<compile_context>
chip_gen: v5e
topology: v5e:2x2
jax: 0.10.0
libtpu: 0.0.40
codegen_flags: <defaults>
</compile_context>

<pallas_src>
import functools

import jax
import jax.numpy as jnp
from jax.experimental import pallas as pl
from jax.experimental.pallas import tpu as pltpu

EPS = 1e-5


def _conv3x3_stats_kernel(x_ref, scale_ref, shift_ref, w_ref,
                          out_ref, ps_ref, xpad,
                          *, H, W, C_in, C_out, apply_bn_relu):
    """One image per grid step: (optional BN+ReLU) -> 3x3 conv -> stats.

    x_ref    : (1, H*W, C_in)  f32   input block (image i, NHWC flattened)
    scale_ref: (1, C_in)       f32   folded BN scale (used when apply_bn_relu)
    shift_ref: (1, C_in)       f32   folded BN shift (used when apply_bn_relu)
    w_ref    : (9, C_in, C_out) bf16 3x3 weights, tap-major (dy*3+dx)
    out_ref  : (1, H*W, C_out) f32   raw conv output (pre-BN) for image i
    ps_ref   : (1, 2, C_out)   f32   per-image [sum, sum(x^2)] of conv output
    xpad     : VMEM (H+2, W+2, C_in) bf16 scratch (zero halo + interior)
    """
    Hp, Wp = H + 2, W + 2

    x = x_ref[0]                                            # (H*W, C_in) f32
    if apply_bn_relu:
        # BN (pre-folded scale/shift) + ReLU on the conv input, in f32.
        x = jnp.maximum(x * scale_ref[...] + shift_ref[...], 0.0)

    # Zero only the 1-pixel halo every step (cheap, and safe when the batch
    # axis is sharded across TensorCores), then write the bf16 interior.
    zrow = jnp.zeros((1, Wp, C_in), jnp.bfloat16)
    zcol = jnp.zeros((Hp, 1, C_in), jnp.bfloat16)
    xpad[0:1, :, :] = zrow
    xpad[Hp - 1:Hp, :, :] = zrow
    xpad[:, 0:1, :] = zcol
    xpad[:, Wp - 1:Wp, :] = zcol
    xpad[1:H + 1, 1:W + 1, :] = x.astype(jnp.bfloat16).reshape(H, W, C_in)

    # 9 shifted bf16 matmuls chained into a single f32 accumulator.
    acc = jnp.zeros((H * W, C_out), jnp.float32)
    for k in range(9):
        dy, dx = k // 3, k % 3
        patch = xpad[dy:dy + H, dx:dx + W, :].reshape(H * W, C_in)
        acc = acc + jnp.dot(patch, w_ref[k],
                            preferred_element_type=jnp.float32)

    out_ref[0] = acc

    # One-pass BN statistics: per-channel sum and sum of squares.
    ps_ref[0, 0:1, :] = jnp.sum(acc, axis=0, keepdims=True)
    ps_ref[0, 1:2, :] = jnp.sum(acc * acc, axis=0, keepdims=True)


def _bn_add_relu_kernel(t_ref, x_ref, scale_ref, shift_ref, out_ref):
    """Final BN (folded scale/shift) + residual add + ReLU, one image per step."""
    z = t_ref[0] * scale_ref[...] + shift_ref[...] + x_ref[0]
    out_ref[0] = jnp.maximum(z, 0.0)


@jax.jit
def basic_block_forward(x_nchw, w1_oihw, g1, b1, w2_oihw, g2, b2):
    """x_nchw: (N, C, H, W) f32; conv weights in PyTorch OIHW layout.

    Returns (N, C, H, W) f32, matching BasicBlock.forward in training mode.
    """
    N, C, H, W = x_nchw.shape
    HW = H * W
    count = N * HW

    # NHWC with flattened spatial dims (row-major NHWC == (N, H*W, C)).
    x = jnp.transpose(x_nchw, (0, 2, 3, 1)).astype(jnp.float32).reshape(N, HW, C)

    def to_taps(w_oihw):
        # (Cout, Cin, 3, 3) -> (3, 3, Cin, Cout) -> (9, Cin, Cout), bf16 for MXU.
        return jnp.transpose(w_oihw, (2, 3, 1, 0)).reshape(9, C, C).astype(jnp.bfloat16)

    w1t, w2t = to_taps(w1_oihw), to_taps(w2_oihw)
    ones = jnp.ones((1, C), jnp.float32)
    zeros = jnp.zeros((1, C), jnp.float32)

    cparams = pltpu.CompilerParams(
        dimension_semantics=("parallel",),          # shard batch on multi-TC chips
        vmem_limit_bytes=32 * 1024 * 1024,          # fits every generation incl. v7x
    )

    def conv_call(inp, scale, shift, w_taps, apply_bn_relu):
        kern = functools.partial(
            _conv3x3_stats_kernel,
            H=H, W=W, C_in=C, C_out=C, apply_bn_relu=apply_bn_relu)
        return pl.pallas_call(
            kern,
            grid=(N,),
            in_specs=[
                pl.BlockSpec((1, HW, C), lambda i: (i, 0, 0)),
                pl.BlockSpec((1, C), lambda i: (0, 0)),
                pl.BlockSpec((1, C), lambda i: (0, 0)),
                pl.BlockSpec((9, C, C), lambda i: (0, 0, 0)),
            ],
            out_specs=(
                pl.BlockSpec((1, HW, C), lambda i: (i, 0, 0)),
                pl.BlockSpec((1, 2, C), lambda i: (i, 0, 0)),
            ),
            out_shape=(
                jax.ShapeDtypeStruct((N, HW, C), jnp.float32),
                jax.ShapeDtypeStruct((N, 2, C), jnp.float32),
            ),
            scratch_shapes=[pltpu.VMEM((H + 2, W + 2, C), jnp.bfloat16)],
            compiler_params=cparams,
        )(inp, scale, shift, w_taps)

    def bn_fold(psums, gamma, beta):
        # psums: (N, 2, C) per-image [sum, sum(x^2)] -> folded scale/shift.
        tot = jnp.sum(psums, axis=0)                               # (2, C)
        mean = tot[0:1] / count                                    # (1, C)
        var = jnp.maximum(tot[1:2] / count - mean * mean, 0.0)     # biased var
        scale = gamma.reshape(1, C) * jax.lax.rsqrt(var + EPS)
        shift = beta.reshape(1, C) - mean * scale
        return scale, shift

    # Pass 1: conv1 + BN1 partial stats.
    t1, ps1 = conv_call(x, ones, zeros, w1t, apply_bn_relu=False)
    scale1, shift1 = bn_fold(ps1, g1, b1)

    # Pass 2: bn1 + relu + conv2 + BN2 partial stats.
    t2, ps2 = conv_call(t1, scale1, shift1, w2t, apply_bn_relu=True)
    scale2, shift2 = bn_fold(ps2, g2, b2)

    # Pass 3: bn2 + residual add + relu.
    out = pl.pallas_call(
        _bn_add_relu_kernel,
        grid=(N,),
        in_specs=[
            pl.BlockSpec((1, HW, C), lambda i: (i, 0, 0)),
            pl.BlockSpec((1, HW, C), lambda i: (i, 0, 0)),
            pl.BlockSpec((1, C), lambda i: (0, 0)),
            pl.BlockSpec((1, C), lambda i: (0, 0)),
        ],
        out_specs=pl.BlockSpec((1, HW, C), lambda i: (i, 0, 0)),
        out_shape=jax.ShapeDtypeStruct((N, HW, C), jnp.float32),
        compiler_params=cparams,
    )(t2, x, scale2, shift2)

    return jnp.transpose(out.reshape(N, H, W, C), (0, 3, 1, 2))


# ------------------------- pure-JAX reference -------------------------
def _reference(x_nchw, w1_oihw, g1, b1, w2_oihw, g2, b2):
    x = jnp.transpose(x_nchw, (0, 2, 3, 1)).astype(jnp.float32)
    C = x.shape[-1]

    def conv3x3(h, w_oihw):
        w = jnp.transpose(w_oihw, (2, 3, 1, 0))   # HWIO
        return jax.lax.conv_general_dilated(
            h, w, window_strides=(1, 1), padding=((1, 1), (1, 1)),
            dimension_numbers=("NHWC", "HWIO", "NHWC"),
            precision=jax.lax.Precision.HIGHEST)

    def bn_train(h, g, b):
        m = jnp.mean(h, axis=(0, 1, 2), keepdims=True)
        v = jnp.mean((h - m) ** 2, axis=(0, 1, 2), keepdims=True)
        return ((h - m) * jax.lax.rsqrt(v + EPS) * g.reshape(1, 1, 1, C)
                + b.reshape(1, 1, 1, C))

    out = jnp.maximum(bn_train(conv3x3(x, w1_oihw), g1, b1), 0.0)
    out = bn_train(conv3x3(out, w2_oihw), g2, b2)
    out = jnp.maximum(out + x, 0.0)
    return jnp.transpose(out, (0, 3, 1, 2))


if __name__ == "__main__":
    # Small shapes consistent with the module defaults (stride=1, no downsample
    # => in_channels == out_channels).
    N, C, H, W = 2, 4, 16, 16

    key = jax.random.PRNGKey(0)
    kx, kw1, kw2 = jax.random.split(key, 3)

    x = jax.random.normal(kx, (N, C, H, W), jnp.float32)

    # Conv weights in PyTorch OIHW layout; BN affine per __init__: gamma=1, beta=0.
    w1 = 0.1 * jax.random.normal(kw1, (C, C, 3, 3), jnp.float32)
    w2 = 0.1 * jax.random.normal(kw2, (C, C, 3, 3), jnp.float32)
    g1 = jnp.ones((C,), jnp.float32)
    b1 = jnp.zeros((C,), jnp.float32)
    g2 = jnp.ones((C,), jnp.float32)
    b2 = jnp.zeros((C,), jnp.float32)

    out = jax.block_until_ready(basic_block_forward(x, w1, g1, b1, w2, g2, b2))
    ref = jax.block_until_ready(_reference(x, w1, g1, b1, w2, g2, b2))

    assert out.shape == (N, C, H, W)
    max_err = float(jnp.max(jnp.abs(out - ref)))
    # bf16 MXU operands with f32 accumulation -> bf16-level agreement.
    assert jnp.allclose(out, ref, atol=3e-2, rtol=3e-2), f"max abs err = {max_err}"

    print("KERNEL_OK")
</pallas_src>

<mosaic_0001>
module attributes {stable_mosaic.version = 11 : i64} {
  func.func @_conv3x3_stats_kernel(%arg0: i32, %arg1: memref<1x256x4xf32, #tpu.memory_space<vmem>>, %arg2: memref<1x4xf32, #tpu.memory_space<vmem>>, %arg3: memref<1x4xf32, #tpu.memory_space<vmem>>, %arg4: memref<9x4x4xbf16, #tpu.memory_space<vmem>>, %arg5: memref<1x256x4xf32, #tpu.memory_space<vmem>>, %arg6: memref<1x2x4xf32, #tpu.memory_space<vmem>>, %arg7: memref<18x18x4xbf16, #tpu.memory_space<vmem>>) attributes {dimension_semantics = [#tpu.dimension_semantics<parallel>], iteration_bounds = array<i64: 2>, scalar_prefetch = 0 : i64, scratch_operands = 1 : i64, tpu.core_type = #tpu.core_type<tc>, window_params = [{transform_indices = @transform_0, window_bounds = array<i64: 1, 256, 4>}, {pipeline_mode = #tpu.pipeline_mode<synchronous>, transform_indices = @transform_1, window_bounds = array<i64: 1, 4>}, {pipeline_mode = #tpu.pipeline_mode<synchronous>, transform_indices = @transform_2, window_bounds = array<i64: 1, 4>}, {pipeline_mode = #tpu.pipeline_mode<synchronous>, transform_indices = @transform_3, window_bounds = array<i64: 9, 4, 4>}, {transform_indices = @transform_4, window_bounds = array<i64: 1, 256, 4>}, {transform_indices = @transform_5, window_bounds = array<i64: 1, 2, 4>}]} {
    %c0 = arith.constant 0 : index
    %c0_0 = arith.constant 0 : index
    %c0_1 = arith.constant 0 : index
    %0 = vector.load %arg1[%c0, %c0_0, %c0_1] : memref<1x256x4xf32, #tpu.memory_space<vmem>>, vector<1x256x4xf32>
    %1 = vector.shape_cast %0 : vector<1x256x4xf32> to vector<256x4xf32>
    %cst = arith.constant 0.000000e+00 : bf16
    %2 = vector.broadcast %cst : bf16 to vector<1x18x4xbf16>
    %cst_2 = arith.constant 0.000000e+00 : bf16
    %3 = vector.broadcast %cst_2 : bf16 to vector<18x1x4xbf16>
    %c0_3 = arith.constant 0 : index
    %c0_4 = arith.constant 0 : index
    %c0_5 = arith.constant 0 : index
    %4 = vector.load %arg7[%c0_3, %c0_4, %c0_5] : memref<18x18x4xbf16, #tpu.memory_space<vmem>>, vector<1x18x4xbf16>
    tpu.vector_store %arg7[%c0_3, %c0_4, %c0_5], %2 {strides = array<i32>} : memref<18x18x4xbf16, #tpu.memory_space<vmem>>, vector<1x18x4xbf16>,
    %c17 = arith.constant 17 : index
    %c0_6 = arith.constant 0 : index
    %c0_7 = arith.constant 0 : index
    %5 = vector.load %arg7[%c17, %c0_6, %c0_7] : memref<18x18x4xbf16, #tpu.memory_space<vmem>>, vector<1x18x4xbf16>
    tpu.vector_store %arg7[%c17, %c0_6, %c0_7], %2 {strides = array<i32>} : memref<18x18x4xbf16, #tpu.memory_space<vmem>>, vector<1x18x4xbf16>,
    %c0_8 = arith.constant 0 : index
    %c0_9 = arith.constant 0 : index
    %c0_10 = arith.constant 0 : index
    %6 = vector.load %arg7[%c0_8, %c0_9, %c0_10] : memref<18x18x4xbf16, #tpu.memory_space<vmem>>, vector<18x1x4xbf16>
    tpu.vector_store %arg7[%c0_8, %c0_9, %c0_10], %3 {strides = array<i32>} : memref<18x18x4xbf16, #tpu.memory_space<vmem>>, vector<18x1x4xbf16>,
    %c0_11 = arith.constant 0 : index
    %c17_12 = arith.constant 17 : index
    %c0_13 = arith.constant 0 : index
    %7 = vector.load %arg7[%c0_11, %c17_12, %c0_13] : memref<18x18x4xbf16, #tpu.memory_space<vmem>>, vector<18x1x4xbf16>
    tpu.vector_store %arg7[%c0_11, %c17_12, %c0_13], %3 {strides = array<i32>} : memref<18x18x4xbf16, #tpu.memory_space<vmem>>, vector<18x1x4xbf16>,
    %8 = arith.truncf %1 : vector<256x4xf32> to vector<256x4xbf16>
    %9 = vector.shape_cast %8 : vector<256x4xbf16> to vector<16x16x4xbf16>
    %c1 = arith.constant 1 : index
    %c1_14 = arith.constant 1 : index
    %c0_15 = arith.constant 0 : index
    %10 = vector.load %arg7[%c1, %c1_14, %c0_15] : memref<18x18x4xbf16, #tpu.memory_space<vmem>>, vector<16x16x4xbf16>
    tpu.vector_store %arg7[%c1, %c1_14, %c0_15], %9 {strides = array<i32>} : memref<18x18x4xbf16, #tpu.memory_space<vmem>>, vector<16x16x4xbf16>,
    %cst_16 = arith.constant 0.000000e+00 : f32
    %11 = vector.broadcast %cst_16 : f32 to vector<256x4xf32>
    %c0_17 = arith.constant 0 : index
    %c0_18 = arith.constant 0 : index
    %c0_19 = arith.constant 0 : index
    %12 = vector.load %arg7[%c0_17, %c0_18, %c0_19] : memref<18x18x4xbf16, #tpu.memory_space<vmem>>, vector<16x16x4xbf16>
    %13 = vector.shape_cast %12 : vector<16x16x4xbf16> to vector<256x4xbf16>
    %c0_20 = arith.constant 0 : index
    %c0_21 = arith.constant 0 : index
    %c0_22 = arith.constant 0 : index
    %14 = vector.load %arg4[%c0_20, %c0_21, %c0_22] : memref<9x4x4xbf16, #tpu.memory_space<vmem>>, vector<1x4x4xbf16>
    %15 = vector.shape_cast %14 : vector<1x4x4xbf16> to vector<4x4xbf16>
    %cst_23 = arith.constant dense<0.000000e+00> : vector<256x4xf32>
    %16 = tpu.matmul %13, %15, %cst_23 {dimension_numbers = #tpu.dot_dimension_numbers<[1], [0], [0], [1], [0, 0, 1, 1], [], []>} : vector<256x4xbf16>, vector<4x4xbf16>, vector<256x4xf32> -> vector<256x4xf32>
    %17 = arith.addf %11, %16 : vector<256x4xf32>
    %c0_24 = arith.constant 0 : index
    %c1_25 = arith.constant 1 : index
    %c0_26 = arith.constant 0 : index
    %18 = vector.load %arg7[%c0_24, %c1_25, %c0_26] : memref<18x18x4xbf16, #tpu.memory_space<vmem>>, vector<16x16x4xbf16>
    %19 = vector.shape_cast %18 : vector<16x16x4xbf16> to vector<256x4xbf16>
    %c1_27 = arith.constant 1 : index
    %c0_28 = arith.constant 0 : index
    %c0_29 = arith.constant 0 : index
    %20 = vector.load %arg4[%c1_27, %c0_28, %c0_29] : memref<9x4x4xbf16, #tpu.memory_space<vmem>>, vector<1x4x4xbf16>
    %21 = vector.shape_cast %20 : vector<1x4x4xbf16> to vector<4x4xbf16>
    %cst_30 = arith.constant dense<0.000000e+00> : vector<256x4xf32>
    %22 = tpu.matmul %19, %21, %cst_30 {dimension_numbers = #tpu.dot_dimension_numbers<[1], [0], [0], [1], [0, 0, 1, 1], [], []>} : vector<256x4xbf16>, vector<4x4xbf16>, vector<256x4xf32> -> vector<256x4xf32>
    %23 = arith.addf %17, %22 : vector<256x4xf32>
    %c0_31 = arith.constant 0 : index
    %c2 = arith.constant 2 : index
    %c0_32 = arith.constant 0 : index
    %24 = vector.load %arg7[%c0_31, %c2, %c0_32] : memref<18x18x4xbf16, #tpu.memory_space<vmem>>, vector<16x16x4xbf16>
    %25 = vector.shape_cast %24 : vector<16x16x4xbf16> to vector<256x4xbf16>
    %c2_33 = arith.constant 2 : index
    %c0_34 = arith.constant 0 : index
    %c0_35 = arith.constant 0 : index
    %26 = vector.load %arg4[%c2_33, %c0_34, %c0_35] : memref<9x4x4xbf16, #tpu.memory_space<vmem>>, vector<1x4x4xbf16>
    %27 = vector.shape_cast %26 : vector<1x4x4xbf16> to vector<4x4xbf16>
    %cst_36 = arith.constant dense<0.000000e+00> : vector<256x4xf32>
    %28 = tpu.matmul %25, %27, %cst_36 {dimension_numbers = #tpu.dot_dimension_numbers<[1], [0], [0], [1], [0, 0, 1, 1], [], []>} : vector<256x4xbf16>, vector<4x4xbf16>, vector<256x4xf32> -> vector<256x4xf32>
    %29 = arith.addf %23, %28 : vector<256x4xf32>
    %c1_37 = arith.constant 1 : index
    %c0_38 = arith.constant 0 : index
    %c0_39 = arith.constant 0 : index
    %30 = vector.load %arg7[%c1_37, %c0_38, %c0_39] : memref<18x18x4xbf16, #tpu.memory_space<vmem>>, vector<16x16x4xbf16>
    %31 = vector.shape_cast %30 : vector<16x16x4xbf16> to vector<256x4xbf16>
    %c3 = arith.constant 3 : index
    %c0_40 = arith.constant 0 : index
    %c0_41 = arith.constant 0 : index
    %32 = vector.load %arg4[%c3, %c0_40, %c0_41] : memref<9x4x4xbf16, #tpu.memory_space<vmem>>, vector<1x4x4xbf16>
    %33 = vector.shape_cast %32 : vector<1x4x4xbf16> to vector<4x4xbf16>
    %cst_42 = arith.constant dense<0.000000e+00> : vector<256x4xf32>
    %34 = tpu.matmul %31, %33, %cst_42 {dimension_numbers = #tpu.dot_dimension_numbers<[1], [0], [0], [1], [0, 0, 1, 1], [], []>} : vector<256x4xbf16>, vector<4x4xbf16>, vector<256x4xf32> -> vector<256x4xf32>
    %35 = arith.addf %29, %34 : vector<256x4xf32>
    %c1_43 = arith.constant 1 : index
    %c1_44 = arith.constant 1 : index
    %c0_45 = arith.constant 0 : index
    %36 = vector.load %arg7[%c1_43, %c1_44, %c0_45] : memref<18x18x4xbf16, #tpu.memory_space<vmem>>, vector<16x16x4xbf16>
    %37 = vector.shape_cast %36 : vector<16x16x4xbf16> to vector<256x4xbf16>
    %c4 = arith.constant 4 : index
    %c0_46 = arith.constant 0 : index
    %c0_47 = arith.constant 0 : index
    %38 = vector.load %arg4[%c4, %c0_46, %c0_47] : memref<9x4x4xbf16, #tpu.memory_space<vmem>>, vector<1x4x4xbf16>
    %39 = vector.shape_cast %38 : vector<1x4x4xbf16> to vector<4x4xbf16>
    %cst_48 = arith.constant dense<0.000000e+00> : vector<256x4xf32>
    %40 = tpu.matmul %37, %39, %cst_48 {dimension_numbers = #tpu.dot_dimension_numbers<[1], [0], [0], [1], [0, 0, 1, 1], [], []>} : vector<256x4xbf16>, vector<4x4xbf16>, vector<256x4xf32> -> vector<256x4xf32>
    %41 = arith.addf %35, %40 : vector<256x4xf32>
    %c1_49 = arith.constant 1 : index
    %c2_50 = arith.constant 2 : index
    %c0_51 = arith.constant 0 : index
    %42 = vector.load %arg7[%c1_49, %c2_50, %c0_51] : memref<18x18x4xbf16, #tpu.memory_space<vmem>>, vector<16x16x4xbf16>
    %43 = vector.shape_cast %42 : vector<16x16x4xbf16> to vector<256x4xbf16>
    %c5 = arith.constant 5 : index
    %c0_52 = arith.constant 0 : index
    %c0_53 = arith.constant 0 : index
    %44 = vector.load %arg4[%c5, %c0_52, %c0_53] : memref<9x4x4xbf16, #tpu.memory_space<vmem>>, vector<1x4x4xbf16>
    %45 = vector.shape_cast %44 : vector<1x4x4xbf16> to vector<4x4xbf16>
    %cst_54 = arith.constant dense<0.000000e+00> : vector<256x4xf32>
    %46 = tpu.matmul %43, %45, %cst_54 {dimension_numbers = #tpu.dot_dimension_numbers<[1], [0], [0], [1], [0, 0, 1, 1], [], []>} : vector<256x4xbf16>, vector<4x4xbf16>, vector<256x4xf32> -> vector<256x4xf32>
    %47 = arith.addf %41, %46 : vector<256x4xf32>
    %c2_55 = arith.constant 2 : index
    %c0_56 = arith.constant 0 : index
    %c0_57 = arith.constant 0 : index
    %48 = vector.load %arg7[%c2_55, %c0_56, %c0_57] : memref<18x18x4xbf16, #tpu.memory_space<vmem>>, vector<16x16x4xbf16>
    %49 = vector.shape_cast %48 : vector<16x16x4xbf16> to vector<256x4xbf16>
    %c6 = arith.constant 6 : index
    %c0_58 = arith.constant 0 : index
    %c0_59 = arith.constant 0 : index
    %50 = vector.load %arg4[%c6, %c0_58, %c0_59] : memref<9x4x4xbf16, #tpu.memory_space<vmem>>, vector<1x4x4xbf16>
    %51 = vector.shape_cast %50 : vector<1x4x4xbf16> to vector<4x4xbf16>
    %cst_60 = arith.constant dense<0.000000e+00> : vector<256x4xf32>
    %52 = tpu.matmul %49, %51, %cst_60 {dimension_numbers = #tpu.dot_dimension_numbers<[1], [0], [0], [1], [0, 0, 1, 1], [], []>} : vector<256x4xbf16>, vector<4x4xbf16>, vector<256x4xf32> -> vector<256x4xf32>
    %53 = arith.addf %47, %52 : vector<256x4xf32>
    %c2_61 = arith.constant 2 : index
    %c1_62 = arith.constant 1 : index
    %c0_63 = arith.constant 0 : index
    %54 = vector.load %arg7[%c2_61, %c1_62, %c0_63] : memref<18x18x4xbf16, #tpu.memory_space<vmem>>, vector<16x16x4xbf16>
    %55 = vector.shape_cast %54 : vector<16x16x4xbf16> to vector<256x4xbf16>
    %c7 = arith.constant 7 : index
    %c0_64 = arith.constant 0 : index
    %c0_65 = arith.constant 0 : index
    %56 = vector.load %arg4[%c7, %c0_64, %c0_65] : memref<9x4x4xbf16, #tpu.memory_space<vmem>>, vector<1x4x4xbf16>
    %57 = vector.shape_cast %56 : vector<1x4x4xbf16> to vector<4x4xbf16>
    %cst_66 = arith.constant dense<0.000000e+00> : vector<256x4xf32>
    %58 = tpu.matmul %55, %57, %cst_66 {dimension_numbers = #tpu.dot_dimension_numbers<[1], [0], [0], [1], [0, 0, 1, 1], [], []>} : vector<256x4xbf16>, vector<4x4xbf16>, vector<256x4xf32> -> vector<256x4xf32>
    %59 = arith.addf %53, %58 : vector<256x4xf32>
    %c2_67 = arith.constant 2 : index
    %c2_68 = arith.constant 2 : index
    %c0_69 = arith.constant 0 : index
    %60 = vector.load %arg7[%c2_67, %c2_68, %c0_69] : memref<18x18x4xbf16, #tpu.memory_space<vmem>>, vector<16x16x4xbf16>
    %61 = vector.shape_cast %60 : vector<16x16x4xbf16> to vector<256x4xbf16>
    %c8 = arith.constant 8 : index
    %c0_70 = arith.constant 0 : index
    %c0_71 = arith.constant 0 : index
    %62 = vector.load %arg4[%c8, %c0_70, %c0_71] : memref<9x4x4xbf16, #tpu.memory_space<vmem>>, vector<1x4x4xbf16>
    %63 = vector.shape_cast %62 : vector<1x4x4xbf16> to vector<4x4xbf16>
    %cst_72 = arith.constant dense<0.000000e+00> : vector<256x4xf32>
    %64 = tpu.matmul %61, %63, %cst_72 {dimension_numbers = #tpu.dot_dimension_numbers<[1], [0], [0], [1], [0, 0, 1, 1], [], []>} : vector<256x4xbf16>, vector<4x4xbf16>, vector<256x4xf32> -> vector<256x4xf32>
    %65 = arith.addf %59, %64 : vector<256x4xf32>
    %c0_73 = arith.constant 0 : index
    %c0_74 = arith.constant 0 : index
    %c0_75 = arith.constant 0 : index
    %66 = vector.load %arg5[%c0_73, %c0_74, %c0_75] : memref<1x256x4xf32, #tpu.memory_space<vmem>>, vector<1x256x4xf32>
    %67 = vector.shape_cast %66 : vector<1x256x4xf32> to vector<256x4xf32>
    %68 = vector.shape_cast %65 : vector<256x4xf32> to vector<1x256x4xf32>
    tpu.vector_store %arg5[%c0_73, %c0_74, %c0_75], %68 {strides = array<i32>} : memref<1x256x4xf32, #tpu.memory_space<vmem>>, vector<1x256x4xf32>,
    %cst_76 = arith.constant dense<0.000000e+00> : vector<4xf32>
    %69 = vector.multi_reduction <add>, %65, %cst_76 [0] : vector<256x4xf32> to vector<4xf32>
    %70 = vector.shape_cast %69 : vector<4xf32> to vector<1x4xf32>
    %c0_77 = arith.constant 0 : index
    %c0_78 = arith.constant 0 : index
    %c0_79 = arith.constant 0 : index
    %71 = vector.load %arg6[%c0_77, %c0_78, %c0_79] : memref<1x2x4xf32, #tpu.memory_space<vmem>>, vector<1x1x4xf32>
    %72 = vector.shape_cast %71 : vector<1x1x4xf32> to vector<1x4xf32>
    %73 = vector.shape_cast %70 : vector<1x4xf32> to vector<1x1x4xf32>
    tpu.vector_store %arg6[%c0_77, %c0_78, %c0_79], %73 {strides = array<i32>} : memref<1x2x4xf32, #tpu.memory_space<vmem>>, vector<1x1x4xf32>,
    %74 = arith.mulf %65, %65 : vector<256x4xf32>
    %cst_80 = arith.constant dense<0.000000e+00> : vector<4xf32>
    %75 = vector.multi_reduction <add>, %74, %cst_80 [0] : vector<256x4xf32> to vector<4xf32>
    %76 = vector.shape_cast %75 : vector<4xf32> to vector<1x4xf32>
    %c0_81 = arith.constant 0 : index
    %c1_82 = arith.constant 1 : index
    %c0_83 = arith.constant 0 : index
    %77 = vector.load %arg6[%c0_81, %c1_82, %c0_83] : memref<1x2x4xf32, #tpu.memory_space<vmem>>, vector<1x1x4xf32>
    %78 = vector.shape_cast %77 : vector<1x1x4xf32> to vector<1x4xf32>
    %79 = vector.shape_cast %76 : vector<1x4xf32> to vector<1x1x4xf32>
    tpu.vector_store %arg6[%c0_81, %c1_82, %c0_83], %79 {strides = array<i32>} : memref<1x2x4xf32, #tpu.memory_space<vmem>>, vector<1x1x4xf32>,
    return
  }
  func.func @transform_0(%arg0: i32) -> (i32, i32, i32) {
    %c0_i32 = arith.constant 0 : i32
    %c0_i32_0 = arith.constant 0 : i32
    %c0_i32_1 = arith.constant 0 : i32
    return %arg0, %c0_i32, %c0_i32_0 : i32, i32, i32
  }
  func.func @transform_1(%arg0: i32) -> (i32, i32) {
    %c0_i32 = arith.constant 0 : i32
    %c0_i32_0 = arith.constant 0 : i32
    %c0_i32_1 = arith.constant 0 : i32
    return %c0_i32, %c0_i32_0 : i32, i32
  }
  func.func @transform_2(%arg0: i32) -> (i32, i32) {
    %c0_i32 = arith.constant 0 : i32
    %c0_i32_0 = arith.constant 0 : i32
    %c0_i32_1 = arith.constant 0 : i32
    return %c0_i32, %c0_i32_0 : i32, i32
  }
  func.func @transform_3(%arg0: i32) -> (i32, i32, i32) {
    %c0_i32 = arith.constant 0 : i32
    %c0_i32_0 = arith.constant 0 : i32
    %c0_i32_1 = arith.constant 0 : i32
    %c0_i32_2 = arith.constant 0 : i32
    return %c0_i32, %c0_i32_0, %c0_i32_1 : i32, i32, i32
  }
  func.func @transform_4(%arg0: i32) -> (i32, i32, i32) {
    %c0_i32 = arith.constant 0 : i32
    %c0_i32_0 = arith.constant 0 : i32
    %c0_i32_1 = arith.constant 0 : i32
    return %arg0, %c0_i32, %c0_i32_0 : i32, i32, i32
  }
  func.func @transform_5(%arg0: i32) -> (i32, i32, i32) {
    %c0_i32 = arith.constant 0 : i32
    %c0_i32_0 = arith.constant 0 : i32
    %c0_i32_1 = arith.constant 0 : i32
    return %arg0, %c0_i32, %c0_i32_0 : i32, i32, i32
  }
}

module attributes {stable_mosaic.version = 11 : i64} {
  func.func @_bn_add_relu_kernel(%arg0: i32, %arg1: memref<1x256x4xf32, #tpu.memory_space<vmem>>, %arg2: memref<1x256x4xf32, #tpu.memory_space<vmem>>, %arg3: memref<1x4xf32, #tpu.memory_space<vmem>>, %arg4: memref<1x4xf32, #tpu.memory_space<vmem>>, %arg5: memref<1x256x4xf32, #tpu.memory_space<vmem>>) attributes {dimension_semantics = [#tpu.dimension_semantics<parallel>], iteration_bounds = array<i64: 2>, scalar_prefetch = 0 : i64, scratch_operands = 0 : i64, tpu.core_type = #tpu.core_type<tc>, window_params = [{transform_indices = @transform_0, window_bounds = array<i64: 1, 256, 4>}, {transform_indices = @transform_1, window_bounds = array<i64: 1, 256, 4>}, {pipeline_mode = #tpu.pipeline_mode<synchronous>, transform_indices = @transform_2, window_bounds = array<i64: 1, 4>}, {pipeline_mode = #tpu.pipeline_mode<synchronous>, transform_indices = @transform_3, window_bounds = array<i64: 1, 4>}, {transform_indices = @transform_4, window_bounds = array<i64: 1, 256, 4>}]} {
    %c0 = arith.constant 0 : index
    %c0_0 = arith.constant 0 : index
    %c0_1 = arith.constant 0 : index
    %0 = vector.load %arg1[%c0, %c0_0, %c0_1] : memref<1x256x4xf32, #tpu.memory_space<vmem>>, vector<1x256x4xf32>
    %1 = vector.shape_cast %0 : vector<1x256x4xf32> to vector<256x4xf32>
    %c0_2 = arith.constant 0 : index
    %c0_3 = arith.constant 0 : index
    %2 = vector.load %arg3[%c0_2, %c0_3] : memref<1x4xf32, #tpu.memory_space<vmem>>, vector<1x4xf32>
    %3 = vector.broadcast %2 : vector<1x4xf32> to vector<256x4xf32>
    %4 = arith.mulf %1, %3 : vector<256x4xf32>
    %c0_4 = arith.constant 0 : index
    %c0_5 = arith.constant 0 : index
    %5 = vector.load %arg4[%c0_4, %c0_5] : memref<1x4xf32, #tpu.memory_space<vmem>>, vector<1x4xf32>
    %6 = vector.broadcast %5 : vector<1x4xf32> to vector<256x4xf32>
    %7 = arith.addf %4, %6 : vector<256x4xf32>
    %c0_6 = arith.constant 0 : index
    %c0_7 = arith.constant 0 : index
    %c0_8 = arith.constant 0 : index
    %8 = vector.load %arg2[%c0_6, %c0_7, %c0_8] : memref<1x256x4xf32, #tpu.memory_space<vmem>>, vector<1x256x4xf32>
    %9 = vector.shape_cast %8 : vector<1x256x4xf32> to vector<256x4xf32>
    %10 = arith.addf %7, %9 : vector<256x4xf32>
    %cst = arith.constant 0.000000e+00 : f32
    %11 = vector.broadcast %cst : f32 to vector<256x4xf32>
    %12 = arith.maximumf %10, %11 : vector<256x4xf32>
    %c0_9 = arith.constant 0 : index
    %c0_10 = arith.constant 0 : index
    %c0_11 = arith.constant 0 : index
    %13 = vector.load %arg5[%c0_9, %c0_10, %c0_11] : memref<1x256x4xf32, #tpu.memory_space<vmem>>, vector<1x256x4xf32>
    %14 = vector.shape_cast %13 : vector<1x256x4xf32> to vector<256x4xf32>
    %15 = vector.shape_cast %12 : vector<256x4xf32> to vector<1x256x4xf32>
    tpu.vector_store %arg5[%c0_9, %c0_10, %c0_11], %15 {strides = array<i32>} : memref<1x256x4xf32, #tpu.memory_space<vmem>>, vector<1x256x4xf32>,
    return
  }
  func.func @transform_0(%arg0: i32) -> (i32, i32, i32) {
    %c0_i32 = arith.constant 0 : i32
    %c0_i32_0 = arith.constant 0 : i32
    %c0_i32_1 = arith.constant 0 : i32
    return %arg0, %c0_i32, %c0_i32_0 : i32, i32, i32
  }
  func.func @transform_1(%arg0: i32) -> (i32, i32, i32) {
    %c0_i32 = arith.constant 0 : i32
    %c0_i32_0 = arith.constant 0 : i32
    %c0_i32_1 = arith.constant 0 : i32
    return %arg0, %c0_i32, %c0_i32_0 : i32, i32, i32
  }
  func.func @transform_2(%arg0: i32) -> (i32, i32) {
    %c0_i32 = arith.constant 0 : i32
    %c0_i32_0 = arith.constant 0 : i32
    %c0_i32_1 = arith.constant 0 : i32
    return %c0_i32, %c0_i32_0 : i32, i32
  }
  func.func @transform_3(%arg0: i32) -> (i32, i32) {
    %c0_i32 = arith.constant 0 : i32
    %c0_i32_0 = arith.constant 0 : i32
    %c0_i32_1 = arith.constant 0 : i32
    return %c0_i32, %c0_i32_0 : i32, i32
  }
  func.func @transform_4(%arg0: i32) -> (i32, i32, i32) {
    %c0_i32 = arith.constant 0 : i32
    %c0_i32_0 = arith.constant 0 : i32
    %c0_i32_1 = arith.constant 0 : i32
    return %arg0, %c0_i32, %c0_i32_0 : i32, i32, i32
  }
}

module attributes {stable_mosaic.version = 11 : i64} {
  func.func @_conv3x3_stats_kernel(%arg0: i32, %arg1: memref<1x256x4xf32, #tpu.memory_space<vmem>>, %arg2: memref<1x4xf32, #tpu.memory_space<vmem>>, %arg3: memref<1x4xf32, #tpu.memory_space<vmem>>, %arg4: memref<9x4x4xbf16, #tpu.memory_space<vmem>>, %arg5: memref<1x256x4xf32, #tpu.memory_space<vmem>>, %arg6: memref<1x2x4xf32, #tpu.memory_space<vmem>>, %arg7: memref<18x18x4xbf16, #tpu.memory_space<vmem>>) attributes {dimension_semantics = [#tpu.dimension_semantics<parallel>], iteration_bounds = array<i64: 2>, scalar_prefetch = 0 : i64, scratch_operands = 1 : i64, tpu.core_type = #tpu.core_type<tc>, window_params = [{transform_indices = @transform_0, window_bounds = array<i64: 1, 256, 4>}, {pipeline_mode = #tpu.pipeline_mode<synchronous>, transform_indices = @transform_1, window_bounds = array<i64: 1, 4>}, {pipeline_mode = #tpu.pipeline_mode<synchronous>, transform_indices = @transform_2, window_bounds = array<i64: 1, 4>}, {pipeline_mode = #tpu.pipeline_mode<synchronous>, transform_indices = @transform_3, window_bounds = array<i64: 9, 4, 4>}, {transform_indices = @transform_4, window_bounds = array<i64: 1, 256, 4>}, {transform_indices = @transform_5, window_bounds = array<i64: 1, 2, 4>}]} {
    %c0 = arith.constant 0 : index
    %c0_0 = arith.constant 0 : index
    %c0_1 = arith.constant 0 : index
    %0 = vector.load %arg1[%c0, %c0_0, %c0_1] : memref<1x256x4xf32, #tpu.memory_space<vmem>>, vector<1x256x4xf32>
    %1 = vector.shape_cast %0 : vector<1x256x4xf32> to vector<256x4xf32>
    %c0_2 = arith.constant 0 : index
    %c0_3 = arith.constant 0 : index
    %2 = vector.load %arg2[%c0_2, %c0_3] : memref<1x4xf32, #tpu.memory_space<vmem>>, vector<1x4xf32>
    %3 = vector.broadcast %2 : vector<1x4xf32> to vector<256x4xf32>
    %4 = arith.mulf %1, %3 : vector<256x4xf32>
    %c0_4 = arith.constant 0 : index
    %c0_5 = arith.constant 0 : index
    %5 = vector.load %arg3[%c0_4, %c0_5] : memref<1x4xf32, #tpu.memory_space<vmem>>, vector<1x4xf32>
    %6 = vector.broadcast %5 : vector<1x4xf32> to vector<256x4xf32>
    %7 = arith.addf %4, %6 : vector<256x4xf32>
    %cst = arith.constant 0.000000e+00 : f32
    %8 = vector.broadcast %cst : f32 to vector<256x4xf32>
    %9 = arith.maximumf %7, %8 : vector<256x4xf32>
    %cst_6 = arith.constant 0.000000e+00 : bf16
    %10 = vector.broadcast %cst_6 : bf16 to vector<1x18x4xbf16>
    %cst_7 = arith.constant 0.000000e+00 : bf16
    %11 = vector.broadcast %cst_7 : bf16 to vector<18x1x4xbf16>
    %c0_8 = arith.constant 0 : index
    %c0_9 = arith.constant 0 : index
    %c0_10 = arith.constant 0 : index
    %12 = vector.load %arg7[%c0_8, %c0_9, %c0_10] : memref<18x18x4xbf16, #tpu.memory_space<vmem>>, vector<1x18x4xbf16>
    tpu.vector_store %arg7[%c0_8, %c0_9, %c0_10], %10 {strides = array<i32>} : memref<18x18x4xbf16, #tpu.memory_space<vmem>>, vector<1x18x4xbf16>,
    %c17 = arith.constant 17 : index
    %c0_11 = arith.constant 0 : index
    %c0_12 = arith.constant 0 : index
    %13 = vector.load %arg7[%c17, %c0_11, %c0_12] : memref<18x18x4xbf16, #tpu.memory_space<vmem>>, vector<1x18x4xbf16>
    tpu.vector_store %arg7[%c17, %c0_11, %c0_12], %10 {strides = array<i32>} : memref<18x18x4xbf16, #tpu.memory_space<vmem>>, vector<1x18x4xbf16>,
    %c0_13 = arith.constant 0 : index
    %c0_14 = arith.constant 0 : index
    %c0_15 = arith.constant 0 : index
    %14 = vector.load %arg7[%c0_13, %c0_14, %c0_15] : memref<18x18x4xbf16, #tpu.memory_space<vmem>>, vector<18x1x4xbf16>
    tpu.vector_store %arg7[%c0_13, %c0_14, %c0_15], %11 {strides = array<i32>} : memref<18x18x4xbf16, #tpu.memory_space<vmem>>, vector<18x1x4xbf16>,
    %c0_16 = arith.constant 0 : index
    %c17_17 = arith.constant 17 : index
    %c0_18 = arith.constant 0 : index
    %15 = vector.load %arg7[%c0_16, %c17_17, %c0_18] : memref<18x18x4xbf16, #tpu.memory_space<vmem>>, vector<18x1x4xbf16>
    tpu.vector_store %arg7[%c0_16, %c17_17, %c0_18], %11 {strides = array<i32>} : memref<18x18x4xbf16, #tpu.memory_space<vmem>>, vector<18x1x4xbf16>,
    %16 = arith.truncf %9 : vector<256x4xf32> to vector<256x4xbf16>
    %17 = vector.shape_cast %16 : vector<256x4xbf16> to vector<16x16x4xbf16>
    %c1 = arith.constant 1 : index
    %c1_19 = arith.constant 1 : index
    %c0_20 = arith.constant 0 : index
    %18 = vector.load %arg7[%c1, %c1_19, %c0_20] : memref<18x18x4xbf16, #tpu.memory_space<vmem>>, vector<16x16x4xbf16>
    tpu.vector_store %arg7[%c1, %c1_19, %c0_20], %17 {strides = array<i32>} : memref<18x18x4xbf16, #tpu.memory_space<vmem>>, vector<16x16x4xbf16>,
    %cst_21 = arith.constant 0.000000e+00 : f32
    %19 = vector.broadcast %cst_21 : f32 to vector<256x4xf32>
    %c0_22 = arith.constant 0 : index
    %c0_23 = arith.constant 0 : index
    %c0_24 = arith.constant 0 : index
    %20 = vector.load %arg7[%c0_22, %c0_23, %c0_24] : memref<18x18x4xbf16, #tpu.memory_space<vmem>>, vector<16x16x4xbf16>
    %21 = vector.shape_cast %20 : vector<16x16x4xbf16> to vector<256x4xbf16>
    %c0_25 = arith.constant 0 : index
    %c0_26 = arith.constant 0 : index
    %c0_27 = arith.constant 0 : index
    %22 = vector.load %arg4[%c0_25, %c0_26, %c0_27] : memref<9x4x4xbf16, #tpu.memory_space<vmem>>, vector<1x4x4xbf16>
    %23 = vector.shape_cast %22 : vector<1x4x4xbf16> to vector<4x4xbf16>
    %cst_28 = arith.constant dense<0.000000e+00> : vector<256x4xf32>
    %24 = tpu.matmul %21, %23, %cst_28 {dimension_numbers = #tpu.dot_dimension_numbers<[1], [0], [0], [1], [0, 0, 1, 1], [], []>} : vector<256x4xbf16>, vector<4x4xbf16>, vector<256x4xf32> -> vector<256x4xf32>
    %25 = arith.addf %19, %24 : vector<256x4xf32>
    %c0_29 = arith.constant 0 : index
    %c1_30 = arith.constant 1 : index
    %c0_31 = arith.constant 0 : index
    %26 = vector.load %arg7[%c0_29, %c1_30, %c0_31] : memref<18x18x4xbf16, #tpu.memory_space<vmem>>, vector<16x16x4xbf16>
    %27 = vector.shape_cast %26 : vector<16x16x4xbf16> to vector<256x4xbf16>
    %c1_32 = arith.constant 1 : index
    %c0_33 = arith.constant 0 : index
    %c0_34 = arith.constant 0 : index
    %28 = vector.load %arg4[%c1_32, %c0_33, %c0_34] : memref<9x4x4xbf16, #tpu.memory_space<vmem>>, vector<1x4x4xbf16>
    %29 = vector.shape_cast %28 : vector<1x4x4xbf16> to vector<4x4xbf16>
    %cst_35 = arith.constant dense<0.000000e+00> : vector<256x4xf32>
    %30 = tpu.matmul %27, %29, %cst_35 {dimension_numbers = #tpu.dot_dimension_numbers<[1], [0], [0], [1], [0, 0, 1, 1], [], []>} : vector<256x4xbf16>, vector<4x4xbf16>, vector<256x4xf32> -> vector<256x4xf32>
    %31 = arith.addf %25, %30 : vector<256x4xf32>
    %c0_36 = arith.constant 0 : index
    %c2 = arith.constant 2 : index
    %c0_37 = arith.constant 0 : index
    %32 = vector.load %arg7[%c0_36, %c2, %c0_37] : memref<18x18x4xbf16, #tpu.memory_space<vmem>>, vector<16x16x4xbf16>
    %33 = vector.shape_cast %32 : vector<16x16x4xbf16> to vector<256x4xbf16>
    %c2_38 = arith.constant 2 : index
    %c0_39 = arith.constant 0 : index
    %c0_40 = arith.constant 0 : index
    %34 = vector.load %arg4[%c2_38, %c0_39, %c0_40] : memref<9x4x4xbf16, #tpu.memory_space<vmem>>, vector<1x4x4xbf16>
    %35 = vector.shape_cast %34 : vector<1x4x4xbf16> to vector<4x4xbf16>
    %cst_41 = arith.constant dense<0.000000e+00> : vector<256x4xf32>
    %36 = tpu.matmul %33, %35, %cst_41 {dimension_numbers = #tpu.dot_dimension_numbers<[1], [0], [0], [1], [0, 0, 1, 1], [], []>} : vector<256x4xbf16>, vector<4x4xbf16>, vector<256x4xf32> -> vector<256x4xf32>
    %37 = arith.addf %31, %36 : vector<256x4xf32>
    %c1_42 = arith.constant 1 : index
    %c0_43 = arith.constant 0 : index
    %c0_44 = arith.constant 0 : index
    %38 = vector.load %arg7[%c1_42, %c0_43, %c0_44] : memref<18x18x4xbf16, #tpu.memory_space<vmem>>, vector<16x16x4xbf16>
    %39 = vector.shape_cast %38 : vector<16x16x4xbf16> to vector<256x4xbf16>
    %c3 = arith.constant 3 : index
    %c0_45 = arith.constant 0 : index
    %c0_46 = arith.constant 0 : index
    %40 = vector.load %arg4[%c3, %c0_45, %c0_46] : memref<9x4x4xbf16, #tpu.memory_space<vmem>>, vector<1x4x4xbf16>
    %41 = vector.shape_cast %40 : vector<1x4x4xbf16> to vector<4x4xbf16>
    %cst_47 = arith.constant dense<0.000000e+00> : vector<256x4xf32>
    %42 = tpu.matmul %39, %41, %cst_47 {dimension_numbers = #tpu.dot_dimension_numbers<[1], [0], [0], [1], [0, 0, 1, 1], [], []>} : vector<256x4xbf16>, vector<4x4xbf16>, vector<256x4xf32> -> vector<256x4xf32>
    %43 = arith.addf %37, %42 : vector<256x4xf32>
    %c1_48 = arith.constant 1 : index
    %c1_49 = arith.constant 1 : index
    %c0_50 = arith.constant 0 : index
    %44 = vector.load %arg7[%c1_48, %c1_49, %c0_50] : memref<18x18x4xbf16, #tpu.memory_space<vmem>>, vector<16x16x4xbf16>
    %45 = vector.shape_cast %44 : vector<16x16x4xbf16> to vector<256x4xbf16>
    %c4 = arith.constant 4 : index
    %c0_51 = arith.constant 0 : index
    %c0_52 = arith.constant 0 : index
    %46 = vector.load %arg4[%c4, %c0_51, %c0_52] : memref<9x4x4xbf16, #tpu.memory_space<vmem>>, vector<1x4x4xbf16>
    %47 = vector.shape_cast %46 : vector<1x4x4xbf16> to vector<4x4xbf16>
    %cst_53 = arith.constant dense<0.000000e+00> : vector<256x4xf32>
    %48 = tpu.matmul %45, %47, %cst_53 {dimension_numbers = #tpu.dot_dimension_numbers<[1], [0], [0], [1], [0, 0, 1, 1], [], []>} : vector<256x4xbf16>, vector<4x4xbf16>, vector<256x4xf32> -> vector<256x4xf32>
    %49 = arith.addf %43, %48 : vector<256x4xf32>
    %c1_54 = arith.constant 1 : index
    %c2_55 = arith.constant 2 : index
    %c0_56 = arith.constant 0 : index
    %50 = vector.load %arg7[%c1_54, %c2_55, %c0_56] : memref<18x18x4xbf16, #tpu.memory_space<vmem>>, vector<16x16x4xbf16>
    %51 = vector.shape_cast %50 : vector<16x16x4xbf16> to vector<256x4xbf16>
    %c5 = arith.constant 5 : index
    %c0_57 = arith.constant 0 : index
    %c0_58 = arith.constant 0 : index
    %52 = vector.load %arg4[%c5, %c0_57, %c0_58] : memref<9x4x4xbf16, #tpu.memory_space<vmem>>, vector<1x4x4xbf16>
    %53 = vector.shape_cast %52 : vector<1x4x4xbf16> to vector<4x4xbf16>
    %cst_59 = arith.constant dense<0.000000e+00> : vector<256x4xf32>
    %54 = tpu.matmul %51, %53, %cst_59 {dimension_numbers = #tpu.dot_dimension_numbers<[1], [0], [0], [1], [0, 0, 1, 1], [], []>} : vector<256x4xbf16>, vector<4x4xbf16>, vector<256x4xf32> -> vector<256x4xf32>
    %55 = arith.addf %49, %54 : vector<256x4xf32>
    %c2_60 = arith.constant 2 : index
    %c0_61 = arith.constant 0 : index
    %c0_62 = arith.constant 0 : index
    %56 = vector.load %arg7[%c2_60, %c0_61, %c0_62] : memref<18x18x4xbf16, #tpu.memory_space<vmem>>, vector<16x16x4xbf16>
    %57 = vector.shape_cast %56 : vector<16x16x4xbf16> to vector<256x4xbf16>
    %c6 = arith.constant 6 : index
    %c0_63 = arith.constant 0 : index
    %c0_64 = arith.constant 0 : index
    %58 = vector.load %arg4[%c6, %c0_63, %c0_64] : memref<9x4x4xbf16, #tpu.memory_space<vmem>>, vector<1x4x4xbf16>
    %59 = vector.shape_cast %58 : vector<1x4x4xbf16> to vector<4x4xbf16>
    %cst_65 = arith.constant dense<0.000000e+00> : vector<256x4xf32>
    %60 = tpu.matmul %57, %59, %cst_65 {dimension_numbers = #tpu.dot_dimension_numbers<[1], [0], [0], [1], [0, 0, 1, 1], [], []>} : vector<256x4xbf16>, vector<4x4xbf16>, vector<256x4xf32> -> vector<256x4xf32>
    %61 = arith.addf %55, %60 : vector<256x4xf32>
    %c2_66 = arith.constant 2 : index
    %c1_67 = arith.constant 1 : index
    %c0_68 = arith.constant 0 : index
    %62 = vector.load %arg7[%c2_66, %c1_67, %c0_68] : memref<18x18x4xbf16, #tpu.memory_space<vmem>>, vector<16x16x4xbf16>
    %63 = vector.shape_cast %62 : vector<16x16x4xbf16> to vector<256x4xbf16>
    %c7 = arith.constant 7 : index
    %c0_69 = arith.constant 0 : index
    %c0_70 = arith.constant 0 : index
    %64 = vector.load %arg4[%c7, %c0_69, %c0_70] : memref<9x4x4xbf16, #tpu.memory_space<vmem>>, vector<1x4x4xbf16>
    %65 = vector.shape_cast %64 : vector<1x4x4xbf16> to vector<4x4xbf16>
    %cst_71 = arith.constant dense<0.000000e+00> : vector<256x4xf32>
    %66 = tpu.matmul %63, %65, %cst_71 {dimension_numbers = #tpu.dot_dimension_numbers<[1], [0], [0], [1], [0, 0, 1, 1], [], []>} : vector<256x4xbf16>, vector<4x4xbf16>, vector<256x4xf32> -> vector<256x4xf32>
    %67 = arith.addf %61, %66 : vector<256x4xf32>
    %c2_72 = arith.constant 2 : index
    %c2_73 = arith.constant 2 : index
    %c0_74 = arith.constant 0 : index
    %68 = vector.load %arg7[%c2_72, %c2_73, %c0_74] : memref<18x18x4xbf16, #tpu.memory_space<vmem>>, vector<16x16x4xbf16>
    %69 = vector.shape_cast %68 : vector<16x16x4xbf16> to vector<256x4xbf16>
    %c8 = arith.constant 8 : index
    %c0_75 = arith.constant 0 : index
    %c0_76 = arith.constant 0 : index
    %70 = vector.load %arg4[%c8, %c0_75, %c0_76] : memref<9x4x4xbf16, #tpu.memory_space<vmem>>, vector<1x4x4xbf16>
    %71 = vector.shape_cast %70 : vector<1x4x4xbf16> to vector<4x4xbf16>
    %cst_77 = arith.constant dense<0.000000e+00> : vector<256x4xf32>
    %72 = tpu.matmul %69, %71, %cst_77 {dimension_numbers = #tpu.dot_dimension_numbers<[1], [0], [0], [1], [0, 0, 1, 1], [], []>} : vector<256x4xbf16>, vector<4x4xbf16>, vector<256x4xf32> -> vector<256x4xf32>
    %73 = arith.addf %67, %72 : vector<256x4xf32>
    %c0_78 = arith.constant 0 : index
    %c0_79 = arith.constant 0 : index
    %c0_80 = arith.constant 0 : index
    %74 = vector.load %arg5[%c0_78, %c0_79, %c0_80] : memref<1x256x4xf32, #tpu.memory_space<vmem>>, vector<1x256x4xf32>
    %75 = vector.shape_cast %74 : vector<1x256x4xf32> to vector<256x4xf32>
    %76 = vector.shape_cast %73 : vector<256x4xf32> to vector<1x256x4xf32>
    tpu.vector_store %arg5[%c0_78, %c0_79, %c0_80], %76 {strides = array<i32>} : memref<1x256x4xf32, #tpu.memory_space<vmem>>, vector<1x256x4xf32>,
    %cst_81 = arith.constant dense<0.000000e+00> : vector<4xf32>
    %77 = vector.multi_reduction <add>, %73, %cst_81 [0] : vector<256x4xf32> to vector<4xf32>
    %78 = vector.shape_cast %77 : vector<4xf32> to vector<1x4xf32>
    %c0_82 = arith.constant 0 : index
    %c0_83 = arith.constant 0 : index
    %c0_84 = arith.constant 0 : index
    %79 = vector.load %arg6[%c0_82, %c0_83, %c0_84] : memref<1x2x4xf32, #tpu.memory_space<vmem>>, vector<1x1x4xf32>
    %80 = vector.shape_cast %79 : vector<1x1x4xf32> to vector<1x4xf32>
    %81 = vector.shape_cast %78 : vector<1x4xf32> to vector<1x1x4xf32>
    tpu.vector_store %arg6[%c0_82, %c0_83, %c0_84], %81 {strides = array<i32>} : memref<1x2x4xf32, #tpu.memory_space<vmem>>, vector<1x1x4xf32>,
    %82 = arith.mulf %73, %73 : vector<256x4xf32>
    %cst_85 = arith.constant dense<0.000000e+00> : vector<4xf32>
    %83 = vector.multi_reduction <add>, %82, %cst_85 [0] : vector<256x4xf32> to vector<4xf32>
    %84 = vector.shape_cast %83 : vector<4xf32> to vector<1x4xf32>
    %c0_86 = arith.constant 0 : index
    %c1_87 = arith.constant 1 : index
    %c0_88 = arith.constant 0 : index
    %85 = vector.load %arg6[%c0_86, %c1_87, %c0_88] : memref<1x2x4xf32, #tpu.memory_space<vmem>>, vector<1x1x4xf32>
    %86 = vector.shape_cast %85 : vector<1x1x4xf32> to vector<1x4xf32>
    %87 = vector.shape_cast %84 : vector<1x4xf32> to vector<1x1x4xf32>
    tpu.vector_store %arg6[%c0_86, %c1_87, %c0_88], %87 {strides = array<i32>} : memref<1x2x4xf32, #tpu.memory_space<vmem>>, vector<1x1x4xf32>,
    return
  }
  func.func @transform_0(%arg0: i32) -> (i32, i32, i32) {
    %c0_i32 = arith.constant 0 : i32
    %c0_i32_0 = arith.constant 0 : i32
    %c0_i32_1 = arith.constant 0 : i32
    return %arg0, %c0_i32, %c0_i32_0 : i32, i32, i32
  }
  func.func @transform_1(%arg0: i32) -> (i32, i32) {
    %c0_i32 = arith.constant 0 : i32
    %c0_i32_0 = arith.constant 0 : i32
    %c0_i32_1 = arith.constant 0 : i32
    return %c0_i32, %c0_i32_0 : i32, i32
  }
  func.func @transform_2(%arg0: i32) -> (i32, i32) {
    %c0_i32 = arith.constant 0 : i32
    %c0_i32_0 = arith.constant 0 : i32
    %c0_i32_1 = arith.constant 0 : i32
    return %c0_i32, %c0_i32_0 : i32, i32
  }
  func.func @transform_3(%arg0: i32) -> (i32, i32, i32) {
    %c0_i32 = arith.constant 0 : i32
    %c0_i32_0 = arith.constant 0 : i32
    %c0_i32_1 = arith.constant 0 : i32
    %c0_i32_2 = arith.constant 0 : i32
    return %c0_i32, %c0_i32_0, %c0_i32_1 : i32, i32, i32
  }
  func.func @transform_4(%arg0: i32) -> (i32, i32, i32) {
    %c0_i32 = arith.constant 0 : i32
    %c0_i32_0 = arith.constant 0 : i32
    %c0_i32_1 = arith.constant 0 : i32
    return %arg0, %c0_i32, %c0_i32_0 : i32, i32, i32
  }
  func.func @transform_5(%arg0: i32) -> (i32, i32, i32) {
    %c0_i32 = arith.constant 0 : i32
    %c0_i32_0 = arith.constant 0 : i32
    %c0_i32_1 = arith.constant 0 : i32
    return %arg0, %c0_i32, %c0_i32_0 : i32, i32, i32
  }
}

</mosaic_0001>

<bundles_post_ra>
// kernel: basic_block_forward.5
= control target key start
LH: loop header
LB: loop body
LE: loop exit
PB: predicated region body
PF: predicated region fallthrough
CT: control target
= control target key end

     0   :  { %s577_s15 = smov 0   ;;  %s810_s0 = inlined_call_operand.vmem [shape: f32[2,256,4], index: 0, kind: input, shape index: {}]   ;;  %s811_s1 = inlined_call_operand.vmem [shape: f32[2,256,4], index: 1, kind: input, shape index: {}]   ;;  %s812_s2 = inlined_call_operand.vmem [shape: f32[1,4], index: 2, kind: input, shape index: {}]   ;;  %s813_s3 = inlined_call_operand.vmem [shape: f32[1,4], index: 3, kind: input, shape index: {}]   ;;  %s814_s4 = inlined_call_operand.vmem [shape: f32[2,256,4], index: 4, kind: output, shape index: {}]  }
   0x1 LB: > { %s518_s16 = sadd.s32 4294967295, %s550_s15   ;;  %p522_p0 = scmp.ge.s32.totalorder %s550_s15, 1  ;;  %s550_s15 = sphi %s577_s15, %s14_s15  }
   0x2   : > { %p172_p1 = scmp.lt.s32.totalorder %s550_s15, 3 }
   0x4   : > { %p173_p2 = pnand %p522_p0, %p172_p1 }
   0x5   : > { %p203_p3 = scmp.lt.s32.totalorder (!%p173_p2), %s518_s16, 1 }
   0x6   : > { %176 = sbr.rel (%p173_p2) target bundleno = 55 (0x37), region = 36 }
   0xb   : > { %s816_s16 = smov (!%p203_p3, %s518_s16), 1  ;;  %v588_v0 = vld [vmem:[%s812_s2] ss:$0 sm:$0xff]  ;;  %vm418_vm0 = vcmask 31744  }
   0xc   : > { %s590_s19 = sshll.u32 %s816_s16, 8  ;;  %v607_v1 = vld [vmem:[%s813_s3] ss:$0 sm:$0xff] }
   0xd   : > { %s596_s22 = scalar_lea.vmem %s810_s0, %s590_s19  ;;  %s602_s25 = scalar_lea.vmem %s811_s1, %s590_s19 }
   0xe   : > { %v218_v2 = vld [vmem:[%s596_s22] sm:$0xff]  ;;  %v219_v3 = vld [vmem:[%s596_s22 + $0x8] sm:$0xff]  ;;  %v220_v7 = vld [vmem:[%s596_s22 + $0x10] sm:$0xff]  ;;  %s638_s30 = scalar_lea.vmem %s814_s4, %s590_s19 }
   0xf   : > { %v254_v4 = vmul.f32 %v588_v0, %v218_v2  ;;  %v322_v5 = vld [vmem:[%s602_s25] sm:$0xff]  ;;  %v255_v6 = vmul.f32 %v588_v0, %v219_v3  ;;  %v323_v8 = vld [vmem:[%s602_s25 + $0x8] sm:$0xff]  ;;  %v256_v9 = vmul.f32 %v588_v0, %v220_v7  ;;  %v221_v10 = vld [vmem:[%s596_s22 + $0x18] sm:$0xff] }
  0x10   : > { %v222_v11 = vld [vmem:[%s596_s22 + $0x20] sm:$0xff]  ;;  %v324_v14 = vld [vmem:[%s602_s25 + $0x10] sm:$0xff]  ;;  %v257_v15 = vmul.f32 %v588_v0, %v221_v10  ;;  %v325_v16 = vld [vmem:[%s602_s25 + $0x18] sm:$0xff] }
  0x11   : > { %v290_v12 = vadd.f32 %v607_v1, %v254_v4  ;;  %v291_v13 = vadd.f32 %v607_v1, %v255_v6  ;;  %v258_v17 = vmul.f32 %v588_v0, %v222_v11  ;;  %v223_v18 = vld [vmem:[%s596_s22 + $0x28] sm:$0xff]  ;;  %v292_v19 = vadd.f32 %v607_v1, %v256_v9  ;;  %v326_v20 = vld [vmem:[%s602_s25 + $0x20] sm:$0xff]  ;;  %v224_v22 = vld [vmem:[%s596_s22 + $0x30] sm:$0xff] }
  0x12   : > { %v259_v21 = vmul.f32 %v588_v0, %v223_v18  ;;  %v225_v23 = vld [vmem:[%s596_s22 + $0x38] sm:$0xff]  ;;  %v293_v26 = vadd.f32 %v607_v1, %v257_v15  ;;  %v327_v28 = vld [vmem:[%s602_s25 + $0x28] sm:$0xff]  ;;  %v260_v31 = vmul.f32 %v588_v0, %v224_v22  ;;  %v226_v33 = vld [vmem:[%s596_s22 + $0x40] sm:$0xff] }
  0x13   : > { %v354_v24 = vadd.f32 %v322_v5, %v290_v12  ;;  %v355_v25 = vadd.f32 %v323_v8, %v291_v13  ;;  %v294_v27 = vadd.f32 %v607_v1, %v258_v17  ;;  %v356_v29 = vadd.f32 %v324_v14, %v292_v19  ;;  %v227_v34 = vld [vmem:[%s596_s22 + $0x48] sm:$0xff]  ;;  %v328_v39 = vld [vmem:[%s602_s25 + $0x30] sm:$0xff]  ;;  %v329_v40 = vld [vmem:[%s602_s25 + $0x38] sm:$0xff] }
  0x14   : > { %v295_v30 = vadd.f32 %v607_v1, %v259_v21  ;;  %v261_v32 = vmul.f32 %v588_v0, %v225_v23  ;;  %v357_v37 = vadd.f32 %v325_v16, %v293_v26  ;;  %v228_v41 = vld [vmem:[%s596_s22 + $0x50] sm:$0xff]  ;;  %v296_v44 = vadd.f32 %v607_v1, %v260_v31  ;;  %v229_v46 = vld [vmem:[%s596_s22 + $0x58] sm:$0xff]  ;;  %v230_v47 = vld [vmem:[%s596_s22 + $0x60] sm:$0xff] }
  0x15   : > { %v386_v35 = vmax.f32 %v354_v24, 0.0  ;;  %v387_v36 = vmax.f32 %v355_v25, 0.0  ;;  %v358_v38 = vadd.f32 %v326_v20, %v294_v27  ;;  %v388_v42 = vmax.f32 %v356_v29, 0.0  ;;  %v231_v52 = vld [vmem:[%s596_s22 + $0x68] sm:$0xff]  ;;  %v330_v56 = vld [vmem:[%s602_s25 + $0x40] sm:$0xff]  ;;  %v332_v61 = vld [vmem:[%s602_s25 + $0x50] sm:$0xff] }
  0x16   : > { %v359_v43 = vadd.f32 %v327_v28, %v295_v30  ;;  %v297_v45 = vadd.f32 %v607_v1, %v261_v32  ;;  %v389_v48 = vmax.f32 %v357_v37, 0.0  ;;  %v262_v50 = vmul.f32 %v588_v0, %v226_v33  ;;  %v331_v57 = vld [vmem:[%s602_s25 + $0x48] sm:$0xff]  ;;  %v232_v2 = vld [vmem:[%s596_s22 + $0x70] sm:$0xff]  ;;  %v233_v3 = vld [vmem:[%s596_s22 + $0x78] sm:$0xff] }
  0x17   : > { %419 = vst.msk [vmem:[%s638_s30] sm:$0xff] %vm418_vm0, %v386_v35  ;;  %v390_v49 = vmax.f32 %v358_v38, 0.0  ;;  %v263_v51 = vmul.f32 %v588_v0, %v227_v34  ;;  %v360_v54 = vadd.f32 %v328_v39, %v296_v44  ;;  %v264_v58 = vmul.f32 %v588_v0, %v228_v41  ;;  %v333_v7 = vld [vmem:[%s602_s25 + $0x58] sm:$0xff]  ;;  %v334_v8 = vld [vmem:[%s602_s25 + $0x60] sm:$0xff]  ;;  %v335_v14 = vld [vmem:[%s602_s25 + $0x68] sm:$0xff] }
  0x18   : > { %420 = vst.msk [vmem:[%s638_s30 + $0x8] sm:$0xff] %vm418_vm0, %v387_v36  ;;  %v391_v53 = vmax.f32 %v359_v43, 0.0  ;;  %v361_v55 = vadd.f32 %v329_v40, %v297_v45  ;;  %v298_v59 = vadd.f32 %v607_v1, %v262_v50  ;;  %v265_v62 = vmul.f32 %v588_v0, %v229_v46  ;;  %v234_v19 = vld [vmem:[%s596_s22 + $0x80] sm:$0xff]  ;;  %v235_v20 = vld [vmem:[%s596_s22 + $0x88] sm:$0xff]  ;;  %v336_v25 = vld [vmem:[%s602_s25 + $0x70] sm:$0xff] }
  0x19   : > { %421 = vst.msk [vmem:[%s638_s30 + $0x10] sm:$0xff] %vm418_vm0, %v388_v42  ;;  %v299_v60 = vadd.f32 %v607_v1, %v263_v51  ;;  %v266_v63 = vmul.f32 %v588_v0, %v230_v47  ;;  %v392_v4 = vmax.f32 %v360_v54, 0.0  ;;  %v300_v6 = vadd.f32 %v607_v1, %v264_v58  ;;  %v337_v26 = vld [vmem:[%s602_s25 + $0x78] sm:$0xff]  ;;  %v236_v27 = vld [vmem:[%s596_s22 + $0x90] sm:$0xff]  ;;  %v238_v33 = vld [vmem:[%s596_s22 + $0xa0] sm:$0xff] }
  0x1a   : > { %422 = vst.msk [vmem:[%s638_s30 + $0x18] sm:$0xff] %vm418_vm0, %v389_v48  ;;  %v393_v5 = vmax.f32 %v361_v55, 0.0  ;;  %v267_v9 = vmul.f32 %v588_v0, %v231_v52  ;;  %v362_v10 = vadd.f32 %v330_v56, %v298_v59  ;;  %v301_v12 = vadd.f32 %v607_v1, %v265_v62  ;;  %v237_v32 = vld [vmem:[%s596_s22 + $0x98] sm:$0xff]  ;;  %v239_v38 = vld [vmem:[%s596_s22 + $0xa8] sm:$0xff]  ;;  %v338_v42 = vld [vmem:[%s602_s25 + $0x80] sm:$0xff] }
  0x1b   : > { %423 = vst.msk [vmem:[%s638_s30 + $0x20] sm:$0xff] %vm418_vm0, %v390_v49  ;;  %v363_v11 = vadd.f32 %v331_v57, %v299_v60  ;;  %v302_v13 = vadd.f32 %v607_v1, %v266_v63  ;;  %v364_v15 = vadd.f32 %v332_v61, %v300_v6  ;;  %v268_v17 = vmul.f32 %v588_v0, %v232_v2  ;;  %v339_v43 = vld [vmem:[%s602_s25 + $0x88] sm:$0xff]  ;;  %v340_v47 = vld [vmem:[%s602_s25 + $0x90] sm:$0xff]  ;;  %v241_v51 = vld [vmem:[%s596_s22 + $0xb8] sm:$0xff] }
  0x1c   : > { %424 = vst.msk [vmem:[%s638_s30 + $0x28] sm:$0xff] %vm418_vm0, %v391_v53  ;;  %v303_v16 = vadd.f32 %v607_v1, %v267_v9  ;;  %v269_v18 = vmul.f32 %v588_v0, %v233_v3  ;;  %v394_v21 = vmax.f32 %v362_v10, 0.0  ;;  %v365_v23 = vadd.f32 %v333_v7, %v301_v12  ;;  %v240_v50 = vld [vmem:[%s596_s22 + $0xb0] sm:$0xff]  ;;  %v341_v55 = vld [vmem:[%s602_s25 + $0x98] sm:$0xff]  ;;  %v342_v56 = vld [vmem:[%s602_s25 + $0xa0] sm:$0xff] }
  0x1d   : > { %425 = vst.msk [vmem:[%s638_s30 + $0x30] sm:$0xff] %vm418_vm0, %v392_v4  ;;  %v395_v22 = vmax.f32 %v363_v11, 0.0  ;;  %v366_v24 = vadd.f32 %v334_v8, %v302_v13  ;;  %v396_v28 = vmax.f32 %v364_v15, 0.0  ;;  %v304_v30 = vadd.f32 %v607_v1, %v268_v17  ;;  %v343_v62 = vld [vmem:[%s602_s25 + $0xa8] sm:$0xff]  ;;  %v344_v11 = vld [vmem:[%s602_s25 + $0xb0] sm:$0xff]  ;;  %v345_v12 = vld [vmem:[%s602_s25 + $0xb8] sm:$0xff] }
  0x1e   : > { %426 = vst.msk [vmem:[%s638_s30 + $0x38] sm:$0xff] %vm418_vm0, %v393_v5  ;;  %v367_v29 = vadd.f32 %v335_v14, %v303_v16  ;;  %v305_v31 = vadd.f32 %v607_v1, %v269_v18  ;;  %v397_v34 = vmax.f32 %v365_v23, 0.0  ;;  %v270_v36 = vmul.f32 %v588_v0, %v234_v19  ;;  %v242_v5 = vld [vmem:[%s596_s22 + $0xc0] sm:$0xff]  ;;  %v243_v6 = vld [vmem:[%s596_s22 + $0xc8] sm:$0xff]  ;;  %v244_v13 = vld [vmem:[%s596_s22 + $0xd0] sm:$0xff] }
  0x1f   : > { %427 = vst.msk [vmem:[%s638_s30 + $0x40] sm:$0xff] %vm418_vm0, %v394_v21  ;;  %v398_v35 = vmax.f32 %v366_v24, 0.0  ;;  %v271_v37 = vmul.f32 %v588_v0, %v235_v20  ;;  %v368_v40 = vadd.f32 %v336_v25, %v304_v30  ;;  %v272_v44 = vmul.f32 %v588_v0, %v236_v27  ;;  %v245_v18 = vld [vmem:[%s596_s22 + $0xd8] sm:$0xff]  ;;  %v246_v19 = vld [vmem:[%s596_s22 + $0xe0] sm:$0xff]  ;;  %v247_v24 = vld [vmem:[%s596_s22 + $0xe8] sm:$0xff] }
  0x20   : > { %428 = vst.msk [vmem:[%s638_s30 + $0x48] sm:$0xff] %vm418_vm0, %v395_v22  ;;  %v399_v39 = vmax.f32 %v367_v29, 0.0  ;;  %v369_v41 = vadd.f32 %v337_v26, %v305_v31  ;;  %v306_v45 = vadd.f32 %v607_v1, %v270_v36  ;;  %v273_v48 = vmul.f32 %v588_v0, %v237_v32  ;;  %v347_v29 = vld [vmem:[%s602_s25 + $0xc8] sm:$0xff]  ;;  %v248_v36 = vld [vmem:[%s596_s22 + $0xf0] sm:$0xff] }
  0x21   : > { %429 = vst.msk [vmem:[%s638_s30 + $0x50] sm:$0xff] %vm418_vm0, %v396_v28  ;;  %v307_v46 = vadd.f32 %v607_v1, %v271_v37  ;;  %v274_v49 = vmul.f32 %v588_v0, %v238_v33  ;;  %v400_v52 = vmax.f32 %v368_v40, 0.0  ;;  %v308_v54 = vadd.f32 %v607_v1, %v272_v44  ;;  %v346_v28 = vld [vmem:[%s602_s25 + $0xc0] sm:$0xff]  ;;  %v348_v33 = vld [vmem:[%s602_s25 + $0xd0] sm:$0xff]  ;;  %v249_v37 = vld [vmem:[%s596_s22 + $0xf8] sm:$0xff] }
  0x22   : > { %430 = vst.msk [vmem:[%s638_s30 + $0x58] sm:$0xff] %vm418_vm0, %v397_v34  ;;  %v401_v53 = vmax.f32 %v369_v41, 0.0  ;;  %v275_v57 = vmul.f32 %v588_v0, %v239_v38  ;;  %v370_v58 = vadd.f32 %v338_v42, %v306_v45  ;;  %v309_v60 = vadd.f32 %v607_v1, %v273_v48  ;;  %v349_v41 = vld [vmem:[%s602_s25 + $0xd8] sm:$0xff]  ;;  %v350_v42 = vld [vmem:[%s602_s25 + $0xe0] sm:$0xff]  ;;  %v351_v48 = vld [vmem:[%s602_s25 + $0xe8] sm:$0xff] }
  0x23   : > { %431 = vst.msk [vmem:[%s638_s30 + $0x60] sm:$0xff] %vm418_vm0, %v398_v35  ;;  %v371_v59 = vadd.f32 %v339_v43, %v307_v46  ;;  %v310_v61 = vadd.f32 %v607_v1, %v274_v49  ;;  %v372_v63 = vadd.f32 %v340_v47, %v308_v54  ;;  %v276_v3 = vmul.f32 %v588_v0, %v240_v50 }
  0x24   : > { %432 = vst.msk [vmem:[%s638_s30 + $0x68] sm:$0xff] %vm418_vm0, %v399_v39  ;;  %v311_v2 = vadd.f32 %v607_v1, %v275_v57  ;;  %v277_v4 = vmul.f32 %v588_v0, %v241_v51  ;;  %v402_v7 = vmax.f32 %v370_v58, 0.0  ;;  %v373_v9 = vadd.f32 %v341_v55, %v309_v60  ;;  %v352_v57 = vld [vmem:[%s602_s25 + $0xf0] sm:$0xff]  ;;  %v353_v58 = vld [vmem:[%s602_s25 + $0xf8] sm:$0xff] }
  0x25   : > { %433 = vst.msk [vmem:[%s638_s30 + $0x70] sm:$0xff] %vm418_vm0, %v400_v52  ;;  %v403_v8 = vmax.f32 %v371_v59, 0.0  ;;  %v374_v10 = vadd.f32 %v342_v56, %v310_v61  ;;  %v404_v14 = vmax.f32 %v372_v63, 0.0  ;;  %v312_v16 = vadd.f32 %v607_v1, %v276_v3 }
  0x26   : > { %434 = vst.msk [vmem:[%s638_s30 + $0x78] sm:$0xff] %vm418_vm0, %v401_v53  ;;  %v375_v15 = vadd.f32 %v343_v62, %v311_v2  ;;  %v313_v17 = vadd.f32 %v607_v1, %v277_v4  ;;  %v405_v20 = vmax.f32 %v373_v9, 0.0  ;;  %v278_v22 = vmul.f32 %v588_v0, %v242_v5 }
  0x27   : > { %435 = vst.msk [vmem:[%s638_s30 + $0x80] sm:$0xff] %vm418_vm0, %v402_v7  ;;  %v406_v21 = vmax.f32 %v374_v10, 0.0  ;;  %v279_v23 = vmul.f32 %v588_v0, %v243_v6  ;;  %v376_v26 = vadd.f32 %v344_v11, %v312_v16  ;;  %v280_v30 = vmul.f32 %v588_v0, %v244_v13 }
  0x28   : > { %436 = vst.msk [vmem:[%s638_s30 + $0x88] sm:$0xff] %vm418_vm0, %v403_v8  ;;  %v407_v25 = vmax.f32 %v375_v15, 0.0  ;;  %v377_v27 = vadd.f32 %v345_v12, %v313_v17  ;;  %v314_v31 = vadd.f32 %v607_v1, %v278_v22  ;;  %v281_v34 = vmul.f32 %v588_v0, %v245_v18 }
  0x29   : > { %437 = vst.msk [vmem:[%s638_s30 + $0x90] sm:$0xff] %vm418_vm0, %v404_v14  ;;  %v315_v32 = vadd.f32 %v607_v1, %v279_v23  ;;  %v282_v35 = vmul.f32 %v588_v0, %v246_v19  ;;  %v408_v38 = vmax.f32 %v376_v26, 0.0  ;;  %v316_v40 = vadd.f32 %v607_v1, %v280_v30 }
  0x2a   : > { %438 = vst.msk [vmem:[%s638_s30 + $0x98] sm:$0xff] %vm418_vm0, %v405_v20  ;;  %v409_v39 = vmax.f32 %v377_v27, 0.0  ;;  %v283_v43 = vmul.f32 %v588_v0, %v247_v24  ;;  %v378_v44 = vadd.f32 %v346_v28, %v314_v31  ;;  %v317_v46 = vadd.f32 %v607_v1, %v281_v34 }
  0x2b   : > { %439 = vst.msk [vmem:[%s638_s30 + $0xa0] sm:$0xff] %vm418_vm0, %v406_v21  ;;  %v379_v45 = vadd.f32 %v347_v29, %v315_v32  ;;  %v318_v47 = vadd.f32 %v607_v1, %v282_v35  ;;  %v380_v49 = vadd.f32 %v348_v33, %v316_v40  ;;  %v284_v51 = vmul.f32 %v588_v0, %v248_v36 }
  0x2c   : > { %440 = vst.msk [vmem:[%s638_s30 + $0xa8] sm:$0xff] %vm418_vm0, %v407_v25  ;;  %v319_v50 = vadd.f32 %v607_v1, %v283_v43  ;;  %v285_v52 = vmul.f32 %v588_v0, %v249_v37  ;;  %v410_v53 = vmax.f32 %v378_v44, 0.0  ;;  %v381_v55 = vadd.f32 %v349_v41, %v317_v46 }
  0x2d   : > { %441 = vst.msk [vmem:[%s638_s30 + $0xb0] sm:$0xff] %vm418_vm0, %v408_v38  ;;  %v411_v54 = vmax.f32 %v379_v45, 0.0  ;;  %v382_v56 = vadd.f32 %v350_v42, %v318_v47  ;;  %v412_v59 = vmax.f32 %v380_v49, 0.0  ;;  %v320_v0 = vadd.f32 %v607_v1, %v284_v51 }
  0x2e   : > { %442 = vst.msk [vmem:[%s638_s30 + $0xb8] sm:$0xff] %vm418_vm0, %v409_v39  ;;  %v383_v60 = vadd.f32 %v351_v48, %v319_v50  ;;  %v321_v61 = vadd.f32 %v607_v1, %v285_v52  ;;  %v413_v62 = vmax.f32 %v381_v55, 0.0 }
  0x2f   : > { %443 = vst.msk [vmem:[%s638_s30 + $0xc0] sm:$0xff] %vm418_vm0, %v410_v53  ;;  %v414_v63 = vmax.f32 %v382_v56, 0.0  ;;  %v384_v3 = vadd.f32 %v352_v57, %v320_v0 }
  0x30   : > { %444 = vst.msk [vmem:[%s638_s30 + $0xc8] sm:$0xff] %vm418_vm0, %v411_v54  ;;  %v415_v2 = vmax.f32 %v383_v60, 0.0  ;;  %v385_v4 = vadd.f32 %v353_v58, %v321_v61 }
  0x31   : > { %445 = vst.msk [vmem:[%s638_s30 + $0xd0] sm:$0xff] %vm418_vm0, %v412_v59  ;;  %v416_v5 = vmax.f32 %v384_v3, 0.0 }
  0x32   : > { %446 = vst.msk [vmem:[%s638_s30 + $0xd8] sm:$0xff] %vm418_vm0, %v413_v62  ;;  %v417_v6 = vmax.f32 %v385_v4, 0.0 }
  0x33   : > { %447 = vst.msk [vmem:[%s638_s30 + $0xe0] sm:$0xff] %vm418_vm0, %v414_v63 }
  0x34   : > { %448 = vst.msk [vmem:[%s638_s30 + $0xe8] sm:$0xff] %vm418_vm0, %v415_v2 }
  0x35   : > { %449 = vst.msk [vmem:[%s638_s30 + $0xf0] sm:$0xff] %vm418_vm0, %v416_v5 }
  0x36   : > { %450 = vst.msk [vmem:[%s638_s30 + $0xf8] sm:$0xff] %vm418_vm0, %v417_v6 }
  0x37 PF: > { %s14_s15 = sadd.s32 1, %s550_s15  }
  0x38   : > { %p11_p4 = scmp.ge.s32.totalorder %s14_s15, 4  }
  0x3a   :  { %13 = sbr.rel (!%p11_p4) target bundleno = 1 (0x1), region = 69 }

// kernel: basic_block_forward.4
= control target key start
LH: loop header
LB: loop body
LE: loop exit
PB: predicated region body
PF: predicated region fallthrough
CT: control target
= control target key end

     0   :  { %s5731_s18 = smov 0   ;;  %s7313_s0 = inlined_call_operand.vmem [shape: f32[2,256,4], index: 0, kind: input, shape index: {}]   ;;  %s7314_s1 = inlined_call_operand.vmem [shape: f32[1,4], index: 1, kind: input, shape index: {}]   ;;  %s7315_s2 = inlined_call_operand.vmem [shape: f32[1,4], index: 2, kind: input, shape index: {}]   ;;  %s7316_s3 = inlined_call_operand.vmem [shape: bf16[9,4,4], index: 3, kind: input, shape index: {}]   ;;  %s7317_s4 = inlined_call_operand.vmem [shape: f32[2,256,4], index: 4, kind: output, shape index: {0}]   ;;  %s7318_s5 = inlined_call_operand.vmem [shape: f32[2,2,4], index: 5, kind: output, shape index: {1}]  }
   0x1 LB: > { %s5164_s19 = sadd.s32 4294967295, %s5698_s18   ;;  %p5168_p0 = scmp.ge.s32.totalorder %s5698_s18, 1  ;;  %s5698_s18 = sphi %s5731_s18, %s16_s18  }
   0x2   : > { %p190_p1 = scmp.lt.s32.totalorder %s5698_s18, 3 }
   0x4   : > { %p191_p2 = pnand %p5168_p0, %p190_p1 }
   0x6   : > { %194 = sbr.rel (%p191_p2) target bundleno = 864 (0x360), region = 36 }
   0xb   : > { %v5174_v0 = vld [vmem:[%s7316_s3 + $0x2] sm:$0x3]  ;;  %vm1499_vm0 = vcmask 1041408   ;;  %p222_p3 = scmp.lt.s32.totalorder %s5164_s19, 1  ;;  %v5748_v2 = vld [vmem:[%s7314_s1] ss:$0 sm:$0xff] }
   0xc   : > { %v1501_v1 = vsel %vm1499_vm0, %v5174_v0, 0  ;;  %vm376_vm1 = vcmask 24576   ;;  %vm383_vm2 = vsmask.f32 256  ;;  %v397_v4 = vld [vmem:[#allocation2 + $0x30] sm:$0x1] }
   0xd   : > { %5618 = vmatpush.bf16.msra.mxu1 %v1501_v1  ;;  %5619 = vmatpush.bf16.msra.mxu2 %v1501_v1  ;;  %s7350_s19 = smov (!%p222_p3, %s5164_s19), 1  ;;  %vm5752_vm3 = vmand %vm376_vm1, %vm383_vm2  ;;  %vm439_vm4 = vsmask.f32 7938  ;;  %v453_v5 = vld [vmem:[#allocation2 + $0x38] sm:$0x1]  ;;  %vm373_vm5 = vcmask 27648  }
   0xe   : > { %5620 = vmatpush.bf16.msra.mxu3 %v1501_v1  ;;  %1510 = vmatpush.bf16.msra.mxu0 %v1501_v1  ;;  %s5568_s24 = sshll.u32 %s7350_s19, 8  ;;  %v398_v6 = vsel %vm5752_vm3, 0, %v397_v4  ;;  %vm5761_vm6 = vmand %vm376_vm1, %vm439_vm4  ;;  %v5775_v8 = vld [vmem:[%s7315_s2] ss:$0 sm:$0xff]  ;;  %v5700_v16 = vmov 0   ;;  %vm1450_vm12 = vcmask 31744  }
   0xf   : > { %s5770_s27 = scalar_lea.vmem %s7313_s0, %s5568_s24  ;;  %399 = vst [vmem:[#allocation2 + $0x30] sm:$0x1] %v398_v6  ;;  %v454_v9 = vsel %vm5761_vm6, 0, %v453_v5  ;;  %v409_v19 = vld [vmem:[#allocation2 + $0x60] sm:$0x1]  ;;  %vm5825_vm9 = vmand %vm373_vm5, %vm439_vm4  ;;  %vm1860_vm14 = vcmask 1042432   ;;  %s6916_s9 = scalar_lea.vmem %s7317_s4, %s5568_s24 }
  0x10   : > { %v243_v10 = vld [vmem:[%s5770_s27 + $0x30] sm:$0xff]  ;;  %v244_v11 = vld [vmem:[%s5770_s27 + $0x38] sm:$0xff]  ;;  %455 = vst [vmem:[#allocation2 + $0x38] sm:$0x1] %v454_v9  ;;  %v465_v20 = vld [vmem:[#allocation2 + $0x68] sm:$0x1] }
  0x11   : > { %v279_v12 = vmul.f32 %v5748_v2, %v243_v10  ;;  %v280_v13 = vmul.f32 %v5748_v2, %v244_v11  ;;  %v251_v14 = vld [vmem:[%s5770_s27 + $0x70] sm:$0xff]  ;;  %v252_v15 = vld [vmem:[%s5770_s27 + $0x78] sm:$0xff]  ;;  %374 = vst.msk [vmem:[#allocation2] sm:$0xf] %vm373_vm5, %v5700_v16  ;;  %v410_v24 = vsel %vm5752_vm3, 0, %v409_v19  ;;  %v466_v25 = vsel %vm5761_vm6, 0, %v465_v20 }
  0x12   : > { %v287_v17 = vmul.f32 %v5748_v2, %v251_v14  ;;  %v288_v18 = vmul.f32 %v5748_v2, %v252_v15  ;;  %v259_v21 = vld [vmem:[%s5770_s27 + $0xb0] sm:$0xff]  ;;  %v260_v26 = vld [vmem:[%s5770_s27 + $0xb8] sm:$0xff]  ;;  %v245_v28 = vld [vmem:[%s5770_s27 + $0x40] sm:$0xff]  ;;  %vm527_vm7 = vsmask.f32 4368  ;;  %vm1861_vm15 = vcmask 1046532  }
  0x13   : > { %v315_v22 = vadd.f32 %v5775_v8, %v279_v12  ;;  %v316_v23 = vadd.f32 %v5775_v8, %v280_v13  ;;  %v421_v27 = vld [vmem:[#allocation2 + $0x90] sm:$0x1]  ;;  %411 = vst [vmem:[#allocation2 + $0x60] sm:$0x1] %v410_v24  ;;  %v295_v31 = vmul.f32 %v5748_v2, %v259_v21  ;;  %v477_v32 = vld [vmem:[#allocation2 + $0x98] sm:$0x1]  ;;  %v296_v35 = vmul.f32 %v5748_v2, %v260_v26  ;;  %vm5819_vm8 = vmor %vm383_vm2, %vm527_vm7 }
  0x14   : > { %v323_v29 = vadd.f32 %v5775_v8, %v287_v17  ;;  %v324_v30 = vadd.f32 %v5775_v8, %v288_v18  ;;  %467 = vst [vmem:[#allocation2 + $0x68] sm:$0x1] %v466_v25  ;;  %v422_v36 = vsel %vm5752_vm3, 0, %v421_v27  ;;  %v246_v37 = vld [vmem:[%s5770_s27 + $0x48] sm:$0xff]  ;;  %v281_v41 = vmul.f32 %v5748_v2, %v245_v28  ;;  %vm6216_vm2 = vmor %vm1860_vm14, %vm1861_vm15  ;;  %s5173_s24 = sshll.u32 %s7350_s19, 1 }
  0x15   : > { %v347_v33 = vmax.f32 %v315_v22, 0.0  ;;  %v348_v34 = vmax.f32 %v316_v23, 0.0  ;;  %v331_v40 = vadd.f32 %v5775_v8, %v295_v31  ;;  %423 = vst [vmem:[#allocation2 + $0x90] sm:$0x1] %v422_v36  ;;  %v332_v44 = vadd.f32 %v5775_v8, %v296_v35  ;;  %s235_s12 = scalar_lea.vmem %s7318_s5, %s5173_s24 }
  0x16   : > { %v355_v38 = vmax.f32 %v323_v29, 0.0  ;;  %v356_v39 = vmax.f32 %v324_v30, 0.0  ;;  %v478_v45 = vsel %vm5761_vm6, 0, %v477_v32  ;;  %375 = vst.msk [vmem:[#allocation2 + $0x4] sm:$0xf] %vm373_vm5, %v5700_v16  ;;  %v282_v50 = vmul.f32 %v5748_v2, %v246_v37 }
  0x17   : > { %v501_v42 = vpack.c.bf16 %v347_v33, %v347_v33  ;;  %v502_v43 = vpack.c.bf16 %v348_v34, %v348_v34  ;;  %v363_v48 = vmax.f32 %v331_v40, 0.0  ;;  %479 = vst [vmem:[#allocation2 + $0x98] sm:$0x1] %v478_v45  ;;  %v873_v62 = vld [vmem:[#allocation2 + $0x30] sm:$0xf]  ;;  %v364_v63 = vmax.f32 %v332_v44, 0.0 }
  0x18   : > { %v509_v46 = vpack.c.bf16 %v355_v38, %v355_v38  ;;  %v510_v47 = vpack.c.bf16 %v356_v39, %v356_v39  ;;  %v385_v49 = vld [vmem:[#allocation2] sm:$0x1]  ;;  %377 = vst.msk [vmem:[#allocation2 + $0x8] sm:$0x1] %vm376_vm1, %v5700_v16  ;;  %v877_v4 = vld [vmem:[#allocation2 + $0x38] sm:$0x1]  ;;  %v5832_v10 = vadd.f32 %v5775_v8, %v281_v41  ;;  %v318_v40 = vadd.f32 %v5775_v8, %v282_v50 }
  0x19   : > { %v581_v51 = vshrl.u32 %v501_v42, 16  ;;  %v584_v52 = vshll.u32 %v501_v42, 16  ;;  %v589_v53 = vshrl.u32 %v502_v43, 16  ;;  %v592_v54 = vshll.u32 %v502_v43, 16  ;;  %379 = vst.msk [vmem:[#allocation2 + $0xcc] sm:$0xf] %vm373_vm5, %v5700_v16 }
  0x1a   : > { %v649_v55 = vshrl.u32 %v509_v46, 16  ;;  %v652_v56 = vshll.u32 %v509_v46, 16  ;;  %v657_v57 = vshrl.u32 %v510_v47, 16  ;;  %v660_v58 = vshll.u32 %v510_v47, 16  ;;  %v901_v15 = vld [vmem:[#allocation2 + $0x60] sm:$0xf] }
  0x1b   : > { %v583_v60 = vrot.slane %v581_v51, 7  ;;  %v591_v61 = vrot.slane %v589_v53, 7  ;;  %v517_v0 = vpack.c.bf16 %v363_v48, %v363_v48  ;;  %v386_v9 = vsel %vm5752_vm3, 0, %v385_v49  ;;  %380 = vst.msk [vmem:[#allocation2 + $0xd0] sm:$0xf] %vm373_vm5, %v5700_v16  ;;  %v253_v45 = vld [vmem:[%s5770_s27 + $0x80] sm:$0xff] }
  0x1c   : > { %v651_v5 = vrot.slane %v649_v55, 7  ;;  %v659_v6 = vrot.slane %v657_v57, 7  ;;  %387 = vst [vmem:[#allocation2] sm:$0x1] %v386_v9  ;;  %v905_v24 = vld [vmem:[#allocation2 + $0x68] sm:$0x1]  ;;  %v518_v25 = vpack.c.bf16 %v364_v63, %v364_v63 }
  0x1d   : > { %v586_v11 = vor.u32 %v584_v52, %v583_v60  ;;  %v587_v12 = vrot.slane %v583_v60, 4  ;;  %v594_v13 = vor.u32 %v592_v54, %v591_v61  ;;  %v596_v14 = vrot.slane %v591_v61, 4  ;;  %v965_v26 = vld [vmem:[#allocation2 + $0x4] sm:$0xf]  ;;  %381 = vst.msk [vmem:[#allocation2 + $0xd4] sm:$0x1] %vm376_vm1, %v5700_v16 }
  0x1e   : > { %v654_v17 = vor.u32 %v652_v56, %v651_v5  ;;  %v655_v18 = vrot.slane %v651_v5, 4  ;;  %v662_v19 = vor.u32 %v660_v58, %v659_v6  ;;  %v664_v20 = vrot.slane %v659_v6, 4  ;;  %v5287_v30 = vld [vmem:[%s7316_s3 + $0x4] sm:$0x3]  ;;  %v929_v34 = vld [vmem:[#allocation2 + $0x90] sm:$0xf] }
  0x1f   : > { %v595_v21 = vsel %vm5819_vm8, %v587_v12, %v594_v13  ;;  %v874_v22 = vsel %vm5825_vm9, %v586_v11, %v873_v62  ;;  %v878_v23 = vsel %vm5752_vm3, %v596_v14, %v877_v4  ;;  %v717_v29 = vshrl.u32 %v517_v0, 16  ;;  %v933_v37 = vld [vmem:[#allocation2 + $0x98] sm:$0x1]  ;;  %v441_v38 = vld [vmem:[#allocation2 + $0x8] sm:$0x1] }
  0x20   : > { %875 = vst [vmem:[#allocation2 + $0x30] sm:$0xf] %v874_v22  ;;  %v663_v27 = vsel %vm5819_vm8, %v655_v18, %v662_v19  ;;  %v902_v28 = vsel %vm5825_vm9, %v654_v17, %v901_v15  ;;  %v720_v31 = vshll.u32 %v517_v0, 16  ;;  %v725_v32 = vshrl.u32 %v518_v25, 16  ;;  %v254_v54 = vld [vmem:[%s5770_s27 + $0x88] sm:$0xff] }
  0x21   : > { %876 = vst.msk [vmem:[#allocation2 + $0x34] sm:$0xf] %vm373_vm5, %v595_v21  ;;  %v728_v33 = vshll.u32 %v518_v25, 16  ;;  %v2074_v16 = vsel %vm1499_vm0, %v5287_v30, 0  ;;  %vm1013_vm10 = vsmask.f32 3328  ;;  %v906_v35 = vsel %vm5752_vm3, %v664_v20, %v905_v24 }
  0x22   : > { %879 = vst [vmem:[#allocation2 + $0x38] sm:$0x1] %v878_v23  ;;  %v719_v36 = vrot.slane %v717_v29, 7  ;;  %2083 = vmatpush.bf16.msrb.mxu2 %v2074_v16  ;;  %v1026_v39 = vshll.u32 %v965_v26, 16  ;;  %v727_v41 = vrot.slane %v725_v32, 7  ;;  %v442_v42 = vsel %vm5761_vm6, 0, %v441_v38 }
  0x23   : > { %903 = vst [vmem:[#allocation2 + $0x60] sm:$0xf] %v902_v28  ;;  %v1030_v43 = vshrl.u32 %v965_v26, 16  ;;  %v349_v44 = vmax.f32 %v5832_v10, 0.0  ;;  %v964_v48 = vld [vmem:[#allocation2] sm:$0xf]  ;;  %v289_v6 = vmul.f32 %v5748_v2, %v253_v45  ;;  %v5879_v9 = vmul.f32 %v5748_v2, %v254_v54 }
  0x24   : > { %904 = vst.msk [vmem:[#allocation2 + $0x64] sm:$0xf] %vm373_vm5, %v663_v27  ;;  %v722_v46 = vor.u32 %v720_v31, %v719_v36  ;;  %v723_v47 = vrot.slane %v719_v36, 4  ;;  %v5861_v49 = vrot.slane %v1026_v39, 5  ;;  %v730_v51 = vor.u32 %v728_v33, %v727_v41 }
  0x25   : > { %907 = vst [vmem:[#allocation2 + $0x68] sm:$0x1] %v906_v35  ;;  %v732_v50 = vrot.slane %v727_v41, 4  ;;  %v1017_v52 = vshrl.u32 %v964_v48, 16  ;;  %v1020_v53 = vshll.u32 %v964_v48, 16  ;;  %v5866_v56 = vrot.slane %v1030_v43, 4 }
  0x26   : > { %vm1014_vm11 = vsmask.f32 7440  ;;  %v930_v55 = vsel %vm5825_vm9, %v722_v46, %v929_v34  ;;  %443 = vst [vmem:[#allocation2 + $0x8] sm:$0x1] %v442_v42  ;;  %v350_v57 = vmax.f32 %v318_v40, 0.0  ;;  %v731_v60 = vsel %vm5819_vm8, %v723_v47, %v730_v51 }
  0x27   : > { %v972_v58 = vld [vmem:[#allocation2 + $0x30] sm:$0xf]  ;;  %931 = vst [vmem:[#allocation2 + $0x90] sm:$0xf] %v930_v55  ;;  %v934_v61 = vsel %vm5752_vm3, %v732_v50, %v933_v37  ;;  %v5872_v62 = vrot.slane %v1017_v52, 4  ;;  %v5874_v63 = vrot.slane %v1020_v53, 5  ;;  %v1033_v13 = vor.u32 %v5866_v56, %v5861_v49  ;;  %vm5889_vm13 = vmor %vm1013_vm10, %vm1014_vm11 }
  0x28   : > { %v973_v0 = vld [vmem:[#allocation2 + $0x34] sm:$0xf]  ;;  %v1113_v4 = vshrl.u32 %v972_v58, 16  ;;  %v1116_v5 = vshll.u32 %v972_v58, 16  ;;  %932 = vst.msk [vmem:[#allocation2 + $0x94] sm:$0xf] %vm373_vm5, %v731_v60  ;;  %v5883_v14 = vpack.c.bf16 %v349_v44, %v349_v44  ;;  %v5885_v20 = vpack.c.bf16 %v350_v57, %v350_v57 }
  0x29   : > { %v1001_v10 = vld [vmem:[#allocation2 + $0x38] sm:$0x1]  ;;  %v1122_v11 = vshll.u32 %v973_v0, 16  ;;  %v1126_v12 = vshrl.u32 %v973_v0, 16  ;;  %935 = vst [vmem:[#allocation2 + $0x98] sm:$0x1] %v934_v61  ;;  %v1023_v39 = vor.u32 %v5874_v63, %v5872_v62  ;;  %v5903_v60 = vadd.f32 %v5775_v8, %v289_v6 }
  0x2a   : > { %v1115_v15 = vrot.slane %v1113_v4, 4  ;;  %v1118_v17 = vrot.slane %v1116_v5, 5  ;;  %v1132_v18 = vshll.u32 %v1001_v10, 16  ;;  %v980_v19 = vld [vmem:[#allocation2 + $0x60] sm:$0xf] }
  0x2b   : > { %v1124_v21 = vrot.slane %v1122_v11, 5  ;;  %v1128_v22 = vrot.slane %v1126_v12, 4  ;;  %v981_v23 = vld [vmem:[#allocation2 + $0x64] sm:$0xf]  ;;  %v1209_v24 = vshrl.u32 %v980_v19, 16  ;;  %v1212_v25 = vshll.u32 %v980_v19, 16 }
  0x2c   : > { %v1119_v26 = vor.u32 %v1118_v17, %v1115_v15  ;;  %v1134_v27 = vrot.slane %v1132_v18, 5  ;;  %v1005_v28 = vld [vmem:[#allocation2 + $0x68] sm:$0x1]  ;;  %v1218_v29 = vshll.u32 %v981_v23, 16  ;;  %v1222_v30 = vshrl.u32 %v981_v23, 16 }
  0x2d   : > { %v1129_v32 = vor.u32 %v1128_v22, %v1124_v21  ;;  %v1211_v33 = vrot.slane %v1209_v24, 4  ;;  %v1214_v34 = vrot.slane %v1212_v25, 5  ;;  %v1228_v16 = vshll.u32 %v1005_v28, 16  ;;  %v5304_v58 = vld [vmem:[%s7316_s3 + $0x6] sm:$0x3] }
  0x2e   : > { %v1120_v35 = vrot.slane %v1119_v26, 4  ;;  %v1220_v36 = vrot.slane %v1218_v29, 5  ;;  %v1224_v37 = vrot.slane %v1222_v30, 4  ;;  %v988_v38 = vld [vmem:[#allocation2 + $0x90] sm:$0xf]  ;;  %v1024_v19 = vrot.slane %v1023_v39, 4 }
  0x2f   : > { %v1130_v40 = vrot.slane %v1129_v32, 4  ;;  %v1215_v41 = vor.u32 %v1214_v34, %v1211_v33  ;;  %v1230_v42 = vrot.slane %v1228_v16, 5  ;;  %v989_v43 = vld [vmem:[#allocation2 + $0x94] sm:$0xf]  ;;  %v1305_v44 = vshrl.u32 %v988_v38, 16 }
  0x30   : > { %v1125_v45 = vsel %vm5889_vm13, %v1120_v35, %v1124_v21  ;;  %v1225_v46 = vor.u32 %v1224_v37, %v1220_v36  ;;  %v1009_v47 = vld [vmem:[#allocation2 + $0x98] sm:$0x1]  ;;  %v1308_v48 = vshll.u32 %v988_v38, 16  ;;  %v1314_v51 = vshll.u32 %v989_v43, 16  ;;  %v997_v4 = vld [vmem:[#allocation2 + $0x8] sm:$0x1] }
  0x31   : > { %v1135_v50 = vsel %vm5889_vm13, %v1130_v40, %v1134_v27  ;;  %v1410_v52 = vunpack.c.l.b16 %v1125_v45  ;;  %v1216_v53 = vrot.slane %v1215_v41, 4  ;;  %v1307_v54 = vrot.slane %v1305_v44, 4  ;;  %v996_v15 = vld [vmem:[%s7316_s3] sm:$0x3]  ;;  %v400_v17 = vld [vmem:[#allocation2 + $0x3c] sm:$0x1] }
  0x32   : > { %v1411_v55 = vunpack.c.l.b16 %v1135_v50  ;;  %v1226_v56 = vrot.slane %v1225_v46, 4  ;;  %v1310_v57 = vrot.slane %v1308_v48, 5  ;;  %v1316_v62 = vrot.slane %v1314_v51, 5  ;;  %v5385_v22 = vld [vmem:[%s7316_s3 + $0x8] sm:$0x3] }
  0x33   : > { %v1221_v61 = vsel %vm5889_vm13, %v1216_v53, %v1220_v36  ;;  %v1318_v63 = vshrl.u32 %v989_v43, 16  ;;  %v1324_v0 = vshll.u32 %v1009_v47, 16  ;;  %v1034_v21 = vrot.slane %v1033_v13, 4  ;;  %v456_v27 = vld [vmem:[#allocation2 + $0x44] sm:$0x1] }
  0x34   : > { %v1438_v5 = vpack.c.b16 %v1411_v55, %v1410_v52  ;;  %v1231_v10 = vsel %vm5889_vm13, %v1226_v56, %v1230_v42  ;;  %v1418_v11 = vunpack.c.l.b16 %v1221_v61  ;;  %v1311_v12 = vor.u32 %v1310_v57, %v1307_v54  ;;  %v412_v35 = vld [vmem:[#allocation2 + $0x6c] sm:$0x1]  ;;  %v468_v39 = vld [vmem:[#allocation2 + $0x74] sm:$0x1]  ;;  %v424_v53 = vld [vmem:[#allocation2 + $0x9c] sm:$0x1] }
  0x35   : > { %v1419_v6 = vunpack.c.l.b16 %v1231_v10  ;;  %v1320_v18 = vrot.slane %v1318_v63, 4  ;;  %v1326_v24 = vrot.slane %v1324_v0, 5  ;;  %v1036_v25 = vshll.u32 %v997_v4, 16  ;;  %v237_v0 = vld [vmem:[%s5770_s27] sm:$0xff] }
  0x36   : > { %5179 = vmatmul.msk.bf16.vlgmr.msra.gmra.mxu1 %vm1450_vm12, %v1438_v5  ;;  %v1312_v23 = vrot.slane %v1311_v12, 4  ;;  %v2360_v26 = vsel %vm1499_vm0, %v5304_v58, 0  ;;  %v1029_v30 = vsel %vm5889_vm13, %v1024_v19, %v5861_v49  ;;  %v1721_v13 = vsel %vm1499_vm0, %v996_v15, 0  ;;  %v480_v58 = vld [vmem:[#allocation2 + $0xa4] sm:$0x1] }
  0x37   : > { %v1442_v28 = vpack.c.b16 %v1419_v6, %v1418_v11  ;;  %v1321_v29 = vor.u32 %v1320_v18, %v1316_v62  ;;  %2369 = vmatpush.bf16.msrb.mxu3 %v2360_v26  ;;  %v1038_v33 = vrot.slane %v1036_v25, 5  ;;  %v1402_v34 = vunpack.c.l.b16 %v1029_v30  ;;  %1730 = vmatpush.bf16.msrb.mxu1 %v1721_v13  ;;  %v238_v6 = vld [vmem:[%s5770_s27 + $0x8] sm:$0xff] }
  0x38   : > { %v1317_v32 = vsel %vm5889_vm13, %v1312_v23, %v1316_v62  ;;  %v3014_v16 = vsel %vm1499_vm0, %v5385_v22, 0  ;;  %v401_v49 = vsel %vm5752_vm3, 0, %v400_v17  ;;  %v457_v38 = vsel %vm5761_vm6, 0, %v456_v27  ;;  %v388_v18 = vld [vmem:[#allocation2 + $0xc] sm:$0x1] }
  0x39   : > { %5183 = vmatmul.msk.bf16.vlgmr.msra.gmra.mxu2 %vm1450_vm12, %v1442_v28  ;;  %v1322_v36 = vrot.slane %v1321_v29, 4  ;;  %v1426_v37 = vunpack.c.l.b16 %v1317_v32  ;;  %3023 = vmatpush.bf16.msrb.mxu0 %v3014_v16  ;;  %v1039_v40 = vsel %vm5889_vm13, %v1034_v21, %v1038_v33  ;;  %402 = vst [vmem:[#allocation2 + $0x3c] sm:$0x1] %v401_v49  ;;  %v598_v41 = vshrl.u32 %v5883_v14, 16 }
  0x3a   : > { %v601_v42 = vshll.u32 %v5883_v14, 16  ;;  %v606_v43 = vshrl.u32 %v5885_v20, 16  ;;  %v1403_v45 = vunpack.c.l.b16 %v1039_v40  ;;  %458 = vst [vmem:[#allocation2 + $0x44] sm:$0x1] %v457_v38  ;;  %v609_v46 = vshll.u32 %v5885_v20, 16  ;;  %v261_v14 = vld [vmem:[%s5770_s27 + $0xc0] sm:$0xff] }
  0x3b   : > { %v1327_v44 = vsel %vm5889_vm13, %v1322_v36, %v1326_v24  ;;  %v326_v47 = vadd.f32 %v5775_v8, %v5879_v9  ;;  %v600_v51 = vrot.slane %v598_v41, 7  ;;  %v357_v52 = vmax.f32 %v5903_v60, 0.0  ;;  %v262_v20 = vld [vmem:[%s5770_s27 + $0xc8] sm:$0xff] }
  0x3c   : > { %v1427_v48 = vunpack.c.l.b16 %v1327_v44  ;;  %v608_v50 = vrot.slane %v606_v43, 7  ;;  %v1434_v54 = vpack.c.b16 %v1403_v45, %v1402_v34  ;;  %v413_v56 = vsel %vm5752_vm3, 0, %v412_v35 }
  0x3d   : > { %v358_v55 = vmax.f32 %v326_v47, 0.0  ;;  %v469_v57 = vsel %vm5761_vm6, 0, %v468_v39  ;;  %v603_v9 = vor.u32 %v601_v42, %v600_v51  ;;  %v604_v62 = vrot.slane %v600_v51, 4  ;;  %414 = vst [vmem:[#allocation2 + $0x6c] sm:$0x1] %v413_v56 }
  0x3e   : > { %v1446_v61 = vpack.c.b16 %v1427_v48, %v1426_v37  ;;  %v611_v63 = vor.u32 %v609_v46, %v608_v50  ;;  %5175 = vmatmul.msk.bf16.vlgmr.msra.gmra.mxu0 %vm1450_vm12, %v1434_v54  ;;  %v613_v60 = vrot.slane %v608_v50, 4  ;;  %470 = vst [vmem:[#allocation2 + $0x74] sm:$0x1] %v469_v57  ;;  %v511_v4 = vpack.c.bf16 %v357_v52, %v357_v52  ;;  %v444_v51 = vld [vmem:[#allocation2 + $0x14] sm:$0x1] }
  0x3f   : > { %v512_v5 = vpack.c.bf16 %v358_v55, %v358_v55  ;;  %v297_v10 = vmul.f32 %v5748_v2, %v261_v14  ;;  %v298_v12 = vmul.f32 %v5748_v2, %v262_v20  ;;  %v425_v15 = vsel %vm5752_vm3, 0, %v424_v53  ;;  %v247_v50 = vld [vmem:[%s5770_s27 + $0x50] sm:$0xff] }
  0x40   : > { %5187 = vmatmul.msk.bf16.vlgmr.msra.gmra.mxu3 %vm1450_vm12, %v1446_v61  ;;  %v612_v11 = vsel %vm5819_vm8, %v604_v62, %v611_v63  ;;  %v481_v17 = vsel %vm5761_vm6, 0, %v480_v58  ;;  %v880_v19 = vld [vmem:[#allocation2 + $0x3c] sm:$0xf]  ;;  %v666_v21 = vshrl.u32 %v511_v4, 16  ;;  %v669_v22 = vshll.u32 %v511_v4, 16 }
  0x41   : > { %883 = vst.msk [vmem:[#allocation2 + $0x40] sm:$0xf] %vm373_vm5, %v612_v11  ;;  %v333_v23 = vadd.f32 %v5775_v8, %v297_v10  ;;  %v273_v24 = vmul.f32 %v5748_v2, %v237_v0  ;;  %v881_v25 = vsel %vm5825_vm9, %v603_v9, %v880_v19  ;;  %v884_v26 = vld [vmem:[#allocation2 + $0x44] sm:$0x1]  ;;  %v674_v27 = vshrl.u32 %v512_v5, 16 }
  0x42   : > { %v677_v28 = vshll.u32 %v512_v5, 16  ;;  %v334_v29 = vadd.f32 %v5775_v8, %v298_v12  ;;  %426 = vst [vmem:[#allocation2 + $0x9c] sm:$0x1] %v425_v15  ;;  %v885_v30 = vsel %vm5752_vm3, %v613_v60, %v884_v26  ;;  %v668_v13 = vrot.slane %v666_v21, 7 }
  0x43   : > { %882 = vst [vmem:[#allocation2 + $0x3c] sm:$0xf] %v881_v25  ;;  %v365_v32 = vmax.f32 %v333_v23, 0.0  ;;  %v274_v33 = vmul.f32 %v5748_v2, %v238_v6  ;;  %v676_v34 = vrot.slane %v674_v27, 7  ;;  %v309_v35 = vadd.f32 %v5775_v8, %v273_v24  ;;  %v248_v25 = vld [vmem:[%s5770_s27 + $0x58] sm:$0xff] }
  0x44   : > { %886 = vst [vmem:[#allocation2 + $0x44] sm:$0x1] %v885_v30  ;;  %v366_v16 = vmax.f32 %v334_v29, 0.0  ;;  %v389_v36 = vsel %vm5752_vm3, 0, %v388_v18  ;;  %v671_v37 = vor.u32 %v669_v22, %v668_v13  ;;  %v672_v49 = vrot.slane %v668_v13, 4 }
  0x45   : > { %v908_v38 = vld [vmem:[#allocation2 + $0x6c] sm:$0xf]  ;;  %482 = vst [vmem:[#allocation2 + $0xa4] sm:$0x1] %v481_v17  ;;  %v519_v39 = vpack.c.bf16 %v365_v32, %v365_v32  ;;  %v310_v40 = vadd.f32 %v5775_v8, %v274_v33  ;;  %v679_v41 = vor.u32 %v677_v28, %v676_v34  ;;  %v681_v42 = vrot.slane %v676_v34, 4 }
  0x46   : > { %v912_v43 = vld [vmem:[#allocation2 + $0x74] sm:$0x1]  ;;  %v520_v44 = vpack.c.bf16 %v366_v16, %v366_v16  ;;  %v341_v45 = vmax.f32 %v309_v35, 0.0  ;;  %390 = vst [vmem:[#allocation2 + $0xc] sm:$0x1] %v389_v36  ;;  %v909_v46 = vsel %vm5825_vm9, %v671_v37, %v908_v38  ;;  %v445_v62 = vsel %vm5761_vm6, 0, %v444_v51 }
  0x47   : > { %v734_v47 = vshrl.u32 %v519_v39, 16  ;;  %v737_v48 = vshll.u32 %v519_v39, 16  ;;  %v680_v14 = vsel %vm5819_vm8, %v672_v49, %v679_v41  ;;  %910 = vst [vmem:[#allocation2 + $0x6c] sm:$0xf] %v909_v46  ;;  %v913_v53 = vsel %vm5752_vm3, %v681_v42, %v912_v43 }
  0x48   : > { %v975_v52 = vld [vmem:[#allocation2 + $0x40] sm:$0xf]  ;;  %v742_v54 = vshrl.u32 %v520_v44, 16  ;;  %v745_v55 = vshll.u32 %v520_v44, 16  ;;  %911 = vst.msk [vmem:[#allocation2 + $0x70] sm:$0xf] %vm373_vm5, %v680_v14  ;;  %v495_v63 = vpack.c.bf16 %v341_v45, %v341_v45  ;;  %v283_v0 = vmul.f32 %v5748_v2, %v247_v50 }
  0x49   : > { %v1146_v56 = vshll.u32 %v975_v52, 16  ;;  %v1150_v57 = vshrl.u32 %v975_v52, 16  ;;  %v736_v20 = vrot.slane %v734_v47, 7  ;;  %v342_v58 = vmax.f32 %v310_v40, 0.0  ;;  %914 = vst [vmem:[#allocation2 + $0x74] sm:$0x1] %v913_v53 }
  0x4a   : > { %v974_v61 = vld [vmem:[#allocation2 + $0x3c] sm:$0xf]  ;;  %v744_v9 = vrot.slane %v742_v54, 7  ;;  %446 = vst [vmem:[#allocation2 + $0x14] sm:$0x1] %v445_v62  ;;  %v530_v29 = vshrl.u32 %v495_v63, 16  ;;  %v284_v49 = vmul.f32 %v5748_v2, %v248_v25  ;;  %v319_v50 = vadd.f32 %v5775_v8, %v283_v0 }
  0x4b   : > { %v1002_v60 = vld [vmem:[#allocation2 + $0x44] sm:$0x1]  ;;  %v1137_v4 = vshrl.u32 %v974_v61, 16  ;;  %v1140_v5 = vshll.u32 %v974_v61, 16  ;;  %v1148_v10 = vrot.slane %v1146_v56, 5  ;;  %v1152_v11 = vrot.slane %v1150_v57, 4 }
  0x4c   : > { %v1156_v12 = vshll.u32 %v1002_v60, 16  ;;  %v739_v15 = vor.u32 %v737_v48, %v736_v20  ;;  %v740_v17 = vrot.slane %v736_v20, 4  ;;  %v747_v6 = vor.u32 %v745_v55, %v744_v9  ;;  %v936_v18 = vld [vmem:[#allocation2 + $0x9c] sm:$0xf]  ;;  %v940_v19 = vld [vmem:[#allocation2 + $0xa4] sm:$0x1] }
  0x4d   : > { %v1139_v21 = vrot.slane %v1137_v4, 4  ;;  %v1142_v22 = vrot.slane %v1140_v5, 5  ;;  %v1153_v23 = vor.u32 %v1152_v11, %v1148_v10  ;;  %v749_v24 = vrot.slane %v744_v9, 4  ;;  %v852_v20 = vld [vmem:[#allocation2 + $0xc] sm:$0xf] }
  0x4e   : > { %v1158_v26 = vrot.slane %v1156_v12, 5  ;;  %v748_v27 = vsel %vm5819_vm8, %v740_v17, %v747_v6  ;;  %v937_v28 = vsel %vm5825_vm9, %v739_v15, %v936_v18  ;;  %v982_v32 = vld [vmem:[#allocation2 + $0x6c] sm:$0xf]  ;;  %v533_v34 = vshll.u32 %v495_v63, 16 }
  0x4f   : > { %v1143_v30 = vor.u32 %v1142_v22, %v1139_v21  ;;  %v1154_v13 = vrot.slane %v1153_v23, 4  ;;  %938 = vst [vmem:[#allocation2 + $0x9c] sm:$0xf] %v937_v28  ;;  %v941_v33 = vsel %vm5752_vm3, %v749_v24, %v940_v19  ;;  %v983_v16 = vld [vmem:[#allocation2 + $0x70] sm:$0xf]  ;;  %v1233_v35 = vshrl.u32 %v982_v32, 16 }
  0x50   : > { %v1236_v36 = vshll.u32 %v982_v32, 16  ;;  %939 = vst.msk [vmem:[#allocation2 + $0xa0] sm:$0xf] %vm373_vm5, %v748_v27  ;;  %v496_v37 = vpack.c.bf16 %v342_v58, %v342_v58  ;;  %v1006_v40 = vld [vmem:[#allocation2 + $0x74] sm:$0x1]  ;;  %v1242_v41 = vshll.u32 %v983_v16, 16  ;;  %v320_v58 = vadd.f32 %v5775_v8, %v284_v49 }
  0x51   : > { %v1144_v38 = vrot.slane %v1143_v30, 4  ;;  %v1159_v39 = vsel %vm5889_vm13, %v1154_v13, %v1158_v26  ;;  %v1246_v42 = vshrl.u32 %v983_v16, 16  ;;  %v1235_v44 = vrot.slane %v1233_v35, 4  ;;  %942 = vst [vmem:[#allocation2 + $0xa4] sm:$0x1] %v941_v33  ;;  %v256_v49 = vld [vmem:[%s5770_s27 + $0x98] sm:$0xff] }
  0x52   : > { %v1413_v43 = vunpack.c.l.b16 %v1159_v39  ;;  %v1238_v45 = vrot.slane %v1236_v36, 5  ;;  %v1252_v46 = vshll.u32 %v1006_v40, 16  ;;  %v1244_v48 = vrot.slane %v1242_v41, 5  ;;  %v856_v28 = vld [vmem:[#allocation2 + $0x14] sm:$0x1] }
  0x53   : > { %v1149_v47 = vsel %vm5889_vm13, %v1144_v38, %v1148_v10  ;;  %v1248_v51 = vrot.slane %v1246_v42, 4  ;;  %v532_v54 = vrot.slane %v530_v29, 7  ;;  %v538_v56 = vshrl.u32 %v496_v37, 16  ;;  %v403_v32 = vld [vmem:[#allocation2 + $0x48] sm:$0x1] }
  0x54   : > { %v1412_v52 = vunpack.c.l.b16 %v1149_v47  ;;  %v1239_v14 = vor.u32 %v1238_v45, %v1235_v44  ;;  %v1254_v53 = vrot.slane %v1252_v46, 5  ;;  %v541_v57 = vshll.u32 %v496_v37, 16  ;;  %v459_v33 = vld [vmem:[#allocation2 + $0x50] sm:$0x1] }
  0x55   : > { %v1249_v55 = vor.u32 %v1248_v51, %v1244_v48  ;;  %v535_v63 = vor.u32 %v533_v34, %v532_v54  ;;  %v536_v60 = vrot.slane %v532_v54, 4  ;;  %v540_v0 = vrot.slane %v538_v56, 7  ;;  %v255_v37 = vld [vmem:[%s5770_s27 + $0x90] sm:$0xff] }
  0x56   : > { %v1439_v61 = vpack.c.b16 %v1413_v43, %v1412_v52  ;;  %v1240_v9 = vrot.slane %v1239_v14, 4  ;;  %v990_v62 = vld [vmem:[#allocation2 + $0x9c] sm:$0xf]  ;;  %v351_v36 = vmax.f32 %v319_v50, 0.0  ;;  %v352_v41 = vmax.f32 %v320_v58, 0.0 }
  0x57   : > { %v1250_v4 = vrot.slane %v1249_v55, 4  ;;  %v991_v5 = vld [vmem:[#allocation2 + $0xa0] sm:$0xf]  ;;  %v1329_v10 = vshrl.u32 %v990_v62, 16  ;;  %v1332_v11 = vshll.u32 %v990_v62, 16  ;;  %v853_v6 = vsel %vm5825_vm9, %v535_v63, %v852_v20 }
  0x58   : > { %5180 = vmatmul.msk.bf16.gmra.mxu1 %vm1450_vm12, %v1439_v61  ;;  %v1245_v12 = vsel %vm5889_vm13, %v1240_v9, %v1244_v48  ;;  %v1338_v15 = vshll.u32 %v991_v5, 16  ;;  %v1342_v17 = vshrl.u32 %v991_v5, 16  ;;  %v1010_v21 = vld [vmem:[#allocation2 + $0xa4] sm:$0x1]  ;;  %854 = vst [vmem:[#allocation2 + $0xc] sm:$0xf] %v853_v6  ;;  %v543_v30 = vor.u32 %v541_v57, %v540_v0 }
  0x59   : > { %v1255_v18 = vsel %vm5889_vm13, %v1250_v4, %v1254_v53  ;;  %v1420_v19 = vunpack.c.l.b16 %v1245_v12  ;;  %v1331_v22 = vrot.slane %v1329_v10, 4  ;;  %v1334_v23 = vrot.slane %v1332_v11, 5  ;;  %v415_v63 = vld [vmem:[#allocation2 + $0x78] sm:$0x1] }
  0x5a   : > { %v1421_v24 = vunpack.c.l.b16 %v1255_v18  ;;  %v1340_v25 = vrot.slane %v1338_v15, 5  ;;  %v1344_v26 = vrot.slane %v1342_v17, 4  ;;  %v1348_v27 = vshll.u32 %v1010_v21, 16  ;;  %v471_v17 = vld [vmem:[#allocation2 + $0x80] sm:$0x1] }
  0x5b   : > { %v1335_v29 = vor.u32 %v1334_v23, %v1331_v22  ;;  %v545_v13 = vrot.slane %v540_v0, 4  ;;  %v544_v39 = vsel %vm5819_vm8, %v536_v60, %v543_v30  ;;  %v404_v43 = vsel %vm5752_vm3, 0, %v403_v32  ;;  %v263_v23 = vld [vmem:[%s5770_s27 + $0xd0] sm:$0xff] }
  0x5c   : > { %v1443_v34 = vpack.c.b16 %v1421_v24, %v1420_v19  ;;  %v1345_v16 = vor.u32 %v1344_v26, %v1340_v25  ;;  %v1350_v35 = vrot.slane %v1348_v27, 5  ;;  %855 = vst.msk [vmem:[#allocation2 + $0x10] sm:$0xf] %vm373_vm5, %v544_v39  ;;  %v460_v44 = vsel %vm5761_vm6, 0, %v459_v33 }
  0x5d   : > { %v1336_v38 = vrot.slane %v1335_v29, 4  ;;  %v857_v40 = vsel %vm5752_vm3, %v545_v13, %v856_v28  ;;  %v505_v45 = vpack.c.bf16 %v351_v36, %v351_v36  ;;  %v506_v47 = vpack.c.bf16 %v352_v41, %v352_v41  ;;  %405 = vst [vmem:[#allocation2 + $0x48] sm:$0x1] %v404_v43 }
  0x5e   : > { %5184 = vmatmul.msk.bf16.gmra.mxu2 %vm1450_vm12, %v1443_v34  ;;  %v1346_v42 = vrot.slane %v1345_v16, 4  ;;  %858 = vst [vmem:[#allocation2 + $0x14] sm:$0x1] %v857_v40  ;;  %v291_v48 = vmul.f32 %v5748_v2, %v255_v37  ;;  %v292_v51 = vmul.f32 %v5748_v2, %v256_v49  ;;  %v416_v22 = vsel %vm5752_vm3, 0, %v415_v63  ;;  %v264_v34 = vld [vmem:[%s5770_s27 + $0xd8] sm:$0xff] }
  0x5f   : > { %v1341_v46 = vsel %vm5889_vm13, %v1336_v38, %v1340_v25  ;;  %v966_v14 = vld [vmem:[#allocation2 + $0xc] sm:$0xf]  ;;  %v615_v53 = vshrl.u32 %v505_v45, 16  ;;  %v618_v54 = vshll.u32 %v505_v45, 16  ;;  %461 = vst [vmem:[#allocation2 + $0x50] sm:$0x1] %v460_v44  ;;  %v299_v39 = vmul.f32 %v5748_v2, %v263_v23 }
  0x60   : > { %v1351_v50 = vsel %vm5889_vm13, %v1346_v42, %v1350_v35  ;;  %v1428_v52 = vunpack.c.l.b16 %v1341_v46  ;;  %v1041_v56 = vshrl.u32 %v966_v14, 16  ;;  %v1044_v57 = vshll.u32 %v966_v14, 16  ;;  %417 = vst [vmem:[#allocation2 + $0x78] sm:$0x1] %v416_v22  ;;  %v427_v16 = vld [vmem:[#allocation2 + $0xa8] sm:$0x1] }
  0x61   : > { %v1429_v55 = vunpack.c.l.b16 %v1351_v50  ;;  %v623_v20 = vshrl.u32 %v506_v47, 16  ;;  %v617_v58 = vrot.slane %v615_v53, 7  ;;  %v626_v61 = vshll.u32 %v506_v47, 16  ;;  %v483_v35 = vld [vmem:[#allocation2 + $0xb0] sm:$0x1] }
  0x62   : > { %v327_v9 = vadd.f32 %v5775_v8, %v291_v48  ;;  %v328_v62 = vadd.f32 %v5775_v8, %v292_v51  ;;  %v1043_v4 = vrot.slane %v1041_v56, 4  ;;  %v1046_v5 = vrot.slane %v1044_v57, 5  ;;  %v6051_v2 = vld [vmem:[%s7314_s1] ss:$0 sm:$0xff]  ;;  %v239_v14 = vld [vmem:[%s5770_s27 + $0x10] sm:$0xff]  ;;  %v240_v57 = vld [vmem:[%s5770_s27 + $0x18] sm:$0xff] }
  0x63   : > { %v1447_v60 = vpack.c.b16 %v1429_v55, %v1428_v52  ;;  %v625_v10 = vrot.slane %v623_v20, 7  ;;  %v620_v11 = vor.u32 %v618_v54, %v617_v58  ;;  %v621_v0 = vrot.slane %v617_v58, 4  ;;  %v6025_v6 = vld [vmem:[#allocation2 + $0x10] sm:$0xf] }
  0x64   : > { %v359_v12 = vmax.f32 %v327_v9, 0.0  ;;  %v360_v15 = vmax.f32 %v328_v62, 0.0  ;;  %v1047_v18 = vor.u32 %v1046_v5, %v1043_v4  ;;  %v1050_v25 = vshll.u32 %v6025_v6, 16  ;;  %v887_v32 = vld [vmem:[#allocation2 + $0x48] sm:$0xf] }
  0x65   : > { %5188 = vmatmul.msk.bf16.gmra.mxu3 %vm1450_vm12, %v1447_v60  ;;  %v628_v19 = vor.u32 %v626_v61, %v625_v10  ;;  %v630_v21 = vrot.slane %v625_v10, 4  ;;  %v6030_v24 = vld [vmem:[#allocation2 + $0x14] sm:$0x1]  ;;  %v1054_v26 = vshrl.u32 %v6025_v6, 16  ;;  %v472_v33 = vsel %vm5761_vm6, 0, %v471_v17 }
  0x66   : > { %v513_v27 = vpack.c.bf16 %v359_v12, %v359_v12  ;;  %v514_v28 = vpack.c.bf16 %v360_v15, %v360_v15  ;;  %v1048_v29 = vrot.slane %v1047_v18, 4  ;;  %v1060_v30 = vshll.u32 %v6030_v24, 16  ;;  %v891_v38 = vld [vmem:[#allocation2 + $0x50] sm:$0x1]  ;;  %473 = vst [vmem:[#allocation2 + $0x80] sm:$0x1] %v472_v33 }
  0x67   : > { %v629_v13 = vsel %vm5819_vm8, %v621_v0, %v628_v19  ;;  %v1052_v36 = vrot.slane %v1050_v25, 5  ;;  %v1056_v37 = vrot.slane %v1054_v26, 4  ;;  %v888_v49 = vsel %vm5825_vm9, %v620_v11, %v887_v32  ;;  %v915_v61 = vld [vmem:[#allocation2 + $0x78] sm:$0xf]  ;;  %v6064_v9 = vld [vmem:[%s7315_s2] ss:$0 sm:$0xff] }
  0x68   : > { %890 = vst.msk [vmem:[#allocation2 + $0x4c] sm:$0xf] %vm373_vm5, %v629_v13  ;;  %v1062_v40 = vrot.slane %v1060_v30, 5  ;;  %v892_v41 = vsel %vm5752_vm3, %v630_v21, %v891_v38  ;;  %v683_v42 = vshrl.u32 %v513_v27, 16  ;;  %v686_v43 = vshll.u32 %v513_v27, 16 }
  0x69   : > { %889 = vst [vmem:[#allocation2 + $0x48] sm:$0xf] %v888_v49  ;;  %v1053_v44 = vsel %vm5889_vm13, %v1048_v29, %v1052_v36  ;;  %v1057_v45 = vor.u32 %v1056_v37, %v1052_v36  ;;  %v691_v46 = vshrl.u32 %v514_v28, 16  ;;  %v694_v47 = vshll.u32 %v514_v28, 16  ;;  %v391_v37 = vld [vmem:[#allocation2 + $0x18] sm:$0x1] }
  0x6a   : > { %893 = vst [vmem:[#allocation2 + $0x50] sm:$0x1] %v892_v41  ;;  %v1404_v48 = vunpack.c.l.b16 %v1053_v44  ;;  %v685_v51 = vrot.slane %v683_v42, 7  ;;  %v300_v50 = vmul.f32 %v6051_v2, %v264_v34  ;;  %v335_v52 = vadd.f32 %v5775_v8, %v299_v39 }
  0x6b   : > { %v1058_v53 = vrot.slane %v1057_v45, 4  ;;  %v693_v54 = vrot.slane %v691_v46, 7  ;;  %v428_v55 = vsel %vm5752_vm3, 0, %v427_v16  ;;  %v484_v56 = vsel %vm5761_vm6, 0, %v483_v35 }
  0x6c   : > { %v688_v20 = vor.u32 %v686_v43, %v685_v51  ;;  %v689_v58 = vrot.slane %v685_v51, 4  ;;  %v336_v8 = vadd.f32 %v6064_v9, %v300_v50  ;;  %v367_v62 = vmax.f32 %v335_v52, 0.0  ;;  %429 = vst [vmem:[#allocation2 + $0xa8] sm:$0x1] %v428_v55 }
  0x6d   : > { %v1063_v63 = vsel %vm5889_vm13, %v1058_v53, %v1062_v40  ;;  %v696_v60 = vor.u32 %v694_v47, %v693_v54  ;;  %v698_v4 = vrot.slane %v693_v54, 4  ;;  %485 = vst [vmem:[#allocation2 + $0xb0] sm:$0x1] %v484_v56  ;;  %v275_v5 = vmul.f32 %v6051_v2, %v239_v14  ;;  %v919_v32 = vld [vmem:[#allocation2 + $0x80] sm:$0x1] }
  0x6e   : > { %v1405_v10 = vunpack.c.l.b16 %v1063_v63  ;;  %v916_v0 = vsel %vm5825_vm9, %v688_v20, %v915_v61  ;;  %v368_v12 = vmax.f32 %v336_v8, 0.0  ;;  %v521_v15 = vpack.c.bf16 %v367_v62, %v367_v62 }
  0x6f   : > { %v977_v11 = vld [vmem:[#allocation2 + $0x4c] sm:$0xf]  ;;  %v697_v21 = vsel %vm5819_vm8, %v689_v58, %v696_v60  ;;  %917 = vst [vmem:[#allocation2 + $0x78] sm:$0xf] %v916_v0  ;;  %v276_v22 = vmul.f32 %v6051_v2, %v240_v57  ;;  %v920_v35 = vsel %vm5752_vm3, %v698_v4, %v919_v32  ;;  %v311_v43 = vadd.f32 %v6064_v9, %v275_v5  ;;  %v447_v0 = vld [vmem:[#allocation2 + $0x20] sm:$0x1] }
  0x70   : > { %v976_v17 = vld [vmem:[#allocation2 + $0x48] sm:$0xf]  ;;  %v1170_v18 = vshll.u32 %v977_v11, 16  ;;  %v1174_v19 = vshrl.u32 %v977_v11, 16  ;;  %v1435_v23 = vpack.c.b16 %v1405_v10, %v1404_v48  ;;  %918 = vst.msk [vmem:[#allocation2 + $0x7c] sm:$0xf] %vm373_vm5, %v697_v21  ;;  %v522_v28 = vpack.c.bf16 %v368_v12, %v368_v12 }
  0x71   : > { %v1003_v25 = vld [vmem:[#allocation2 + $0x50] sm:$0x1]  ;;  %v1161_v26 = vshrl.u32 %v976_v17, 16  ;;  %v1164_v27 = vshll.u32 %v976_v17, 16  ;;  %v751_v33 = vshrl.u32 %v521_v15, 16  ;;  %v754_v36 = vshll.u32 %v521_v15, 16 }
  0x72   : > { %v1172_v29 = vrot.slane %v1170_v18, 5  ;;  %v1176_v30 = vrot.slane %v1174_v19, 4  ;;  %v1180_v13 = vshll.u32 %v1003_v25, 16  ;;  %5176 = vmatmul.msk.bf16.gmra.mxu0 %vm1450_vm12, %v1435_v23  ;;  %921 = vst [vmem:[#allocation2 + $0x80] sm:$0x1] %v920_v35  ;;  %v759_v40 = vshrl.u32 %v522_v28, 16 }
  0x73   : > { %v1163_v34 = vrot.slane %v1161_v26, 4  ;;  %v1166_v16 = vrot.slane %v1164_v27, 5  ;;  %v753_v39 = vrot.slane %v751_v33, 7  ;;  %v762_v42 = vshll.u32 %v522_v28, 16  ;;  %v943_v51 = vld [vmem:[#allocation2 + $0xa8] sm:$0xf] }
  0x74   : > { %v1177_v49 = vor.u32 %v1176_v30, %v1172_v29  ;;  %v1182_v38 = vrot.slane %v1180_v13, 5  ;;  %v312_v44 = vadd.f32 %v6064_v9, %v276_v22  ;;  %v761_v48 = vrot.slane %v759_v40, 7  ;;  %v947_v11 = vld [vmem:[#allocation2 + $0xb0] sm:$0x1]  ;;  %v249_v21 = vld [vmem:[%s5770_s27 + $0x60] sm:$0xff]  ;;  %v250_v26 = vld [vmem:[%s5770_s27 + $0x68] sm:$0xff] }
  0x75   : > { %v1167_v41 = vor.u32 %v1166_v16, %v1163_v34  ;;  %v756_v46 = vor.u32 %v754_v36, %v753_v39  ;;  %v757_v47 = vrot.slane %v753_v39, 4  ;;  %v343_v14 = vmax.f32 %v311_v43, 0.0  ;;  %v406_v16 = vld [vmem:[#allocation2 + $0x54] sm:$0x1] }
  0x76   : > { %v1178_v45 = vrot.slane %v1177_v49, 4  ;;  %v984_v52 = vld [vmem:[#allocation2 + $0x78] sm:$0xf]  ;;  %v344_v53 = vmax.f32 %v312_v44, 0.0  ;;  %v392_v54 = vsel %vm5752_vm3, 0, %v391_v37  ;;  %v764_v58 = vor.u32 %v762_v42, %v761_v48  ;;  %v257_v42 = vld [vmem:[%s5770_s27 + $0xa0] sm:$0xff] }
  0x77   : > { %v1168_v50 = vrot.slane %v1167_v41, 4  ;;  %v985_v56 = vld [vmem:[#allocation2 + $0x7c] sm:$0xf]  ;;  %v1257_v57 = vshrl.u32 %v984_v52, 16  ;;  %v1260_v20 = vshll.u32 %v984_v52, 16  ;;  %v766_v18 = vrot.slane %v761_v48, 4 }
  0x78   : > { %v1183_v55 = vsel %vm5889_vm13, %v1178_v45, %v1182_v38  ;;  %393 = vst [vmem:[#allocation2 + $0x18] sm:$0x1] %v392_v54  ;;  %v1266_v62 = vshll.u32 %v985_v56, 16  ;;  %v1270_v63 = vshrl.u32 %v985_v56, 16  ;;  %v765_v10 = vsel %vm5819_vm8, %v757_v47, %v764_v58 }
  0x79   : > { %v1173_v61 = vsel %vm5889_vm13, %v1168_v50, %v1172_v29  ;;  %v1415_v8 = vunpack.c.l.b16 %v1183_v55  ;;  %v1259_v4 = vrot.slane %v1257_v57, 4  ;;  %v1262_v5 = vrot.slane %v1260_v20, 5  ;;  %v1007_v12 = vld [vmem:[#allocation2 + $0x80] sm:$0x1]  ;;  %946 = vst.msk [vmem:[#allocation2 + $0xac] sm:$0xf] %vm373_vm5, %v765_v10 }
  0x7a   : > { %v1414_v60 = vunpack.c.l.b16 %v1173_v61  ;;  %v1268_v15 = vrot.slane %v1266_v62, 5  ;;  %v1272_v17 = vrot.slane %v1270_v63, 4  ;;  %v944_v19 = vsel %vm5825_vm9, %v756_v46, %v943_v51  ;;  %v462_v62 = vld [vmem:[#allocation2 + $0x5c] sm:$0x1] }
  0x7b   : > { %v1263_v23 = vor.u32 %v1262_v5, %v1259_v4  ;;  %v1276_v25 = vshll.u32 %v1007_v12, 16  ;;  %945 = vst [vmem:[#allocation2 + $0xa8] sm:$0xf] %v944_v19  ;;  %v948_v28 = vsel %vm5752_vm3, %v766_v18, %v947_v11  ;;  %v448_v29 = vsel %vm5761_vm6, 0, %v447_v0  ;;  %v418_v11 = vld [vmem:[#allocation2 + $0x84] sm:$0x1] }
  0x7c   : > { %v1440_v22 = vpack.c.b16 %v1415_v8, %v1414_v60  ;;  %v1273_v27 = vor.u32 %v1272_v17, %v1268_v15  ;;  %v497_v30 = vpack.c.bf16 %v343_v14, %v343_v14  ;;  %949 = vst [vmem:[#allocation2 + $0xb0] sm:$0x1] %v948_v28  ;;  %v498_v33 = vpack.c.bf16 %v344_v53, %v344_v53  ;;  %v258_v17 = vld [vmem:[%s5770_s27 + $0xa8] sm:$0xff] }
  0x7d   : > { %v1264_v13 = vrot.slane %v1263_v23, 4  ;;  %v1278_v32 = vrot.slane %v1276_v25, 5  ;;  %v285_v34 = vmul.f32 %v6051_v2, %v249_v21  ;;  %449 = vst [vmem:[#allocation2 + $0x20] sm:$0x1] %v448_v29  ;;  %v286_v49 = vmul.f32 %v6051_v2, %v250_v26 }
  0x7e   : > { %5181 = vmatmul.msk.bf16.gmra.mxu1 %vm1450_vm12, %v1440_v22  ;;  %v1274_v35 = vrot.slane %v1273_v27, 4  ;;  %v547_v36 = vshrl.u32 %v497_v30, 16  ;;  %v550_v37 = vshll.u32 %v497_v30, 16  ;;  %v555_v39 = vshrl.u32 %v498_v33, 16 }
  0x7f   : > { %v1269_v38 = vsel %vm5889_vm13, %v1264_v13, %v1268_v15  ;;  %v558_v40 = vshll.u32 %v498_v33, 16  ;;  %v321_v41 = vadd.f32 %v6064_v9, %v285_v34  ;;  %v322_v46 = vadd.f32 %v6064_v9, %v286_v49  ;;  %v859_v51 = vld [vmem:[#allocation2 + $0x18] sm:$0xf]  ;;  %v474_v33 = vld [vmem:[#allocation2 + $0x8c] sm:$0x1] }
  0x80   : > { %v1279_v43 = vsel %vm5889_vm13, %v1274_v35, %v1278_v32  ;;  %v1422_v44 = vunpack.c.l.b16 %v1269_v38  ;;  %v549_v45 = vrot.slane %v547_v36, 7  ;;  %v557_v48 = vrot.slane %v555_v39, 7  ;;  %v993_v20 = vld [vmem:[#allocation2 + $0xac] sm:$0xf] }
  0x81   : > { %v1423_v47 = vunpack.c.l.b16 %v1279_v43  ;;  %v353_v50 = vmax.f32 %v321_v41, 0.0  ;;  %v407_v52 = vsel %vm5752_vm3, 0, %v406_v16  ;;  %v354_v55 = vmax.f32 %v322_v46, 0.0 }
  0x82   : > { %v992_v14 = vld [vmem:[#allocation2 + $0xa8] sm:$0xf]  ;;  %v552_v53 = vor.u32 %v550_v37, %v549_v45  ;;  %v553_v54 = vrot.slane %v549_v45, 4  ;;  %408 = vst [vmem:[#allocation2 + $0x54] sm:$0x1] %v407_v52  ;;  %v293_v56 = vmul.f32 %v6051_v2, %v257_v42  ;;  %v560_v8 = vor.u32 %v558_v40, %v557_v48 }
  0x83   : > { %v1444_v57 = vpack.c.b16 %v1423_v47, %v1422_v44  ;;  %v1353_v58 = vshrl.u32 %v992_v14, 16  ;;  %v1356_v61 = vshll.u32 %v992_v14, 16  ;;  %v1011_v63 = vld [vmem:[#allocation2 + $0xb0] sm:$0x1]  ;;  %v1362_v60 = vshll.u32 %v993_v20, 16 }
  0x84   : > { %v1366_v4 = vshrl.u32 %v993_v20, 16  ;;  %v562_v5 = vrot.slane %v557_v48, 4  ;;  %v860_v10 = vsel %vm5825_vm9, %v552_v53, %v859_v51  ;;  %v1372_v15 = vshll.u32 %v1011_v63, 16  ;;  %v863_v22 = vld [vmem:[#allocation2 + $0x20] sm:$0x1] }
  0x85   : > { %5185 = vmatmul.msk.bf16.gmra.mxu2 %vm1450_vm12, %v1444_v57  ;;  %v1355_v0 = vrot.slane %v1353_v58, 4  ;;  %v1358_v12 = vrot.slane %v1356_v61, 5  ;;  %861 = vst [vmem:[#allocation2 + $0x18] sm:$0xf] %v860_v10  ;;  %v1364_v18 = vrot.slane %v1362_v60, 5  ;;  %v561_v21 = vsel %vm5819_vm8, %v553_v54, %v560_v8  ;;  %v265_v60 = vld [vmem:[%s5770_s27 + $0xe0] sm:$0xff] }
  0x86   : > { %v1368_v19 = vrot.slane %v1366_v4, 4  ;;  %v463_v23 = vsel %vm5761_vm6, 0, %v462_v62  ;;  %v1374_v26 = vrot.slane %v1372_v15, 5  ;;  %862 = vst.msk [vmem:[#allocation2 + $0x1c] sm:$0xf] %vm373_vm5, %v561_v21  ;;  %v864_v27 = vsel %vm5752_vm3, %v562_v5, %v863_v22  ;;  %v266_v21 = vld [vmem:[%s5770_s27 + $0xe8] sm:$0xff] }
  0x87   : > { %v1359_v25 = vor.u32 %v1358_v12, %v1355_v0  ;;  %v507_v28 = vpack.c.bf16 %v353_v50, %v353_v50  ;;  %865 = vst [vmem:[#allocation2 + $0x20] sm:$0x1] %v864_v27  ;;  %v508_v30 = vpack.c.bf16 %v354_v55, %v354_v55  ;;  %v294_v13 = vmul.f32 %v6051_v2, %v258_v17  ;;  %v430_v12 = vld [vmem:[#allocation2 + $0xb4] sm:$0x1]  ;;  %v486_v22 = vld [vmem:[#allocation2 + $0xbc] sm:$0x1] }
  0x88   : > { %v1369_v29 = vor.u32 %v1368_v19, %v1364_v18  ;;  %v329_v32 = vadd.f32 %v6064_v9, %v293_v56  ;;  %464 = vst [vmem:[#allocation2 + $0x5c] sm:$0x1] %v463_v23  ;;  %v419_v36 = vsel %vm5752_vm3, 0, %v418_v11  ;;  %v475_v43 = vsel %vm5761_vm6, 0, %v474_v33 }
  0x89   : > { %v1360_v34 = vrot.slane %v1359_v25, 4  ;;  %v632_v16 = vshrl.u32 %v507_v28, 16  ;;  %v635_v35 = vshll.u32 %v507_v28, 16  ;;  %v640_v49 = vshrl.u32 %v508_v30, 16  ;;  %420 = vst [vmem:[#allocation2 + $0x84] sm:$0x1] %v419_v36 }
  0x8a   : > { %v1370_v37 = vrot.slane %v1369_v29, 4  ;;  %v643_v38 = vshll.u32 %v508_v30, 16  ;;  %v330_v39 = vadd.f32 %v6064_v9, %v294_v13  ;;  %v361_v42 = vmax.f32 %v329_v32, 0.0  ;;  %476 = vst [vmem:[#allocation2 + $0x8c] sm:$0x1] %v475_v43  ;;  %v242_v36 = vld [vmem:[%s5770_s27 + $0x28] sm:$0xff] }
  0x8b   : > { %v1365_v40 = vsel %vm5889_vm13, %v1360_v34, %v1364_v18  ;;  %v634_v41 = vrot.slane %v632_v16, 7  ;;  %v642_v47 = vrot.slane %v640_v49, 7  ;;  %v894_v53 = vld [vmem:[#allocation2 + $0x54] sm:$0xf]  ;;  %v301_v13 = vmul.f32 %v6051_v2, %v265_v60 }
  0x8c   : > { %v1375_v44 = vsel %vm5889_vm13, %v1370_v37, %v1374_v26  ;;  %v1430_v45 = vunpack.c.l.b16 %v1365_v40  ;;  %v968_v46 = vld [vmem:[#allocation2 + $0x18] sm:$0xf]  ;;  %v362_v48 = vmax.f32 %v330_v39, 0.0  ;;  %v515_v20 = vpack.c.bf16 %v361_v42, %v361_v42 }
  0x8d   : > { %v1431_v51 = vunpack.c.l.b16 %v1375_v44  ;;  %v1065_v50 = vshrl.u32 %v968_v46, 16  ;;  %v1068_v52 = vshll.u32 %v968_v46, 16  ;;  %v637_v14 = vor.u32 %v635_v35, %v634_v41  ;;  %v6133_v54 = vld [vmem:[#allocation2 + $0x1c] sm:$0xf]  ;;  %v241_v35 = vld [vmem:[%s5770_s27 + $0x20] sm:$0xff] }
  0x8e   : > { %v638_v55 = vrot.slane %v634_v41, 4  ;;  %v645_v56 = vor.u32 %v643_v38, %v642_v47  ;;  %v647_v57 = vrot.slane %v642_v47, 4  ;;  %v6135_v61 = vld [vmem:[#allocation2 + $0x20] sm:$0x1]  ;;  %v1074_v63 = vshll.u32 %v6133_v54, 16 }
  0x8f   : > { %v1448_v58 = vpack.c.b16 %v1431_v51, %v1430_v45  ;;  %v1067_v8 = vrot.slane %v1065_v50, 4  ;;  %v1070_v62 = vrot.slane %v1068_v52, 5  ;;  %v1078_v4 = vshrl.u32 %v6133_v54, 16  ;;  %v898_v0 = vld [vmem:[#allocation2 + $0x5c] sm:$0x1] }
  0x90   : > { %v1084_v5 = vshll.u32 %v6135_v61, 16  ;;  %v646_v10 = vsel %vm5819_vm8, %v638_v55, %v645_v56  ;;  %v895_v11 = vsel %vm5825_vm9, %v637_v14, %v894_v53  ;;  %v1076_v17 = vrot.slane %v1074_v63, 5  ;;  %v922_v38 = vld [vmem:[#allocation2 + $0x84] sm:$0xf] }
  0x91   : > { %5189 = vmatmul.msk.bf16.gmra.mxu3 %vm1450_vm12, %v1448_v58  ;;  %v1071_v15 = vor.u32 %v1070_v62, %v1067_v8  ;;  %896 = vst [vmem:[#allocation2 + $0x54] sm:$0xf] %v895_v11  ;;  %v899_v18 = vsel %vm5752_vm3, %v647_v57, %v898_v0  ;;  %v516_v19 = vpack.c.bf16 %v362_v48, %v362_v48  ;;  %v1080_v23 = vrot.slane %v1078_v4, 4  ;;  %v926_v47 = vld [vmem:[#allocation2 + $0x8c] sm:$0x1] }
  0x92   : > { %v1086_v25 = vrot.slane %v1084_v5, 5  ;;  %897 = vst.msk [vmem:[#allocation2 + $0x58] sm:$0xf] %vm373_vm5, %v646_v10  ;;  %v700_v26 = vshrl.u32 %v515_v20, 16  ;;  %v703_v27 = vshll.u32 %v515_v20, 16  ;;  %v302_v34 = vmul.f32 %v6051_v2, %v266_v21 }
  0x93   : > { %v1072_v28 = vrot.slane %v1071_v15, 4  ;;  %900 = vst [vmem:[#allocation2 + $0x5c] sm:$0x1] %v899_v18  ;;  %v708_v29 = vshrl.u32 %v516_v19, 16  ;;  %v711_v30 = vshll.u32 %v516_v19, 16  ;;  %v1081_v32 = vor.u32 %v1080_v23, %v1076_v17 }
  0x94   : > { %v702_v33 = vrot.slane %v700_v26, 7  ;;  %v431_v16 = vsel %vm5752_vm3, 0, %v430_v12  ;;  %v337_v39 = vadd.f32 %v6064_v9, %v301_v13  ;;  %v487_v40 = vsel %vm5761_vm6, 0, %v486_v22  ;;  %v394_v19 = vld [vmem:[#allocation2 + $0x24] sm:$0x1] }
  0x95   : > { %v1077_v37 = vsel %vm5889_vm13, %v1072_v28, %v1076_v17  ;;  %v710_v49 = vrot.slane %v708_v29, 7  ;;  %432 = vst [vmem:[#allocation2 + $0xb4] sm:$0x1] %v431_v16  ;;  %v1082_v41 = vrot.slane %v1081_v32, 4  ;;  %v338_v48 = vadd.f32 %v6064_v9, %v302_v34 }
  0x96   : > { %v1406_v42 = vunpack.c.l.b16 %v1077_v37  ;;  %v705_v43 = vor.u32 %v703_v27, %v702_v33  ;;  %v706_v44 = vrot.slane %v702_v33, 4  ;;  %488 = vst [vmem:[#allocation2 + $0xbc] sm:$0x1] %v487_v40  ;;  %v369_v51 = vmax.f32 %v337_v39, 0.0 }
  0x97   : > { %v713_v45 = vor.u32 %v711_v30, %v710_v49  ;;  %v715_v46 = vrot.slane %v710_v49, 4  ;;  %v1087_v50 = vsel %vm5889_vm13, %v1082_v41, %v1086_v25  ;;  %v277_v53 = vmul.f32 %v6051_v2, %v241_v35  ;;  %v450_v25 = vld [vmem:[#allocation2 + $0x2c] sm:$0x1] }
  0x98   : > { %v978_v52 = vld [vmem:[#allocation2 + $0x54] sm:$0xf]  ;;  %v923_v14 = vsel %vm5825_vm9, %v705_v43, %v922_v38  ;;  %v278_v55 = vmul.f32 %v6051_v2, %v242_v36  ;;  %v1407_v56 = vunpack.c.l.b16 %v1087_v50  ;;  %v523_v4 = vpack.c.bf16 %v369_v51, %v369_v51 }
  0x99   : > { %v6168_v57 = vld [vmem:[#allocation2 + $0x58] sm:$0xf]  ;;  %v1185_v20 = vshrl.u32 %v978_v52, 16  ;;  %v1188_v58 = vshll.u32 %v978_v52, 16  ;;  %v714_v8 = vsel %vm5819_vm8, %v706_v44, %v713_v45  ;;  %924 = vst [vmem:[#allocation2 + $0x84] sm:$0xf] %v923_v14  ;;  %v927_v2 = vsel %vm5752_vm3, %v715_v46, %v926_v47 }
  0x9a   : > { %v6172_v62 = vld [vmem:[#allocation2 + $0x5c] sm:$0x1]  ;;  %v1194_v63 = vshll.u32 %v6168_v57, 16  ;;  %v1198_v60 = vshrl.u32 %v6168_v57, 16  ;;  %925 = vst.msk [vmem:[#allocation2 + $0x88] sm:$0xf] %vm373_vm5, %v714_v8  ;;  %v1436_v5 = vpack.c.b16 %v1407_v56, %v1406_v42  ;;  %v313_v23 = vadd.f32 %v6064_v9, %v277_v53 }
  0x9b   : > { %v1187_v10 = vrot.slane %v1185_v20, 4  ;;  %v1190_v11 = vrot.slane %v1188_v58, 5  ;;  %v1204_v0 = vshll.u32 %v6172_v62, 16  ;;  %928 = vst [vmem:[#allocation2 + $0x8c] sm:$0x1] %v927_v2  ;;  %v370_v17 = vmax.f32 %v338_v48, 0.0 }
  0x9c   : > { %v1196_v12 = vrot.slane %v1194_v63, 5  ;;  %v1200_v15 = vrot.slane %v1198_v60, 4  ;;  %v768_v18 = vshrl.u32 %v523_v4, 16  ;;  %5177 = vmatmul.msk.bf16.gmra.mxu0 %vm1450_vm12, %v1436_v5  ;;  %v771_v22 = vshll.u32 %v523_v4, 16  ;;  %v950_v37 = vld [vmem:[#allocation2 + $0xb4] sm:$0xf] }
  0x9d   : > { %v1191_v21 = vor.u32 %v1190_v11, %v1187_v10  ;;  %v1206_v27 = vrot.slane %v1204_v0, 5  ;;  %v524_v28 = vpack.c.bf16 %v370_v17, %v370_v17  ;;  %v314_v13 = vadd.f32 %v6064_v9, %v278_v55  ;;  %v954_v63 = vld [vmem:[#allocation2 + $0xbc] sm:$0x1] }
  0x9e   : > { %v1201_v26 = vor.u32 %v1200_v15, %v1196_v12  ;;  %v770_v29 = vrot.slane %v768_v18, 7  ;;  %v345_v32 = vmax.f32 %v313_v23, 0.0  ;;  %v395_v33 = vsel %vm5752_vm3, 0, %v394_v19 }
  0x9f   : > { %v1192_v30 = vrot.slane %v1191_v21, 4  ;;  %v776_v36 = vshrl.u32 %v524_v28, 16  ;;  %v451_v49 = vsel %vm5761_vm6, 0, %v450_v25  ;;  %v779_v42 = vshll.u32 %v524_v28, 16  ;;  %396 = vst [vmem:[#allocation2 + $0x24] sm:$0x1] %v395_v33 }
  0xa0   : > { %v1202_v34 = vrot.slane %v1201_v26, 4  ;;  %v986_v16 = vld [vmem:[#allocation2 + $0x84] sm:$0xf]  ;;  %v773_v35 = vor.u32 %v771_v22, %v770_v29  ;;  %452 = vst [vmem:[#allocation2 + $0x2c] sm:$0x1] %v451_v49  ;;  %v774_v53 = vrot.slane %v770_v29, 4  ;;  %v499_v11 = vpack.c.bf16 %v345_v32, %v345_v32 }
  0xa1   : > { %v1197_v38 = vsel %vm5889_vm13, %v1192_v30, %v1196_v12  ;;  %v987_v39 = vld [vmem:[#allocation2 + $0x88] sm:$0xf]  ;;  %v1281_v40 = vshrl.u32 %v986_v16, 16  ;;  %v1284_v41 = vshll.u32 %v986_v16, 16  ;;  %v778_v55 = vrot.slane %v776_v36, 7 }
  0xa2   : > { %v1207_v9 = vsel %vm5889_vm13, %v1202_v34, %v1206_v27  ;;  %v1416_v43 = vunpack.c.l.b16 %v1197_v38  ;;  %v1008_v44 = vld [vmem:[#allocation2 + $0x8c] sm:$0x1]  ;;  %v1290_v45 = vshll.u32 %v987_v39, 16  ;;  %v1294_v46 = vshrl.u32 %v987_v39, 16  ;;  %v5634_v27 = vld [vmem:[#allocation2 + $0x8] sm:$0x1] }
  0xa3   : > { %v1417_v47 = vunpack.c.l.b16 %v1207_v9  ;;  %v1283_v48 = vrot.slane %v1281_v40, 4  ;;  %v1286_v51 = vrot.slane %v1284_v41, 5  ;;  %v1300_v50 = vshll.u32 %v1008_v44, 16  ;;  %v1812_v16 = vld [vmem:[#allocation2] sm:$0xe] }
  0xa4   : > { %v1292_v52 = vrot.slane %v1290_v45, 5  ;;  %v1296_v14 = vrot.slane %v1294_v46, 4  ;;  %v951_v8 = vsel %vm5825_vm9, %v773_v35, %v950_v37  ;;  %v781_v2 = vor.u32 %v779_v42, %v778_v55  ;;  %v5435_v9 = vld [vmem:[%s7316_s3 + $0xc] sm:$0x3] }
  0xa5   : > { %v1441_v56 = vpack.c.b16 %v1417_v47, %v1416_v43  ;;  %v1287_v20 = vor.u32 %v1286_v51, %v1283_v48  ;;  %v1302_v58 = vrot.slane %v1300_v50, 5  ;;  %v783_v4 = vrot.slane %v778_v55, 4  ;;  %952 = vst [vmem:[#allocation2 + $0xb4] sm:$0xf] %v951_v8  ;;  %v2483_v47 = vld [vmem:[#allocation2 + $0xc] sm:$0xf] }
  0xa6   : > { %v1297_v60 = vor.u32 %v1296_v14, %v1292_v52  ;;  %v346_v5 = vmax.f32 %v314_v13, 0.0  ;;  %v782_v12 = vsel %vm5819_vm8, %v774_v53, %v781_v2  ;;  %v564_v19 = vshrl.u32 %v499_v11, 16  ;;  %v5635_v13 = vld [vmem:[#allocation2 + $0x4] sm:$0xf] }
  0xa7   : > { %5182 = vmatmul.msk.bf16.gmra.mxu1 %vm1450_vm12, %v1441_v56  ;;  %v1288_v10 = vrot.slane %v1287_v20, 4  ;;  %v955_v15 = vsel %vm5752_vm3, %v783_v4, %v954_v63  ;;  %953 = vst.msk [vmem:[#allocation2 + $0xb8] sm:$0xf] %vm373_vm5, %v782_v12  ;;  %v567_v21 = vshll.u32 %v499_v11, 16  ;;  %v1868_v28 = vrot.slane %v5634_v27, 5 }
  0xa8   : > { %v1298_v0 = vrot.slane %v1297_v60, 4  ;;  %v500_v17 = vpack.c.bf16 %v346_v5, %v346_v5  ;;  %956 = vst [vmem:[#allocation2 + $0xbc] sm:$0x1] %v955_v15  ;;  %v566_v30 = vrot.slane %v564_v19, 7  ;;  %v1865_v32 = vrot.slane %v5635_v13, 5  ;;  %v5570_v5 = vld [vmem:[#allocation2] sm:$0xff] }
  0xa9   : > { %v1293_v18 = vsel %vm5889_vm13, %v1288_v10, %v1292_v52  ;;  %v866_v34 = vld [vmem:[#allocation2 + $0x24] sm:$0xf]  ;;  %v870_v38 = vld [vmem:[#allocation2 + $0x2c] sm:$0x1]  ;;  %v5271_v44 = vrot.slane %v1812_v16, 9  ;;  %v3699_v46 = vsel %vm1499_vm0, %v5435_v9, 0 }
  0xaa   : > { %v1303_v22 = vsel %vm5889_vm13, %v1298_v0, %v1302_v58  ;;  %v1424_v23 = vunpack.c.l.b16 %v1293_v18  ;;  %v572_v25 = vshrl.u32 %v500_v17, 16  ;;  %v575_v26 = vshll.u32 %v500_v17, 16  ;;  %3708 = vmatpush.bf16.msra.mxu2 %v3699_v46  ;;  %v2484_v0 = vld [vmem:[#allocation2 + $0x10] sm:$0xf] }
  0xab   : > { %v1425_v29 = vunpack.c.l.b16 %v1303_v22  ;;  %v569_v37 = vor.u32 %v567_v21, %v566_v30  ;;  %v570_v49 = vrot.slane %v566_v30, 4  ;;  %v1867_v45 = vrot.slane %v1865_v32, 4 }
  0xac   : > { %v574_v33 = vrot.slane %v572_v25, 7  ;;  %v994_v36 = vld [vmem:[#allocation2 + $0xb4] sm:$0xf]  ;;  %v2532_v63 = vshrl.u32 %v2483_v47, 16  ;;  %v2535_v60 = vshll.u32 %v2483_v47, 16  ;;  %v1866_v10 = vsel %vm6216_vm2, %v5271_v44, %v1865_v32 }
  0xad   : > { %v1445_v35 = vpack.c.b16 %v1425_v29, %v1424_v23  ;;  %v1377_v39 = vshrl.u32 %v994_v36, 16  ;;  %v1380_v40 = vshll.u32 %v994_v36, 16  ;;  %v867_v43 = vsel %vm5825_vm9, %v569_v37, %v866_v34  ;;  %v5418_v37 = vld [vmem:[%s7316_s3 + $0xa] sm:$0x3] }
  0xae   : > { %v577_v41 = vor.u32 %v575_v26, %v574_v33  ;;  %v579_v42 = vrot.slane %v574_v33, 4  ;;  %v995_v48 = vld [vmem:[#allocation2 + $0xb8] sm:$0xf]  ;;  %868 = vst [vmem:[#allocation2 + $0x24] sm:$0xf] %v867_v43  ;;  %v1869_v11 = vsel %vm6216_vm2, %v1867_v45, %v1868_v28  ;;  %v1977_v19 = vunpack.c.l.b16 %v1866_v10 }
  0xaf   : > { %5186 = vmatmul.msk.bf16.gmra.mxu2 %vm1450_vm12, %v1445_v35  ;;  %v1379_v51 = vrot.slane %v1377_v39, 4  ;;  %v1382_v50 = vrot.slane %v1380_v40, 5  ;;  %v1012_v55 = vld [vmem:[#allocation2 + $0xbc] sm:$0x1]  ;;  %v1386_v56 = vshll.u32 %v995_v48, 16  ;;  %v1390_v20 = vshrl.u32 %v995_v48, 16 }
  0xb0   : > { %v578_v52 = vsel %vm5819_vm8, %v570_v49, %v577_v41  ;;  %v871_v14 = vsel %vm5752_vm3, %v579_v42, %v870_v38  ;;  %v1396_v8 = vshll.u32 %v1012_v55, 16  ;;  %v1978_v21 = vunpack.c.l.b16 %v1869_v11  ;;  %v5516_v33 = vld [vmem:[%s7316_s3 + $0xe] sm:$0x3]  ;;  %v5549_v41 = vld [vmem:[%s7316_s3 + $0x10] sm:$0x3] }
  0xb1   : > { %869 = vst.msk [vmem:[#allocation2 + $0x28] sm:$0xf] %vm373_vm5, %v578_v52  ;;  %v1383_v58 = vor.u32 %v1382_v50, %v1379_v51  ;;  %v1388_v2 = vrot.slane %v1386_v56, 5  ;;  %v1392_v4 = vrot.slane %v1390_v20, 4  ;;  %v2541_v22 = vshll.u32 %v2484_v0, 16 }
  0xb2   : > { %872 = vst [vmem:[#allocation2 + $0x2c] sm:$0x1] %v871_v14  ;;  %v1398_v17 = vrot.slane %v1396_v8, 5  ;;  %v2534_v26 = vrot.slane %v2532_v63, 4  ;;  %v2537_v27 = vrot.slane %v2535_v60, 5  ;;  %v2545_v29 = vshrl.u32 %v2484_v0, 16 }
  0xb3   : > { %v1384_v12 = vrot.slane %v1383_v58, 4  ;;  %v1393_v15 = vor.u32 %v1392_v4, %v1388_v2  ;;  %v2009_v43 = vpack.c.b16 %v1978_v21, %v1977_v19  ;;  %v2543_v44 = vrot.slane %v2541_v22, 5  ;;  %v1813_v55 = vld [vmem:[#allocation2 + $0xc] sm:$0xe]  ;;  %v2485_v20 = vld [vmem:[#allocation2 + $0x14] sm:$0x1] }
  0xb4   : > { %v2547_v47 = vrot.slane %v2545_v29, 4  ;;  %v4353_v48 = vsel %vm1499_vm0, %v5516_v33, 0  ;;  %v3412_v52 = vsel %vm1499_vm0, %v5418_v37, 0  ;;  %v4751_v14 = vsel %vm1499_vm0, %v5549_v41, 0  ;;  %v2486_v29 = vld [vmem:[#allocation2 + $0x18] sm:$0xf] }
  0xb5   : > { %v1389_v18 = vsel %vm5889_vm13, %v1384_v12, %v1388_v2  ;;  %v1394_v23 = vrot.slane %v1393_v15, 4  ;;  %v970_v25 = vld [vmem:[#allocation2 + $0x24] sm:$0xf]  ;;  %4362 = vmatpush.bf16.msra.mxu3 %v4353_v48  ;;  %3421 = vmatpush.bf16.msra.mxu1 %v3412_v52  ;;  %v1872_v58 = vrot.slane %v6025_v6, 5  ;;  %v2538_v63 = vor.u32 %v2537_v27, %v2534_v26  ;;  %v5571_v6 = vld [vmem:[#allocation2 + $0xc] sm:$0xff] }
  0xb6   : > { %v1432_v30 = vunpack.c.l.b16 %v1389_v18  ;;  %v1089_v28 = vshrl.u32 %v970_v25, 16  ;;  %v1092_v32 = vshll.u32 %v970_v25, 16  ;;  %4760 = vmatpush.bf16.msra.mxu0 %v4751_v14  ;;  %v5272_v2 = vrot.slane %v1813_v55, 9 }
  0xb7   : > { %5255 = vmatmul.msk.bf16.vlgmr.msrb.gmra.mxu1 %vm1450_vm12, %v5570_v5  ;;  %v1399_v34 = vsel %vm5889_vm13, %v1394_v23, %v1398_v17  ;;  %v1874_v4 = vrot.slane %v1872_v58, 4  ;;  %v1875_v5 = vrot.slane %v6030_v24, 5  ;;  %v2548_v0 = vor.u32 %v2547_v47, %v2543_v44  ;;  %v1814_v24 = vld [vmem:[#allocation2 + $0x18] sm:$0xe] }
  0xb8   : > { %v6228_v13 = vld [vmem:[#allocation2 + $0x28] sm:$0xf]  ;;  %v1433_v49 = vunpack.c.l.b16 %v1399_v34  ;;  %v1091_v38 = vrot.slane %v1089_v28, 4  ;;  %v1094_v39 = vrot.slane %v1092_v32, 5  ;;  %v2551_v12 = vshll.u32 %v2485_v20, 16 }
  0xb9   : > { %v6235_v16 = vld [vmem:[#allocation2 + $0x2c] sm:$0x1]  ;;  %v1098_v35 = vshll.u32 %v6228_v13, 16  ;;  %v1102_v36 = vshrl.u32 %v6228_v13, 16  ;;  %v1873_v18 = vsel %vm6216_vm2, %v5272_v2, %v1872_v58  ;;  %v1876_v19 = vsel %vm6216_vm2, %v1874_v4, %v1875_v5  ;;  %v2487_v32 = vld [vmem:[#allocation2 + $0x1c] sm:$0xf] }
  0xba   : > { %v1108_v40 = vshll.u32 %v6235_v16, 16  ;;  %v1449_v45 = vpack.c.b16 %v1433_v49, %v1432_v30  ;;  %v1095_v46 = vor.u32 %v1094_v39, %v1091_v38  ;;  %v2539_v21 = vrot.slane %v2538_v63, 4  ;;  %v2489_v63 = vld [vmem:[#allocation2 + $0x24] sm:$0xf]  ;;  %v5587_v2 = vld [vmem:[#allocation2 + $0x18] sm:$0xff] }
  0xbb   : > { %v1100_v42 = vrot.slane %v1098_v35, 5  ;;  %v1104_v9 = vrot.slane %v1102_v36, 4  ;;  %v2549_v22 = vrot.slane %v2548_v0, 4  ;;  %v2553_v23 = vrot.slane %v2551_v12, 5 }
  0xbc   : > { %v1110_v50 = vrot.slane %v1108_v40, 5  ;;  %5190 = vmatmul.msk.bf16.gmra.mxu3 %vm1450_vm12, %v1449_v45  ;;  %v1096_v56 = vrot.slane %v1095_v46, 4  ;;  %v1879_v25 = vrot.slane %v6133_v54, 5  ;;  %v1979_v26 = vunpack.c.l.b16 %v1873_v18  ;;  %v5586_v54 = vld [vmem:[#allocation2 + $0xc] sm:$0xff] }
  0xbd   : > { %v1105_v51 = vor.u32 %v1104_v9, %v1100_v42  ;;  %v1980_v27 = vunpack.c.l.b16 %v1876_v19  ;;  %v5273_v30 = vrot.slane %v1814_v24, 9  ;;  %v1882_v28 = vrot.slane %v6135_v61, 5  ;;  %v2491_v24 = vld [vmem:[#allocation2 + $0x2c] sm:$0x1] }
  0xbe   : > { %v1101_v60 = vsel %vm5889_vm13, %v1096_v56, %v1100_v42  ;;  %v1881_v33 = vrot.slane %v1879_v25, 4  ;;  %v2544_v34 = vsel %vm5889_vm13, %v2539_v21, %v2543_v44  ;;  %v2554_v35 = vsel %vm5889_vm13, %v2549_v22, %v2553_v23  ;;  %v5572_v56 = vld [vmem:[#allocation2 + $0x18] sm:$0xff] }
  0xbf   : > { %v1106_v8 = vrot.slane %v1105_v51, 4  ;;  %5288 = vmatmul.msk.bf16.vlgmr.msrb.gmra.mxu2 %vm1450_vm12, %v2009_v43  ;;  %v1408_v11 = vunpack.c.l.b16 %v1101_v60  ;;  %v1880_v36 = vsel %vm6216_vm2, %v5273_v30, %v1879_v25  ;;  %v2556_v37 = vshrl.u32 %v2486_v29, 16  ;;  %v2488_v51 = vld [vmem:[#allocation2 + $0x20] sm:$0x1]  ;;  %v2490_v60 = vld [vmem:[#allocation2 + $0x28] sm:$0xf] }
  0xc0   : > { %v2559_v49 = vshll.u32 %v2486_v29, 16  ;;  %v1883_v38 = vsel %vm6216_vm2, %v1881_v33, %v1882_v28  ;;  %v1981_v39 = vunpack.c.l.b16 %v1880_v36  ;;  %v2010_v40 = vpack.c.b16 %v1980_v27, %v1979_v26 }
  0xc1   : > { %v1111_v10 = vsel %vm5889_vm13, %v1106_v8, %v1110_v50  ;;  %v2565_v61 = vshll.u32 %v2487_v32, 16  ;;  %v2569_v41 = vshrl.u32 %v2487_v32, 16  ;;  %v1982_v42 = vunpack.c.l.b16 %v1883_v38  ;;  %v5573_v32 = vld [vmem:[#allocation2 + $0x24] sm:$0xff]  ;;  %v2493_v38 = vld [vmem:[#allocation2 + $0x34] sm:$0xf] }
  0xc2   : > { %v1409_v15 = vunpack.c.l.b16 %v1111_v10  ;;  %v2917_v43 = vunpack.c.l.b16 %v2544_v34  ;;  %v2918_v44 = vunpack.c.l.b16 %v2554_v35  ;;  %v2558_v45 = vrot.slane %v2556_v37, 4 }
  0xc3   : > { %v2011_v9 = vpack.c.b16 %v1982_v42, %v1981_v39  ;;  %v2561_v46 = vrot.slane %v2559_v49, 5  ;;  %v2567_v47 = vrot.slane %v2565_v61, 5  ;;  %v2571_v48 = vrot.slane %v2569_v41, 4  ;;  %v2492_v49 = vld [vmem:[#allocation2 + $0x30] sm:$0xf]  ;;  %v5588_v39 = vld [vmem:[#allocation2 + $0x24] sm:$0xff] }
  0xc4   : > { %v1437_v17 = vpack.c.b16 %v1409_v15, %v1408_v11  ;;  %v2949_v50 = vpack.c.b16 %v2918_v44, %v2917_v43  ;;  %v2575_v55 = vshll.u32 %v2488_v51, 16  ;;  %v2580_v4 = vshrl.u32 %v2489_v63, 16 }
  0xc5   : > { %v2562_v52 = vor.u32 %v2561_v46, %v2558_v45  ;;  %v2572_v14 = vor.u32 %v2571_v48, %v2567_v47  ;;  %v2583_v5 = vshll.u32 %v2489_v63, 16  ;;  %v2589_v0 = vshll.u32 %v2490_v60, 16  ;;  %v5636_v45 = vld [vmem:[#allocation2 + $0x34] sm:$0xf]  ;;  %v1816_v48 = vld [vmem:[#allocation2 + $0x30] sm:$0xe] }
  0xc6   : > { %5178 = vmatmul.msk.bf16.gmra.mxu0 %vm1450_vm12, %v1437_v17  ;;  %v2577_v8 = vrot.slane %v2575_v55, 5  ;;  %v2593_v12 = vshrl.u32 %v2490_v60, 16  ;;  %v1886_v15 = vrot.slane %v6228_v13, 5  ;;  %v2582_v19 = vrot.slane %v2580_v4, 4  ;;  %v5637_v63 = vld [vmem:[#allocation2 + $0x38] sm:$0x1] }
  0xc7   : > { %5256 = vmatmul.msk.bf16.gmra.mxu1 %vm1450_vm12, %v5571_v6  ;;  %v2563_v20 = vrot.slane %v2562_v52, 4  ;;  %v2573_v58 = vrot.slane %v2572_v14, 4  ;;  %v1815_v6 = vld [vmem:[#allocation2 + $0x24] sm:$0xe]  ;;  %v2585_v21 = vrot.slane %v2583_v5, 5  ;;  %v2591_v22 = vrot.slane %v2589_v0, 5 }
  0xc8   : > { %v2595_v23 = vrot.slane %v2593_v12, 4  ;;  %v5274_v25 = vrot.slane %v1815_v6, 9  ;;  %v1888_v26 = vrot.slane %v1886_v15, 4  ;;  %v1889_v27 = vrot.slane %v6235_v16, 5  ;;  %v6304_v6 = vpop.f32.mrf.mxu2 }
  0xc9   : > { %v2568_v10 = vsel %vm5889_vm13, %v2563_v20, %v2567_v47  ;;  %v2578_v11 = vsel %vm5889_vm13, %v2573_v58, %v2577_v8  ;;  %v2586_v30 = vor.u32 %v2585_v21, %v2582_v19  ;;  %v2599_v13 = vshll.u32 %v2491_v24, 16  ;;  %v6295_v47 = vpop.f32.mrf.mxu1  ;;  %v2494_v20 = vld [vmem:[#allocation2 + $0x38] sm:$0x1]  ;;  %v2496_v24 = vld [vmem:[#allocation2 + $0x40] sm:$0xf] }
  0xca   : > { %v2919_v17 = vunpack.c.l.b16 %v2568_v10  ;;  %v2920_v18 = vunpack.c.l.b16 %v2578_v11  ;;  %v2596_v28 = vor.u32 %v2595_v23, %v2591_v22  ;;  %v1887_v33 = vsel %vm6216_vm2, %v5274_v25, %v1886_v15  ;;  %v5574_v11 = vld [vmem:[#allocation2 + $0x30] sm:$0xff] }
  0xcb   : > { %v1890_v34 = vsel %vm6216_vm2, %v1888_v26, %v1889_v27  ;;  %v2587_v35 = vrot.slane %v2586_v30, 4  ;;  %v1983_v37 = vunpack.c.l.b16 %v1887_v33  ;;  %v2604_v61 = vshrl.u32 %v2492_v49, 16  ;;  %v5589_v25 = vld [vmem:[#allocation2 + $0x30] sm:$0xff]  ;;  %v5638_v33 = vld [vmem:[#allocation2 + $0x40] sm:$0xf] }
  0xcc   : > { %5369 = vmatmul.msk.bf16.vlgmr.msrb.gmra.mxu3 %vm1450_vm12, %v5586_v54  ;;  %v2950_v29 = vpack.c.b16 %v2920_v18, %v2919_v17  ;;  %v2597_v36 = vrot.slane %v2596_v28, 4  ;;  %v2601_v54 = vrot.slane %v2599_v13, 5  ;;  %v1984_v16 = vunpack.c.l.b16 %v1890_v34 }
  0xcd   : > { %v2607_v41 = vshll.u32 %v2492_v49, 16  ;;  %v2613_v43 = vshll.u32 %v2493_v38, 16  ;;  %v2617_v44 = vshrl.u32 %v2493_v38, 16  ;;  %v1893_v46 = vrot.slane %v5636_v45, 5 }
  0xce   : > { %v2602_v42 = vsel %vm5889_vm13, %v2597_v36, %v2601_v54  ;;  %v2606_v52 = vrot.slane %v2604_v61, 4  ;;  %v5275_v58 = vrot.slane %v1816_v48, 9  ;;  %v1896_v60 = vrot.slane %v5637_v63, 5 }
  0xcf   : > { %5289 = vmatmul.msk.bf16.gmra.mxu2 %vm1450_vm12, %v2010_v40  ;;  %v2592_v40 = vsel %vm5889_vm13, %v2587_v35, %v2591_v22  ;;  %v2609_v14 = vrot.slane %v2607_v41, 5  ;;  %v2615_v55 = vrot.slane %v2613_v43, 5  ;;  %v1895_v8 = vrot.slane %v1893_v46, 4  ;;  %v2495_v22 = vld [vmem:[#allocation2 + $0x3c] sm:$0xf] }
  0xd0   : > { %v2921_v51 = vunpack.c.l.b16 %v2592_v40  ;;  %v2623_v10 = vshll.u32 %v2494_v20, 16  ;;  %v1894_v0 = vsel %vm6216_vm2, %v5275_v58, %v1893_v46  ;;  %v2628_v27 = vshrl.u32 %v2495_v22, 16  ;;  %v1817_v35 = vld [vmem:[#allocation2 + $0x3c] sm:$0xe]  ;;  %v2497_v40 = vld [vmem:[#allocation2 + $0x44] sm:$0x1]  ;;  %v6317_v61 = vpop.f32.mrf.mxu2 }
  0xd1   : > { %v2610_v4 = vor.u32 %v2609_v14, %v2606_v52  ;;  %v1897_v12 = vsel %vm6216_vm2, %v1895_v8, %v1896_v60  ;;  %v1985_v19 = vunpack.c.l.b16 %v1894_v0  ;;  %v6307_v23 = vpop.f32.mrf.mxu1  ;;  %v2637_v13 = vshll.u32 %v2496_v24, 16  ;;  %v6323_v14 = vpop.f32.mrf.mxu3  ;;  %v2498_v60 = vld [vmem:[#allocation2 + $0x48] sm:$0xf] }
  0xd2   : > { %v2625_v18 = vrot.slane %v2623_v10, 5  ;;  %v1986_v21 = vunpack.c.l.b16 %v1897_v12  ;;  %v1900_v34 = vrot.slane %v5638_v33, 5  ;;  %v5276_v41 = vrot.slane %v1817_v35, 9 }
  0xd3   : > { %v2611_v15 = vrot.slane %v2610_v4, 4  ;;  %v2639_v49 = vrot.slane %v2637_v13, 5  ;;  %v2647_v48 = vshll.u32 %v2497_v40, 16  ;;  %v2499_v4 = vld [vmem:[#allocation2 + $0x4c] sm:$0xf]  ;;  %v2655_v0 = vshll.u32 %v2498_v60, 16 }
  0xd4   : > { %v2013_v28 = vpack.c.b16 %v1986_v21, %v1985_v19  ;;  %v2665_v19 = vshrl.u32 %v2499_v4, 16  ;;  %v5640_v21 = vld [vmem:[#allocation2 + $0x4c] sm:$0xf] }
  0xd5   : > { %v2616_v26 = vsel %vm5889_vm13, %v2611_v15, %v2615_v55  ;;  %v2649_v58 = vrot.slane %v2647_v48, 5 }
  0xd6   : > { %5386 = vmatmul.msk.bf16.vlgmr.msrb.gmra.mxu0 %vm1450_vm12, %v2949_v50  ;;  %v2922_v50 = vunpack.c.l.b16 %v2602_v42  ;;  %v2923_v36 = vunpack.c.l.b16 %v2616_v26  ;;  %v1902_v42 = vrot.slane %v1900_v34, 4  ;;  %v2667_v13 = vrot.slane %v2665_v19, 4 }
  0xd7   : > { %5257 = vmatmul.msk.bf16.gmra.mxu1 %vm1450_vm12, %v5572_v56  ;;  %v2619_v56 = vrot.slane %v2617_v44, 4 }
  0xd9   : > { %v2620_v5 = vor.u32 %v2619_v56, %v2615_v55  ;;  %v6326_v56 = vpop.f32.mrf.mxu0 }
  0xdb   : > { %v2621_v17 = vrot.slane %v2620_v5, 4  ;;  %v5590_v5 = vld [vmem:[#allocation2 + $0x3c] sm:$0xff] }
  0xdc   : > { %5370 = vmatmul.msk.bf16.gmra.mxu3 %vm1450_vm12, %v5587_v2  ;;  %v2951_v2 = vpack.c.b16 %v2922_v50, %v2921_v51  ;;  %v5575_v51 = vld [vmem:[#allocation2 + $0x3c] sm:$0xff]  ;;  %v1901_v50 = vsel %vm6216_vm2, %v5276_v41, %v1900_v34  ;;  %v5576_v41 = vld [vmem:[#allocation2 + $0x48] sm:$0xff] }
  0xdd   : > { %v2626_v30 = vsel %vm5889_vm13, %v2621_v17, %v2625_v18  ;;  %v1987_v8 = vunpack.c.l.b16 %v1901_v50  ;;  %v2661_v18 = vshll.u32 %v2499_v4, 16  ;;  %v2501_v50 = vld [vmem:[#allocation2 + $0x54] sm:$0xf] }
  0xde   : > { %v2924_v54 = vunpack.c.l.b16 %v2626_v30  ;;  %v6338_v30 = vpop.f32.mrf.mxu3 }
  0xdf   : > { %5290 = vmatmul.msk.bf16.gmra.mxu2 %vm1450_vm12, %v2011_v9  ;;  %v2012_v9 = vpack.c.b16 %v1984_v16, %v1983_v37  ;;  %v2630_v37 = vrot.slane %v2628_v27, 4 }
  0xe0   : > { %v2952_v44 = vpack.c.b16 %v2924_v54, %v2923_v36  ;;  %v5641_v36 = vld [vmem:[#allocation2 + $0x50] sm:$0x1] }
  0xe1   : > { %v6333_v12 = vpop.f32.mrf.mxu2  ;;  %v1910_v54 = vrot.slane %v5641_v36, 5 }
  0xe6   : > { %5387 = vmatmul.msk.bf16.gmra.mxu0 %vm1450_vm12, %v2950_v29  ;;  %v2631_v29 = vshll.u32 %v2495_v22, 16  ;;  %v1907_v22 = vrot.slane %v5640_v21, 5 }
  0xe7   : > { %5258 = vmatmul.msk.bf16.gmra.mxu1 %vm1450_vm12, %v5573_v32  ;;  %v2641_v32 = vshrl.u32 %v2496_v24, 16  ;;  %v1818_v24 = vld [vmem:[#allocation2 + $0x48] sm:$0xe] }
  0xe8   : > { %v2633_v16 = vrot.slane %v2631_v29, 5  ;;  %v2657_v29 = vrot.slane %v2655_v0, 5  ;;  %v5277_v34 = vrot.slane %v1818_v24, 9  ;;  %v1909_v35 = vrot.slane %v1907_v22, 4 }
  0xe9   : > { %v2643_v38 = vrot.slane %v2641_v32, 4  ;;  %v2500_v32 = vld [vmem:[#allocation2 + $0x50] sm:$0x1] }
  0xea   : > { %v2634_v45 = vor.u32 %v2633_v16, %v2630_v37  ;;  %v6343_v37 = vpop.f32.mrf.mxu0  ;;  %v2671_v40 = vshll.u32 %v2500_v32, 16 }
  0xeb   : > { %v2644_v46 = vor.u32 %v2643_v38, %v2639_v49 }
  0xec   : > { %5371 = vmatmul.msk.bf16.gmra.mxu3 %vm1450_vm12, %v5588_v39  ;;  %v6315_v39 = vpop.f32.mrf.mxu1  ;;  %v2635_v55 = vrot.slane %v2634_v45, 4 }
  0xed   : > { %v2645_v20 = vrot.slane %v2644_v46, 4  ;;  %v2673_v46 = vrot.slane %v2671_v40, 5 }
  0xee   : > { %v2640_v10 = vsel %vm5889_vm13, %v2635_v55, %v2639_v49  ;;  %v6353_v55 = vpop.f32.mrf.mxu3 }
  0xef   : > { %5291 = vmatmul.msk.bf16.gmra.mxu2 %vm1450_vm12, %v2012_v9  ;;  %v5639_v9 = vld [vmem:[#allocation2 + $0x44] sm:$0x1]  ;;  %v2650_v15 = vsel %vm5889_vm13, %v2645_v20, %v2649_v58  ;;  %v5591_v20 = vld [vmem:[#allocation2 + $0x48] sm:$0xff] }
  0xf0   : > { %v1903_v43 = vrot.slane %v5639_v9, 5  ;;  %v2926_v26 = vunpack.c.l.b16 %v2650_v15  ;;  %v1908_v9 = vsel %vm6216_vm2, %v5277_v34, %v1907_v22  ;;  %v1914_v15 = vrot.slane %v6168_v57, 5 }
  0xf1   : > { %v1989_v48 = vunpack.c.l.b16 %v1908_v9  ;;  %v2505_v9 = vld [vmem:[#allocation2 + $0x64] sm:$0xf] }
  0xf2   : > { %v1904_v52 = vsel %vm6216_vm2, %v1902_v42, %v1903_v43  ;;  %v6345_v42 = vpop.f32.mrf.mxu2  ;;  %v1911_v43 = vsel %vm6216_vm2, %v1909_v35, %v1910_v54  ;;  %v6359_v4 = vpop.f32.mrf.mxu0  ;;  %v5577_v54 = vld [vmem:[#allocation2 + $0x54] sm:$0xff] }
  0xf3   : > { %v1988_v63 = vunpack.c.l.b16 %v1904_v52  ;;  %v2502_v52 = vld [vmem:[#allocation2 + $0x58] sm:$0xf] }
  0xf4   : > { %v2689_v0 = vshrl.u32 %v2502_v52, 16 }
  0xf5   : > { %v2014_v17 = vpack.c.b16 %v1988_v63, %v1987_v8  ;;  %v2676_v8 = vshrl.u32 %v2501_v50, 16  ;;  %v2679_v63 = vshll.u32 %v2501_v50, 16 }
  0xf6   : > { %5388 = vmatmul.msk.bf16.gmra.mxu0 %vm1450_vm12, %v2951_v2  ;;  %v6329_v2 = vpop.f32.mrf.mxu1  ;;  %v6369_v34 = vpop.f32.mrf.mxu3 }
  0xf7   : > { %5259 = vmatmul.msk.bf16.gmra.mxu1 %vm1450_vm12, %v5574_v11  ;;  %v2652_v11 = vshrl.u32 %v2498_v60, 16  ;;  %v2678_v21 = vrot.slane %v2676_v8, 4  ;;  %v2681_v22 = vrot.slane %v2679_v63, 5 }
  0xf9   : > { %v2654_v27 = vrot.slane %v2652_v11, 4  ;;  %v2685_v11 = vshll.u32 %v2502_v52, 16  ;;  %v2682_v57 = vor.u32 %v2681_v22, %v2678_v21  ;;  %v2709_v52 = vshll.u32 %v2505_v9, 16  ;;  %v1820_v22 = vld [vmem:[#allocation2 + $0x60] sm:$0xe] }
  0xfa   : > { %v6377_v40 = vpop.f32.mrf.mxu0 }
  0xfb   : > { %v2658_v49 = vor.u32 %v2657_v29, %v2654_v27  ;;  %v2503_v27 = vld [vmem:[#allocation2 + $0x5c] sm:$0x1] }
  0xfc   : > { %5372 = vmatmul.msk.bf16.gmra.mxu3 %vm1450_vm12, %v5589_v25  ;;  %v2925_v25 = vunpack.c.l.b16 %v2640_v10  ;;  %v2695_v36 = vshll.u32 %v2503_v27, 16 }
  0xfe   : > { %v6341_v33 = vpop.f32.mrf.mxu1  ;;  %v2953_v16 = vpack.c.b16 %v2926_v26, %v2925_v25  ;;  %v2687_v25 = vrot.slane %v2685_v11, 5  ;;  %v2691_v26 = vrot.slane %v2689_v0, 4  ;;  %v5642_v11 = vld [vmem:[#allocation2 + $0x64] sm:$0xf] }
  0xff   : > { %5292 = vmatmul.msk.bf16.gmra.mxu2 %vm1450_vm12, %v2013_v28  ;;  %v2663_v28 = vrot.slane %v2661_v18, 5  ;;  %v1921_v0 = vrot.slane %v5642_v11, 5 }
 0x100   : > { %v2692_v35 = vor.u32 %v2691_v26, %v2687_v25 }
 0x101   : > { %v2668_v38 = vor.u32 %v2667_v13, %v2663_v28  ;;  %v1917_v13 = vrot.slane %v6172_v62, 5  ;;  %v2683_v62 = vrot.slane %v2682_v57, 4  ;;  %v1923_v57 = vrot.slane %v1921_v0, 4 }
 0x103   : > { %v2669_v45 = vrot.slane %v2668_v38, 4  ;;  %v2688_v8 = vsel %vm5889_vm13, %v2683_v62, %v2687_v25  ;;  %v2506_v25 = vld [vmem:[#allocation2 + $0x68] sm:$0x1]  ;;  %v5578_v62 = vld [vmem:[#allocation2 + $0x60] sm:$0xff] }
 0x104   : > { %v2929_v26 = vunpack.c.l.b16 %v2688_v8  ;;  %v2508_v8 = vld [vmem:[#allocation2 + $0x70] sm:$0xf] }
 0x106   : > { %5389 = vmatmul.msk.bf16.gmra.mxu0 %vm1450_vm12, %v2952_v44  ;;  %v2659_v44 = vrot.slane %v2658_v49, 4  ;;  %v6357_v60 = vpop.f32.mrf.mxu1 }
 0x107   : > { %5260 = vmatmul.msk.bf16.gmra.mxu1 %vm1450_vm12, %v5575_v51  ;;  %v1990_v51 = vunpack.c.l.b16 %v1911_v43  ;;  %v2693_v43 = vrot.slane %v2692_v35, 4 }
 0x108   : > { %v2664_v58 = vsel %vm5889_vm13, %v2659_v44, %v2663_v28  ;;  %v6365_v24 = vpop.f32.mrf.mxu2  ;;  %v1916_v28 = vrot.slane %v1914_v15, 4  ;;  %v2697_v44 = vrot.slane %v2695_v36, 5 }
 0x109   : > { %v2015_v10 = vpack.c.b16 %v1990_v51, %v1989_v48  ;;  %v2927_v18 = vunpack.c.l.b16 %v2664_v58  ;;  %v5592_v58 = vld [vmem:[#allocation2 + $0x54] sm:$0xff] }
 0x10a   : > { %v1918_v38 = vsel %vm6216_vm2, %v1916_v28, %v1917_v13  ;;  %v2698_v63 = vsel %vm5889_vm13, %v2693_v43, %v2697_v44  ;;  %v5643_v28 = vld [vmem:[#allocation2 + $0x68] sm:$0x1] }
 0x10b   : > { %v2930_v27 = vunpack.c.l.b16 %v2698_v63  ;;  %v1924_v13 = vrot.slane %v5643_v28, 5 }
 0x10c   : > { %5373 = vmatmul.msk.bf16.gmra.mxu3 %vm1450_vm12, %v5590_v5  ;;  %v2674_v5 = vsel %vm5889_vm13, %v2669_v45, %v2673_v46  ;;  %v1992_v46 = vunpack.c.l.b16 %v1918_v38 }
 0x10d   : > { %v2928_v19 = vunpack.c.l.b16 %v2674_v5  ;;  %v1925_v43 = vsel %vm6216_vm2, %v1923_v57, %v1924_v13  ;;  %v1821_v57 = vld [vmem:[#allocation2 + $0x6c] sm:$0xe] }
 0x10f   : > { %5293 = vmatmul.msk.bf16.gmra.mxu2 %vm1450_vm12, %v2014_v17  ;;  %v1819_v17 = vld [vmem:[#allocation2 + $0x54] sm:$0xe]  ;;  %v2954_v32 = vpack.c.b16 %v2928_v19, %v2927_v18  ;;  %v2711_v19 = vrot.slane %v2709_v52, 5 }
 0x110   : > { %v5278_v29 = vrot.slane %v1819_v17, 9  ;;  %v6381_v48 = vpop.f32.mrf.mxu2 }
 0x112   : > { %v1915_v49 = vsel %vm6216_vm2, %v5278_v29, %v1914_v15 }
 0x113   : > { %v1991_v45 = vunpack.c.l.b16 %v1915_v49  ;;  %v2955_v49 = vpack.c.b16 %v2930_v27, %v2929_v26 }
 0x114   : > { %v6389_v15 = vpop.f32.mrf.mxu3 }
 0x115   : > { %v2016_v5 = vpack.c.b16 %v1992_v46, %v1991_v45 }
 0x116   : > { %5390 = vmatmul.msk.bf16.gmra.mxu0 %vm1450_vm12, %v2953_v16 }
 0x117   : > { %5261 = vmatmul.msk.bf16.gmra.mxu1 %vm1450_vm12, %v5576_v41  ;;  %v2504_v41 = vld [vmem:[#allocation2 + $0x60] sm:$0xf] }
 0x118   : > { %v2700_v51 = vshrl.u32 %v2504_v41, 16  ;;  %v2703_v50 = vshll.u32 %v2504_v41, 16 }
 0x119   : > { %v6392_v29 = vpop.f32.mrf.mxu0 }
 0x11a   : > { %v2702_v17 = vrot.slane %v2700_v51, 4  ;;  %v2705_v18 = vrot.slane %v2703_v50, 5 }
 0x11c   : > { %5374 = vmatmul.msk.bf16.gmra.mxu3 %vm1450_vm12, %v5591_v20  ;;  %v2713_v20 = vshrl.u32 %v2505_v9, 16  ;;  %v2706_v35 = vor.u32 %v2705_v18, %v2702_v17  ;;  %v6403_v50 = vpop.f32.mrf.mxu3 }
 0x11e   : > { %v2715_v21 = vrot.slane %v2713_v20, 4  ;;  %v2707_v44 = vrot.slane %v2706_v35, 4  ;;  %v1994_v20 = vunpack.c.l.b16 %v1925_v43 }
 0x11f   : > { %5294 = vmatmul.msk.bf16.gmra.mxu2 %vm1450_vm12, %v2015_v10 }
 0x120   : > { %v2716_v36 = vor.u32 %v2715_v21, %v2711_v19  ;;  %v2733_v21 = vshll.u32 %v2508_v8, 16 }
 0x121   : > { %v6406_v63 = vpop.f32.mrf.mxu0 }
 0x122   : > { %v2717_v45 = vrot.slane %v2716_v36, 4  ;;  %v2735_v36 = vrot.slane %v2733_v21, 5 }
 0x124   : > { %v6371_v16 = vpop.f32.mrf.mxu1 }
 0x126   : > { %5391 = vmatmul.msk.bf16.gmra.mxu0 %vm1450_vm12, %v2954_v32  ;;  %v5279_v32 = vrot.slane %v1820_v22, 9  ;;  %v2737_v22 = vshrl.u32 %v2508_v8, 16 }
 0x127   : > { %5262 = vmatmul.msk.bf16.gmra.mxu1 %vm1450_vm12, %v5577_v54  ;;  %v2719_v54 = vshll.u32 %v2506_v25, 16  ;;  %v5644_v25 = vld [vmem:[#allocation2 + $0x70] sm:$0xf] }
 0x128   : > { %v1922_v9 = vsel %vm6216_vm2, %v5279_v32, %v1921_v0  ;;  %v5593_v0 = vld [vmem:[#allocation2 + $0x60] sm:$0xff]  ;;  %v1928_v28 = vrot.slane %v5644_v25, 5 }
 0x129   : > { %v2721_v46 = vrot.slane %v2719_v54, 5  ;;  %v1993_v52 = vunpack.c.l.b16 %v1922_v9  ;;  %v2739_v54 = vrot.slane %v2737_v22, 4  ;;  %v5280_v9 = vrot.slane %v1821_v57, 9  ;;  %v2511_v57 = vld [vmem:[#allocation2 + $0x7c] sm:$0xf] }
 0x12a   : > { %v1930_v43 = vrot.slane %v1928_v28, 4 }
 0x12b   : > { %v2722_v11 = vsel %vm5889_vm13, %v2717_v45, %v2721_v46  ;;  %v2017_v26 = vpack.c.b16 %v1994_v20, %v1993_v52  ;;  %v2740_v52 = vor.u32 %v2739_v54, %v2735_v36 }
 0x12c   : > { %v6387_v10 = vpop.f32.mrf.mxu1  ;;  %5375 = vmatmul.msk.bf16.gmra.mxu3 %vm1450_vm12, %v5592_v58  ;;  %v2507_v58 = vld [vmem:[#allocation2 + $0x6c] sm:$0xf]  ;;  %v2932_v32 = vunpack.c.l.b16 %v2722_v11 }
 0x12d   : > { %v2724_v17 = vshrl.u32 %v2507_v58, 16  ;;  %v2727_v18 = vshll.u32 %v2507_v58, 16  ;;  %v5579_v11 = vld [vmem:[#allocation2 + $0x6c] sm:$0xff] }
 0x12f   : > { %5295 = vmatmul.msk.bf16.gmra.mxu2 %vm1450_vm12, %v2016_v5  ;;  %v2712_v5 = vsel %vm5889_vm13, %v2707_v44, %v2711_v19  ;;  %v2726_v19 = vrot.slane %v2724_v17, 4  ;;  %v2729_v35 = vrot.slane %v2727_v18, 5  ;;  %v1929_v17 = vsel %vm6216_vm2, %v5280_v9, %v1928_v28 }
 0x130   : > { %v2931_v13 = vunpack.c.l.b16 %v2712_v5 }
 0x131   : > { %v2730_v46 = vor.u32 %v2729_v35, %v2726_v19  ;;  %v5594_v35 = vld [vmem:[#allocation2 + $0x6c] sm:$0xff] }
 0x132   : > { %v6395_v38 = vpop.f32.mrf.mxu2  ;;  %v2956_v45 = vpack.c.b16 %v2932_v32, %v2931_v13  ;;  %v1995_v13 = vunpack.c.l.b16 %v1929_v17 }
 0x133   : > { %v2731_v22 = vrot.slane %v2730_v46, 4  ;;  %v2757_v46 = vshll.u32 %v2511_v57, 16 }
 0x134   : > { %v1732_v41 = vpop.f32.mrf.mxu1 }
 0x135   : > { %v1733_v51 = vadd.f32 %v1732_v41, %v6326_v56  ;;  %v2736_v54 = vsel %vm5889_vm13, %v2731_v22, %v2735_v36 }
 0x136   : > { %5392 = vmatmul.msk.bf16.gmra.mxu0 %vm1450_vm12, %v2955_v49  ;;  %v2509_v49 = vld [vmem:[#allocation2 + $0x74] sm:$0x1] }
 0x137   : > { %5263 = vmatmul.msk.bf16.gmra.mxu1 %vm1450_vm12, %v5578_v62  ;;  %v5645_v62 = vld [vmem:[#allocation2 + $0x74] sm:$0x1]  ;;  %v2743_v20 = vshll.u32 %v2509_v49, 16 }
 0x138   : > { %v1931_v41 = vrot.slane %v5645_v62, 5 }
 0x139   : > { %v2745_v25 = vrot.slane %v2743_v20, 5 }
 0x13a   : > { %v6412_v56 = vpop.f32.mrf.mxu2  ;;  %v1932_v18 = vsel %vm6216_vm2, %v1930_v43, %v1931_v41 }
 0x13b   : > { %v1996_v32 = vunpack.c.l.b16 %v1932_v18  ;;  %v2759_v18 = vrot.slane %v2757_v46, 5 }
 0x13c   : > { %v1734_v27 = vpop.f32.mrf.mxu1  ;;  %5376 = vmatmul.msk.bf16.gmra.mxu3 %vm1450_vm12, %v5593_v0 }
 0x13d   : > { %v1735_v28 = vadd.f32 %v1734_v27, %v6343_v37  ;;  %v1822_v37 = vld [vmem:[#allocation2 + $0x78] sm:$0xe]  ;;  %v2933_v27 = vunpack.c.l.b16 %v2736_v54 }
 0x13f   : > { %5296 = vmatmul.msk.bf16.gmra.mxu2 %vm1450_vm12, %v2017_v26  ;;  %v6416_v44 = vpop.f32.mrf.mxu3  ;;  %v2741_v26 = vrot.slane %v2740_v52, 4  ;;  %v2761_v52 = vshrl.u32 %v2511_v57, 16 }
 0x140   : > { %7331 = vst [vmem:[#allocation3_spill] sm:$0xff] %v6416_v44 }
 0x141   : > { %v2763_v22 = vrot.slane %v2761_v52, 4 }
 0x142   : > { %v2085_v58 = vpop.f32.mrf.mxu2 }
 0x143   : > { %v6418_v8 = vpop.f32.mrf.mxu0  ;;  %v2165_v5 = vadd.f32 %v2085_v58, %v1733_v51  ;;  %v2510_v51 = vld [vmem:[#allocation2 + $0x78] sm:$0xf]  ;;  %v5646_v58 = vld [vmem:[#allocation2 + $0x7c] sm:$0xf] }
 0x144   : > { %v1737_v0 = vpop.f32.mrf.mxu1  ;;  %v2748_v62 = vshrl.u32 %v2510_v51, 16  ;;  %v2751_v41 = vshll.u32 %v2510_v51, 16  ;;  %v2512_v51 = vld [vmem:[#allocation2 + $0x80] sm:$0x1] }
 0x145   : > { %v1738_v21 = vadd.f32 %v1737_v0, %v6359_v4  ;;  %v2746_v4 = vsel %vm5889_vm13, %v2741_v26, %v2745_v25  ;;  %v5647_v26 = vld [vmem:[#allocation2 + $0x80] sm:$0x1]  ;;  %v2767_v54 = vshll.u32 %v2512_v51, 16  ;;  %v5595_v51 = vld [vmem:[#allocation2 + $0x78] sm:$0xff] }
 0x146   : > { %5393 = vmatmul.msk.bf16.gmra.mxu0 %vm1450_vm12, %v2956_v45  ;;  %v2018_v45 = vpack.c.b16 %v1996_v32, %v1995_v13  ;;  %v2934_v36 = vunpack.c.l.b16 %v2746_v4  ;;  %v2750_v0 = vrot.slane %v2748_v62, 4  ;;  %v2753_v17 = vrot.slane %v2751_v41, 5  ;;  %v5580_v62 = vld [vmem:[#allocation2 + $0x78] sm:$0xff] }
 0x147   : > { %5264 = vmatmul.msk.bf16.gmra.mxu1 %vm1450_vm12, %v5579_v11  ;;  %v6427_v19 = vpop.f32.mrf.mxu3  ;;  %v1935_v11 = vrot.slane %v5646_v58, 5  ;;  %v1938_v25 = vrot.slane %v5647_v26, 5  ;;  %v5281_v13 = vrot.slane %v1822_v37, 9 }
 0x148   : > { %7332 = vst [vmem:[#allocation4_spill] sm:$0xff] %v6427_v19  ;;  %v2754_v58 = vor.u32 %v2753_v17, %v2750_v0  ;;  %v2769_v0 = vrot.slane %v2767_v54, 5  ;;  %v2514_v17 = vld [vmem:[#allocation2 + $0x88] sm:$0xf] }
 0x149   : > { %v1937_v32 = vrot.slane %v1935_v11, 4 }
 0x14a   : > { %v2087_v49 = vpop.f32.mrf.mxu2 }
 0x14b   : > { %v6434_v9 = vpop.f32.mrf.mxu0  ;;  %v2166_v43 = vadd.f32 %v2087_v49, %v1735_v28  ;;  %v2957_v28 = vpack.c.b16 %v2934_v36, %v2933_v27  ;;  %v1939_v46 = vsel %vm6216_vm2, %v1937_v32, %v1938_v25  ;;  %v2513_v27 = vld [vmem:[#allocation2 + $0x84] sm:$0xf]  ;;  %v2785_v32 = vshrl.u32 %v2514_v17, 16 }
 0x14c   : > { %v1739_v20 = vpop.f32.mrf.mxu1  ;;  %5377 = vmatmul.msk.bf16.gmra.mxu3 %vm1450_vm12, %v5594_v35  ;;  %v2764_v35 = vor.u32 %v2763_v22, %v2759_v18  ;;  %v2772_v26 = vshrl.u32 %v2513_v27, 16  ;;  %v2775_v25 = vshll.u32 %v2513_v27, 16 }
 0x14e   : > { %v2765_v36 = vrot.slane %v2764_v35, 4 }
 0x14f   : > { %5297 = vmatmul.msk.bf16.gmra.mxu2 %vm1450_vm12, %v2018_v45  ;;  %v2371_v57 = vpop.f32.mrf.mxu3  ;;  %v1936_v45 = vsel %vm6216_vm2, %v5281_v13, %v1935_v11  ;;  %v1740_v11 = vadd.f32 %v1739_v20, %v6377_v40  ;;  %v2774_v20 = vrot.slane %v2772_v26, 4 }
 0x150   : > { %v2451_v49 = vadd.f32 %v2371_v57, %v2165_v5  ;;  %v2755_v5 = vrot.slane %v2754_v58, 4 }
 0x152   : > { %v2090_v19 = vpop.f32.mrf.mxu2 }
 0x153   : > { %v3025_v44 = vpop.f32.mrf.mxu0  ;;  %v2167_v4 = vadd.f32 %v2090_v19, %v1738_v21  ;;  %v1997_v21 = vunpack.c.l.b16 %v1936_v45  ;;  %v1998_v19 = vunpack.c.l.b16 %v1939_v46  ;;  %v1823_v46 = vld [vmem:[#allocation2 + $0x84] sm:$0xe] }
 0x154   : > { %v1742_v41 = vpop.f32.mrf.mxu1  ;;  %v6442_v52 = vadd.f32 %v3025_v44, %v2451_v49  ;;  %v2770_v49 = vsel %vm5889_vm13, %v2765_v36, %v2769_v0  ;;  %v2515_v36 = vld [vmem:[#allocation2 + $0x8c] sm:$0x1] }
 0x155   : > { %v1743_v37 = vadd.f32 %v1742_v41, %v6392_v29  ;;  %v2781_v29 = vshll.u32 %v2514_v17, 16  ;;  %v2019_v35 = vpack.c.b16 %v1998_v19, %v1997_v21  ;;  %v2936_v17 = vunpack.c.l.b16 %v2770_v49  ;;  %v5649_v0 = vld [vmem:[#allocation2 + $0x8c] sm:$0x1] }
 0x156   : > { %5394 = vmatmul.msk.bf16.gmra.mxu0 %vm1450_vm12, %v2957_v28  ;;  %v2760_v28 = vsel %vm5889_vm13, %v2755_v5, %v2759_v18  ;;  %v2787_v5 = vrot.slane %v2785_v32, 4  ;;  %v1945_v21 = vrot.slane %v5649_v0, 5  ;;  %v5282_v19 = vrot.slane %v1823_v46, 9  ;;  %v5596_v0 = vld [vmem:[#allocation2 + $0x84] sm:$0xff] }
 0x157   : > { %5265 = vmatmul.msk.bf16.gmra.mxu1 %vm1450_vm12, %v5580_v62  ;;  %v2373_v22 = vpop.f32.mrf.mxu3  ;;  %v5648_v62 = vld [vmem:[#allocation2 + $0x88] sm:$0xf]  ;;  %v2935_v27 = vunpack.c.l.b16 %v2760_v28  ;;  %v2783_v18 = vrot.slane %v2781_v29, 5 }
 0x158   : > { %v2452_v44 = vadd.f32 %v2373_v22, %v2166_v43  ;;  %v1942_v41 = vrot.slane %v5648_v62, 5  ;;  %v2777_v43 = vrot.slane %v2775_v25, 5  ;;  %v5581_v28 = vld [vmem:[#allocation2 + $0x84] sm:$0xff] }
 0x159   : > { %v2958_v26 = vpack.c.b16 %v2936_v17, %v2935_v27  ;;  %v2516_v27 = vld [vmem:[#allocation2 + $0x90] sm:$0xf]  ;;  %v2517_v17 = vld [vmem:[#allocation2 + $0x94] sm:$0xf] }
 0x15a   : > { %v2092_v13 = vpop.f32.mrf.mxu2  ;;  %v1944_v22 = vrot.slane %v1942_v41, 4  ;;  %v1943_v29 = vsel %vm6216_vm2, %v5282_v19, %v1942_v41  ;;  %v2796_v19 = vshrl.u32 %v2516_v27, 16 }
 0x15b   : > { %v3027_v57 = vpop.f32.mrf.mxu0  ;;  %v2168_v58 = vadd.f32 %v2092_v13, %v1740_v11  ;;  %v2788_v13 = vor.u32 %v2787_v5, %v2783_v18 }
 0x15c   : > { %v1744_v54 = vpop.f32.mrf.mxu1  ;;  %v6452_v40 = vadd.f32 %v3027_v57, %v2452_v44  ;;  %5378 = vmatmul.msk.bf16.gmra.mxu3 %vm1450_vm12, %v5595_v51  ;;  %v2778_v44 = vor.u32 %v2777_v43, %v2774_v20  ;;  %v1946_v32 = vsel %vm6216_vm2, %v1944_v22, %v1945_v21  ;;  %v2799_v22 = vshll.u32 %v2516_v27, 16 }
 0x15d   : > { %v1745_v45 = vadd.f32 %v1744_v54, %v6406_v63  ;;  %v2791_v63 = vshll.u32 %v2515_v36, 16  ;;  %v2000_v46 = vunpack.c.l.b16 %v1946_v32  ;;  %v2798_v32 = vrot.slane %v2796_v19, 4  ;;  %v5582_v19 = vld [vmem:[#allocation2 + $0x90] sm:$0xff] }
 0x15e   : > { %v2779_v62 = vrot.slane %v2778_v44, 4 }
 0x15f   : > { %5298 = vmatmul.msk.bf16.gmra.mxu2 %vm1450_vm12, %v2019_v35  ;;  %v2376_v11 = vpop.f32.mrf.mxu3  ;;  %v2793_v43 = vrot.slane %v2791_v63, 5 }
 0x160   : > { %v2453_v25 = vadd.f32 %v2376_v11, %v2167_v4  ;;  %v2789_v4 = vrot.slane %v2788_v13, 4  ;;  %v2784_v41 = vsel %vm5889_vm13, %v2779_v62, %v2783_v18  ;;  %v2809_v13 = vshrl.u32 %v2517_v17, 16 }
 0x161   : > { %v2801_v62 = vrot.slane %v2799_v22, 5 }
 0x162   : > { %v2095_v57 = vpop.f32.mrf.mxu2  ;;  %v2794_v21 = vsel %vm5889_vm13, %v2789_v4, %v2793_v43  ;;  %v2811_v4 = vrot.slane %v2809_v13, 4  ;;  %v5651_v43 = vld [vmem:[#allocation2 + $0x98] sm:$0x1] }
 0x163   : > { %v3030_v54 = vpop.f32.mrf.mxu0  ;;  %v2169_v51 = vadd.f32 %v2095_v57, %v1743_v37  ;;  %v1999_v37 = vunpack.c.l.b16 %v1943_v29  ;;  %v5650_v57 = vld [vmem:[#allocation2 + $0x94] sm:$0xf]  ;;  %v2938_v29 = vunpack.c.l.b16 %v2794_v21 }
 0x164   : > { %v1747_v49 = vpop.f32.mrf.mxu1  ;;  %v6461_v35 = vadd.f32 %v3030_v54, %v2453_v25  ;;  %v2805_v25 = vshll.u32 %v2517_v17, 16  ;;  %v1949_v54 = vrot.slane %v5650_v57, 5 }
 0x165   : > { %v1748_v20 = vadd.f32 %v1747_v49, %v6418_v8  ;;  %v2937_v49 = vunpack.c.l.b16 %v2784_v41 }
 0x166   : > { %5395 = vmatmul.msk.bf16.gmra.mxu0 %vm1450_vm12, %v2958_v26  ;;  %v2020_v26 = vpack.c.b16 %v2000_v46, %v1999_v37  ;;  %v1952_v37 = vrot.slane %v5651_v43, 5  ;;  %v2518_v46 = vld [vmem:[#allocation2 + $0x98] sm:$0x1]  ;;  %v1951_v17 = vrot.slane %v1949_v54, 4 }
 0x167   : > { %5266 = vmatmul.msk.bf16.gmra.mxu1 %vm1450_vm12, %v5581_v28  ;;  %v2378_v5 = vpop.f32.mrf.mxu3  ;;  %v2815_v41 = vshll.u32 %v2518_v46, 16 }
 0x168   : > { %v2454_v36 = vadd.f32 %v2378_v5, %v2168_v58  ;;  %v1824_v58 = vld [vmem:[#allocation2 + $0x90] sm:$0xe] }
 0x169   : > { %v5283_v27 = vrot.slane %v1824_v58, 9  ;;  %v2520_v58 = vld [vmem:[#allocation2 + $0xa0] sm:$0xf] }
 0x16a   : > { %v2097_v8 = vpop.f32.mrf.mxu2  ;;  %v2833_v46 = vshrl.u32 %v2520_v58, 16 }
 0x16b   : > { %v3032_v11 = vpop.f32.mrf.mxu0  ;;  %v2170_v44 = vadd.f32 %v2097_v8, %v1745_v45  ;;  %v2807_v45 = vrot.slane %v2805_v25, 5  ;;  %v1953_v25 = vsel %vm6216_vm2, %v1951_v17, %v1952_v37  ;;  %v5597_v37 = vld [vmem:[#allocation2 + $0x90] sm:$0xff] }
 0x16c   : > { %v1749_v63 = vpop.f32.mrf.mxu1  ;;  %v6470_v28 = vadd.f32 %v3032_v11, %v2454_v36  ;;  %5379 = vmatmul.msk.bf16.gmra.mxu3 %vm1450_vm12, %v5596_v0  ;;  %v2959_v36 = vpack.c.b16 %v2938_v29, %v2937_v49  ;;  %v2817_v29 = vrot.slane %v2815_v41, 5  ;;  %v5652_v41 = vld [vmem:[#allocation2 + $0xa0] sm:$0xf] }
 0x16d   : > { %v1750_v18 = vadd.f32 %v1749_v63, %v6434_v9  ;;  %v2802_v9 = vor.u32 %v2801_v62, %v2798_v32  ;;  %v2812_v0 = vor.u32 %v2811_v4, %v2807_v45  ;;  %v2002_v32 = vunpack.c.l.b16 %v1953_v25 }
 0x16e   : > { %7333 = vst [vmem:[#allocation5_spill] sm:$0xff] %v6470_v28 }
 0x16f   : > { %5299 = vmatmul.msk.bf16.gmra.mxu2 %vm1450_vm12, %v2020_v26  ;;  %v2381_v5 = vpop.f32.mrf.mxu3  ;;  %v1950_v26 = vsel %vm6216_vm2, %v5283_v27, %v1949_v54  ;;  %v2803_v57 = vrot.slane %v2802_v9, 4  ;;  %v2813_v49 = vrot.slane %v2812_v0, 4  ;;  %v2829_v54 = vshll.u32 %v2520_v58, 16  ;;  %v1825_v0 = vld [vmem:[#allocation2 + $0x9c] sm:$0xe] }
 0x170   : > { %v2455_v8 = vadd.f32 %v2381_v5, %v2169_v51  ;;  %v2519_v51 = vld [vmem:[#allocation2 + $0x9c] sm:$0xf]  ;;  %v2835_v58 = vrot.slane %v2833_v46, 4 }
 0x171   : > { %v2820_v4 = vshrl.u32 %v2519_v51, 16  ;;  %v2823_v43 = vshll.u32 %v2519_v51, 16  ;;  %v6491_v51 = vrot.slane %v2829_v54, 5 }
 0x172   : > { %v2100_v11 = vpop.f32.mrf.mxu2 }
 0x173   : > { %v3035_v63 = vpop.f32.mrf.mxu0  ;;  %v2171_v21 = vadd.f32 %v2100_v11, %v1748_v20  ;;  %v2001_v20 = vunpack.c.l.b16 %v1950_v26  ;;  %v2822_v25 = vrot.slane %v2820_v4, 4  ;;  %v2836_v54 = vor.u32 %v2835_v58, %v6491_v51 }
 0x174   : > { %v1752_v22 = vpop.f32.mrf.mxu1  ;;  %v6479_v13 = vadd.f32 %v3035_v63, %v2455_v8  ;;  %v2818_v8 = vsel %vm5889_vm13, %v2813_v49, %v2817_v29  ;;  %v5284_v49 = vrot.slane %v1825_v0, 9  ;;  %v5653_v29 = vld [vmem:[#allocation2 + $0xa4] sm:$0x1] }
 0x175   : > { %v2021_v11 = vpack.c.b16 %v2002_v32, %v2001_v20  ;;  %v1959_v20 = vrot.slane %v5653_v29, 5  ;;  %v1753_v4 = vadd.f32 %v1752_v22, %v6295_v47  ;;  %v2522_v29 = vld [vmem:[#allocation2 + $0xa8] sm:$0xf]  ;;  %v5654_v47 = vld [vmem:[%s7314_s1] ss:$0 sm:$0xff] }
 0x176   : > { %7334 = vst [vmem:[#allocation6_spill] sm:$0xff] %v6479_v13  ;;  %5396 = vmatmul.msk.bf16.gmra.mxu0 %vm1450_vm12, %v2959_v36  ;;  %v2808_v36 = vsel %vm5889_vm13, %v2803_v57, %v2807_v45  ;;  %v2940_v57 = vunpack.c.l.b16 %v2818_v8 }
 0x177   : > { %5267 = vmatmul.msk.bf16.gmra.mxu1 %vm1450_vm12, %v5582_v19  ;;  %v2383_v62 = vpop.f32.mrf.mxu3  ;;  %v1956_v19 = vrot.slane %v5652_v41, 5  ;;  %v2939_v45 = vunpack.c.l.b16 %v2808_v36 }
 0x178   : > { %v2456_v27 = vadd.f32 %v2383_v62, %v2170_v44  ;;  %v2825_v44 = vrot.slane %v2823_v43, 5 }
 0x179   : > { %v1958_v32 = vrot.slane %v1956_v19, 4  ;;  %v2960_v46 = vpack.c.b16 %v2940_v57, %v2939_v45  ;;  %v1957_v0 = vsel %vm6216_vm2, %v5284_v49, %v1956_v19  ;;  %v2837_v57 = vrot.slane %v2836_v54, 4  ;;  %v5655_v19 = vld [vmem:[%s7315_s2] ss:$0 sm:$0xff] }
 0x17a   : > { %v2102_v17 = vpop.f32.mrf.mxu2  ;;  %v2826_v43 = vor.u32 %v2825_v44, %v2822_v25 }
 0x17b   : > { %v3037_v5 = vpop.f32.mrf.mxu0  ;;  %v6487_v9 = vadd.f32 %v2102_v17, %v1750_v18  ;;  %v2521_v18 = vld [vmem:[#allocation2 + $0xa4] sm:$0x1]  ;;  %v268_v17 = vld [vmem:[%s5770_s27 + $0xf8] sm:$0xff] }
 0x17c   : > { %v1754_v63 = vpop.f32.mrf.mxu1  ;;  %v6489_v26 = vadd.f32 %v3037_v5, %v2456_v27  ;;  %5380 = vmatmul.msk.bf16.gmra.mxu3 %vm1450_vm12, %v5597_v37  ;;  %v267_v27 = vld [vmem:[%s5770_s27 + $0xf0] sm:$0xff]  ;;  %v2839_v37 = vshll.u32 %v2521_v18, 16  ;;  %v304_v25 = vmul.f32 %v5654_v47, %v268_v17  ;;  %v2827_v45 = vrot.slane %v2826_v43, 4  ;;  %v2523_v18 = vld [vmem:[#allocation2 + $0xac] sm:$0xf] }
 0x17d   : > { %v303_v22 = vmul.f32 %v5654_v47, %v267_v27  ;;  %v2003_v27 = vunpack.c.l.b16 %v1957_v0  ;;  %v2844_v17 = vshrl.u32 %v2522_v29, 16  ;;  %v433_v47 = vld [vmem:[#allocation2 + $0xc0] sm:$0x1] }
 0x17e   : > { %7335 = vst [vmem:[#allocation7_spill] sm:$0xff] %v6489_v26  ;;  %v434_v54 = vsel %vm5752_vm3, 0, %v433_v47 }
 0x17f   : > { %5300 = vmatmul.msk.bf16.gmra.mxu2 %vm1450_vm12, %v2021_v11  ;;  %v2386_v62 = vpop.f32.mrf.mxu3  ;;  %v5583_v11 = vld [vmem:[#allocation2 + $0x9c] sm:$0xff]  ;;  %v339_v49 = vadd.f32 %v5655_v19, %v303_v22  ;;  %435 = vst [vmem:[#allocation2 + $0xc0] sm:$0x1] %v434_v54 }
 0x180   : > { %v2457_v5 = vadd.f32 %v2386_v62, %v2171_v21  ;;  %v1960_v21 = vsel %vm6216_vm2, %v1958_v32, %v1959_v20  ;;  %v340_v62 = vadd.f32 %v5655_v19, %v304_v25 }
 0x181   : > { %v2004_v20 = vunpack.c.l.b16 %v1960_v21  ;;  %v371_v32 = vmax.f32 %v339_v49, 0.0  ;;  %v2846_v21 = vrot.slane %v2844_v17, 4 }
 0x182   : > { %v2105_v36 = vpop.f32.mrf.mxu2  ;;  %v372_v43 = vmax.f32 %v340_v62, 0.0 }
 0x183   : > { %v3040_v8 = vpop.f32.mrf.mxu0  ;;  %v6499_v41 = vadd.f32 %v2105_v36, %v1753_v4  ;;  %v2841_v4 = vrot.slane %v2839_v37, 5  ;;  %v2847_v36 = vshll.u32 %v2522_v29, 16  ;;  %v1755_v37 = vadd.f32 %v1754_v63, %v6307_v23  ;;  %v5598_v29 = vld [vmem:[#allocation2 + $0x9c] sm:$0xff]  ;;  %v1826_v23 = vld [vmem:[#allocation2 + $0xa8] sm:$0xe] }
 0x184   : > { %v1757_v44 = vpop.f32.mrf.mxu1  ;;  %v6508_v58 = vadd.f32 %v3040_v8, %v2457_v5  ;;  %v2853_v5 = vshll.u32 %v2523_v18, 16  ;;  %v2857_v8 = vshrl.u32 %v2523_v18, 16  ;;  %v525_v19 = vpack.c.bf16 %v371_v32, %v371_v32  ;;  %v5656_v63 = vld [vmem:[#allocation2 + $0xac] sm:$0xf]  ;;  %v2524_v32 = vld [vmem:[#allocation2 + $0xb0] sm:$0x1] }
 0x185   : > { %v2022_v18 = vpack.c.b16 %v2004_v20, %v2003_v27  ;;  %v2849_v47 = vrot.slane %v2847_v36, 5  ;;  %v526_v54 = vpack.c.bf16 %v372_v43, %v372_v43  ;;  %v5285_v27 = vrot.slane %v1826_v23, 9  ;;  %v5657_v43 = vld [vmem:[#allocation2 + $0xb0] sm:$0x1] }
 0x186   : > { %7336 = vst [vmem:[#allocation8_spill] sm:$0xff] %v6508_v58  ;;  %5397 = vmatmul.msk.bf16.gmra.mxu0 %vm1450_vm12, %v2960_v46  ;;  %v2832_v46 = vsel %vm5889_vm13, %v2827_v45, %v6491_v51  ;;  %v6526_v58 = vrot.slane %v2853_v5, 5  ;;  %v2859_v51 = vrot.slane %v2857_v8, 4  ;;  %v785_v17 = vshrl.u32 %v525_v19, 16 }
 0x187   : > { %5268 = vmatmul.msk.bf16.gmra.mxu1 %vm1450_vm12, %v5583_v11  ;;  %v2388_v22 = vpop.f32.mrf.mxu3  ;;  %v2842_v11 = vsel %vm5889_vm13, %v2837_v57, %v2841_v4  ;;  %v2941_v57 = vunpack.c.l.b16 %v2832_v46  ;;  %v788_v36 = vshll.u32 %v525_v19, 16  ;;  %v793_v20 = vshrl.u32 %v526_v54, 16  ;;  %v957_v19 = vld [vmem:[#allocation2 + $0xc0] sm:$0xf] }
 0x188   : > { %v2458_v0 = vadd.f32 %v2388_v22, %v6487_v9  ;;  %v1963_v9 = vrot.slane %v5656_v63, 5  ;;  %v2942_v4 = vunpack.c.l.b16 %v2842_v11  ;;  %v1966_v5 = vrot.slane %v5657_v43, 5  ;;  %v489_v11 = vld [vmem:[#allocation2 + $0xc8] sm:$0x1] }
 0x189   : > { %v2850_v8 = vor.u32 %v2849_v47, %v2846_v21  ;;  %v796_v46 = vshll.u32 %v526_v54, 16  ;;  %v2863_v26 = vshll.u32 %v2524_v32, 16  ;;  %v5584_v21 = vld [vmem:[#allocation2 + $0xa8] sm:$0xff] }
 0x18a   : > { %v2107_v25 = vpop.f32.mrf.mxu2  ;;  %v1964_v47 = vsel %vm6216_vm2, %v5285_v27, %v1963_v9 }
 0x18b   : > { %v3042_v49 = vpop.f32.mrf.mxu0  ;;  %v6524_v62 = vadd.f32 %v2107_v25, %v1755_v37  ;;  %v2860_v37 = vor.u32 %v2859_v51, %v6526_v58  ;;  %v1965_v25 = vrot.slane %v1963_v9, 4  ;;  %v2525_v51 = vld [vmem:[#allocation2 + $0xb4] sm:$0xf]  ;;  %v2851_v32 = vrot.slane %v2850_v8, 4 }
 0x18c   : > { %v1759_v45 = vpop.f32.mrf.mxu1  ;;  %v6528_v22 = vadd.f32 %v3042_v49, %v2458_v0  ;;  %5381 = vmatmul.msk.bf16.gmra.mxu3 %vm1450_vm12, %v5598_v29  ;;  %v1758_v0 = vadd.f32 %v1757_v44, %v6315_v39  ;;  %v787_v49 = vrot.slane %v785_v17, 7  ;;  %v795_v29 = vrot.slane %v793_v20, 7 }
 0x18d   : > { %v1967_v54 = vsel %vm6216_vm2, %v1965_v25, %v1966_v5  ;;  %v2861_v20 = vrot.slane %v2860_v37, 4  ;;  %v2865_v9 = vrot.slane %v2863_v26, 5  ;;  %v2868_v27 = vshrl.u32 %v2525_v51, 16 }
 0x18e   : > { %7337 = vst [vmem:[#allocation9_spill] sm:$0xff] %v6528_v22  ;;  %v2961_v22 = vpack.c.b16 %v2942_v4, %v2941_v57  ;;  %v790_v43 = vor.u32 %v788_v36, %v787_v49  ;;  %v791_v39 = vrot.slane %v787_v49, 4  ;;  %v2526_v57 = vld [vmem:[#allocation2 + $0xb8] sm:$0xf]  ;;  %v798_v4 = vor.u32 %v796_v46, %v795_v29  ;;  %v5599_v49 = vld [vmem:[#allocation2 + $0xa8] sm:$0xff] }
 0x18f   : > { %5301 = vmatmul.msk.bf16.gmra.mxu2 %vm1450_vm12, %v2022_v18  ;;  %v2391_v63 = vpop.f32.mrf.mxu3  ;;  %v2871_v36 = vshll.u32 %v2525_v51, 16  ;;  %v2005_v25 = vunpack.c.l.b16 %v1964_v47  ;;  %v2881_v8 = vshrl.u32 %v2526_v57, 16  ;;  %v1760_v26 = vadd.f32 %v1759_v45, %v6329_v2  ;;  %v2527_v45 = vld [vmem:[#allocation2 + $0xbc] sm:$0x1] }
 0x190   : > { %v2459_v18 = vadd.f32 %v2391_v63, %v6499_v41  ;;  %v490_v41 = vsel %vm5761_vm6, 0, %v489_v11  ;;  %v958_v63 = vsel %vm5825_vm9, %v790_v43, %v957_v19  ;;  %v799_v5 = vsel %vm5819_vm8, %v791_v39, %v798_v4 }
 0x191   : > { %491 = vst [vmem:[#allocation2 + $0xc8] sm:$0x1] %v490_v41  ;;  %v800_v37 = vrot.slane %v795_v29, 4  ;;  %v2866_v46 = vsel %vm5889_vm13, %v2861_v20, %v2865_v9  ;;  %v2883_v43 = vrot.slane %v2881_v8, 4 }
 0x192   : > { %v2110_v23 = vpop.f32.mrf.mxu2  ;;  %959 = vst [vmem:[#allocation2 + $0xc0] sm:$0xf] %v958_v63  ;;  %v2944_v41 = vunpack.c.l.b16 %v2866_v46  ;;  %v5659_v63 = vld [vmem:[#allocation2 + $0xbc] sm:$0x1] }
 0x193   : > { %v3045_v13 = vpop.f32.mrf.mxu0  ;;  %v6535_v28 = vadd.f32 %v2110_v23, %v1758_v0  ;;  %v2877_v0 = vshll.u32 %v2526_v57, 16  ;;  %960 = vst.msk [vmem:[#allocation2 + $0xc4] sm:$0xf] %vm373_vm5, %v799_v5  ;;  %v2873_v23 = vrot.slane %v2871_v36, 5  ;;  %v1973_v9 = vrot.slane %v5659_v63, 5  ;;  %v5600_v63 = vld [vmem:[#allocation2 + $0xb4] sm:$0xff] }
 0x194   : > { %v1762_v44 = vpop.f32.mrf.mxu1  ;;  %v6543_v17 = vadd.f32 %v3045_v13, %v2459_v18  ;;  %v2006_v13 = vunpack.c.l.b16 %v1967_v54  ;;  %v2870_v18 = vrot.slane %v2868_v27, 4  ;;  %v5658_v54 = vld [vmem:[#allocation2 + $0xb8] sm:$0xf]  ;;  %v2887_v27 = vshll.u32 %v2527_v45, 16 }
 0x195   : > { %v2879_v51 = vrot.slane %v2877_v0, 5 }
 0x196   : > { %5398 = vmatmul.msk.bf16.gmra.mxu0 %vm1450_vm12, %v2961_v22  ;;  %v2856_v22 = vsel %vm5889_vm13, %v2851_v32, %v6526_v58  ;;  %v2023_v47 = vpack.c.b16 %v2006_v13, %v2005_v25  ;;  %v1970_v58 = vrot.slane %v5658_v54, 5  ;;  %v2874_v32 = vor.u32 %v2873_v23, %v2870_v18 }
 0x197   : > { %5269 = vmatmul.msk.bf16.gmra.mxu1 %vm1450_vm12, %v5584_v21  ;;  %v2393_v1 = vpop.f32.mrf.mxu3  ;;  %v2943_v4 = vunpack.c.l.b16 %v2856_v22  ;;  %v2884_v20 = vor.u32 %v2883_v43, %v2879_v51  ;;  %v1763_v13 = vadd.f32 %v1762_v44, %v6341_v33  ;;  %v2889_v46 = vrot.slane %v2887_v27, 5  ;;  %v5660_v44 = vld [vmem:[#allocation2 + $0x10] sm:$0xf] }
 0x198   : > { %v2460_v59 = vadd.f32 %v2393_v1, %v6524_v62  ;;  %v961_v57 = vld [vmem:[#allocation2 + $0xc8] sm:$0x1]  ;;  %v1827_v62 = vld [vmem:[#allocation2 + $0xb4] sm:$0xe]  ;;  %v1972_v5 = vrot.slane %v1970_v58, 4  ;;  %v2875_v22 = vrot.slane %v2874_v32, 4 }
 0x199   : > { %v962_v29 = vsel %vm5752_vm3, %v800_v37, %v961_v57  ;;  %v5286_v36 = vrot.slane %v1827_v62, 9  ;;  %v2962_v0 = vpack.c.b16 %v2944_v41, %v2943_v4  ;;  %v2885_v37 = vrot.slane %v2884_v20, 4  ;;  %v2528_v33 = vld [vmem:[#allocation2 + $0xc0] sm:$0xf] }
 0x19a   : > { %v2112_v11 = vpop.f32.mrf.mxu2  ;;  %963 = vst [vmem:[#allocation2 + $0xc8] sm:$0x1] %v962_v29  ;;  %v1974_v23 = vsel %vm6216_vm2, %v1972_v5, %v1973_v9  ;;  %v2880_v57 = vsel %vm5889_vm13, %v2875_v22, %v2879_v51  ;;  %v2892_v45 = vshrl.u32 %v2528_v33, 16  ;;  %v2895_v4 = vshll.u32 %v2528_v33, 16  ;;  %v3137_v22 = vld [vmem:[#allocation2 + $0xc] sm:$0xe] }
 0x19b   : > { %v3047_v19 = vpop.f32.mrf.mxu0  ;;  %v2176_v21 = vadd.f32 %v2112_v11, %v1760_v26  ;;  %v1971_v18 = vsel %vm6216_vm2, %v5286_v36, %v1970_v58  ;;  %v2008_v54 = vunpack.c.l.b16 %v1974_v23  ;;  %v2890_v58 = vsel %vm5889_vm13, %v2885_v37, %v2889_v46  ;;  %v5661_v36 = vld [vmem:[#allocation2 + $0x14] sm:$0x1]  ;;  %v3822_v33 = vld [vmem:[#allocation2 + $0x18] sm:$0xf] }
 0x19c   : > { %v1764_v39 = vpop.f32.mrf.mxu1  ;;  %v6559_v2 = vadd.f32 %v3047_v19, %v2460_v59  ;;  %5382 = vmatmul.msk.bf16.gmra.mxu3 %vm1450_vm12, %v5599_v49  ;;  %v5585_v49 = vld [vmem:[#allocation2 + $0xb4] sm:$0xff]  ;;  %v2007_v43 = vunpack.c.l.b16 %v1971_v18  ;;  %v3206_v5 = vrot.slane %v5661_v36, 5  ;;  %v2945_v51 = vunpack.c.l.b16 %v2880_v57 }
 0x19d   : > { %v1765_v29 = vadd.f32 %v1764_v39, %v6357_v60  ;;  %v2897_v60 = vrot.slane %v2895_v4, 5  ;;  %v5402_v46 = vrot.slane %v3137_v22, 9  ;;  %v6597_v22 = vld [vmem:[#allocation2 + $0x20] sm:$0x1] }
 0x19f   : > { %5302 = vmatmul.msk.bf16.gmra.mxu2 %vm1450_vm12, %v2023_v47  ;;  %v2396_v25 = vpop.f32.mrf.mxu3  ;;  %v3203_v47 = vrot.slane %v5660_v44, 5 }
 0x1a0   : > { %v2461_v8 = vadd.f32 %v2396_v25, %v6535_v28  ;;  %v2529_v28 = vld [vmem:[#allocation2 + $0xc4] sm:$0xf] }
 0x1a1   : > { %v2901_v41 = vshll.u32 %v2529_v28, 16  ;;  %v2905_v32 = vshrl.u32 %v2529_v28, 16  ;;  %v3205_v27 = vrot.slane %v3203_v47, 4  ;;  %v3204_v18 = vsel %vm6216_vm2, %v5402_v46, %v3203_v47 }
 0x1a2   : > { %v2115_v1 = vpop.f32.mrf.mxu2  ;;  %v3315_v44 = vunpack.c.l.b16 %v3204_v18  ;;  %v3874_v47 = vshll.u32 %v3822_v33, 16 }
 0x1a3   : > { %v3050_v26 = vpop.f32.mrf.mxu0  ;;  %v2177_v59 = vadd.f32 %v2115_v1, %v1763_v13  ;;  %v2894_v1 = vrot.slane %v2892_v45, 4  ;;  %v2903_v39 = vrot.slane %v2901_v41, 5  ;;  %v3207_v23 = vsel %vm6216_vm2, %v3205_v27, %v3206_v5 }
 0x1a4   : > { %v1767_v11 = vpop.f32.mrf.mxu1  ;;  %v6571_v19 = vadd.f32 %v3050_v26, %v2461_v8  ;;  %v2946_v8 = vunpack.c.l.b16 %v2890_v58 }
 0x1a5   : > { %v1768_v58 = vadd.f32 %v1767_v11, %v6371_v16  ;;  %v2898_v45 = vor.u32 %v2897_v60, %v2894_v1  ;;  %v5662_v60 = vld [vmem:[#allocation2 + $0x20] sm:$0x1] }
 0x1a6   : > { %5399 = vmatmul.msk.bf16.gmra.mxu0 %vm1450_vm12, %v2962_v0  ;;  %v2024_v0 = vpack.c.b16 %v2008_v54, %v2007_v43  ;;  %v2963_v28 = vpack.c.b16 %v2946_v8, %v2945_v51  ;;  %v3316_v43 = vunpack.c.l.b16 %v3207_v23  ;;  %v6588_v54 = vld [vmem:[#allocation2 + $0x1c] sm:$0xf]  ;;  %v5601_v23 = vld [vmem:[#allocation2 + $0xc0] sm:$0xff] }
 0x1a7   : > { %5270 = vmatmul.msk.bf16.gmra.mxu1 %vm1450_vm12, %v5585_v49  ;;  %v2398_v62 = vpop.f32.mrf.mxu3  ;;  %v2907_v49 = vrot.slane %v2905_v32, 4  ;;  %v3880_v27 = vshll.u32 %v6588_v54, 16  ;;  %v3884_v36 = vshrl.u32 %v6588_v54, 16 }
 0x1a8   : > { %v2462_v20 = vadd.f32 %v2398_v62, %v2176_v21  ;;  %v2530_v21 = vld [vmem:[#allocation2 + $0xc8] sm:$0x1]  ;;  %v3347_v32 = vpack.c.b16 %v3316_v43, %v3315_v44 }
 0x1a9   : > { %v2908_v62 = vor.u32 %v2907_v49, %v2903_v39  ;;  %v3882_v8 = vrot.slane %v3880_v27, 5  ;;  %v3886_v1 = vrot.slane %v3884_v36, 4  ;;  %v3213_v49 = vrot.slane %v5662_v60, 5  ;;  %v3825_v27 = vld [vmem:[#allocation2 + $0x24] sm:$0xf] }
 0x1aa   : > { %v2117_v9 = vpop.f32.mrf.mxu2 }
 0x1ab   : > { %v3052_v25 = vpop.f32.mrf.mxu0  ;;  %v2178_v13 = vadd.f32 %v2117_v9, %v1765_v29  ;;  %v2911_v29 = vshll.u32 %v2530_v21, 16  ;;  %v2909_v16 = vrot.slane %v2908_v62, 4  ;;  %v3887_v62 = vor.u32 %v3886_v1, %v3882_v8 }
 0x1ac   : > { %v1769_v26 = vpop.f32.mrf.mxu1  ;;  %v6580_v37 = vadd.f32 %v3052_v25, %v2462_v20  ;;  %5383 = vmatmul.msk.bf16.gmra.mxu3 %vm1450_vm12, %v5600_v63  ;;  %v3871_v20 = vshrl.u32 %v3822_v33, 16 }
 0x1ad   : > { %v2913_v11 = vrot.slane %v2911_v29, 5  ;;  %v1770_v21 = vadd.f32 %v1769_v26, %v6387_v10  ;;  %v3890_v29 = vshll.u32 %v6597_v22, 16  ;;  %v3138_v10 = vld [vmem:[#allocation2 + $0x18] sm:$0xe]  ;;  %v3888_v36 = vrot.slane %v3887_v62, 4 }
 0x1ae   : > { %v3873_v51 = vrot.slane %v3871_v20, 4  ;;  %v5403_v26 = vrot.slane %v3138_v10, 9 }
 0x1af   : > { %5303 = vmatmul.msk.bf16.gmra.mxu2 %vm1450_vm12, %v2024_v0  ;;  %v2401_v57 = vpop.f32.mrf.mxu3  ;;  %v2899_v0 = vrot.slane %v2898_v45, 4  ;;  %v5602_v45 = vld [vmem:[#allocation2 + $0x18] sm:$0xff] }
 0x1b0   : > { %v2463_v4 = vadd.f32 %v2401_v57, %v2177_v59  ;;  %v3876_v59 = vrot.slane %v3874_v47, 5 }
 0x1b1   : > { %v2904_v33 = vsel %vm5889_vm13, %v2899_v0, %v2903_v39  ;;  %v3892_v0 = vrot.slane %v3890_v29, 5 }
 0x1b2   : > { %v2120_v41 = vpop.f32.mrf.mxu2  ;;  %v3877_v43 = vor.u32 %v3876_v59, %v3873_v51  ;;  %v2947_v39 = vunpack.c.l.b16 %v2904_v33  ;;  %v6613_v51 = vld [vmem:[#allocation2 + $0x28] sm:$0xf]  ;;  %v3898_v33 = vshll.u32 %v3825_v27, 16 }
 0x1b3   : > { %v3055_v63 = vpop.f32.mrf.mxu0  ;;  %v2179_v9 = vadd.f32 %v2120_v41, %v1768_v58  ;;  %v3893_v29 = vsel %vm5889_vm13, %v3888_v36, %v3892_v0 }
 0x1b4   : > { %v1772_v5 = vpop.f32.mrf.mxu1  ;;  %v6593_v25 = vadd.f32 %v3055_v63, %v2463_v4  ;;  %v5663_v4 = vld [vmem:[#allocation2 + $0x1c] sm:$0xf]  ;;  %v3878_v63 = vrot.slane %v3877_v43, 4 }
 0x1b5   : > { %v3210_v41 = vrot.slane %v5663_v4, 5 }
 0x1b6   : > { %5400 = vmatmul.msk.bf16.gmra.mxu0 %vm1450_vm12, %v2963_v28  ;;  %v2914_v28 = vsel %vm5889_vm13, %v2909_v16, %v2913_v11  ;;  %v3883_v62 = vsel %vm5889_vm13, %v3878_v63, %v3882_v8  ;;  %v6628_v63 = vld [vmem:[#allocation2 + $0x2c] sm:$0x1] }
 0x1b7   : > { %5419 = vmatmul.msk.bf16.vlgmr.msra.gmra.mxu1 %vm1450_vm12, %v3347_v32  ;;  %v2403_v46 = vpop.f32.mrf.mxu3  ;;  %v3212_v20 = vrot.slane %v3210_v41, 4  ;;  %v2948_v47 = vunpack.c.l.b16 %v2914_v28  ;;  %v3211_v16 = vsel %vm6216_vm2, %v5403_v26, %v3210_v41 }
 0x1b8   : > { %v2464_v18 = vadd.f32 %v2403_v46, %v2178_v13  ;;  %v3317_v59 = vunpack.c.l.b16 %v3211_v16  ;;  %v1773_v46 = vadd.f32 %v1772_v5, %v6304_v6 }
 0x1b9   : > { %v3214_v11 = vsel %vm6216_vm2, %v3212_v20, %v3213_v49  ;;  %v2964_v28 = vpack.c.b16 %v2948_v47, %v2947_v39  ;;  %v3900_v20 = vrot.slane %v3898_v33, 5  ;;  %v4256_v39 = vunpack.c.l.b16 %v3883_v62 }
 0x1ba   : > { %v2122_v44 = vpop.f32.mrf.mxu2  ;;  %v3318_v1 = vunpack.c.l.b16 %v3214_v11  ;;  %v4257_v47 = vunpack.c.l.b16 %v3893_v29  ;;  %v3139_v29 = vld [vmem:[#allocation2 + $0x24] sm:$0xe] }
 0x1bb   : > { %v3057_v57 = vpop.f32.mrf.mxu0  ;;  %v2180_v58 = vadd.f32 %v2122_v44, %v1770_v21  ;;  %v4476_v21 = vld [vmem:[#allocation2 + $0x18] sm:$0xe] }
 0x1bc   : > { %v1774_v32 = vpop.f32.mrf.mxu1  ;;  %v6605_v13 = vadd.f32 %v3057_v57, %v2464_v18  ;;  %5384 = vmatmul.msk.bf16.gmra.mxu3 %vm1450_vm12, %v5601_v23  ;;  %v4542_v18 = vrot.slane %v6588_v54, 5  ;;  %v3895_v23 = vshrl.u32 %v3825_v27, 16  ;;  %v3904_v57 = vshll.u32 %v6613_v51, 16 }
 0x1bd   : > { %v3348_v5 = vpack.c.b16 %v3318_v1, %v3317_v59  ;;  %v5533_v4 = vrot.slane %v4476_v21, 9  ;;  %v4288_v1 = vpack.c.b16 %v4257_v47, %v4256_v39  ;;  %v3914_v21 = vshll.u32 %v6628_v63, 16  ;;  %v6644_v39 = vld [vmem:[#allocation2 + $0x34] sm:$0xf] }
 0x1be   : > { %v4544_v10 = vrot.slane %v4542_v18, 4  ;;  %v3897_v26 = vrot.slane %v3895_v23, 4  ;;  %v3906_v27 = vrot.slane %v3904_v57, 5  ;;  %v5664_v23 = vld [vmem:[#allocation2 + $0x2c] sm:$0x1] }
 0x1bf   : > { %5500 = vmatmul.msk.bf16.vlgmr.msra.gmra.mxu2 %vm1450_vm12, %v5602_v45  ;;  %v2406_v60 = vpop.f32.mrf.mxu3  ;;  %v3908_v45 = vshrl.u32 %v6613_v51, 16  ;;  %v4543_v0 = vsel %vm6216_vm2, %v5533_v4, %v4542_v18  ;;  %v3220_v33 = vrot.slane %v5664_v23, 5  ;;  %v5665_v57 = vld [vmem:[#allocation2 + $0x28] sm:$0xf] }
 0x1c0   : > { %v2465_v44 = vadd.f32 %v2406_v60, %v2179_v9  ;;  %v4545_v9 = vrot.slane %v6597_v22, 5  ;;  %v1775_v22 = vadd.f32 %v1774_v32, %v6317_v61  ;;  %v3901_v11 = vor.u32 %v3900_v20, %v3897_v26 }
 0x1c1   : > { %v3910_v8 = vrot.slane %v3908_v45, 4  ;;  %v3217_v45 = vrot.slane %v5665_v57, 5  ;;  %v4654_v18 = vunpack.c.l.b16 %v4543_v0 }
 0x1c2   : > { %v2125_v43 = vpop.f32.mrf.mxu2  ;;  %v4546_v16 = vsel %vm6216_vm2, %v4544_v10, %v4545_v9  ;;  %v3902_v61 = vrot.slane %v3901_v11, 4  ;;  %v3916_v10 = vrot.slane %v3914_v21, 5  ;;  %v3828_v9 = vld [vmem:[#allocation2 + $0x30] sm:$0xf] }
 0x1c3   : > { %v3060_v49 = vpop.f32.mrf.mxu0  ;;  %v2181_v6 = vadd.f32 %v2125_v43, %v1773_v46  ;;  %v3911_v46 = vor.u32 %v3910_v8, %v3906_v27  ;;  %v5603_v43 = vld [vmem:[#allocation2 + $0x24] sm:$0xff]  ;;  %v3219_v32 = vrot.slane %v3217_v45, 4  ;;  %v4549_v8 = vrot.slane %v6613_v51, 5 }
 0x1c4   : > { %v1777_v54 = vpop.f32.mrf.mxu1  ;;  %v6623_v41 = vadd.f32 %v3060_v49, %v2465_v44  ;;  %v4655_v49 = vunpack.c.l.b16 %v4546_v16  ;;  %v3907_v11 = vsel %vm5889_vm13, %v3902_v61, %v3906_v27  ;;  %v3932_v51 = vshrl.u32 %v6644_v39, 16 }
 0x1c5   : > { %v3912_v4 = vrot.slane %v3911_v46, 4  ;;  %v3221_v20 = vsel %vm6216_vm2, %v3219_v32, %v3220_v33  ;;  %v3928_v33 = vshll.u32 %v6644_v39, 16  ;;  %v4258_v27 = vunpack.c.l.b16 %v3907_v11  ;;  %v5666_v11 = vld [vmem:[#allocation2 + $0x38] sm:$0x1] }
 0x1c6   : > { %5401 = vmatmul.msk.bf16.gmra.mxu0 %vm1450_vm12, %v2964_v28  ;;  %v4686_v47 = vpack.c.b16 %v4655_v49, %v4654_v18  ;;  %v3320_v0 = vunpack.c.l.b16 %v3221_v20  ;;  %v4552_v61 = vrot.slane %v6628_v63, 5  ;;  %v3934_v32 = vrot.slane %v3932_v51, 4  ;;  %v3140_v51 = vld [vmem:[#allocation2 + $0x30] sm:$0xe] }
 0x1c7   : > { %5420 = vmatmul.msk.bf16.gmra.mxu1 %vm1450_vm12, %v3348_v5  ;;  %v2408_v36 = vpop.f32.mrf.mxu3  ;;  %v3917_v21 = vsel %vm5889_vm13, %v3912_v4, %v3916_v10  ;;  %v6659_v4 = vld [vmem:[#allocation2 + $0x38] sm:$0x1] }
 0x1c8   : > { %v2466_v59 = vadd.f32 %v2408_v36, %v2180_v58  ;;  %v5404_v58 = vrot.slane %v3139_v29, 9  ;;  %v4259_v18 = vunpack.c.l.b16 %v3917_v21  ;;  %v5667_v21 = vld [vmem:[#allocation2 + $0x34] sm:$0xf] }
 0x1ca   : > { %v2127_v60 = vpop.f32.mrf.mxu2  ;;  %v3218_v26 = vsel %vm6216_vm2, %v5404_v58, %v3217_v45  ;;  %v3930_v58 = vrot.slane %v3928_v33, 5 }
 0x1cb   : > { %v3062_v28 = vpop.f32.mrf.mxu0  ;;  %v2182_v44 = vadd.f32 %v2127_v60, %v1775_v22  ;;  %v3319_v36 = vunpack.c.l.b16 %v3218_v26  ;;  %v1778_v22 = vadd.f32 %v1777_v54, %v6333_v12  ;;  %v3922_v60 = vshll.u32 %v3828_v9, 16 }
 0x1cc   : > { %v1779_v62 = vpop.f32.mrf.mxu1  ;;  %v6636_v5 = vadd.f32 %v3062_v28, %v2466_v59  ;;  %5517 = vmatmul.msk.bf16.vlgmr.msra.gmra.mxu3 %vm1450_vm12, %v4288_v1  ;;  %v4477_v59 = vld [vmem:[#allocation2 + $0x24] sm:$0xe]  ;;  %v3919_v1 = vshrl.u32 %v3828_v9, 16  ;;  %v4289_v9 = vpack.c.b16 %v4259_v18, %v4258_v27  ;;  %v3935_v63 = vor.u32 %v3934_v32, %v3930_v58  ;;  %v6675_v32 = vld [vmem:[#allocation2 + $0x40] sm:$0xf] }
 0x1cd   : > { %v3349_v57 = vpack.c.b16 %v3320_v0, %v3319_v36  ;;  %v5534_v45 = vrot.slane %v4477_v59, 9  ;;  %v3924_v29 = vrot.slane %v3922_v60, 5  ;;  %v1780_v20 = vadd.f32 %v1779_v62, %v6345_v42 }
 0x1ce   : > { %v3921_v49 = vrot.slane %v3919_v1, 4  ;;  %v3227_v59 = vrot.slane %v5666_v11, 5 }
 0x1cf   : > { %5501 = vmatmul.msk.bf16.gmra.mxu2 %vm1450_vm12, %v5603_v43  ;;  %v2411_v16 = vpop.f32.mrf.mxu3  ;;  %v4550_v26 = vsel %vm6216_vm2, %v5534_v45, %v4549_v8  ;;  %v3936_v45 = vrot.slane %v3935_v63, 4 }
 0x1d0   : > { %v2467_v46 = vadd.f32 %v2411_v16, %v2181_v6  ;;  %v4551_v6 = vrot.slane %v4549_v8, 4  ;;  %v3925_v36 = vor.u32 %v3924_v29, %v3921_v49  ;;  %v4656_v33 = vunpack.c.l.b16 %v4550_v26  ;;  %v3831_v29 = vld [vmem:[#allocation2 + $0x3c] sm:$0xf] }
 0x1d1   : > { %v3946_v11 = vshll.u32 %v3831_v29, 16 }
 0x1d2   : > { %v2130_v23 = vpop.f32.mrf.mxu2  ;;  %v3926_v62 = vrot.slane %v3925_v36, 4  ;;  %v4556_v36 = vrot.slane %v6644_v39, 5 }
 0x1d3   : > { %v3065_v28 = vpop.f32.mrf.mxu0  ;;  %v2183_v43 = vadd.f32 %v2130_v23, %v1778_v22  ;;  %v3938_v22 = vshll.u32 %v6659_v4, 16  ;;  %v3224_v23 = vrot.slane %v5667_v21, 5  ;;  %v3952_v21 = vshll.u32 %v6675_v32, 16 }
 0x1d4   : > { %v1782_v12 = vpop.f32.mrf.mxu1  ;;  %v6654_v54 = vadd.f32 %v3065_v28, %v2467_v46  ;;  %v5604_v46 = vld [vmem:[#allocation2 + $0x30] sm:$0xff]  ;;  %v5405_v28 = vrot.slane %v3140_v51, 9  ;;  %v4559_v51 = vrot.slane %v6659_v4, 5 }
 0x1d5   : > { %v3940_v27 = vrot.slane %v3938_v22, 5  ;;  %v3943_v22 = vshrl.u32 %v3831_v29, 16 }
 0x1d6   : > { %5550 = vmatmul.msk.bf16.vlgmr.msra.gmra.mxu0 %vm1450_vm12, %v4686_v47  ;;  %v4553_v47 = vsel %vm6216_vm2, %v4551_v6, %v4552_v61  ;;  %v3225_v18 = vsel %vm6216_vm2, %v5405_v28, %v3224_v23  ;;  %v3954_v28 = vrot.slane %v3952_v21, 5 }
 0x1d7   : > { %5421 = vmatmul.msk.bf16.gmra.mxu1 %vm1450_vm12, %v3349_v57  ;;  %v2413_v10 = vpop.f32.mrf.mxu3  ;;  %v3226_v57 = vrot.slane %v3224_v23, 4  ;;  %v3321_v6 = vunpack.c.l.b16 %v3225_v18 }
 0x1d8   : > { %v2468_v0 = vadd.f32 %v2413_v10, %v2182_v44  ;;  %v4657_v44 = vunpack.c.l.b16 %v4553_v47  ;;  %v3941_v47 = vsel %vm5889_vm13, %v3936_v45, %v3940_v27  ;;  %v6690_v45 = vld [vmem:[#allocation2 + $0x44] sm:$0x1] }
 0x1d9   : > { %v3228_v49 = vsel %vm6216_vm2, %v3226_v57, %v3227_v59  ;;  %v4261_v39 = vunpack.c.l.b16 %v3941_v47  ;;  %v5668_v27 = vld [vmem:[#allocation2 + $0x44] sm:$0x1]  ;;  %v5605_v47 = vld [vmem:[#allocation2 + $0x3c] sm:$0xff] }
 0x1da   : > { %v2132_v16 = vpop.f32.mrf.mxu2  ;;  %v3322_v61 = vunpack.c.l.b16 %v3228_v49  ;;  %v4687_v10 = vpack.c.b16 %v4657_v44, %v4656_v33  ;;  %v4558_v33 = vrot.slane %v4556_v36, 4  ;;  %v3945_v44 = vrot.slane %v3943_v22, 4  ;;  %v5669_v22 = vld [vmem:[#allocation2 + $0x40] sm:$0xf] }
 0x1db   : > { %v3067_v1 = vpop.f32.mrf.mxu0  ;;  %v2184_v60 = vadd.f32 %v2132_v16, %v1780_v20  ;;  %v1783_v20 = vadd.f32 %v1782_v12, %v6365_v24  ;;  %v4478_v16 = vld [vmem:[#allocation2 + $0x30] sm:$0xe]  ;;  %v3956_v24 = vshrl.u32 %v6675_v32, 16  ;;  %v3234_v18 = vrot.slane %v5668_v27, 5 }
 0x1dc   : > { %v1784_v8 = vpop.f32.mrf.mxu1  ;;  %v6667_v42 = vadd.f32 %v3067_v1, %v2468_v0  ;;  %5518 = vmatmul.msk.bf16.gmra.mxu3 %vm1450_vm12, %v4289_v9  ;;  %v3931_v9 = vsel %vm5889_vm13, %v3926_v62, %v3930_v58  ;;  %v3948_v62 = vrot.slane %v3946_v11, 5  ;;  %v4560_v4 = vsel %vm6216_vm2, %v4558_v33, %v4559_v51 }
 0x1dd   : > { %v4260_v58 = vunpack.c.l.b16 %v3931_v9  ;;  %v3958_v57 = vrot.slane %v3956_v24, 4  ;;  %v3231_v11 = vrot.slane %v5669_v22, 5  ;;  %v4659_v21 = vunpack.c.l.b16 %v4560_v4 }
 0x1df   : > { %5502 = vmatmul.msk.bf16.gmra.mxu2 %vm1450_vm12, %v5604_v46  ;;  %v2416_v26 = vpop.f32.mrf.mxu3  ;;  %v3350_v46 = vpack.c.b16 %v3322_v61, %v3321_v6  ;;  %v1785_v6 = vadd.f32 %v1784_v8, %v6381_v48 }
 0x1e0   : > { %v2469_v0 = vadd.f32 %v2416_v26, %v2183_v43  ;;  %v5535_v43 = vrot.slane %v4478_v16, 9  ;;  %v3959_v16 = vor.u32 %v3958_v57, %v3954_v28 }
 0x1e2   : > { %v2135_v63 = vpop.f32.mrf.mxu2  ;;  %v4557_v29 = vsel %vm6216_vm2, %v5535_v43, %v4556_v36 }
 0x1e3   : > { %v3070_v59 = vpop.f32.mrf.mxu0  ;;  %v2185_v1 = vadd.f32 %v2135_v63, %v1783_v20  ;;  %v3949_v20 = vor.u32 %v3948_v62, %v3945_v44  ;;  %v3962_v63 = vshll.u32 %v6690_v45, 16  ;;  %v4658_v8 = vunpack.c.l.b16 %v4557_v29  ;;  %v6706_v44 = vld [vmem:[#allocation2 + $0x4c] sm:$0xf]  ;;  %v4479_v29 = vld [vmem:[#allocation2 + $0x3c] sm:$0xe] }
 0x1e4   : > { %v1787_v12 = vpop.f32.mrf.mxu1  ;;  %v6685_v23 = vadd.f32 %v3070_v59, %v2469_v0  ;;  %v5536_v22 = vrot.slane %v4479_v29, 9 }
 0x1e5   : > { %v3950_v24 = vrot.slane %v3949_v20, 4  ;;  %v3964_v43 = vrot.slane %v3962_v63, 5  ;;  %v4688_v4 = vpack.c.b16 %v4659_v21, %v4658_v8 }
 0x1e6   : > { %5551 = vmatmul.msk.bf16.gmra.mxu0 %vm1450_vm12, %v4687_v10  ;;  %v4290_v10 = vpack.c.b16 %v4261_v39, %v4260_v58  ;;  %v3834_v58 = vld [vmem:[#allocation2 + $0x48] sm:$0xf]  ;;  %v3960_v39 = vrot.slane %v3959_v16, 4 }
 0x1e7   : > { %5422 = vmatmul.msk.bf16.gmra.mxu1 %vm1450_vm12, %v3350_v46  ;;  %v2418_v49 = vpop.f32.mrf.mxu3  ;;  %v3141_v46 = vld [vmem:[#allocation2 + $0x3c] sm:$0xe]  ;;  %v3955_v16 = vsel %vm5889_vm13, %v3950_v24, %v3954_v28  ;;  %v6721_v24 = vld [vmem:[#allocation2 + $0x50] sm:$0x1] }
 0x1e8   : > { %v2470_v61 = vadd.f32 %v2418_v49, %v2184_v60  ;;  %v5406_v48 = vrot.slane %v3141_v46, 9  ;;  %v3233_v60 = vrot.slane %v3231_v11, 4  ;;  %v1788_v49 = vadd.f32 %v1787_v12, %v6395_v38 }
 0x1e9   : > { %v3965_v63 = vsel %vm5889_vm13, %v3960_v39, %v3964_v43  ;;  %v4262_v8 = vunpack.c.l.b16 %v3955_v16  ;;  %v3986_v29 = vshll.u32 %v6721_v24, 16 }
 0x1ea   : > { %v2137_v26 = vpop.f32.mrf.mxu2  ;;  %v3232_v33 = vsel %vm6216_vm2, %v5406_v48, %v3231_v11  ;;  %v3235_v51 = vsel %vm6216_vm2, %v3233_v60, %v3234_v18  ;;  %v4263_v21 = vunpack.c.l.b16 %v3965_v63  ;;  %v3142_v63 = vld [vmem:[#allocation2 + $0x48] sm:$0xe] }
 0x1eb   : > { %v3072_v9 = vpop.f32.mrf.mxu0  ;;  %v2186_v0 = vadd.f32 %v2137_v26, %v1785_v6  ;;  %v3323_v62 = vunpack.c.l.b16 %v3232_v33  ;;  %v3324_v57 = vunpack.c.l.b16 %v3235_v51  ;;  %v4563_v6 = vrot.slane %v6675_v32, 5 }
 0x1ec   : > { %v1789_v59 = vpop.f32.mrf.mxu1  ;;  %v6698_v36 = vadd.f32 %v3072_v9, %v2470_v61  ;;  %5519 = vmatmul.msk.bf16.gmra.mxu3 %vm1450_vm12, %v4290_v10  ;;  %v3967_v61 = vshrl.u32 %v3834_v58, 16  ;;  %v3970_v10 = vshll.u32 %v3834_v58, 16  ;;  %v3976_v9 = vshll.u32 %v6706_v44, 16 }
 0x1ed   : > { %v3351_v12 = vpack.c.b16 %v3324_v57, %v3323_v62  ;;  %v4565_v46 = vrot.slane %v4563_v6, 4  ;;  %v4564_v43 = vsel %vm6216_vm2, %v5536_v22, %v4563_v6  ;;  %v4291_v57 = vpack.c.b16 %v4263_v21, %v4262_v8  ;;  %v6737_v8 = vld [vmem:[#allocation2 + $0x58] sm:$0xf] }
 0x1ee   : > { %v3969_v48 = vrot.slane %v3967_v61, 4  ;;  %v3972_v60 = vrot.slane %v3970_v10, 5  ;;  %v3978_v58 = vrot.slane %v3976_v9, 5  ;;  %v5670_v61 = vld [vmem:[#allocation2 + $0x50] sm:$0x1]  ;;  %v4660_v6 = vunpack.c.l.b16 %v4564_v43 }
 0x1ef   : > { %5503 = vmatmul.msk.bf16.gmra.mxu2 %vm1450_vm12, %v5605_v47  ;;  %v2421_v27 = vpop.f32.mrf.mxu3  ;;  %v3980_v47 = vshrl.u32 %v6706_v44, 16  ;;  %v3241_v10 = vrot.slane %v5670_v61, 5  ;;  %v5671_v9 = vld [vmem:[#allocation2 + $0x4c] sm:$0xf] }
 0x1f0   : > { %v2471_v26 = vadd.f32 %v2421_v27, %v2185_v1  ;;  %v4566_v1 = vrot.slane %v6690_v45, 5  ;;  %v1790_v45 = vadd.f32 %v1789_v59, %v6412_v56  ;;  %v3973_v51 = vor.u32 %v3972_v60, %v3969_v48 }
 0x1f1   : > { %v3982_v28 = vrot.slane %v3980_v47, 4  ;;  %v3238_v47 = vrot.slane %v5671_v9, 5 }
 0x1f2   : > { %v2140_v20 = vpop.f32.mrf.mxu2  ;;  %v4567_v33 = vsel %vm6216_vm2, %v4565_v46, %v4566_v1  ;;  %v3974_v56 = vrot.slane %v3973_v51, 4  ;;  %v3988_v46 = vrot.slane %v3986_v29, 5  ;;  %v3837_v1 = vld [vmem:[#allocation2 + $0x54] sm:$0xf] }
 0x1f3   : > { %v3075_v18 = vpop.f32.mrf.mxu0  ;;  %v2187_v38 = vadd.f32 %v2140_v20, %v1788_v49  ;;  %v3983_v49 = vor.u32 %v3982_v28, %v3978_v58  ;;  %v5606_v20 = vld [vmem:[#allocation2 + $0x48] sm:$0xff]  ;;  %v3240_v59 = vrot.slane %v3238_v47, 4  ;;  %v4570_v28 = vrot.slane %v6706_v44, 5 }
 0x1f4   : > { %v1792_v32 = vpop.f32.mrf.mxu1  ;;  %v6716_v11 = vadd.f32 %v3075_v18, %v2471_v26  ;;  %v4661_v18 = vunpack.c.l.b16 %v4567_v33  ;;  %v3979_v51 = vsel %vm5889_vm13, %v3974_v56, %v3978_v58  ;;  %v4004_v44 = vshrl.u32 %v6737_v8, 16 }
 0x1f5   : > { %v3984_v22 = vrot.slane %v3983_v49, 4  ;;  %v3242_v60 = vsel %vm6216_vm2, %v3240_v59, %v3241_v10  ;;  %v4000_v10 = vshll.u32 %v6737_v8, 16  ;;  %v4264_v58 = vunpack.c.l.b16 %v3979_v51  ;;  %v5672_v51 = vld [vmem:[#allocation2 + $0x5c] sm:$0x1] }
 0x1f6   : > { %5552 = vmatmul.msk.bf16.gmra.mxu0 %vm1450_vm12, %v4688_v4  ;;  %v4689_v21 = vpack.c.b16 %v4661_v18, %v4660_v6  ;;  %v3326_v43 = vunpack.c.l.b16 %v3242_v60  ;;  %v4573_v56 = vrot.slane %v6721_v24, 5  ;;  %v4006_v59 = vrot.slane %v4004_v44, 4  ;;  %v3143_v44 = vld [vmem:[#allocation2 + $0x54] sm:$0xe] }
 0x1f7   : > { %5423 = vmatmul.msk.bf16.gmra.mxu1 %vm1450_vm12, %v3351_v12  ;;  %v2423_v39 = vpop.f32.mrf.mxu3  ;;  %v3989_v29 = vsel %vm5889_vm13, %v3984_v22, %v3988_v46  ;;  %v6752_v22 = vld [vmem:[#allocation2 + $0x5c] sm:$0x1] }
 0x1f8   : > { %v2472_v62 = vadd.f32 %v2423_v39, %v2186_v0  ;;  %v5407_v0 = vrot.slane %v3142_v63, 9  ;;  %v4265_v6 = vunpack.c.l.b16 %v3989_v29  ;;  %v5673_v29 = vld [vmem:[#allocation2 + $0x58] sm:$0xf] }
 0x1fa   : > { %v2142_v27 = vpop.f32.mrf.mxu2  ;;  %v3239_v48 = vsel %vm6216_vm2, %v5407_v0, %v3238_v47  ;;  %v4002_v0 = vrot.slane %v4000_v10, 5 }
 0x1fb   : > { %v3077_v4 = vpop.f32.mrf.mxu0  ;;  %v2188_v26 = vadd.f32 %v2142_v27, %v1790_v45  ;;  %v3325_v39 = vunpack.c.l.b16 %v3239_v48  ;;  %v1793_v45 = vadd.f32 %v1792_v32, %v6323_v14  ;;  %v3994_v27 = vshll.u32 %v3837_v1, 16 }
 0x1fc   : > { %v1794_v16 = vpop.f32.mrf.mxu1  ;;  %v6729_v12 = vadd.f32 %v3077_v4, %v2472_v62  ;;  %5520 = vmatmul.msk.bf16.gmra.mxu3 %vm1450_vm12, %v4291_v57  ;;  %v4480_v62 = vld [vmem:[#allocation2 + $0x48] sm:$0xe]  ;;  %v3991_v57 = vshrl.u32 %v3837_v1, 16  ;;  %v4292_v1 = vpack.c.b16 %v4265_v6, %v4264_v58  ;;  %v4007_v24 = vor.u32 %v4006_v59, %v4002_v0  ;;  %v6768_v59 = vld [vmem:[#allocation2 + $0x64] sm:$0xf] }
 0x1fd   : > { %v3352_v9 = vpack.c.b16 %v3326_v43, %v3325_v39  ;;  %v5537_v47 = vrot.slane %v4480_v62, 9  ;;  %v3996_v63 = vrot.slane %v3994_v27, 5  ;;  %v1795_v60 = vadd.f32 %v1794_v16, %v6338_v30 }
 0x1fe   : > { %v3993_v18 = vrot.slane %v3991_v57, 4  ;;  %v3248_v62 = vrot.slane %v5672_v51, 5 }
 0x1ff   : > { %5504 = vmatmul.msk.bf16.gmra.mxu2 %vm1450_vm12, %v5606_v20  ;;  %v2426_v33 = vpop.f32.mrf.mxu3  ;;  %v4571_v48 = vsel %vm6216_vm2, %v5537_v47, %v4570_v28  ;;  %v4008_v47 = vrot.slane %v4007_v24, 4 }
 0x200   : > { %v2473_v49 = vadd.f32 %v2426_v33, %v2187_v38  ;;  %v4572_v38 = vrot.slane %v4570_v28, 4  ;;  %v3997_v39 = vor.u32 %v3996_v63, %v3993_v18  ;;  %v4662_v10 = vunpack.c.l.b16 %v4571_v48  ;;  %v3840_v63 = vld [vmem:[#allocation2 + $0x60] sm:$0xf] }
 0x201   : > { %v4018_v51 = vshll.u32 %v3840_v63, 16 }
 0x202   : > { %v2145_v61 = vpop.f32.mrf.mxu2  ;;  %v3998_v16 = vrot.slane %v3997_v39, 4  ;;  %v4577_v39 = vrot.slane %v6737_v8, 5 }
 0x203   : > { %v3080_v4 = vpop.f32.mrf.mxu0  ;;  %v2189_v20 = vadd.f32 %v2145_v61, %v1793_v45  ;;  %v4010_v45 = vshll.u32 %v6752_v22, 16  ;;  %v3245_v61 = vrot.slane %v5673_v29, 5  ;;  %v4024_v29 = vshll.u32 %v6768_v59, 16 }
 0x204   : > { %v1797_v14 = vpop.f32.mrf.mxu1  ;;  %v6747_v32 = vadd.f32 %v3080_v4, %v2473_v49  ;;  %v5607_v49 = vld [vmem:[#allocation2 + $0x54] sm:$0xff]  ;;  %v5408_v4 = vrot.slane %v3143_v44, 9  ;;  %v4580_v44 = vrot.slane %v6752_v22, 5 }
 0x205   : > { %v4012_v58 = vrot.slane %v4010_v45, 5  ;;  %v4015_v45 = vshrl.u32 %v3840_v63, 16 }
 0x206   : > { %5553 = vmatmul.msk.bf16.gmra.mxu0 %vm1450_vm12, %v4689_v21  ;;  %v4574_v21 = vsel %vm6216_vm2, %v4572_v38, %v4573_v56  ;;  %v3246_v6 = vsel %vm6216_vm2, %v5408_v4, %v3245_v61  ;;  %v4026_v4 = vrot.slane %v4024_v29, 5 }
 0x207   : > { %5424 = vmatmul.msk.bf16.gmra.mxu1 %vm1450_vm12, %v3352_v9  ;;  %v2428_v46 = vpop.f32.mrf.mxu3  ;;  %v3247_v9 = vrot.slane %v3245_v61, 4  ;;  %v3327_v38 = vunpack.c.l.b16 %v3246_v6 }
 0x208   : > { %v2474_v43 = vadd.f32 %v2428_v46, %v2188_v26  ;;  %v4663_v26 = vunpack.c.l.b16 %v4574_v21  ;;  %v4013_v21 = vsel %vm5889_vm13, %v4008_v47, %v4012_v58  ;;  %v6783_v47 = vld [vmem:[#allocation2 + $0x68] sm:$0x1] }
 0x209   : > { %v3249_v18 = vsel %vm6216_vm2, %v3247_v9, %v3248_v62  ;;  %v4267_v8 = vunpack.c.l.b16 %v4013_v21  ;;  %v5674_v58 = vld [vmem:[#allocation2 + $0x68] sm:$0x1]  ;;  %v5608_v21 = vld [vmem:[#allocation2 + $0x60] sm:$0xff] }
 0x20a   : > { %v2147_v33 = vpop.f32.mrf.mxu2  ;;  %v3328_v56 = vunpack.c.l.b16 %v3249_v18  ;;  %v4690_v46 = vpack.c.b16 %v4663_v26, %v4662_v10  ;;  %v4579_v10 = vrot.slane %v4577_v39, 4  ;;  %v4017_v26 = vrot.slane %v4015_v45, 4  ;;  %v5675_v45 = vld [vmem:[#allocation2 + $0x64] sm:$0xf] }
 0x20b   : > { %v3082_v57 = vpop.f32.mrf.mxu0  ;;  %v2190_v27 = vadd.f32 %v2147_v33, %v1795_v60  ;;  %v1798_v60 = vadd.f32 %v1797_v14, %v6353_v55  ;;  %v4481_v33 = vld [vmem:[#allocation2 + $0x54] sm:$0xe]  ;;  %v4028_v55 = vshrl.u32 %v6768_v59, 16  ;;  %v3255_v6 = vrot.slane %v5674_v58, 5 }
 0x20c   : > { %v1799_v28 = vpop.f32.mrf.mxu1  ;;  %v6760_v30 = vadd.f32 %v3082_v57, %v2474_v43  ;;  %5521 = vmatmul.msk.bf16.gmra.mxu3 %vm1450_vm12, %v4292_v1  ;;  %v4003_v1 = vsel %vm5889_vm13, %v3998_v16, %v4002_v0  ;;  %v4020_v16 = vrot.slane %v4018_v51, 5  ;;  %v4581_v22 = vsel %vm6216_vm2, %v4579_v10, %v4580_v44 }
 0x20d   : > { %v4266_v0 = vunpack.c.l.b16 %v4003_v1  ;;  %v4030_v9 = vrot.slane %v4028_v55, 4  ;;  %v3252_v51 = vrot.slane %v5675_v45, 5  ;;  %v4665_v29 = vunpack.c.l.b16 %v4581_v22 }
 0x20f   : > { %5505 = vmatmul.msk.bf16.gmra.mxu2 %vm1450_vm12, %v5607_v49  ;;  %v2431_v48 = vpop.f32.mrf.mxu3  ;;  %v3353_v49 = vpack.c.b16 %v3328_v56, %v3327_v38  ;;  %v1800_v38 = vadd.f32 %v1799_v28, %v6369_v34 }
 0x210   : > { %v2475_v43 = vadd.f32 %v2431_v48, %v2189_v20  ;;  %v5538_v20 = vrot.slane %v4481_v33, 9  ;;  %v4031_v33 = vor.u32 %v4030_v9, %v4026_v4 }
 0x212   : > { %v2150_v24 = vpop.f32.mrf.mxu2  ;;  %v4578_v63 = vsel %vm6216_vm2, %v5538_v20, %v4577_v39 }
 0x213   : > { %v3085_v62 = vpop.f32.mrf.mxu0  ;;  %v2191_v57 = vadd.f32 %v2150_v24, %v1798_v60  ;;  %v4021_v60 = vor.u32 %v4020_v16, %v4017_v26  ;;  %v4034_v24 = vshll.u32 %v6783_v47, 16  ;;  %v4664_v28 = vunpack.c.l.b16 %v4578_v63  ;;  %v6799_v26 = vld [vmem:[#allocation2 + $0x70] sm:$0xf]  ;;  %v4482_v63 = vld [vmem:[#allocation2 + $0x60] sm:$0xe] }
 0x214   : > { %v1802_v14 = vpop.f32.mrf.mxu1  ;;  %v6778_v61 = vadd.f32 %v3085_v62, %v2475_v43  ;;  %v5539_v45 = vrot.slane %v4482_v63, 9 }
 0x215   : > { %v4022_v55 = vrot.slane %v4021_v60, 4  ;;  %v4036_v20 = vrot.slane %v4034_v24, 5  ;;  %v4691_v22 = vpack.c.b16 %v4665_v29, %v4664_v28 }
 0x216   : > { %5554 = vmatmul.msk.bf16.gmra.mxu0 %vm1450_vm12, %v4690_v46  ;;  %v4293_v46 = vpack.c.b16 %v4267_v8, %v4266_v0  ;;  %v3843_v0 = vld [vmem:[#allocation2 + $0x6c] sm:$0xf]  ;;  %v4032_v8 = vrot.slane %v4031_v33, 4 }
 0x217   : > { %5425 = vmatmul.msk.bf16.gmra.mxu1 %vm1450_vm12, %v3353_v49  ;;  %v2433_v18 = vpop.f32.mrf.mxu3  ;;  %v3144_v49 = vld [vmem:[#allocation2 + $0x60] sm:$0xe]  ;;  %v4027_v33 = vsel %vm5889_vm13, %v4022_v55, %v4026_v4  ;;  %v6814_v55 = vld [vmem:[#allocation2 + $0x74] sm:$0x1] }
 0x218   : > { %v2476_v56 = vadd.f32 %v2433_v18, %v2190_v27  ;;  %v5409_v34 = vrot.slane %v3144_v49, 9  ;;  %v3254_v27 = vrot.slane %v3252_v51, 4  ;;  %v1803_v18 = vadd.f32 %v1802_v14, %v6389_v15 }
 0x219   : > { %v4037_v24 = vsel %vm5889_vm13, %v4032_v8, %v4036_v20  ;;  %v4268_v28 = vunpack.c.l.b16 %v4027_v33  ;;  %v4058_v63 = vshll.u32 %v6814_v55, 16 }
 0x21a   : > { %v2152_v48 = vpop.f32.mrf.mxu2  ;;  %v3253_v10 = vsel %vm6216_vm2, %v5409_v34, %v3252_v51  ;;  %v3256_v44 = vsel %vm6216_vm2, %v3254_v27, %v3255_v6  ;;  %v4269_v29 = vunpack.c.l.b16 %v4037_v24 }
 0x21b   : > { %v3087_v1 = vpop.f32.mrf.mxu0  ;;  %v2192_v43 = vadd.f32 %v2152_v48, %v1800_v38  ;;  %v3329_v16 = vunpack.c.l.b16 %v3253_v10  ;;  %v3330_v9 = vunpack.c.l.b16 %v3256_v44  ;;  %v4584_v38 = vrot.slane %v6768_v59, 5 }
 0x21c   : > { %v1804_v62 = vpop.f32.mrf.mxu1  ;;  %v6791_v39 = vadd.f32 %v3087_v1, %v2476_v56  ;;  %5522 = vmatmul.msk.bf16.gmra.mxu3 %vm1450_vm12, %v4293_v46  ;;  %v4039_v56 = vshrl.u32 %v3843_v0, 16  ;;  %v4042_v46 = vshll.u32 %v3843_v0, 16  ;;  %v4048_v1 = vshll.u32 %v6799_v26, 16 }
 0x21d   : > { %v3354_v14 = vpack.c.b16 %v3330_v9, %v3329_v16  ;;  %v4586_v49 = vrot.slane %v4584_v38, 4  ;;  %v4585_v20 = vsel %vm6216_vm2, %v5539_v45, %v4584_v38  ;;  %v4294_v9 = vpack.c.b16 %v4269_v29, %v4268_v28 }
 0x21e   : > { %v4041_v34 = vrot.slane %v4039_v56, 4  ;;  %v4044_v27 = vrot.slane %v4042_v46, 5  ;;  %v4050_v0 = vrot.slane %v4048_v1, 5  ;;  %v4666_v1 = vunpack.c.l.b16 %v4585_v20 }
 0x21f   : > { %5506 = vmatmul.msk.bf16.gmra.mxu2 %vm1450_vm12, %v5608_v21  ;;  %v2436_v58 = vpop.f32.mrf.mxu3  ;;  %v4052_v21 = vshrl.u32 %v6799_v26, 16 }
 0x220   : > { %v2477_v48 = vadd.f32 %v2436_v58, %v2191_v57  ;;  %v4587_v57 = vrot.slane %v6783_v47, 5  ;;  %v1805_v47 = vadd.f32 %v1804_v62, %v6403_v50  ;;  %v4045_v44 = vor.u32 %v4044_v27, %v4041_v34  ;;  %v3846_v27 = vld [vmem:[#allocation2 + $0x78] sm:$0xf] }
 0x221   : > { %v4054_v4 = vrot.slane %v4052_v21, 4 }
 0x222   : > { %v2155_v60 = vpop.f32.mrf.mxu2  ;;  %v4588_v10 = vsel %vm6216_vm2, %v4586_v49, %v4587_v57  ;;  %v4046_v24 = vrot.slane %v4045_v44, 4  ;;  %v4060_v49 = vrot.slane %v4058_v63, 5 }
 0x223   : > { %v3090_v6 = vpop.f32.mrf.mxu0  ;;  %v2193_v15 = vadd.f32 %v2155_v60, %v1803_v18  ;;  %v4055_v18 = vor.u32 %v4054_v4, %v4050_v0  ;;  %v4667_v21 = vunpack.c.l.b16 %v4588_v10  ;;  %v6830_v4 = vld [vmem:[#allocation2 + $0x7c] sm:$0xf] }
 0x224   : > { %v1807_v59 = vpop.f32.mrf.mxu1  ;;  %v6809_v51 = vadd.f32 %v3090_v6, %v2477_v48  ;;  %v5676_v48 = vld [vmem:[#allocation2 + $0x70] sm:$0xf]  ;;  %v3145_v6 = vld [vmem:[#allocation2 + $0x6c] sm:$0xe]  ;;  %v7338_v10 = vld [vmem:[#allocation3_spill] sm:$0xff]  ;;  %v4051_v44 = vsel %vm5889_vm13, %v4046_v24, %v4050_v0 }
 0x225   : > { %v3259_v60 = vrot.slane %v5676_v48, 5  ;;  %v5410_v50 = vrot.slane %v3145_v6, 9  ;;  %v4056_v45 = vrot.slane %v4055_v18, 4  ;;  %v4483_v18 = vld [vmem:[#allocation2 + $0x6c] sm:$0xe] }
 0x226   : > { %5555 = vmatmul.msk.bf16.gmra.mxu0 %vm1450_vm12, %v4691_v22  ;;  %v5609_v22 = vld [vmem:[#allocation2 + $0x6c] sm:$0xff]  ;;  %v5540_v24 = vrot.slane %v4483_v18, 9 }
 0x227   : > { %5426 = vmatmul.msk.bf16.gmra.mxu1 %vm1450_vm12, %v3354_v14  ;;  %v2438_v8 = vpop.f32.mrf.mxu3  ;;  %v3261_v62 = vrot.slane %v3259_v60, 4  ;;  %v3260_v57 = vsel %vm6216_vm2, %v5410_v50, %v3259_v60 }
 0x228   : > { %v2478_v16 = vadd.f32 %v2438_v8, %v2192_v43  ;;  %v5677_v43 = vld [vmem:[#allocation2 + $0x74] sm:$0x1]  ;;  %v3331_v28 = vunpack.c.l.b16 %v3260_v57  ;;  %v4692_v8 = vpack.c.b16 %v4667_v21, %v4666_v1  ;;  %v4072_v1 = vshll.u32 %v6830_v4, 16  ;;  %v6847_v57 = vld [vmem:[#allocation2 + $0x80] sm:$0x1] }
 0x229   : > { %v3262_v14 = vrot.slane %v5677_v43, 5 }
 0x22a   : > { %v2157_v58 = vpop.f32.mrf.mxu2 }
 0x22b   : > { %v3092_v56 = vpop.f32.mrf.mxu0  ;;  %v2194_v46 = vadd.f32 %v2157_v58, %v1805_v47  ;;  %v3263_v34 = vsel %vm6216_vm2, %v3261_v62, %v3262_v14  ;;  %v1808_v47 = vadd.f32 %v1807_v59, %v7338_v10  ;;  %v4061_v58 = vsel %vm5889_vm13, %v4056_v45, %v4060_v49 }
 0x22c   : > { %v1809_v38 = vpop.f32.mrf.mxu1  ;;  %v6822_v33 = vadd.f32 %v3092_v56, %v2478_v16  ;;  %5523 = vmatmul.msk.bf16.gmra.mxu3 %vm1450_vm12, %v4294_v9  ;;  %v3332_v29 = vunpack.c.l.b16 %v3263_v34  ;;  %v4591_v16 = vrot.slane %v6799_v26, 5  ;;  %v4063_v56 = vshrl.u32 %v3846_v27, 16 }
 0x22d   : > { %v4076_v59 = vshrl.u32 %v6830_v4, 16  ;;  %v4270_v26 = vunpack.c.l.b16 %v4051_v44  ;;  %v4594_v62 = vrot.slane %v6814_v55, 5  ;;  %v4074_v45 = vrot.slane %v4072_v1, 5  ;;  %v5679_v1 = vld [vmem:[#allocation2 + $0x80] sm:$0x1] }
 0x22e   : > { %v3355_v6 = vpack.c.b16 %v3332_v29, %v3331_v28  ;;  %v4593_v50 = vrot.slane %v4591_v16, 4  ;;  %v4065_v43 = vrot.slane %v4063_v56, 4  ;;  %v7339_v28 = vld [vmem:[#allocation4_spill] sm:$0xff]  ;;  %v5678_v56 = vld [vmem:[#allocation2 + $0x7c] sm:$0xf] }
 0x22f   : > { %5507 = vmatmul.msk.bf16.gmra.mxu2 %vm1450_vm12, %v5609_v22  ;;  %v2441_v20 = vpop.f32.mrf.mxu3  ;;  %v4066_v22 = vshll.u32 %v3846_v27, 16  ;;  %v4078_v49 = vrot.slane %v4076_v59, 4  ;;  %v4592_v27 = vsel %vm6216_vm2, %v5540_v24, %v4591_v16  ;;  %v1810_v29 = vadd.f32 %v1809_v38, %v7339_v28  ;;  %v3146_v16 = vld [vmem:[#allocation2 + $0x78] sm:$0xe] }
 0x230   : > { %v2479_v9 = vadd.f32 %v2441_v20, %v2193_v15  ;;  %v4271_v15 = vunpack.c.l.b16 %v4061_v58  ;;  %v5610_v58 = vld [vmem:[#allocation2 + $0x78] sm:$0xff]  ;;  %v3269_v59 = vrot.slane %v5679_v1, 5 }
 0x231   : > { %v4068_v14 = vrot.slane %v4066_v22, 5  ;;  %v4079_v18 = vor.u32 %v4078_v49, %v4074_v45  ;;  %v3266_v22 = vrot.slane %v5678_v56, 5 }
 0x232   : > { %v2160_v63 = vpop.f32.mrf.mxu2  ;;  %v4295_v10 = vpack.c.b16 %v4271_v15, %v4270_v26  ;;  %v3849_v26 = vld [vmem:[#allocation2 + $0x84] sm:$0xf]  ;;  %v4668_v15 = vunpack.c.l.b16 %v4592_v27  ;;  %v4484_v27 = vld [vmem:[#allocation2 + $0x78] sm:$0xe] }
 0x233   : > { %v3095_v48 = vpop.f32.mrf.mxu0  ;;  %v2195_v60 = vadd.f32 %v2160_v63, %v1808_v47  ;;  %v4069_v47 = vor.u32 %v4068_v14, %v4065_v43  ;;  %v4082_v63 = vshll.u32 %v6847_v57, 16  ;;  %v3268_v38 = vrot.slane %v3266_v22, 4 }
 0x234   : > { %v6840_v21 = vpop.f32.mrf.mxu1  ;;  %v6842_v0 = vadd.f32 %v3095_v48, %v2479_v9  ;;  %v4080_v43 = vrot.slane %v4079_v18, 4 }
 0x235   : > { %v4084_v14 = vrot.slane %v4082_v63, 5 }
 0x236   : > { %5556 = vmatmul.msk.bf16.gmra.mxu0 %vm1450_vm12, %v4692_v8  ;;  %v4595_v8 = vsel %vm6216_vm2, %v4593_v50, %v4594_v62  ;;  %v4070_v50 = vrot.slane %v4069_v47, 4  ;;  %v6860_v62 = vld [vmem:[#allocation2 + $0x88] sm:$0xf] }
 0x237   : > { %5427 = vmatmul.msk.bf16.gmra.mxu1 %vm1450_vm12, %v3355_v6  ;;  %v2443_v34 = vpop.f32.mrf.mxu3  ;;  %v4669_v24 = vunpack.c.l.b16 %v4595_v8  ;;  %v4598_v8 = vrot.slane %v6830_v4, 5  ;;  %v4096_v47 = vshll.u32 %v6860_v62, 16 }
 0x238   : > { %v2480_v20 = vadd.f32 %v2443_v34, %v2194_v46  ;;  %v5411_v46 = vrot.slane %v3146_v16, 9  ;;  %v3270_v34 = vsel %vm6216_vm2, %v3268_v38, %v3269_v59  ;;  %v4085_v16 = vsel %vm5889_vm13, %v4080_v43, %v4084_v14  ;;  %v6883_v43 = vld [vmem:[#allocation2 + $0x8c] sm:$0x1] }
 0x239   : > { %v5541_v38 = vrot.slane %v4484_v27, 9  ;;  %v4106_v27 = vshll.u32 %v6883_v43, 16 }
 0x23a   : > { %v2162_v55 = vpop.f32.mrf.mxu2  ;;  %v3267_v49 = vsel %vm6216_vm2, %v5411_v46, %v3266_v22  ;;  %v4075_v22 = vsel %vm5889_vm13, %v4070_v50, %v4074_v45  ;;  %v4273_v50 = vunpack.c.l.b16 %v4085_v16 }
 0x23b   : > { %v3097_v44 = vpop.f32.mrf.mxu0  ;;  %v2196_v9 = vadd.f32 %v2162_v55, %v1810_v29  ;;  %v3333_v28 = vunpack.c.l.b16 %v3267_v49  ;;  %v3334_v29 = vunpack.c.l.b16 %v3270_v34  ;;  %v4090_v55 = vshll.u32 %v3849_v26, 16 }
 0x23c   : > { %v6855_v48 = vpop.f32.mrf.mxu1  ;;  %v6857_v6 = vadd.f32 %v3097_v44, %v2480_v20  ;;  %5524 = vmatmul.msk.bf16.gmra.mxu3 %vm1450_vm12, %v4295_v10  ;;  %v4087_v20 = vshrl.u32 %v3849_v26, 16  ;;  %v4100_v44 = vshrl.u32 %v6860_v62, 16  ;;  %v4600_v49 = vrot.slane %v4598_v8, 4 }
 0x23d   : > { %v3356_v46 = vpack.c.b16 %v3334_v29, %v3333_v28  ;;  %v4092_v4 = vrot.slane %v4090_v55, 5  ;;  %v4272_v45 = vunpack.c.l.b16 %v4075_v22  ;;  %v4599_v14 = vsel %vm6216_vm2, %v5541_v38, %v4598_v8  ;;  %v3852_v22 = vld [vmem:[#allocation2 + $0x90] sm:$0xf] }
 0x23e   : > { %v4089_v59 = vrot.slane %v4087_v20, 4  ;;  %v3503_v8 = vadd.f32 %v6840_v21, %v6442_v52  ;;  %v4111_v52 = vshrl.u32 %v3852_v22, 16  ;;  %v4114_v21 = vshll.u32 %v3852_v22, 16 }
 0x23f   : > { %5508 = vmatmul.msk.bf16.gmra.mxu2 %vm1450_vm12, %v5610_v58  ;;  %v2446_v10 = vpop.f32.mrf.mxu3  ;;  %v4693_v58 = vpack.c.b16 %v4669_v24, %v4668_v15  ;;  %v4601_v15 = vrot.slane %v6847_v57, 5  ;;  %v4102_v24 = vrot.slane %v4100_v44, 4  ;;  %v4296_v55 = vpack.c.b16 %v4273_v50, %v4272_v45  ;;  %v5681_v45 = vld [vmem:[#allocation2 + $0x8c] sm:$0x1] }
 0x240   : > { %v2481_v18 = vadd.f32 %v2446_v10, %v2195_v60  ;;  %v6879_v60 = vrot.slane %v4096_v47, 5  ;;  %v4093_v34 = vor.u32 %v4092_v4, %v4089_v59  ;;  %v4670_v44 = vunpack.c.l.b16 %v4599_v14  ;;  %v3147_v59 = vld [vmem:[#allocation2 + $0x84] sm:$0xe]  ;;  %v6895_v4 = vld [vmem:[#allocation2 + $0x94] sm:$0xf] }
 0x241   : > { %v4602_v29 = vsel %vm6216_vm2, %v4600_v49, %v4601_v15  ;;  %v5412_v15 = vrot.slane %v3147_v59, 9  ;;  %v3276_v50 = vrot.slane %v5681_v45, 5  ;;  %v4116_v45 = vrot.slane %v4114_v21, 5  ;;  %v6927_v21 = vld [vmem:[#allocation2 + $0x98] sm:$0x1] }
 0x242   : > { %v3710_v63 = vpop.f32.mrf.mxu2  ;;  %v4103_v57 = vor.u32 %v4102_v24, %v6879_v60  ;;  %v4671_v16 = vunpack.c.l.b16 %v4602_v29 }
 0x243   : > { %v3100_v56 = vpop.f32.mrf.mxu0  ;;  %v3790_v14 = vadd.f32 %v3710_v63, %v3503_v8 }
 0x244   : > { %v6874_v1 = vpop.f32.mrf.mxu1  ;;  %v6876_v26 = vadd.f32 %v3100_v56, %v2481_v18  ;;  %v5680_v18 = vld [vmem:[#allocation2 + $0x88] sm:$0xf]  ;;  %v4104_v49 = vrot.slane %v4103_v57, 4  ;;  %v4120_v57 = vshll.u32 %v6895_v4, 16 }
 0x245   : > { %v3273_v56 = vrot.slane %v5680_v18, 5  ;;  %v4485_v18 = vld [vmem:[#allocation2 + $0x84] sm:$0xe] }
 0x246   : > { %7340 = vst [vmem:[#allocation3_spill] sm:$0xff] %v6876_v26  ;;  %5557 = vmatmul.msk.bf16.gmra.mxu0 %vm1450_vm12, %v4693_v58  ;;  %v5611_v58 = vld [vmem:[#allocation2 + $0x84] sm:$0xff]  ;;  %v5542_v22 = vrot.slane %v4485_v18, 9  ;;  %v4608_v18 = vrot.slane %v6883_v43, 5 }
 0x247   : > { %5428 = vmatmul.msk.bf16.gmra.mxu1 %vm1450_vm12, %v3356_v46  ;;  %v2448_v28 = vpop.f32.mrf.mxu3  ;;  %v4094_v46 = vrot.slane %v4093_v34, 4  ;;  %v3275_v24 = vrot.slane %v3273_v56, 4  ;;  %v3274_v34 = vsel %vm6216_vm2, %v5412_v15, %v3273_v56  ;;  %v4113_v15 = vrot.slane %v4111_v52, 4  ;;  %v7342_v26 = vld [vmem:[#allocation5_spill] sm:$0xff] }
 0x248   : > { %v2482_v20 = vadd.f32 %v2448_v28, %v2196_v9  ;;  %v4108_v28 = vrot.slane %v4106_v27, 5  ;;  %v3335_v63 = vunpack.c.l.b16 %v3274_v34 }
 0x249   : > { %v3277_v29 = vsel %vm6216_vm2, %v3275_v24, %v3276_v50 }
 0x24a   : > { %v3712_v10 = vpop.f32.mrf.mxu2  ;;  %v3336_v27 = vunpack.c.l.b16 %v3277_v29 }
 0x24b   : > { %v3102_v47 = vpop.f32.mrf.mxu0 }
 0x24c   : > { %v6893_v38 = vpop.f32.mrf.mxu1  ;;  %v6897_v9 = vadd.f32 %v3102_v47, %v2482_v20  ;;  %5525 = vmatmul.msk.bf16.gmra.mxu3 %vm1450_vm12, %v4296_v55  ;;  %v4124_v20 = vshrl.u32 %v6895_v4, 16  ;;  %v4605_v55 = vrot.slane %v6860_v62, 5  ;;  %v4694_v47 = vpack.c.b16 %v4671_v16, %v4670_v44 }
 0x24d   : > { %v4109_v62 = vsel %vm5889_vm13, %v4104_v49, %v4108_v28  ;;  %v3357_v44 = vpack.c.b16 %v3336_v27, %v3335_v63  ;;  %v6920_v16 = vrot.slane %v4120_v57, 5  ;;  %v4117_v57 = vor.u32 %v4116_v45, %v4113_v15  ;;  %v5612_v15 = vld [vmem:[#allocation2 + $0x90] sm:$0xff] }
 0x24e   : > { %7341 = vst [vmem:[#allocation4_spill] sm:$0xff] %v6897_v9  ;;  %v4126_v50 = vrot.slane %v4124_v20, 4  ;;  %v4275_v28 = vunpack.c.l.b16 %v4109_v62  ;;  %v4606_v29 = vsel %vm6216_vm2, %v5542_v22, %v4605_v55  ;;  %v3855_v22 = vld [vmem:[#allocation2 + $0x9c] sm:$0xf]  ;;  %v5682_v62 = vld [vmem:[#allocation2 + $0x94] sm:$0xf] }
 0x24f   : > { %5509 = vmatmul.msk.bf16.gmra.mxu2 %vm1450_vm12, %v5611_v58  ;;  %v4364_v8 = vpop.f32.mrf.mxu3  ;;  %v4099_v58 = vsel %vm5889_vm13, %v4094_v46, %v6879_v60  ;;  %v3504_v60 = vadd.f32 %v6855_v48, %v6452_v40  ;;  %v4607_v46 = vrot.slane %v4605_v55, 4  ;;  %v4130_v48 = vshll.u32 %v6927_v21, 16  ;;  %v4486_v9 = vld [vmem:[#allocation2 + $0x90] sm:$0xe] }
 0x250   : > { %v4444_v59 = vadd.f32 %v4364_v8, %v3790_v14  ;;  %v4274_v34 = vunpack.c.l.b16 %v4099_v58  ;;  %v4127_v40 = vor.u32 %v4126_v50, %v6920_v16  ;;  %v4672_v63 = vunpack.c.l.b16 %v4606_v29  ;;  %v6943_v50 = vld [vmem:[#allocation2 + $0xa0] sm:$0xf]  ;;  %v5683_v29 = vld [vmem:[#allocation2 + $0x98] sm:$0x1] }
 0x251   : > { %v3791_v49 = vadd.f32 %v3712_v10, %v3504_v60  ;;  %v4609_v43 = vsel %vm6216_vm2, %v4607_v46, %v4608_v18  ;;  %v3505_v10 = vadd.f32 %v6874_v1, %v6461_v35  ;;  %v4118_v55 = vrot.slane %v4117_v57, 4 }
 0x252   : > { %v3715_v56 = vpop.f32.mrf.mxu2  ;;  %v4673_v58 = vunpack.c.l.b16 %v4609_v43  ;;  %v4128_v45 = vrot.slane %v4127_v40, 4  ;;  %v3283_v57 = vrot.slane %v5683_v29, 5  ;;  %v4135_v43 = vshrl.u32 %v3855_v22, 16 }
 0x253   : > { %v4762_v24 = vpop.f32.mrf.mxu0  ;;  %v3792_v35 = vadd.f32 %v3715_v56, %v3505_v10 }
 0x254   : > { %v4842_v14 = vadd.f32 %v4762_v24, %v4444_v59  ;;  %v6925_v52 = vpop.f32.mrf.mxu1  ;;  %v4132_v24 = vrot.slane %v4130_v48, 5 }
 0x256   : > { %5558 = vmatmul.msk.bf16.gmra.mxu0 %vm1450_vm12, %v4694_v47  ;;  %4874 = vst.msk [vmem:[%s6916_s9] sm:$0xff] %vm1450_vm12, %v4842_v14  ;;  %v4297_v47 = vpack.c.b16 %v4275_v28, %v4274_v34  ;;  %v4906_v60 = vsel %vm1450_vm12, %v4842_v14, 0.0  ;;  %v4976_v46 = vmul.f32 %v4842_v14, %v4842_v14  ;;  %v3148_v34 = vld [vmem:[#allocation2 + $0x90] sm:$0xe]  ;;  %v4144_v14 = vshll.u32 %v6943_v50, 16 }
 0x257   : > { %5429 = vmatmul.msk.bf16.gmra.mxu1 %vm1450_vm12, %v3357_v44  ;;  %v4366_v20 = vpop.f32.mrf.mxu3  ;;  %v3280_v44 = vrot.slane %v5682_v62, 5 }
 0x258   : > { %v4445_v27 = vadd.f32 %v4366_v20, %v3791_v49  ;;  %v5413_v49 = vrot.slane %v3148_v34, 9  ;;  %v4138_v20 = vshll.u32 %v3855_v22, 16  ;;  %v5008_v62 = vsel %vm1450_vm12, %v4976_v46, 0.0 }
 0x259   : > { %v3282_v28 = vrot.slane %v3280_v44, 4 }
 0x25a   : > { %v6941_v8 = vpop.f32.mrf.mxu2  ;;  %v3281_v56 = vsel %vm6216_vm2, %v5413_v49, %v3280_v44  ;;  %v3506_v44 = vadd.f32 %v6893_v38, %v7342_v26  ;;  %v4123_v49 = vsel %vm5889_vm13, %v4118_v55, %v6920_v16  ;;  %v4615_v16 = vrot.slane %v6927_v21, 5  ;;  %v6974_v55 = vld [vmem:[#allocation2 + $0xa4] sm:$0x1] }
 0x25b   : > { %v4764_v59 = vpop.f32.mrf.mxu0  ;;  %v3284_v10 = vsel %vm6216_vm2, %v3282_v28, %v3283_v57  ;;  %v3337_v34 = vunpack.c.l.b16 %v3281_v56  ;;  %v4133_v57 = vsel %vm5889_vm13, %v4128_v45, %v4132_v24  ;;  %v4137_v56 = vrot.slane %v4135_v43, 4 }
 0x25c   : > { %v4843_v18 = vadd.f32 %v4764_v59, %v4445_v27  ;;  %v6946_v1 = vpop.f32.mrf.mxu1  ;;  %5526 = vmatmul.msk.bf16.gmra.mxu3 %vm1450_vm12, %v4297_v47  ;;  %v4148_v59 = vshrl.u32 %v6943_v50, 16  ;;  %v3338_v47 = vunpack.c.l.b16 %v3284_v10  ;;  %v4140_v10 = vrot.slane %v4138_v20, 5 }
 0x25d   : > { %v4276_v38 = vunpack.c.l.b16 %v4123_v49  ;;  %v4277_v43 = vunpack.c.l.b16 %v4133_v57  ;;  %v7343_v49 = vld [vmem:[#allocation6_spill] sm:$0xff] }
 0x25e   : > { %4875 = vst.msk [vmem:[%s6916_s9 + $0x8] sm:$0xff] %vm1450_vm12, %v4843_v18  ;;  %v4907_v40 = vsel %vm1450_vm12, %v4843_v18, 0.0  ;;  %v4977_v48 = vmul.f32 %v4843_v18, %v4843_v18  ;;  %v4150_v26 = vrot.slane %v4148_v59, 4 }
 0x25f   : > { %v4908_v27 = vadd.f32 %v4907_v40, %v4906_v60  ;;  %5510 = vmatmul.msk.bf16.gmra.mxu2 %vm1450_vm12, %v5612_v15  ;;  %v4369_v29 = vpop.f32.mrf.mxu3  ;;  %v4612_v60 = vrot.slane %v6895_v4, 5  ;;  %v4695_v15 = vpack.c.b16 %v4673_v58, %v4672_v63  ;;  %v5543_v4 = vrot.slane %v4486_v9, 9 }
 0x260   : > { %v5009_v18 = vsel %vm1450_vm12, %v4977_v48, 0.0  ;;  %v4446_v40 = vadd.f32 %v4369_v29, %v3792_v35  ;;  %v3358_v48 = vpack.c.b16 %v3338_v47, %v3337_v34  ;;  %v6971_v58 = vrot.slane %v4144_v14, 5 }
 0x261   : > { %v5010_v22 = vadd.f32 %v5009_v18, %v5008_v62  ;;  %v4614_v35 = vrot.slane %v4612_v60, 4  ;;  %v3793_v9 = vadd.f32 %v6941_v8, %v3506_v44  ;;  %v4141_v14 = vor.u32 %v4140_v10, %v4137_v56  ;;  %v5684_v56 = vld [vmem:[#allocation2 + $0xa0] sm:$0xf] }
 0x262   : > { %v3720_v28 = vpop.f32.mrf.mxu2  ;;  %v4613_v21 = vsel %vm6216_vm2, %v5543_v4, %v4612_v60  ;;  %v4151_v18 = vor.u32 %v4150_v26, %v6971_v58  ;;  %v4154_v34 = vshll.u32 %v6974_v55, 16  ;;  %v3287_v10 = vrot.slane %v5684_v56, 5 }
 0x263   : > { %v4767_v46 = vpop.f32.mrf.mxu0  ;;  %v4674_v57 = vunpack.c.l.b16 %v4613_v21  ;;  %v4142_v60 = vrot.slane %v4141_v14, 4 }
 0x264   : > { %v4844_v62 = vadd.f32 %v4767_v46, %v4446_v40  ;;  %v6969_v63 = vpop.f32.mrf.mxu1  ;;  %v4298_v40 = vpack.c.b16 %v4277_v43, %v4276_v38  ;;  %v3507_v46 = vadd.f32 %v6925_v52, %v7343_v49  ;;  %v4152_v26 = vrot.slane %v4151_v18, 4  ;;  %v3149_v38 = vld [vmem:[#allocation2 + $0x9c] sm:$0xe]  ;;  %v5685_v52 = vld [vmem:[#allocation2 + $0xa4] sm:$0x1] }
 0x265   : > { %v3289_v43 = vrot.slane %v3287_v10, 4 }
 0x266   : > { %5559 = vmatmul.msk.bf16.gmra.mxu0 %vm1450_vm12, %v4695_v15  ;;  %4876 = vst.msk [vmem:[%s6916_s9 + $0x10] sm:$0xff] %vm1450_vm12, %v4844_v62  ;;  %v4909_v45 = vsel %vm1450_vm12, %v4844_v62, 0.0  ;;  %v4978_v24 = vmul.f32 %v4844_v62, %v4844_v62  ;;  %v4616_v15 = vsel %vm6216_vm2, %v4614_v35, %v4615_v16  ;;  %v3858_v62 = vld [vmem:[#allocation2 + $0xa8] sm:$0xf]  ;;  %v6995_v16 = vld [vmem:[#allocation2 + $0xac] sm:$0xf] }
 0x267   : > { %v4910_v20 = vadd.f32 %v4909_v45, %v4908_v27  ;;  %5430 = vmatmul.msk.bf16.gmra.mxu1 %vm1450_vm12, %v3358_v48  ;;  %v4371_v29 = vpop.f32.mrf.mxu3  ;;  %v5613_v48 = vld [vmem:[#allocation2 + $0x9c] sm:$0xff]  ;;  %v4675_v4 = vunpack.c.l.b16 %v4616_v15  ;;  %v4156_v45 = vrot.slane %v4154_v34, 5  ;;  %v4162_v18 = vshll.u32 %v3858_v62, 16 }
 0x268   : > { %v5011_v59 = vsel %vm1450_vm12, %v4978_v24, 0.0  ;;  %v4447_v8 = vadd.f32 %v4371_v29, %v3793_v9  ;;  %v3794_v24 = vadd.f32 %v3720_v28, %v3507_v46  ;;  %v5414_v9 = vrot.slane %v3149_v38, 9 }
 0x269   : > { %v5012_v47 = vadd.f32 %v5011_v59, %v5010_v22  ;;  %v3290_v59 = vrot.slane %v5685_v52, 5  ;;  %v4159_v29 = vshrl.u32 %v3858_v62, 16  ;;  %v4172_v56 = vshrl.u32 %v6995_v16, 16  ;;  %v4487_v62 = vld [vmem:[#allocation2 + $0x9c] sm:$0xe] }
 0x26a   : > { %v6989_v27 = vpop.f32.mrf.mxu2  ;;  %v3288_v15 = vsel %vm6216_vm2, %v5414_v9, %v3287_v10  ;;  %v7344_v52 = vld [vmem:[#allocation7_spill] sm:$0xff]  ;;  %v4147_v9 = vsel %vm5889_vm13, %v4142_v60, %v6971_v58  ;;  %v4622_v58 = vrot.slane %v6974_v55, 5  ;;  %v7022_v60 = vld [vmem:[#allocation2 + $0xb0] sm:$0x1] }
 0x26b   : > { %v4769_v44 = vpop.f32.mrf.mxu0  ;;  %v3291_v28 = vsel %vm6216_vm2, %v3289_v43, %v3290_v59  ;;  %v3339_v49 = vunpack.c.l.b16 %v3288_v15  ;;  %v3508_v10 = vadd.f32 %v6946_v1, %v7344_v52  ;;  %v4164_v15 = vrot.slane %v4162_v18, 5 }
 0x26c   : > { %v4845_v22 = vadd.f32 %v4769_v44, %v4447_v8  ;;  %v6993_v35 = vpop.f32.mrf.mxu1  ;;  %5527 = vmatmul.msk.bf16.gmra.mxu3 %vm1450_vm12, %v4298_v40  ;;  %v4168_v8 = vshll.u32 %v6995_v16, 16  ;;  %v3340_v46 = vunpack.c.l.b16 %v3291_v28  ;;  %v4174_v1 = vrot.slane %v4172_v56, 4 }
 0x26e   : > { %4877 = vst.msk [vmem:[%s6916_s9 + $0x18] sm:$0xff] %vm1450_vm12, %v4845_v22  ;;  %v4911_v14 = vsel %vm1450_vm12, %v4845_v22, 0.0  ;;  %v4979_v21 = vmul.f32 %v4845_v22, %v4845_v22 }
 0x26f   : > { %v4912_v34 = vadd.f32 %v4911_v14, %v4910_v20  ;;  %5511 = vmatmul.msk.bf16.gmra.mxu2 %vm1450_vm12, %v5613_v48  ;;  %v4374_v22 = vpop.f32.mrf.mxu3  ;;  %v4619_v20 = vrot.slane %v6943_v50, 5  ;;  %v4696_v48 = vpack.c.b16 %v4675_v4, %v4674_v57  ;;  %v4157_v14 = vsel %vm5889_vm13, %v4152_v26, %v4156_v45 }
 0x270   : > { %v5013_v44 = vsel %vm1450_vm12, %v4979_v21, 0.0  ;;  %v4448_v38 = vadd.f32 %v4374_v22, %v3794_v24  ;;  %v4161_v21 = vrot.slane %v4159_v29, 4  ;;  %v5544_v50 = vrot.slane %v4487_v62, 9 }
 0x271   : > { %v5014_v40 = vadd.f32 %v5013_v44, %v5012_v47  ;;  %v3359_v47 = vpack.c.b16 %v3340_v46, %v3339_v49  ;;  %v7019_v4 = vrot.slane %v4168_v8, 5  ;;  %v4278_v24 = vunpack.c.l.b16 %v4147_v9  ;;  %v7345_v9 = vld [vmem:[#allocation8_spill] sm:$0xff] }
 0x272   : > { %v3725_v43 = vpop.f32.mrf.mxu2  ;;  %v4621_v44 = vrot.slane %v4619_v20, 4  ;;  %v3795_v29 = vadd.f32 %v6989_v27, %v3508_v10  ;;  %v4279_v18 = vunpack.c.l.b16 %v4157_v14  ;;  %v4165_v8 = vor.u32 %v4164_v15, %v4161_v21  ;;  %v5686_v21 = vld [vmem:[#allocation2 + $0xac] sm:$0xf] }
 0x273   : > { %v4772_v59 = vpop.f32.mrf.mxu0  ;;  %v4620_v55 = vsel %vm6216_vm2, %v5544_v50, %v4619_v20  ;;  %v4175_v56 = vor.u32 %v4174_v1, %v7019_v4  ;;  %v4178_v22 = vshll.u32 %v7022_v60, 16  ;;  %v3294_v15 = vrot.slane %v5686_v21, 5 }
 0x274   : > { %v4846_v28 = vadd.f32 %v4772_v59, %v4448_v38  ;;  %v7017_v57 = vpop.f32.mrf.mxu1  ;;  %v4623_v38 = vsel %vm6216_vm2, %v4621_v44, %v4622_v58  ;;  %v4299_v52 = vpack.c.b16 %v4279_v18, %v4278_v24  ;;  %v3509_v59 = vadd.f32 %v6969_v63, %v7345_v9  ;;  %v3150_v24 = vld [vmem:[#allocation2 + $0xa8] sm:$0xe]  ;;  %v7043_v58 = vld [vmem:[#allocation2 + $0xb8] sm:$0xf]  ;;  %v5687_v63 = vld [vmem:[#allocation2 + $0xb0] sm:$0x1] }
 0x275   : > { %v4676_v14 = vunpack.c.l.b16 %v4620_v55  ;;  %v4166_v20 = vrot.slane %v4165_v8, 4  ;;  %v4677_v50 = vunpack.c.l.b16 %v4623_v38  ;;  %v4176_v1 = vrot.slane %v4175_v56, 4 }
 0x276   : > { %5560 = vmatmul.msk.bf16.gmra.mxu0 %vm1450_vm12, %v4696_v48  ;;  %4878 = vst.msk [vmem:[%s6916_s9 + $0x20] sm:$0xff] %vm1450_vm12, %v4846_v28  ;;  %v4913_v26 = vsel %vm1450_vm12, %v4846_v28, 0.0  ;;  %v4980_v45 = vmul.f32 %v4846_v28, %v4846_v28  ;;  %v3861_v28 = vld [vmem:[#allocation2 + $0xb4] sm:$0xf]  ;;  %v3296_v18 = vrot.slane %v3294_v15, 4  ;;  %v4196_v21 = vshrl.u32 %v7043_v58, 16 }
 0x277   : > { %v4914_v49 = vadd.f32 %v4913_v26, %v4912_v34  ;;  %5431 = vmatmul.msk.bf16.gmra.mxu1 %vm1450_vm12, %v3359_v47  ;;  %v4376_v48 = vpop.f32.mrf.mxu3  ;;  %v5614_v47 = vld [vmem:[#allocation2 + $0xa8] sm:$0xff]  ;;  %v4180_v26 = vrot.slane %v4178_v22, 5  ;;  %v4186_v56 = vshll.u32 %v3861_v28, 16 }
 0x278   : > { %v5015_v46 = vsel %vm1450_vm12, %v4980_v45, 0.0  ;;  %v4449_v27 = vadd.f32 %v4376_v48, %v3795_v29  ;;  %v3796_v45 = vadd.f32 %v3725_v43, %v3509_v59  ;;  %v5415_v29 = vrot.slane %v3150_v24, 9 }
 0x279   : > { %v5016_v62 = vadd.f32 %v5015_v46, %v5014_v40  ;;  %v3297_v46 = vrot.slane %v5687_v63, 5  ;;  %v4183_v48 = vshrl.u32 %v3861_v28, 16  ;;  %v4181_v24 = vsel %vm5889_vm13, %v4176_v1, %v4180_v26 }
 0x27a   : > { %v7037_v34 = vpop.f32.mrf.mxu2  ;;  %v3295_v38 = vsel %vm6216_vm2, %v5415_v29, %v3294_v15  ;;  %v4488_v29 = vld [vmem:[#allocation2 + $0xa8] sm:$0xe]  ;;  %v4629_v26 = vrot.slane %v7022_v60, 5 }
 0x27b   : > { %v4774_v10 = vpop.f32.mrf.mxu0  ;;  %v3298_v43 = vsel %vm6216_vm2, %v3296_v18, %v3297_v46  ;;  %v3341_v9 = vunpack.c.l.b16 %v3295_v38  ;;  %v4185_v63 = vrot.slane %v4183_v48, 4  ;;  %v4188_v46 = vrot.slane %v4186_v56, 5 }
 0x27c   : > { %v4847_v40 = vadd.f32 %v4774_v10, %v4449_v27  ;;  %v7041_v44 = vpop.f32.mrf.mxu1  ;;  %5528 = vmatmul.msk.bf16.gmra.mxu3 %vm1450_vm12, %v4299_v52  ;;  %v4192_v27 = vshll.u32 %v7043_v58, 16  ;;  %v3342_v59 = vunpack.c.l.b16 %v3298_v43 }
 0x27e   : > { %4879 = vst.msk [vmem:[%s6916_s9 + $0x28] sm:$0xff] %vm1450_vm12, %v4847_v40  ;;  %v4915_v8 = vsel %vm1450_vm12, %v4847_v40, 0.0  ;;  %v4981_v55 = vmul.f32 %v4847_v40, %v4847_v40  ;;  %v4697_v40 = vpack.c.b16 %v4677_v50, %v4676_v14  ;;  %v3360_v14 = vpack.c.b16 %v3342_v59, %v3341_v9 }
 0x27f   : > { %v4916_v22 = vadd.f32 %v4915_v8, %v4914_v49  ;;  %5512 = vmatmul.msk.bf16.gmra.mxu2 %vm1450_vm12, %v5614_v47  ;;  %v4379_v28 = vpop.f32.mrf.mxu3  ;;  %v4171_v49 = vsel %vm5889_vm13, %v4166_v20, %v7019_v4  ;;  %v4626_v47 = vrot.slane %v6995_v16, 5  ;;  %v7067_v4 = vrot.slane %v4192_v27, 5 }
 0x280   : > { %v5017_v10 = vsel %vm1450_vm12, %v4981_v55, 0.0  ;;  %v4450_v15 = vadd.f32 %v4379_v28, %v3796_v45  ;;  %v7346_v55 = vld [vmem:[#allocation9_spill] sm:$0xff]  ;;  %v4280_v38 = vunpack.c.l.b16 %v4171_v49  ;;  %v4198_v16 = vrot.slane %v4196_v21, 4 }
 0x281   : > { %v5018_v52 = vadd.f32 %v5017_v10, %v5016_v62  ;;  %v3510_v62 = vadd.f32 %v6993_v35, %v7346_v55  ;;  %v4281_v20 = vunpack.c.l.b16 %v4181_v24  ;;  %v5545_v45 = vrot.slane %v4488_v29, 9  ;;  %v7075_v10 = vld [vmem:[#allocation2 + $0xbc] sm:$0x1] }
 0x282   : > { %v3730_v18 = vpop.f32.mrf.mxu2  ;;  %v4628_v1 = vrot.slane %v4626_v47, 4  ;;  %v4189_v9 = vor.u32 %v4188_v46, %v4185_v63  ;;  %v4199_v21 = vor.u32 %v4198_v16, %v7067_v4  ;;  %v3511_v46 = vadd.f32 %v7017_v57, %v6543_v17 }
 0x283   : > { %v4777_v8 = vpop.f32.mrf.mxu0  ;;  %v3797_v56 = vadd.f32 %v7037_v34, %v3510_v62  ;;  %v4202_v34 = vshll.u32 %v7075_v10, 16  ;;  %v4300_v24 = vpack.c.b16 %v4281_v20, %v4280_v38 }
 0x284   : > { %v4848_v50 = vadd.f32 %v4777_v8, %v4450_v15  ;;  %v7065_v43 = vpop.f32.mrf.mxu1  ;;  %v4630_v49 = vsel %vm6216_vm2, %v4628_v1, %v4629_v26  ;;  %v5688_v8 = vld [vmem:[#allocation2 + $0xb8] sm:$0xf]  ;;  %v3864_v1 = vld [vmem:[#allocation2 + $0xc0] sm:$0xf] }
 0x285   : > { %v3301_v55 = vrot.slane %v5688_v8, 5  ;;  %v4204_v38 = vrot.slane %v4202_v34, 5 }
 0x286   : > { %5561 = vmatmul.msk.bf16.gmra.mxu0 %vm1450_vm12, %v4697_v40  ;;  %4880 = vst.msk [vmem:[%s6916_s9 + $0x30] sm:$0xff] %vm1450_vm12, %v4848_v50  ;;  %v4917_v48 = vsel %vm1450_vm12, %v4848_v50, 0.0  ;;  %v4982_v35 = vmul.f32 %v4848_v50, %v4848_v50  ;;  %v4627_v40 = vsel %vm6216_vm2, %v5545_v45, %v4626_v47  ;;  %v4200_v50 = vrot.slane %v4199_v21, 4  ;;  %v3151_v45 = vld [vmem:[#allocation2 + $0xb4] sm:$0xe] }
 0x287   : > { %v4918_v27 = vadd.f32 %v4917_v48, %v4916_v22  ;;  %5432 = vmatmul.msk.bf16.gmra.mxu1 %vm1450_vm12, %v3360_v14  ;;  %v4381_v28 = vpop.f32.mrf.mxu3  ;;  %v4190_v22 = vrot.slane %v4189_v9, 4  ;;  %v4678_v47 = vunpack.c.l.b16 %v4627_v40  ;;  %v4679_v14 = vunpack.c.l.b16 %v4630_v49  ;;  %v5689_v48 = vld [vmem:[#allocation2 + $0xbc] sm:$0x1] }
 0x288   : > { %v5019_v59 = vsel %vm1450_vm12, %v4982_v35, 0.0  ;;  %v4451_v15 = vadd.f32 %v4381_v28, %v3797_v56  ;;  %v5416_v20 = vrot.slane %v3151_v45, 9  ;;  %v3303_v26 = vrot.slane %v3301_v55, 4 }
 0x289   : > { %v5020_v60 = vadd.f32 %v5019_v59, %v5018_v52  ;;  %v5615_v52 = vld [vmem:[#allocation2 + $0xb4] sm:$0xff]  ;;  %v3304_v35 = vrot.slane %v5689_v48, 5  ;;  %v3798_v56 = vadd.f32 %v3730_v18, %v3511_v46  ;;  %v4195_v9 = vsel %vm5889_vm13, %v4190_v22, %v7067_v4  ;;  %v7098_v59 = vld [vmem:[#allocation2 + $0xc4] sm:$0xf]  ;;  %v436_v46 = vld [vmem:[#allocation2 + $0xcc] sm:$0x1] }
 0x28a   : > { %v7085_v29 = vpop.f32.mrf.mxu2  ;;  %v3302_v28 = vsel %vm6216_vm2, %v5416_v20, %v3301_v55  ;;  %v4207_v49 = vshrl.u32 %v3864_v1, 16  ;;  %v4220_v8 = vshrl.u32 %v7098_v59, 16  ;;  %v492_v55 = vld [vmem:[#allocation2 + $0xd4] sm:$0x1]  ;;  %v3512_v20 = vadd.f32 %v7041_v44, %v6559_v2 }
 0x28b   : > { %v4779_v63 = vpop.f32.mrf.mxu0  ;;  %v3305_v40 = vsel %vm6216_vm2, %v3303_v26, %v3304_v35  ;;  %v3343_v18 = vunpack.c.l.b16 %v3302_v28  ;;  %v4205_v26 = vsel %vm5889_vm13, %v4200_v50, %v4204_v38  ;;  %v4282_v35 = vunpack.c.l.b16 %v4195_v9 }
 0x28c   : > { %v4849_v62 = vadd.f32 %v4779_v63, %v4451_v15  ;;  %v7089_v16 = vpop.f32.mrf.mxu1  ;;  %5529 = vmatmul.msk.bf16.gmra.mxu3 %vm1450_vm12, %v4300_v24  ;;  %v4489_v15 = vld [vmem:[#allocation2 + $0xb4] sm:$0xe]  ;;  %v3344_v24 = vunpack.c.l.b16 %v3305_v40  ;;  %v4210_v63 = vshll.u32 %v3864_v1, 16  ;;  %v4636_v50 = vrot.slane %v7075_v10, 5 }
 0x28d   : > { %v4222_v9 = vrot.slane %v4220_v8, 4  ;;  %v3799_v28 = vadd.f32 %v7085_v29, %v3512_v20  ;;  %v4283_v40 = vunpack.c.l.b16 %v4205_v26 }
 0x28e   : > { %4881 = vst.msk [vmem:[%s6916_s9 + $0x38] sm:$0xff] %vm1450_vm12, %v4849_v62  ;;  %v4919_v17 = vsel %vm1450_vm12, %v4849_v62, 0.0  ;;  %v4983_v57 = vmul.f32 %v4849_v62, %v4849_v62  ;;  %v4698_v62 = vpack.c.b16 %v4679_v14, %v4678_v47  ;;  %v5546_v47 = vrot.slane %v4489_v15, 9 }
 0x28f   : > { %v4920_v21 = vadd.f32 %v4919_v17, %v4918_v27  ;;  %5513 = vmatmul.msk.bf16.gmra.mxu2 %vm1450_vm12, %v5615_v52  ;;  %v4384_v22 = vpop.f32.mrf.mxu3  ;;  %v4633_v27 = vrot.slane %v7043_v58, 5  ;;  %v4216_v52 = vshll.u32 %v7098_v59, 16  ;;  %v437_v58 = vsel %vm5752_vm3, 0, %v436_v46 }
 0x290   : > { %v5021_v34 = vsel %vm1450_vm12, %v4983_v57, 0.0  ;;  %v4452_v45 = vadd.f32 %v4384_v22, %v3798_v56  ;;  %v493_v17 = vsel %vm5761_vm6, 0, %v492_v55  ;;  %v4209_v56 = vrot.slane %v4207_v49, 4  ;;  %438 = vst [vmem:[#allocation2 + $0xcc] sm:$0x1] %v437_v58 }
 0x291   : > { %v5022_v4 = vadd.f32 %v5021_v34, %v5020_v60  ;;  %v3361_v60 = vpack.c.b16 %v3344_v24, %v3343_v18  ;;  %v4212_v2 = vrot.slane %v4210_v63, 5  ;;  %v4635_v44 = vrot.slane %v4633_v27, 4  ;;  %494 = vst [vmem:[#allocation2 + $0xd4] sm:$0x1] %v493_v17  ;;  %v7128_v34 = vld [vmem:[#allocation2 + $0xc8] sm:$0x1] }
 0x292   : > { %v3735_v48 = vpop.f32.mrf.mxu2  ;;  %v7120_v38 = vrot.slane %v4216_v52, 5  ;;  %v4634_v63 = vsel %vm6216_vm2, %v5546_v47, %v4633_v27  ;;  %v4301_v52 = vpack.c.b16 %v4283_v40, %v4282_v35  ;;  %v4226_v8 = vshll.u32 %v7128_v34, 16  ;;  %v3152_v17 = vld [vmem:[#allocation2 + $0xc0] sm:$0xe] }
 0x293   : > { %v4782_v1 = vpop.f32.mrf.mxu0  ;;  %v4213_v15 = vor.u32 %v4212_v2, %v4209_v56  ;;  %v4637_v46 = vsel %vm6216_vm2, %v4635_v44, %v4636_v50  ;;  %v4680_v27 = vunpack.c.l.b16 %v4634_v63  ;;  %v5417_v35 = vrot.slane %v3152_v17, 9  ;;  %v5691_v56 = vld [vmem:[#allocation2 + $0xc8] sm:$0x1] }
 0x294   : > { %v4850_v57 = vadd.f32 %v4782_v1, %v4452_v45  ;;  %v7117_v14 = vpop.f32.mrf.mxu1  ;;  %v4223_v22 = vor.u32 %v4222_v9, %v7120_v38  ;;  %v5690_v45 = vld [vmem:[#allocation2 + $0xc4] sm:$0xf]  ;;  %v4681_v1 = vunpack.c.l.b16 %v4637_v46  ;;  %v3311_v2 = vrot.slane %v5691_v56, 5 }
 0x295   : > { %v3308_v20 = vrot.slane %v5690_v45, 5  ;;  %v4228_v50 = vrot.slane %v4226_v8, 5 }
 0x296   : > { %5562 = vmatmul.msk.bf16.gmra.mxu0 %vm1450_vm12, %v4698_v62  ;;  %4882 = vst.msk [vmem:[%s6916_s9 + $0x40] sm:$0xff] %vm1450_vm12, %v4850_v57  ;;  %v4921_v3 = vsel %vm1450_vm12, %v4850_v57, 0.0  ;;  %v4984_v7 = vmul.f32 %v4850_v57, %v4850_v57  ;;  %v3513_v62 = vadd.f32 %v7065_v43, %v6571_v19  ;;  %v4224_v57 = vrot.slane %v4223_v22, 4  ;;  %v4490_v22 = vld [vmem:[#allocation2 + $0xc0] sm:$0xe] }
 0x297   : > { %v4922_v49 = vadd.f32 %v4921_v3, %v4920_v21  ;;  %5433 = vmatmul.msk.bf16.gmra.mxu1 %vm1450_vm12, %v3361_v60  ;;  %v4386_v24 = vpop.f32.mrf.mxu3  ;;  %v4214_v60 = vrot.slane %v4213_v15, 4  ;;  %v3310_v47 = vrot.slane %v3308_v20, 4  ;;  %v3309_v3 = vsel %vm6216_vm2, %v5417_v35, %v3308_v20 }
 0x298   : > { %v5023_v10 = vsel %vm1450_vm12, %v4984_v7, 0.0  ;;  %v4453_v29 = vadd.f32 %v4386_v24, %v3799_v28  ;;  %v3800_v43 = vadd.f32 %v3735_v48, %v3513_v62  ;;  %v3867_v28 = vld [vmem:[#allocation2 + $0xcc] sm:$0xf]  ;;  %v7151_v24 = vld [vmem:[#allocation2 + $0xd0] sm:$0xf]  ;;  %v4699_v46 = vpack.c.b16 %v4681_v1, %v4680_v27 }
 0x299   : > { %v5024_v18 = vadd.f32 %v5023_v10, %v5022_v4  ;;  %v5616_v4 = vld [vmem:[#allocation2 + $0xc0] sm:$0xff]  ;;  %v3312_v7 = vsel %vm6216_vm2, %v3310_v47, %v3311_v2  ;;  %v3345_v10 = vunpack.c.l.b16 %v3309_v3  ;;  %v4229_v8 = vsel %vm5889_vm13, %v4224_v57, %v4228_v50  ;;  %v7172_v50 = vld [vmem:[#allocation2 + $0xd4] sm:$0x1] }
 0x29a   : > { %v3737_v21 = vpop.f32.mrf.mxu2  ;;  %v3346_v15 = vunpack.c.l.b16 %v3312_v7  ;;  %v4231_v62 = vshrl.u32 %v3867_v28, 16  ;;  %v4285_v57 = vunpack.c.l.b16 %v4229_v8  ;;  %v4643_v47 = vrot.slane %v7128_v34, 5 }
 0x29b   : > { %v4784_v55 = vpop.f32.mrf.mxu0 }
 0x29c   : > { %v4851_v26 = vadd.f32 %v4784_v55, %v4453_v29  ;;  %v7139_v58 = vpop.f32.mrf.mxu1  ;;  %5530 = vmatmul.msk.bf16.gmra.mxu3 %vm1450_vm12, %v4301_v52  ;;  %v4640_v29 = vrot.slane %v7098_v59, 5  ;;  %v3362_v20 = vpack.c.b16 %v3346_v15, %v3345_v10  ;;  %v5547_v59 = vrot.slane %v4490_v22, 9 }
 0x29d   : > { %v4233_v56 = vrot.slane %v4231_v62, 4  ;;  %v4250_v22 = vshll.u32 %v7172_v50, 16 }
 0x29e   : > { %4883 = vst.msk [vmem:[%s6916_s9 + $0x48] sm:$0xff] %vm1450_vm12, %v4851_v26  ;;  %v4923_v44 = vsel %vm1450_vm12, %v4851_v26, 0.0  ;;  %v4985_v19 = vmul.f32 %v4851_v26, %v4851_v26  ;;  %v4240_v26 = vshll.u32 %v7151_v24, 16  ;;  %v4642_v35 = vrot.slane %v4640_v29, 4 }
 0x29f   : > { %v4924_v9 = vadd.f32 %v4923_v44, %v4922_v49  ;;  %5514 = vmatmul.msk.bf16.gmra.mxu2 %vm1450_vm12, %v5616_v4  ;;  %v4389_v48 = vpop.f32.mrf.mxu3  ;;  %v4219_v49 = vsel %vm5889_vm13, %v4214_v60, %v7120_v38  ;;  %v4234_v4 = vshll.u32 %v3867_v28, 16  ;;  %v4244_v38 = vshrl.u32 %v7151_v24, 16 }
 0x2a0   : > { %v5025_v40 = vsel %vm1450_vm12, %v4985_v19, 0.0  ;;  %v4454_v52 = vadd.f32 %v4389_v48, %v3800_v43  ;;  %v4284_v1 = vunpack.c.l.b16 %v4219_v49  ;;  %v4242_v19 = vrot.slane %v4240_v26, 5  ;;  %v5617_v48 = vld [vmem:[#allocation2 + $0xcc] sm:$0xff] }
 0x2a1   : > { %v5026_v63 = vadd.f32 %v5025_v40, %v5024_v18  ;;  %v3514_v18 = vadd.f32 %v7089_v16, %v6580_v37  ;;  %v4236_v2 = vrot.slane %v4234_v4, 5  ;;  %v4246_v43 = vrot.slane %v4244_v38, 4 }
 0x2a2   : > { %v3740_v55 = vpop.f32.mrf.mxu2  ;;  %v4302_v7 = vpack.c.b16 %v4285_v57, %v4284_v1  ;;  %v4641_v40 = vsel %vm6216_vm2, %v5547_v59, %v4640_v29  ;;  %v4644_v10 = vsel %vm6216_vm2, %v4642_v35, %v4643_v47  ;;  %v4491_v35 = vld [vmem:[#allocation2 + $0xcc] sm:$0xe] }
 0x2a3   : > { %v4787_v45 = vpop.f32.mrf.mxu0  ;;  %v3801_v17 = vadd.f32 %v3737_v21, %v3514_v18  ;;  %v4237_v15 = vor.u32 %v4236_v2, %v4233_v56  ;;  %v4247_v49 = vor.u32 %v4246_v43, %v4242_v19  ;;  %v4682_v62 = vunpack.c.l.b16 %v4641_v40 }
 0x2a4   : > { %v4852_v27 = vadd.f32 %v4787_v45, %v4454_v52  ;;  %v7163_v60 = vpop.f32.mrf.mxu1  ;;  %v4683_v4 = vunpack.c.l.b16 %v4644_v10  ;;  %v3516_v2 = vadd.f32 %v7139_v58, %v6605_v13 }
 0x2a5   : > { %v4248_v38 = vrot.slane %v4247_v49, 4 }
 0x2a6   : > { %5563 = vmatmul.msk.bf16.gmra.mxu0 %vm1450_vm12, %v4699_v46  ;;  %4884 = vst.msk [vmem:[%s6916_s9 + $0x50] sm:$0xff] %vm1450_vm12, %v4852_v27  ;;  %v4925_v37 = vsel %vm1450_vm12, %v4852_v27, 0.0  ;;  %v4986_v16 = vmul.f32 %v4852_v27, %v4852_v27  ;;  %v4252_v27 = vrot.slane %v4250_v22, 5  ;;  %v4700_v59 = vpack.c.b16 %v4683_v4, %v4682_v62 }
 0x2a7   : > { %v4926_v44 = vadd.f32 %v4925_v37, %v4924_v9  ;;  %5434 = vmatmul.msk.bf16.gmra.mxu1 %vm1450_vm12, %v3362_v20  ;;  %v4391_v34 = vpop.f32.mrf.mxu3  ;;  %v4238_v20 = vrot.slane %v4237_v15, 4 }
 0x2a8   : > { %v5027_v21 = vsel %vm1450_vm12, %v4986_v16, 0.0  ;;  %v4455_v28 = vadd.f32 %v4391_v34, %v3801_v17  ;;  %v4647_v16 = vrot.slane %v7151_v24, 5  ;;  %v4650_v24 = vrot.slane %v7172_v50, 5 }
 0x2a9   : > { %v5028_v3 = vadd.f32 %v5027_v21, %v5026_v63  ;;  %v3515_v63 = vadd.f32 %v7117_v14, %v6593_v25  ;;  %v4243_v57 = vsel %vm5889_vm13, %v4238_v20, %v4242_v19  ;;  %v5548_v21 = vrot.slane %v4491_v35, 9 }
 0x2aa   : > { %v3742_v9 = vpop.f32.mrf.mxu2  ;;  %v4286_v43 = vunpack.c.l.b16 %v4243_v57 }
 0x2ab   : > { %v4789_v46 = vpop.f32.mrf.mxu0  ;;  %v3802_v18 = vadd.f32 %v3740_v55, %v3515_v63  ;;  %v4253_v55 = vsel %vm5889_vm13, %v4248_v38, %v4252_v27  ;;  %v3803_v34 = vadd.f32 %v3742_v9, %v3516_v2 }
 0x2ac   : > { %v4853_v52 = vadd.f32 %v4789_v46, %v4455_v28  ;;  %v7181_v8 = vpop.f32.mrf.mxu1  ;;  %5531 = vmatmul.msk.bf16.gmra.mxu3 %vm1450_vm12, %v4302_v7  ;;  %v4287_v7 = vunpack.c.l.b16 %v4253_v55  ;;  %v4649_v28 = vrot.slane %v4647_v16, 4  ;;  %v4648_v46 = vsel %vm6216_vm2, %v5548_v21, %v4647_v16 }
 0x2ad   : > { %v4684_v50 = vunpack.c.l.b16 %v4648_v46 }
 0x2ae   : > { %4885 = vst.msk [vmem:[%s6916_s9 + $0x58] sm:$0xff] %vm1450_vm12, %v4853_v52  ;;  %v4927_v29 = vsel %vm1450_vm12, %v4853_v52, 0.0  ;;  %v4987_v45 = vmul.f32 %v4853_v52, %v4853_v52  ;;  %v4303_v15 = vpack.c.b16 %v4287_v7, %v4286_v43  ;;  %v4651_v9 = vsel %vm6216_vm2, %v4649_v28, %v4650_v24 }
 0x2af   : > { %v4928_v26 = vadd.f32 %v4927_v29, %v4926_v44  ;;  %5515 = vmatmul.msk.bf16.gmra.mxu2 %vm1450_vm12, %v5617_v48  ;;  %v4394_v1 = vpop.f32.mrf.mxu3  ;;  %v3517_v52 = vadd.f32 %v7163_v60, %v6623_v41  ;;  %v4685_v29 = vunpack.c.l.b16 %v4651_v9 }
 0x2b0   : > { %v5029_v25 = vsel %vm1450_vm12, %v4987_v45, 0.0  ;;  %v4456_v17 = vadd.f32 %v4394_v1, %v3802_v18 }
 0x2b1   : > { %v5030_v14 = vadd.f32 %v5029_v25, %v5028_v3  ;;  %v4701_v38 = vpack.c.b16 %v4685_v29, %v4684_v50 }
 0x2b2   : > { %v3745_v47 = vpop.f32.mrf.mxu2 }
 0x2b3   : > { %v4792_v37 = vpop.f32.mrf.mxu0  ;;  %v3804_v45 = vadd.f32 %v3745_v47, %v3517_v52 }
 0x2b4   : > { %v4854_v56 = vadd.f32 %v4792_v37, %v4456_v17  ;;  %v3463_v44 = vpop.f32.mrf.mxu1 }
 0x2b6   : > { %5564 = vmatmul.msk.bf16.gmra.mxu0 %vm1450_vm12, %v4700_v59  ;;  %4886 = vst.msk [vmem:[%s6916_s9 + $0x60] sm:$0xff] %vm1450_vm12, %v4854_v56  ;;  %v4929_v19 = vsel %vm1450_vm12, %v4854_v56, 0.0  ;;  %v4988_v3 = vmul.f32 %v4854_v56, %v4854_v56 }
 0x2b7   : > { %v4930_v31 = vadd.f32 %v4929_v19, %v4928_v26  ;;  %v4396_v58 = vpop.f32.mrf.mxu3 }
 0x2b8   : > { %v5031_v40 = vsel %vm1450_vm12, %v4988_v3, 0.0  ;;  %v4457_v10 = vadd.f32 %v4396_v58, %v3803_v34 }
 0x2b9   : > { %v5032_v13 = vadd.f32 %v5031_v40, %v5030_v14  ;;  %v3518_v14 = vadd.f32 %v7181_v8, %v6636_v5  ;;  %v3519_v5 = vadd.f32 %v3463_v44, %v6654_v54 }
 0x2ba   : > { %v3747_v48 = vpop.f32.mrf.mxu2 }
 0x2bb   : > { %v4794_v49 = vpop.f32.mrf.mxu0  ;;  %v3805_v57 = vadd.f32 %v3747_v48, %v3518_v14 }
 0x2bc   : > { %v4855_v22 = vadd.f32 %v4794_v49, %v4457_v10  ;;  %v3465_v63 = vpop.f32.mrf.mxu1  ;;  %5532 = vmatmul.msk.bf16.gmra.mxu3 %vm1450_vm12, %v4303_v15 }
 0x2bd   : > { %v3520_v10 = vadd.f32 %v3465_v63, %v6667_v42 }
 0x2be   : > { %4887 = vst.msk [vmem:[%s6916_s9 + $0x68] sm:$0xff] %vm1450_vm12, %v4855_v22  ;;  %v4931_v62 = vsel %vm1450_vm12, %v4855_v22, 0.0  ;;  %v4989_v4 = vmul.f32 %v4855_v22, %v4855_v22 }
 0x2bf   : > { %v4932_v18 = vadd.f32 %v4931_v62, %v4930_v31  ;;  %v4399_v26 = vpop.f32.mrf.mxu3 }
 0x2c0   : > { %v5033_v53 = vsel %vm1450_vm12, %v4989_v4, 0.0  ;;  %v4458_v27 = vadd.f32 %v4399_v26, %v3804_v45 }
 0x2c1   : > { %v5034_v20 = vadd.f32 %v5033_v53, %v5032_v13 }
 0x2c2   : > { %v3750_v41 = vpop.f32.mrf.mxu2 }
 0x2c3   : > { %v4797_v60 = vpop.f32.mrf.mxu0  ;;  %v3806_v3 = vadd.f32 %v3750_v41, %v3519_v5 }
 0x2c4   : > { %v4856_v25 = vadd.f32 %v4797_v60, %v4458_v27  ;;  %v3468_v1 = vpop.f32.mrf.mxu1 }
 0x2c5   : > { %v3521_v42 = vadd.f32 %v3468_v1, %v6685_v23 }
 0x2c6   : > { %5565 = vmatmul.msk.bf16.gmra.mxu0 %vm1450_vm12, %v4701_v38  ;;  %4888 = vst.msk [vmem:[%s6916_s9 + $0x70] sm:$0xff] %vm1450_vm12, %v4856_v25  ;;  %v4933_v59 = vsel %vm1450_vm12, %v4856_v25, 0.0  ;;  %v4990_v17 = vmul.f32 %v4856_v25, %v4856_v25 }
 0x2c7   : > { %v4934_v35 = vadd.f32 %v4933_v59, %v4932_v18  ;;  %v4401_v55 = vpop.f32.mrf.mxu3 }
 0x2c8   : > { %v5035_v47 = vsel %vm1450_vm12, %v4990_v17, 0.0  ;;  %v4459_v16 = vadd.f32 %v4401_v55, %v3805_v57 }
 0x2c9   : > { %v5036_v37 = vadd.f32 %v5035_v47, %v5034_v20 }
 0x2ca   : > { %v3752_v56 = vpop.f32.mrf.mxu2 }
 0x2cb   : > { %v4799_v2 = vpop.f32.mrf.mxu0  ;;  %v3807_v46 = vadd.f32 %v3752_v56, %v3520_v10 }
 0x2cc   : > { %v4857_v43 = vadd.f32 %v4799_v2, %v4459_v16  ;;  %v3470_v8 = vpop.f32.mrf.mxu1 }
 0x2cd   : > { %v3522_v14 = vadd.f32 %v3470_v8, %v6698_v36 }
 0x2ce   : > { %4889 = vst.msk [vmem:[%s6916_s9 + $0x78] sm:$0xff] %vm1450_vm12, %v4857_v43  ;;  %v4935_v21 = vsel %vm1450_vm12, %v4857_v43, 0.0  ;;  %v4991_v19 = vmul.f32 %v4857_v43, %v4857_v43 }
 0x2cf   : > { %v4936_v34 = vadd.f32 %v4935_v21, %v4934_v35  ;;  %v4404_v28 = vpop.f32.mrf.mxu3 }
 0x2d0   : > { %v5037_v7 = vsel %vm1450_vm12, %v4991_v19, 0.0  ;;  %v4460_v24 = vadd.f32 %v4404_v28, %v3806_v3 }
 0x2d1   : > { %v5038_v31 = vadd.f32 %v5037_v7, %v5036_v37 }
 0x2d2   : > { %v3755_v40 = vpop.f32.mrf.mxu2 }
 0x2d3   : > { %v4802_v13 = vpop.f32.mrf.mxu0  ;;  %v3808_v18 = vadd.f32 %v3755_v40, %v3521_v42 }
 0x2d4   : > { %v4858_v58 = vadd.f32 %v4802_v13, %v4460_v24  ;;  %v3473_v54 = vpop.f32.mrf.mxu1 }
 0x2d5   : > { %v3523_v43 = vadd.f32 %v3473_v54, %v6716_v11 }
 0x2d6   : > { %4890 = vst.msk [vmem:[%s6916_s9 + $0x80] sm:$0xff] %vm1450_vm12, %v4858_v58  ;;  %v4937_v44 = vsel %vm1450_vm12, %v4858_v58, 0.0  ;;  %v4992_v15 = vmul.f32 %v4858_v58, %v4858_v58 }
 0x2d7   : > { %v4938_v48 = vadd.f32 %v4937_v44, %v4936_v34  ;;  %v4406_v22 = vpop.f32.mrf.mxu3 }
 0x2d8   : > { %v5039_v49 = vsel %vm1450_vm12, %v4992_v15, 0.0  ;;  %v4461_v52 = vadd.f32 %v4406_v22, %v3807_v46 }
 0x2d9   : > { %v5040_v9 = vadd.f32 %v5039_v49, %v5038_v31 }
 0x2da   : > { %v3757_v50 = vpop.f32.mrf.mxu2 }
 0x2db   : > { %v4804_v62 = vpop.f32.mrf.mxu0  ;;  %v3809_v59 = vadd.f32 %v3757_v50, %v3522_v14 }
 0x2dc   : > { %v4859_v4 = vadd.f32 %v4804_v62, %v4461_v52  ;;  %v3475_v63 = vpop.f32.mrf.mxu1 }
 0x2dd   : > { %v3524_v13 = vadd.f32 %v3475_v63, %v6729_v12 }
 0x2de   : > { %4891 = vst.msk [vmem:[%s6916_s9 + $0x88] sm:$0xff] %vm1450_vm12, %v4859_v4  ;;  %v4939_v29 = vsel %vm1450_vm12, %v4859_v4, 0.0  ;;  %v4993_v45 = vmul.f32 %v4859_v4, %v4859_v4 }
 0x2df   : > { %v4940_v53 = vadd.f32 %v4939_v29, %v4938_v48  ;;  %v4409_v38 = vpop.f32.mrf.mxu3 }
 0x2e0   : > { %v5041_v20 = vsel %vm1450_vm12, %v4993_v45, 0.0  ;;  %v4462_v27 = vadd.f32 %v4409_v38, %v3808_v18 }
 0x2e1   : > { %v5042_v26 = vadd.f32 %v5041_v20, %v5040_v9 }
 0x2e2   : > { %v3760_v41 = vpop.f32.mrf.mxu2 }
 0x2e3   : > { %v4807_v60 = vpop.f32.mrf.mxu0  ;;  %v3810_v8 = vadd.f32 %v3760_v41, %v3523_v43 }
 0x2e4   : > { %v4860_v25 = vadd.f32 %v4807_v60, %v4462_v27  ;;  %v3478_v57 = vpop.f32.mrf.mxu1 }
 0x2e5   : > { %v3525_v50 = vadd.f32 %v3478_v57, %v6747_v32 }
 0x2e6   : > { %4892 = vst.msk [vmem:[%s6916_s9 + $0x90] sm:$0xff] %vm1450_vm12, %v4860_v25  ;;  %v4941_v23 = vsel %vm1450_vm12, %v4860_v25, 0.0  ;;  %v4994_v1 = vmul.f32 %v4860_v25, %v4860_v25 }
 0x2e7   : > { %v4942_v17 = vadd.f32 %v4941_v23, %v4940_v53  ;;  %v4411_v37 = vpop.f32.mrf.mxu3 }
 0x2e8   : > { %v5043_v35 = vsel %vm1450_vm12, %v4994_v1, 0.0  ;;  %v4463_v55 = vadd.f32 %v4411_v37, %v3809_v59 }
 0x2e9   : > { %v5044_v47 = vadd.f32 %v5043_v35, %v5042_v26 }
 0x2ea   : > { %v3762_v16 = vpop.f32.mrf.mxu2 }
 0x2eb   : > { %v4809_v56 = vpop.f32.mrf.mxu0  ;;  %v3811_v10 = vadd.f32 %v3762_v16, %v3524_v13 }
 0x2ec   : > { %v4861_v2 = vadd.f32 %v4809_v56, %v4463_v55  ;;  %v3480_v7 = vpop.f32.mrf.mxu1 }
 0x2ed   : > { %v3526_v38 = vadd.f32 %v3480_v7, %v6760_v30 }
 0x2ee   : > { %4893 = vst.msk [vmem:[%s6916_s9 + $0x98] sm:$0xff] %vm1450_vm12, %v4861_v2  ;;  %v4943_v36 = vsel %vm1450_vm12, %v4861_v2, 0.0  ;;  %v4995_v5 = vmul.f32 %v4861_v2, %v4861_v2 }
 0x2ef   : > { %v4944_v21 = vadd.f32 %v4943_v36, %v4942_v17  ;;  %v4414_v34 = vpop.f32.mrf.mxu3 }
 0x2f0   : > { %v5045_v19 = vsel %vm1450_vm12, %v4995_v5, 0.0  ;;  %v4464_v31 = vadd.f32 %v4414_v34, %v3810_v8 }
 0x2f1   : > { %v5046_v3 = vadd.f32 %v5045_v19, %v5044_v47 }
 0x2f2   : > { %v3765_v28 = vpop.f32.mrf.mxu2 }
 0x2f3   : > { %v4812_v24 = vpop.f32.mrf.mxu0  ;;  %v3812_v4 = vadd.f32 %v3765_v28, %v3525_v50 }
 0x2f4   : > { %v4862_v40 = vadd.f32 %v4812_v24, %v4464_v31  ;;  %v3483_v22 = vpop.f32.mrf.mxu1 }
 0x2f5   : > { %v3527_v47 = vadd.f32 %v3483_v22, %v6778_v61 }
 0x2f6   : > { %4894 = vst.msk [vmem:[%s6916_s9 + $0xa0] sm:$0xff] %vm1450_vm12, %v4862_v40  ;;  %v4945_v11 = vsel %vm1450_vm12, %v4862_v40, 0.0  ;;  %v4996_v58 = vmul.f32 %v4862_v40, %v4862_v40 }
 0x2f7   : > { %v4946_v54 = vadd.f32 %v4945_v11, %v4944_v21  ;;  %v4416_v46 = vpop.f32.mrf.mxu3 }
 0x2f8   : > { %v5047_v44 = vsel %vm1450_vm12, %v4996_v58, 0.0  ;;  %v4465_v48 = vadd.f32 %v4416_v46, %v3811_v10 }
 0x2f9   : > { %v5048_v15 = vadd.f32 %v5047_v44, %v5046_v3 }
 0x2fa   : > { %v3767_v49 = vpop.f32.mrf.mxu2 }
 0x2fb   : > { %v4814_v9 = vpop.f32.mrf.mxu0  ;;  %v3813_v60 = vadd.f32 %v3767_v49, %v3526_v38 }
 0x2fc   : > { %v4863_v52 = vadd.f32 %v4814_v9, %v4465_v48  ;;  %v3485_v27 = vpop.f32.mrf.mxu1 }
 0x2fd   : > { %v3528_v3 = vadd.f32 %v3485_v27, %v6791_v39 }
 0x2fe   : > { %4895 = vst.msk [vmem:[%s6916_s9 + $0xa8] sm:$0xff] %vm1450_vm12, %v4863_v52  ;;  %v4947_v12 = vsel %vm1450_vm12, %v4863_v52, 0.0  ;;  %v4997_v62 = vmul.f32 %v4863_v52, %v4863_v52 }
 0x2ff   : > { %v4948_v42 = vadd.f32 %v4947_v12, %v4946_v54  ;;  %v4419_v45 = vpop.f32.mrf.mxu3 }
 0x300   : > { %v5049_v63 = vsel %vm1450_vm12, %v4997_v62, 0.0  ;;  %v4466_v18 = vadd.f32 %v4419_v45, %v3812_v4 }
 0x301   : > { %v5050_v29 = vadd.f32 %v5049_v63, %v5048_v15 }
 0x302   : > { %v3770_v53 = vpop.f32.mrf.mxu2 }
 0x303   : > { %v4817_v20 = vpop.f32.mrf.mxu0  ;;  %v3814_v55 = vadd.f32 %v3770_v53, %v3527_v47 }
 0x304   : > { %v4864_v26 = vadd.f32 %v4817_v20, %v4466_v18  ;;  %v3488_v56 = vpop.f32.mrf.mxu1 }
 0x305   : > { %v3529_v44 = vadd.f32 %v3488_v56, %v6809_v51 }
 0x306   : > { %4896 = vst.msk [vmem:[%s6916_s9 + $0xb0] sm:$0xff] %vm1450_vm12, %v4864_v26  ;;  %v4949_v32 = vsel %vm1450_vm12, %v4864_v26, 0.0  ;;  %v4998_v41 = vmul.f32 %v4864_v26, %v4864_v26 }
 0x307   : > { %v4950_v25 = vadd.f32 %v4949_v32, %v4948_v42  ;;  %v4421_v1 = vpop.f32.mrf.mxu3 }
 0x308   : > { %v5051_v14 = vsel %vm1450_vm12, %v4998_v41, 0.0  ;;  %v4467_v59 = vadd.f32 %v4421_v1, %v3813_v60 }
 0x309   : > { %v5052_v23 = vadd.f32 %v5051_v14, %v5050_v29 }
 0x30a   : > { %v3772_v17 = vpop.f32.mrf.mxu2 }
 0x30b   : > { %v4819_v57 = vpop.f32.mrf.mxu0  ;;  %v3815_v7 = vadd.f32 %v3772_v17, %v3528_v3  ;;  %v7347_v3 = vld [vmem:[#allocation3_spill] sm:$0xff] }
 0x30c   : > { %v4865_v35 = vadd.f32 %v4819_v57, %v4467_v59  ;;  %v3490_v13 = vpop.f32.mrf.mxu1 }
 0x30d   : > { %v3530_v4 = vadd.f32 %v3490_v13, %v6822_v33 }
 0x30e   : > { %4897 = vst.msk [vmem:[%s6916_s9 + $0xb8] sm:$0xff] %vm1450_vm12, %v4865_v35  ;;  %v4951_v30 = vsel %vm1450_vm12, %v4865_v35, 0.0  ;;  %v4999_v37 = vmul.f32 %v4865_v35, %v4865_v35 }
 0x30f   : > { %v4952_v16 = vadd.f32 %v4951_v30, %v4950_v25  ;;  %v4424_v36 = vpop.f32.mrf.mxu3 }
 0x310   : > { %v5053_v2 = vsel %vm1450_vm12, %v4999_v37, 0.0  ;;  %v4468_v5 = vadd.f32 %v4424_v36, %v3814_v55 }
 0x311   : > { %v5054_v43 = vadd.f32 %v5053_v2, %v5052_v23 }
 0x312   : > { %v3775_v8 = vpop.f32.mrf.mxu2 }
 0x313   : > { %v4822_v21 = vpop.f32.mrf.mxu0  ;;  %v3816_v46 = vadd.f32 %v3775_v8, %v3529_v44  ;;  %v7348_v44 = vld [vmem:[#allocation4_spill] sm:$0xff] }
 0x314   : > { %v4866_v19 = vadd.f32 %v4822_v21, %v4468_v5  ;;  %v3493_v12 = vpop.f32.mrf.mxu1 }
 0x315   : > { %v3531_v32 = vadd.f32 %v3493_v12, %v6842_v0 }
 0x316   : > { %4898 = vst.msk [vmem:[%s6916_s9 + $0xc0] sm:$0xff] %vm1450_vm12, %v4866_v19  ;;  %v4953_v61 = vsel %vm1450_vm12, %v4866_v19, 0.0  ;;  %v5000_v34 = vmul.f32 %v4866_v19, %v4866_v19 }
 0x317   : > { %v4954_v31 = vadd.f32 %v4953_v61, %v4952_v16  ;;  %v4426_v40 = vpop.f32.mrf.mxu3 }
 0x318   : > { %v5055_v28 = vsel %vm1450_vm12, %v5000_v34, 0.0  ;;  %v4469_v11 = vadd.f32 %v4426_v40, %v3815_v7 }
 0x319   : > { %v5056_v24 = vadd.f32 %v5055_v28, %v5054_v43 }
 0x31a   : > { %v3777_v10 = vpop.f32.mrf.mxu2 }
 0x31b   : > { %v4824_v58 = vpop.f32.mrf.mxu0  ;;  %v3817_v29 = vadd.f32 %v3777_v10, %v3530_v4 }
 0x31c   : > { %v4867_v54 = vadd.f32 %v4824_v58, %v4469_v11  ;;  %v3495_v41 = vpop.f32.mrf.mxu1 }
 0x31d   : > { %v3532_v30 = vadd.f32 %v3495_v41, %v6857_v6 }
 0x31e   : > { %4899 = vst.msk [vmem:[%s6916_s9 + $0xc8] sm:$0xff] %vm1450_vm12, %v4867_v54  ;;  %v4955_v39 = vsel %vm1450_vm12, %v4867_v54, 0.0  ;;  %v5001_v15 = vmul.f32 %v4867_v54, %v4867_v54 }
 0x31f   : > { %v4956_v48 = vadd.f32 %v4955_v39, %v4954_v31  ;;  %v4429_v22 = vpop.f32.mrf.mxu3 }
 0x320   : > { %v5057_v49 = vsel %vm1450_vm12, %v5001_v15, 0.0  ;;  %v4470_v52 = vadd.f32 %v4429_v22, %v3816_v46 }
 0x321   : > { %v5058_v9 = vadd.f32 %v5057_v49, %v5056_v24 }
 0x322   : > { %v3780_v42 = vpop.f32.mrf.mxu2 }
 0x323   : > { %v4827_v50 = vpop.f32.mrf.mxu0  ;;  %v3818_v25 = vadd.f32 %v3780_v42, %v3531_v32 }
 0x324   : > { %v4868_v62 = vadd.f32 %v4827_v50, %v4470_v52  ;;  %v3498_v56 = vpop.f32.mrf.mxu1 }
 0x325   : > { %v3533_v61 = vadd.f32 %v3498_v56, %v7347_v3 }
 0x326   : > { %4900 = vst.msk [vmem:[%s6916_s9 + $0xd0] sm:$0xff] %vm1450_vm12, %v4868_v62  ;;  %v4957_v51 = vsel %vm1450_vm12, %v4868_v62, 0.0  ;;  %v5002_v63 = vmul.f32 %v4868_v62, %v4868_v62 }
 0x327   : > { %v4958_v45 = vadd.f32 %v4957_v51, %v4956_v48  ;;  %v4431_v20 = vpop.f32.mrf.mxu3 }
 0x328   : > { %v5059_v18 = vsel %vm1450_vm12, %v5002_v63, 0.0  ;;  %v4471_v26 = vadd.f32 %v4431_v20, %v3817_v29 }
 0x329   : > { %v5060_v53 = vadd.f32 %v5059_v18, %v5058_v9 }
 0x32a   : > { %v3782_v23 = vpop.f32.mrf.mxu2 }
 0x32b   : > { %v4829_v38 = vpop.f32.mrf.mxu0  ;;  %v3819_v55 = vadd.f32 %v3782_v23, %v3532_v30 }
 0x32c   : > { %v4869_v27 = vadd.f32 %v4829_v38, %v4471_v26  ;;  %v3500_v13 = vpop.f32.mrf.mxu1 }
 0x32d   : > { %v3534_v39 = vadd.f32 %v3500_v13, %v7348_v44 }
 0x32e   : > { %4901 = vst.msk [vmem:[%s6916_s9 + $0xd8] sm:$0xff] %vm1450_vm12, %v4869_v27  ;;  %v4959_v33 = vsel %vm1450_vm12, %v4869_v27, 0.0  ;;  %v5003_v60 = vmul.f32 %v4869_v27, %v4869_v27 }
 0x32f   : > { %v4960_v14 = vadd.f32 %v4959_v33, %v4958_v45  ;;  %v4434_v17 = vpop.f32.mrf.mxu3 }
 0x330   : > { %v5061_v1 = vsel %vm1450_vm12, %v5003_v60, 0.0  ;;  %v4472_v57 = vadd.f32 %v4434_v17, %v3818_v25 }
 0x331   : > { %v5062_v59 = vadd.f32 %v5061_v1, %v5060_v53 }
 0x332   : > { %v3785_v5 = vpop.f32.mrf.mxu2 }
 0x333   : > { %v4832_v35 = vpop.f32.mrf.mxu0  ;;  %v3820_v7 = vadd.f32 %v3785_v5, %v3533_v61 }
 0x334   : > { %v4870_v47 = vadd.f32 %v4832_v35, %v4472_v57 }
 0x336   : > { %4902 = vst.msk [vmem:[%s6916_s9 + $0xe0] sm:$0xff] %vm1450_vm12, %v4870_v47  ;;  %v4961_v0 = vsel %vm1450_vm12, %v4870_v47, 0.0  ;;  %v5004_v37 = vmul.f32 %v4870_v47, %v4870_v47 }
 0x337   : > { %v4962_v16 = vadd.f32 %v4961_v0, %v4960_v14  ;;  %v4436_v36 = vpop.f32.mrf.mxu3 }
 0x338   : > { %v5063_v2 = vsel %vm1450_vm12, %v5004_v37, 0.0  ;;  %v4473_v8 = vadd.f32 %v4436_v36, %v3819_v55 }
 0x339   : > { %v5064_v43 = vadd.f32 %v5063_v2, %v5062_v59 }
 0x33a   : > { %v3787_v10 = vpop.f32.mrf.mxu2 }
 0x33b   : > { %v4834_v21 = vpop.f32.mrf.mxu0  ;;  %v3821_v48 = vadd.f32 %v3787_v10, %v3534_v39 }
 0x33c   : > { %v4871_v19 = vadd.f32 %v4834_v21, %v4473_v8 }
 0x33e   : > { %4903 = vst.msk [vmem:[%s6916_s9 + $0xe8] sm:$0xff] %vm1450_vm12, %v4871_v19  ;;  %v4963_v6 = vsel %vm1450_vm12, %v4871_v19, 0.0  ;;  %v5005_v34 = vmul.f32 %v4871_v19, %v4871_v19 }
 0x33f   : > { %v4964_v31 = vadd.f32 %v4963_v6, %v4962_v16  ;;  %v4439_v40 = vpop.f32.mrf.mxu3 }
 0x340   : > { %v5065_v28 = vsel %vm1450_vm12, %v5005_v34, 0.0  ;;  %v4474_v11 = vadd.f32 %v4439_v40, %v3820_v7 }
 0x341   : > { %v5066_v24 = vadd.f32 %v5065_v28, %v5064_v43 }
 0x343   : > { %v4837_v58 = vpop.f32.mrf.mxu0 }
 0x344   : > { %v4872_v54 = vadd.f32 %v4837_v58, %v4474_v11 }
 0x346   : > { %4904 = vst.msk [vmem:[%s6916_s9 + $0xf0] sm:$0xff] %vm1450_vm12, %v4872_v54  ;;  %v4965_v15 = vsel %vm1450_vm12, %v4872_v54, 0.0  ;;  %v5006_v46 = vmul.f32 %v4872_v54, %v4872_v54 }
 0x347   : > { %v4966_v49 = vadd.f32 %v4965_v15, %v4964_v31  ;;  %v4441_v52 = vpop.f32.mrf.mxu3 }
 0x348   : > { %v5067_v9 = vsel %vm1450_vm12, %v5006_v46, 0.0  ;;  %v4475_v50 = vadd.f32 %v4441_v52, %v3821_v48 }
 0x349   : > { %v5068_v22 = vadd.f32 %v5067_v9, %v5066_v24 }
 0x34b   : > { %v4839_v12 = vpop.f32.mrf.mxu0 }
 0x34c   : > { %v4873_v62 = vadd.f32 %v4839_v12, %v4475_v50 }
 0x34e   : > { %4905 = vst.msk [vmem:[%s6916_s9 + $0xf8] sm:$0xff] %vm1450_vm12, %v4873_v62  ;;  %v4967_v4 = vsel %vm1450_vm12, %v4873_v62, 0.0  ;;  %v5007_v42 = vmul.f32 %v4873_v62, %v4873_v62 }
 0x34f   : > { %v4968_v51 = vadd.f32 %v4967_v4, %v4966_v49 }
 0x350   : > { %v5069_v63 = vsel %vm1450_vm12, %v5007_v42, 0.0 }
 0x351   : > { %v4969_v29 = vrot.slane %v4968_v51, 4  ;;  %v5070_v45 = vadd.f32 %v5069_v63, %v5068_v22 }
 0x353   : > { %v4970_v18 = vadd.f32 %v4969_v29, %v4968_v51  ;;  %v5071_v53 = vrot.slane %v5070_v45, 4 }
 0x355   : > { %v4971_v20 = vrot.slane %v4970_v18, 2  ;;  %v5072_v26 = vadd.f32 %v5071_v53, %v5070_v45 }
 0x357   : > { %v4972_v38 = vadd.f32 %v4971_v20, %v4970_v18  ;;  %v5073_v27 = vrot.slane %v5072_v26, 2 }
 0x359   : > { %v4973_v32 = vrot.slane %v4972_v38, 1  ;;  %v5074_v41 = vadd.f32 %v5073_v27, %v5072_v26 }
 0x35b   : > { %v4974_v33 = vadd.f32 %v4973_v32, %v4972_v38  ;;  %v5075_v60 = vrot.slane %v5074_v41, 1 }
 0x35d   : > { %4975 = vst.msk [vmem:[%s235_s12] sm:$0x1] %vm376_vm1, %v4974_v33  ;;  %v5076_v25 = vadd.f32 %v5075_v60, %v5074_v41 }
 0x35f   : > { %5077 = vst.msk [vmem:[%s235_s12 + $0x1] sm:$0x1] %vm376_vm1, %v5076_v25 }
 0x360 PF: > { %s16_s18 = sadd.s32 1, %s5698_s18  }
 0x361   : > { %p13_p4 = scmp.ge.s32.totalorder %s16_s18, 4  }
 0x363   :  { %15 = sbr.rel (!%p13_p4) target bundleno = 1 (0x1), region = 89 }

// kernel: basic_block_forward.3
= control target key start
LH: loop header
LB: loop body
LE: loop exit
PB: predicated region body
PF: predicated region fallthrough
CT: control target
= control target key end

     0   :  { %s5621_s18 = smov 0   ;;  %s7148_s0 = inlined_call_operand.vmem [shape: f32[2,256,4], index: 0, kind: input, shape index: {}]   ;;  %s7149_s1 = inlined_call_operand.vmem [shape: f32[1,4], index: 1, kind: input, shape index: {}]   ;;  %s7150_s2 = inlined_call_operand.vmem [shape: f32[1,4], index: 2, kind: input, shape index: {}]   ;;  %s7151_s3 = inlined_call_operand.vmem [shape: bf16[9,4,4], index: 3, kind: input, shape index: {}]   ;;  %s7152_s4 = inlined_call_operand.vmem [shape: f32[2,256,4], index: 4, kind: output, shape index: {0}]   ;;  %s7153_s5 = inlined_call_operand.vmem [shape: f32[2,2,4], index: 5, kind: output, shape index: {1}]  }
   0x1 LB: > { %s5060_s1 = sadd.s32 4294967295, %s5588_s18   ;;  %p5064_p0 = scmp.ge.s32.totalorder %s5588_s18, 1  ;;  %s5588_s18 = sphi %s5621_s18, %s16_s18  }
   0x2   : > { %p190_p1 = scmp.lt.s32.totalorder %s5588_s18, 3 }
   0x4   : > { %p191_p2 = pnand %p5064_p0, %p190_p1 }
   0x6   : > { %194 = sbr.rel (%p191_p2) target bundleno = 843 (0x34b), region = 36 }
   0xb   : > { %v5070_v0 = vld [vmem:[%s7151_s3 + $0x2] sm:$0x3]  ;;  %vm1395_vm0 = vcmask 1041408   ;;  %p222_p3 = scmp.lt.s32.totalorder %s5060_s1, 1  ;;  %vm272_vm1 = vcmask 24576   ;;  %vm269_vm5 = vcmask 27648  }
   0xc   : > { %v1397_v1 = vsel %vm1395_vm0, %v5070_v0, 0  ;;  %vm279_vm2 = vsmask.f32 256  ;;  %v293_v2 = vld [vmem:[#allocation2 + $0x30] sm:$0x1]  ;;  %v5590_v12 = vmov 0  }
   0xd   : > { %5514 = vmatpush.bf16.msra.mxu1 %v1397_v1  ;;  %5515 = vmatpush.bf16.msra.mxu2 %v1397_v1  ;;  %s7193_s1 = smov (!%p222_p3, %s5060_s1), 1  ;;  %vm5637_vm3 = vmand %vm272_vm1, %vm279_vm2  ;;  %vm335_vm4 = vsmask.f32 7938  ;;  %v349_v4 = vld [vmem:[#allocation2 + $0x38] sm:$0x1]  ;;  %vm1346_vm12 = vcmask 31744  }
   0xe   : > { %5516 = vmatpush.bf16.msra.mxu3 %v1397_v1  ;;  %1406 = vmatpush.bf16.msra.mxu0 %v1397_v1  ;;  %v294_v5 = vsel %vm5637_vm3, 0, %v293_v2  ;;  %vm5645_vm6 = vmand %vm272_vm1, %vm335_vm4  ;;  %s5464_s20 = sshll.u32 %s7193_s1, 8  ;;  %vm423_vm7 = vsmask.f32 4368  ;;  %v305_v8 = vld [vmem:[#allocation2 + $0x60] sm:$0x1] }
   0xf   : > { %295 = vst [vmem:[#allocation2 + $0x30] sm:$0x1] %v294_v5  ;;  %v350_v7 = vsel %vm5645_vm6, 0, %v349_v4  ;;  %s5657_s23 = scalar_lea.vmem %s7148_s0, %s5464_s20  ;;  %v306_v11 = vsel %vm5637_vm3, 0, %v305_v8  ;;  %v361_v17 = vld [vmem:[#allocation2 + $0x68] sm:$0x1]  ;;  %vm5673_vm8 = vmor %vm279_vm2, %vm423_vm7  ;;  %s6770_s17 = scalar_lea.vmem %s7152_s4, %s5464_s20 }
  0x10   : > { %351 = vst [vmem:[#allocation2 + $0x38] sm:$0x1] %v350_v7  ;;  %v243_v9 = vld [vmem:[%s5657_s23 + $0x30] sm:$0xff]  ;;  %v244_v10 = vld [vmem:[%s5657_s23 + $0x38] sm:$0xff]  ;;  %v362_v18 = vsel %vm5645_vm6, 0, %v361_v17  ;;  %vm5683_vm9 = vmand %vm269_vm5, %vm335_vm4  ;;  %vm1756_vm14 = vcmask 1042432  }
  0x11   : > { %270 = vst.msk [vmem:[#allocation2] sm:$0xf] %vm269_vm5, %v5590_v12  ;;  %v397_v13 = vpack.c.bf16 %v243_v9, %v243_v9  ;;  %v398_v14 = vpack.c.bf16 %v244_v10, %v244_v10  ;;  %v251_v15 = vld [vmem:[%s5657_s23 + $0x70] sm:$0xff]  ;;  %v252_v16 = vld [vmem:[%s5657_s23 + $0x78] sm:$0xff]  ;;  %v245_v59 = vld [vmem:[%s5657_s23 + $0x40] sm:$0xff]  ;;  %vm1757_vm15 = vcmask 1046532  }
  0x12   : > { %307 = vst [vmem:[#allocation2 + $0x60] sm:$0x1] %v306_v11  ;;  %v405_v19 = vpack.c.bf16 %v251_v15, %v251_v15  ;;  %v406_v20 = vpack.c.bf16 %v252_v16, %v252_v16  ;;  %v259_v21 = vld [vmem:[%s5657_s23 + $0xb0] sm:$0xff]  ;;  %v260_v22 = vld [vmem:[%s5657_s23 + $0xb8] sm:$0xff]  ;;  %v5183_v4 = vld [vmem:[%s7151_s3 + $0x4] sm:$0x3]  ;;  %v5706_v5 = vpack.c.bf16 %v245_v59, %v245_v59 }
  0x13   : > { %v317_v23 = vld [vmem:[#allocation2 + $0x90] sm:$0x1]  ;;  %v477_v24 = vshrl.u32 %v397_v13, 16  ;;  %v480_v25 = vshll.u32 %v397_v13, 16  ;;  %v485_v26 = vshrl.u32 %v398_v14, 16  ;;  %v488_v27 = vshll.u32 %v398_v14, 16  ;;  %vm6076_vm2 = vmor %vm1756_vm14, %vm1757_vm15 }
  0x14   : > { %363 = vst [vmem:[#allocation2 + $0x68] sm:$0x1] %v362_v18  ;;  %v545_v28 = vshrl.u32 %v405_v19, 16  ;;  %v548_v29 = vshll.u32 %v405_v19, 16  ;;  %v553_v30 = vshrl.u32 %v406_v20, 16  ;;  %v556_v31 = vshll.u32 %v406_v20, 16 }
  0x15   : > { %v373_v32 = vld [vmem:[#allocation2 + $0x98] sm:$0x1]  ;;  %v479_v34 = vrot.slane %v477_v24, 7  ;;  %v487_v35 = vrot.slane %v485_v26, 7  ;;  %v318_v37 = vsel %vm5637_vm3, 0, %v317_v23  ;;  %v413_v43 = vpack.c.bf16 %v259_v21, %v259_v21  ;;  %v246_v18 = vld [vmem:[%s5657_s23 + $0x48] sm:$0xff] }
  0x16   : > { %v769_v36 = vld [vmem:[#allocation2 + $0x30] sm:$0xf]  ;;  %v374_v38 = vsel %vm5645_vm6, 0, %v373_v32  ;;  %v547_v41 = vrot.slane %v545_v28, 7  ;;  %v555_v42 = vrot.slane %v553_v30, 7  ;;  %v414_v44 = vpack.c.bf16 %v260_v22, %v260_v22  ;;  %s5069_s2 = sshll.u32 %s7193_s1, 1 }
  0x17   : > { %v773_v40 = vld [vmem:[#allocation2 + $0x38] sm:$0x1]  ;;  %319 = vst [vmem:[#allocation2 + $0x90] sm:$0x1] %v318_v37  ;;  %v482_v45 = vor.u32 %v480_v25, %v479_v34  ;;  %v483_v46 = vrot.slane %v479_v34, 4  ;;  %v490_v47 = vor.u32 %v488_v27, %v487_v35  ;;  %v492_v48 = vrot.slane %v487_v35, 4  ;;  %s235_s21 = scalar_lea.vmem %s7153_s5, %s5069_s2 }
  0x18   : > { %375 = vst [vmem:[#allocation2 + $0x98] sm:$0x1] %v374_v38  ;;  %v550_v49 = vor.u32 %v548_v29, %v547_v41  ;;  %v551_v50 = vrot.slane %v547_v41, 4  ;;  %v558_v51 = vor.u32 %v556_v31, %v555_v42  ;;  %v560_v52 = vrot.slane %v555_v42, 4  ;;  %v281_v58 = vld [vmem:[#allocation2] sm:$0x1] }
  0x19   : > { %v797_v53 = vld [vmem:[#allocation2 + $0x60] sm:$0xf]  ;;  %271 = vst.msk [vmem:[#allocation2 + $0x4] sm:$0xf] %vm269_vm5, %v5590_v12  ;;  %v491_v54 = vsel %vm5673_vm8, %v483_v46, %v490_v47  ;;  %v770_v55 = vsel %vm5683_vm9, %v482_v45, %v769_v36  ;;  %v774_v56 = vsel %vm5637_vm3, %v492_v48, %v773_v40  ;;  %v613_v57 = vshrl.u32 %v413_v43, 16 }
  0x1a   : > { %273 = vst.msk [vmem:[#allocation2 + $0x8] sm:$0x1] %vm272_vm1, %v5590_v12  ;;  %v798_v60 = vsel %vm5683_vm9, %v550_v49, %v797_v53  ;;  %v616_v62 = vshll.u32 %v413_v43, 16  ;;  %v621_v63 = vshrl.u32 %v414_v44, 16  ;;  %v559_v0 = vsel %vm5673_vm8, %v551_v50, %v558_v51  ;;  %v5200_v22 = vld [vmem:[%s7151_s3 + $0x6] sm:$0x3] }
  0x1b   : > { %771 = vst [vmem:[#allocation2 + $0x30] sm:$0xf] %v770_v55  ;;  %v801_v61 = vld [vmem:[#allocation2 + $0x68] sm:$0x1]  ;;  %v615_v1 = vrot.slane %v613_v57, 7  ;;  %v624_v2 = vshll.u32 %v414_v44, 16  ;;  %v5732_v38 = vpack.c.bf16 %v246_v18, %v246_v18 }
  0x1c   : > { %772 = vst.msk [vmem:[#allocation2 + $0x34] sm:$0xf] %vm269_vm5, %v491_v54  ;;  %vm909_vm10 = vsmask.f32 3328  ;;  %vm910_vm11 = vsmask.f32 7440  ;;  %v802_v7 = vsel %vm5637_vm3, %v560_v52, %v801_v61 }
  0x1d   : > { %775 = vst [vmem:[#allocation2 + $0x38] sm:$0x1] %v774_v56  ;;  %v623_v8 = vrot.slane %v621_v63, 7  ;;  %v1970_v9 = vsel %vm1395_vm0, %v5183_v4, 0  ;;  %v618_v10 = vor.u32 %v616_v62, %v615_v1  ;;  %v619_v11 = vrot.slane %v615_v1, 4  ;;  %vm5738_vm13 = vmor %vm909_vm10, %vm910_vm11 }
  0x1e   : > { %799 = vst [vmem:[#allocation2 + $0x60] sm:$0xf] %v798_v60  ;;  %v825_v13 = vld [vmem:[#allocation2 + $0x90] sm:$0xf]  ;;  %1979 = vmatpush.bf16.msrb.mxu2 %v1970_v9  ;;  %v282_v14 = vsel %vm5637_vm3, 0, %v281_v58  ;;  %v494_v19 = vshrl.u32 %v5706_v5, 16 }
  0x1f   : > { %800 = vst.msk [vmem:[#allocation2 + $0x64] sm:$0xf] %vm269_vm5, %v559_v0  ;;  %v626_v15 = vor.u32 %v624_v2, %v623_v8  ;;  %v628_v16 = vrot.slane %v623_v8, 4  ;;  %v829_v17 = vld [vmem:[#allocation2 + $0x98] sm:$0x1]  ;;  %v826_v20 = vsel %vm5683_vm9, %v618_v10, %v825_v13  ;;  %v497_v27 = vshll.u32 %v5706_v5, 16 }
  0x20   : > { %803 = vst [vmem:[#allocation2 + $0x68] sm:$0x1] %v802_v7  ;;  %v5718_v21 = vld [vmem:[#allocation2 + $0x4] sm:$0xf]  ;;  %v2256_v30 = vsel %vm1395_vm0, %v5200_v22, 0 }
  0x21   : > { %v627_v23 = vsel %vm5673_vm8, %v619_v11, %v626_v15  ;;  %827 = vst [vmem:[#allocation2 + $0x90] sm:$0xf] %v826_v20  ;;  %v830_v24 = vsel %vm5637_vm3, %v628_v16, %v829_v17  ;;  %v337_v25 = vld [vmem:[#allocation2 + $0x8] sm:$0x1]  ;;  %v922_v26 = vshll.u32 %v5718_v21, 16  ;;  %v926_v29 = vshrl.u32 %v5718_v21, 16  ;;  %2265 = vmatpush.bf16.msrb.mxu3 %v2256_v30 }
  0x22   : > { %v868_v28 = vld [vmem:[#allocation2 + $0x30] sm:$0xf]  ;;  %828 = vst.msk [vmem:[#allocation2 + $0x94] sm:$0xf] %vm269_vm5, %v627_v23  ;;  %v338_v44 = vsel %vm5645_vm6, 0, %v337_v25  ;;  %v253_v9 = vld [vmem:[%s5657_s23 + $0x80] sm:$0xff] }
  0x23   : > { %v869_v31 = vld [vmem:[#allocation2 + $0x34] sm:$0xf]  ;;  %v1009_v32 = vshrl.u32 %v868_v28, 16  ;;  %v1012_v34 = vshll.u32 %v868_v28, 16  ;;  %831 = vst [vmem:[#allocation2 + $0x98] sm:$0x1] %v830_v24  ;;  %v5756_v28 = vpack.c.bf16 %v253_v9, %v253_v9 }
  0x24   : > { %v897_v35 = vld [vmem:[#allocation2 + $0x38] sm:$0x1]  ;;  %v1018_v36 = vshll.u32 %v869_v31, 16  ;;  %v1022_v37 = vshrl.u32 %v869_v31, 16  ;;  %283 = vst [vmem:[#allocation2] sm:$0x1] %v282_v14 }
  0x25   : > { %v1011_v40 = vrot.slane %v1009_v32, 4  ;;  %v1014_v41 = vrot.slane %v1012_v34, 5  ;;  %v1028_v42 = vshll.u32 %v897_v35, 16  ;;  %v876_v43 = vld [vmem:[#allocation2 + $0x60] sm:$0xf]  ;;  %v5742_v1 = vrot.slane %v922_v26, 5 }
  0x26   : > { %v1020_v45 = vrot.slane %v1018_v36, 5  ;;  %v1024_v46 = vrot.slane %v1022_v37, 4  ;;  %v877_v47 = vld [vmem:[#allocation2 + $0x64] sm:$0xf]  ;;  %v1105_v48 = vshrl.u32 %v876_v43, 16  ;;  %v1108_v49 = vshll.u32 %v876_v43, 16 }
  0x27   : > { %v1015_v50 = vor.u32 %v1014_v41, %v1011_v40  ;;  %v1030_v51 = vrot.slane %v1028_v42, 5  ;;  %v901_v52 = vld [vmem:[#allocation2 + $0x68] sm:$0x1]  ;;  %v1114_v53 = vshll.u32 %v877_v47, 16  ;;  %v1118_v54 = vshrl.u32 %v877_v47, 16 }
  0x28   : > { %v1025_v56 = vor.u32 %v1024_v46, %v1020_v45  ;;  %v1107_v57 = vrot.slane %v1105_v48, 4  ;;  %v1110_v58 = vrot.slane %v1108_v49, 5  ;;  %v1124_v59 = vshll.u32 %v901_v52, 16  ;;  %v884_v60 = vld [vmem:[#allocation2 + $0x90] sm:$0xf]  ;;  %v254_v46 = vld [vmem:[%s5657_s23 + $0x88] sm:$0xff] }
  0x29   : > { %v1016_v61 = vrot.slane %v1015_v50, 4  ;;  %v1116_v62 = vrot.slane %v1114_v53, 5  ;;  %v1120_v63 = vrot.slane %v1118_v54, 4  ;;  %v885_v0 = vld [vmem:[#allocation2 + $0x94] sm:$0xf]  ;;  %v1201_v8 = vshrl.u32 %v884_v60, 16 }
  0x2a   : > { %v1026_v2 = vrot.slane %v1025_v56, 4  ;;  %v1111_v4 = vor.u32 %v1110_v58, %v1107_v57  ;;  %v1126_v7 = vrot.slane %v1124_v59, 5  ;;  %v905_v13 = vld [vmem:[#allocation2 + $0x98] sm:$0x1]  ;;  %v1204_v14 = vshll.u32 %v884_v60, 16 }
  0x2b   : > { %v1021_v10 = vsel %vm5738_vm13, %v1016_v61, %v1020_v45  ;;  %v1121_v11 = vor.u32 %v1120_v63, %v1116_v62  ;;  %v1210_v15 = vshll.u32 %v885_v0, 16  ;;  %339 = vst [vmem:[#allocation2 + $0x8] sm:$0x1] %v338_v44  ;;  %v1203_v20 = vrot.slane %v1201_v8, 4  ;;  %v860_v22 = vld [vmem:[#allocation2] sm:$0xf] }
  0x2c   : > { %v1031_v16 = vsel %vm5738_vm13, %v1026_v2, %v1030_v51  ;;  %v1306_v17 = vunpack.c.l.b16 %v1021_v10  ;;  %v1112_v18 = vrot.slane %v1111_v4, 4  ;;  %275 = vst.msk [vmem:[#allocation2 + $0xcc] sm:$0xf] %vm269_vm5, %v5590_v12  ;;  %v1206_v25 = vrot.slane %v1204_v14, 5  ;;  %v892_v26 = vld [vmem:[%s7151_s3] sm:$0x3] }
  0x2d   : > { %v1307_v23 = vunpack.c.l.b16 %v1031_v16  ;;  %v1122_v24 = vrot.slane %v1121_v11, 4  ;;  %276 = vst.msk [vmem:[#allocation2 + $0xd0] sm:$0xf] %vm269_vm5, %v5590_v12  ;;  %v1212_v31 = vrot.slane %v1210_v15, 5  ;;  %v1214_v32 = vshrl.u32 %v885_v0, 16 }
  0x2e   : > { %v1117_v30 = vsel %vm5738_vm13, %v1112_v18, %v1116_v62  ;;  %v1220_v34 = vshll.u32 %v905_v13, 16  ;;  %277 = vst.msk [vmem:[#allocation2 + $0xd4] sm:$0x1] %vm272_vm1, %v5590_v12  ;;  %v1207_v40 = vor.u32 %v1206_v25, %v1203_v20  ;;  %v5281_v41 = vld [vmem:[%s7151_s3 + $0x8] sm:$0x3]  ;;  %v913_v45 = vshrl.u32 %v860_v22, 16 }
  0x2f   : > { %v1334_v35 = vpack.c.b16 %v1307_v23, %v1306_v17  ;;  %v1127_v36 = vsel %vm5738_vm13, %v1122_v24, %v1126_v7  ;;  %v1314_v37 = vunpack.c.l.b16 %v1117_v30  ;;  %v1216_v43 = vrot.slane %v1214_v32, 4  ;;  %v296_v50 = vld [vmem:[#allocation2 + $0x3c] sm:$0x1]  ;;  %v352_v57 = vld [vmem:[#allocation2 + $0x44] sm:$0x1] }
  0x30   : > { %v1315_v42 = vunpack.c.l.b16 %v1127_v36  ;;  %v1222_v44 = vrot.slane %v1220_v34, 5  ;;  %v1208_v47 = vrot.slane %v1207_v40, 4  ;;  %v916_v48 = vshll.u32 %v860_v22, 16  ;;  %v308_v63 = vld [vmem:[#allocation2 + $0x6c] sm:$0x1] }
  0x31   : > { %5075 = vmatmul.msk.bf16.vlgmr.msra.gmra.mxu1 %vm1346_vm12, %v1334_v35  ;;  %v928_v12 = vrot.slane %v926_v29, 4  ;;  %v1617_v49 = vsel %vm1395_vm0, %v892_v26, 0  ;;  %v1217_v52 = vor.u32 %v1216_v43, %v1212_v31  ;;  %v915_v54 = vrot.slane %v913_v45, 4  ;;  %v364_v0 = vld [vmem:[#allocation2 + $0x74] sm:$0x1]  ;;  %v262_v36 = vld [vmem:[%s5657_s23 + $0xc8] sm:$0xff] }
  0x32   : > { %v1338_v51 = vpack.c.b16 %v1315_v42, %v1314_v37  ;;  %v893_v53 = vld [vmem:[#allocation2 + $0x8] sm:$0x1]  ;;  %1626 = vmatpush.bf16.msrb.mxu1 %v1617_v49  ;;  %v2910_v56 = vsel %vm1395_vm0, %v5281_v41, 0  ;;  %v1213_v58 = vsel %vm5738_vm13, %v1208_v47, %v1212_v31  ;;  %v918_v59 = vrot.slane %v916_v48, 5  ;;  %v320_v24 = vld [vmem:[#allocation2 + $0x9c] sm:$0x1] }
  0x33   : > { %v929_v60 = vor.u32 %v928_v12, %v5742_v1  ;;  %v932_v61 = vshll.u32 %v893_v53, 16  ;;  %2919 = vmatpush.bf16.msrb.mxu0 %v2910_v56  ;;  %v1218_v21 = vrot.slane %v1217_v52, 4  ;;  %v1322_v29 = vunpack.c.l.b16 %v1213_v58  ;;  %v261_v31 = vld [vmem:[%s5657_s23 + $0xc0] sm:$0xff]  ;;  %v284_v43 = vld [vmem:[#allocation2 + $0xc] sm:$0x1] }
  0x34   : > { %5079 = vmatmul.msk.bf16.vlgmr.msra.gmra.mxu2 %vm1346_vm12, %v1338_v51  ;;  %v297_v62 = vsel %vm5637_vm3, 0, %v296_v50  ;;  %v408_v2 = vpack.c.bf16 %v254_v46, %v254_v46  ;;  %v919_v4 = vor.u32 %v918_v59, %v915_v54  ;;  %v353_v9 = vsel %vm5645_vm6, 0, %v352_v57  ;;  %v376_v32 = vld [vmem:[#allocation2 + $0xa4] sm:$0x1]  ;;  %v238_v48 = vld [vmem:[%s5657_s23 + $0x8] sm:$0xff] }
  0x35   : > { %v930_v7 = vrot.slane %v929_v60, 4  ;;  %v934_v8 = vrot.slane %v932_v61, 5  ;;  %298 = vst [vmem:[#allocation2 + $0x3c] sm:$0x1] %v297_v62  ;;  %v1223_v10 = vsel %vm5738_vm13, %v1218_v21, %v1222_v44  ;;  %v496_v11 = vrot.slane %v494_v19, 7  ;;  %v237_v37 = vld [vmem:[%s5657_s23] sm:$0xff] }
  0x36   : > { %354 = vst [vmem:[#allocation2 + $0x44] sm:$0x1] %v353_v9  ;;  %v502_v13 = vshrl.u32 %v5732_v38, 16  ;;  %v505_v14 = vshll.u32 %v5732_v38, 16  ;;  %v1323_v15 = vunpack.c.l.b16 %v1223_v10  ;;  %v920_v16 = vrot.slane %v919_v4, 4 }
  0x37   : > { %v935_v17 = vsel %vm5738_vm13, %v930_v7, %v934_v8  ;;  %v309_v18 = vsel %vm5637_vm3, 0, %v308_v63  ;;  %v499_v22 = vor.u32 %v497_v27, %v496_v11  ;;  %v500_v23 = vrot.slane %v496_v11, 4  ;;  %v340_v58 = vld [vmem:[#allocation2 + $0x14] sm:$0x1] }
  0x38   : > { %v1299_v20 = vunpack.c.l.b16 %v935_v17  ;;  %v504_v19 = vrot.slane %v502_v13, 7  ;;  %310 = vst [vmem:[#allocation2 + $0x6c] sm:$0x1] %v309_v18  ;;  %v1342_v25 = vpack.c.b16 %v1323_v15, %v1322_v29  ;;  %v925_v38 = vsel %vm5738_vm13, %v920_v16, %v5742_v1  ;;  %v247_v16 = vld [vmem:[%s5657_s23 + $0x50] sm:$0xff]  ;;  %v248_v17 = vld [vmem:[%s5657_s23 + $0x58] sm:$0xff] }
  0x39   : > { %v365_v26 = vsel %vm5645_vm6, 0, %v364_v0  ;;  %v562_v30 = vshrl.u32 %v5756_v28, 16  ;;  %v1298_v5 = vunpack.c.l.b16 %v925_v38  ;;  %v565_v35 = vshll.u32 %v5756_v28, 16 }
  0x3a   : > { %v507_v27 = vor.u32 %v505_v14, %v504_v19  ;;  %v509_v34 = vrot.slane %v504_v19, 4  ;;  %366 = vst [vmem:[#allocation2 + $0x74] sm:$0x1] %v365_v26  ;;  %5083 = vmatmul.msk.bf16.vlgmr.msra.gmra.mxu3 %vm1346_vm12, %v1342_v25  ;;  %v570_v1 = vshrl.u32 %v408_v2, 16  ;;  %v573_v41 = vshll.u32 %v408_v2, 16  ;;  %v256_v19 = vld [vmem:[%s5657_s23 + $0x98] sm:$0xff] }
  0x3b   : > { %v564_v40 = vrot.slane %v562_v30, 7  ;;  %v321_v42 = vsel %vm5637_vm3, 0, %v320_v24  ;;  %v1330_v44 = vpack.c.b16 %v1299_v20, %v1298_v5  ;;  %v377_v28 = vsel %vm5645_vm6, 0, %v376_v32 }
  0x3c   : > { %v508_v45 = vsel %vm5673_vm8, %v500_v23, %v507_v27  ;;  %v776_v46 = vld [vmem:[#allocation2 + $0x3c] sm:$0xf]  ;;  %322 = vst [vmem:[#allocation2 + $0x9c] sm:$0x1] %v321_v42  ;;  %v415_v47 = vpack.c.bf16 %v261_v31, %v261_v31  ;;  %v572_v52 = vrot.slane %v570_v1, 7  ;;  %v416_v54 = vpack.c.bf16 %v262_v36, %v262_v36  ;;  %v255_v23 = vld [vmem:[%s5657_s23 + $0x90] sm:$0xff] }
  0x3d   : > { %v777_v12 = vsel %vm5683_vm9, %v499_v22, %v776_v46  ;;  %779 = vst.msk [vmem:[#allocation2 + $0x40] sm:$0xf] %vm269_vm5, %v508_v45  ;;  %v780_v49 = vld [vmem:[#allocation2 + $0x44] sm:$0x1]  ;;  %v567_v50 = vor.u32 %v565_v35, %v564_v40  ;;  %v568_v51 = vrot.slane %v564_v40, 4  ;;  %5071 = vmatmul.msk.bf16.vlgmr.msra.gmra.mxu0 %vm1346_vm12, %v1330_v44  ;;  %v285_v21 = vsel %vm5637_vm3, 0, %v284_v43 }
  0x3e   : > { %778 = vst [vmem:[#allocation2 + $0x3c] sm:$0xf] %v777_v12  ;;  %v781_v53 = vsel %vm5637_vm3, %v509_v34, %v780_v49  ;;  %v630_v56 = vshrl.u32 %v415_v47, 16  ;;  %v633_v57 = vshll.u32 %v415_v47, 16  ;;  %v575_v59 = vor.u32 %v573_v41, %v572_v52 }
  0x3f   : > { %782 = vst [vmem:[#allocation2 + $0x44] sm:$0x1] %v781_v53  ;;  %v577_v60 = vrot.slane %v572_v52, 4  ;;  %v804_v61 = vld [vmem:[#allocation2 + $0x6c] sm:$0xf]  ;;  %v391_v29 = vpack.c.bf16 %v237_v37, %v237_v37  ;;  %v638_v0 = vshrl.u32 %v416_v54, 16  ;;  %v5825_v9 = vpack.c.bf16 %v238_v48, %v238_v48 }
  0x40   : > { %v805_v62 = vsel %vm5683_vm9, %v567_v50, %v804_v61  ;;  %378 = vst [vmem:[#allocation2 + $0xa4] sm:$0x1] %v377_v28  ;;  %v632_v63 = vrot.slane %v630_v56, 7  ;;  %v641_v2 = vshll.u32 %v416_v54, 16  ;;  %v576_v4 = vsel %vm5673_vm8, %v568_v51, %v575_v59 }
  0x41   : > { %806 = vst [vmem:[#allocation2 + $0x6c] sm:$0xf] %v805_v62  ;;  %v808_v7 = vld [vmem:[#allocation2 + $0x74] sm:$0x1]  ;;  %v341_v8 = vsel %vm5645_vm6, 0, %v340_v58  ;;  %v426_v10 = vshrl.u32 %v391_v29, 16  ;;  %v5839_v27 = vpack.c.bf16 %v247_v16, %v247_v16  ;;  %v5843_v40 = vpack.c.bf16 %v248_v17, %v248_v17 }
  0x42   : > { %807 = vst.msk [vmem:[#allocation2 + $0x70] sm:$0xf] %vm269_vm5, %v576_v4  ;;  %v809_v11 = vsel %vm5637_vm3, %v577_v60, %v808_v7  ;;  %v635_v13 = vor.u32 %v633_v57, %v632_v63  ;;  %v636_v14 = vrot.slane %v632_v63, 4  ;;  %v640_v15 = vrot.slane %v638_v0, 7 }
  0x43   : > { %810 = vst [vmem:[#allocation2 + $0x74] sm:$0x1] %v809_v11  ;;  %v832_v18 = vld [vmem:[#allocation2 + $0x9c] sm:$0xf]  ;;  %v5832_v20 = vrot.slane %v426_v10, 7  ;;  %v429_v22 = vshll.u32 %v391_v29, 16  ;;  %v5849_v47 = vpack.c.bf16 %v255_v23, %v255_v23  ;;  %v5851_v48 = vpack.c.bf16 %v256_v19, %v256_v19 }
  0x44   : > { %v871_v24 = vld [vmem:[#allocation2 + $0x40] sm:$0xf]  ;;  %v643_v25 = vor.u32 %v641_v2, %v640_v15  ;;  %v645_v38 = vrot.slane %v640_v15, 4  ;;  %v833_v26 = vsel %vm5683_vm9, %v635_v13, %v832_v18  ;;  %286 = vst [vmem:[#allocation2 + $0xc] sm:$0x1] %v285_v21  ;;  %v434_v30 = vshrl.u32 %v5825_v9, 16 }
  0x45   : > { %v870_v31 = vld [vmem:[#allocation2 + $0x3c] sm:$0xf]  ;;  %v1042_v32 = vshll.u32 %v871_v24, 16  ;;  %v1046_v5 = vshrl.u32 %v871_v24, 16  ;;  %834 = vst [vmem:[#allocation2 + $0x9c] sm:$0xf] %v833_v26  ;;  %v5847_v43 = vor.u32 %v429_v22, %v5832_v20 }
  0x46   : > { %v898_v34 = vld [vmem:[#allocation2 + $0x44] sm:$0x1]  ;;  %v1033_v35 = vshrl.u32 %v870_v31, 16  ;;  %v1036_v36 = vshll.u32 %v870_v31, 16  ;;  %v644_v37 = vsel %vm5673_vm8, %v636_v14, %v643_v25  ;;  %342 = vst [vmem:[#allocation2 + $0x14] sm:$0x1] %v341_v8 }
  0x47   : > { %v1044_v1 = vrot.slane %v1042_v32, 5  ;;  %v1048_v41 = vrot.slane %v1046_v5, 4  ;;  %v1052_v42 = vshll.u32 %v898_v34, 16  ;;  %835 = vst.msk [vmem:[#allocation2 + $0xa0] sm:$0xf] %vm269_vm5, %v644_v37  ;;  %v432_v2 = vrot.slane %v5832_v20, 4 }
  0x48   : > { %v1035_v44 = vrot.slane %v1033_v35, 4  ;;  %v1038_v45 = vrot.slane %v1036_v36, 5  ;;  %v878_v46 = vld [vmem:[#allocation2 + $0x6c] sm:$0xf]  ;;  %v836_v28 = vld [vmem:[#allocation2 + $0xa4] sm:$0x1] }
  0x49   : > { %v1049_v12 = vor.u32 %v1048_v41, %v1044_v1  ;;  %v1054_v49 = vrot.slane %v1052_v42, 5  ;;  %v879_v50 = vld [vmem:[#allocation2 + $0x70] sm:$0xf]  ;;  %v1129_v51 = vshrl.u32 %v878_v46, 16  ;;  %v1132_v52 = vshll.u32 %v878_v46, 16 }
  0x4a   : > { %v1039_v53 = vor.u32 %v1038_v45, %v1035_v44  ;;  %v902_v54 = vld [vmem:[#allocation2 + $0x74] sm:$0x1]  ;;  %v1138_v56 = vshll.u32 %v879_v50, 16  ;;  %v1142_v57 = vshrl.u32 %v879_v50, 16  ;;  %v837_v58 = vsel %vm5637_vm3, %v645_v38, %v836_v28  ;;  %v299_v42 = vld [vmem:[#allocation2 + $0x48] sm:$0x1] }
  0x4b   : > { %v1050_v59 = vrot.slane %v1049_v12, 4  ;;  %v1131_v60 = vrot.slane %v1129_v51, 4  ;;  %v1134_v61 = vrot.slane %v1132_v52, 5  ;;  %v1148_v21 = vshll.u32 %v902_v54, 16  ;;  %838 = vst [vmem:[#allocation2 + $0xa4] sm:$0x1] %v837_v58 }
  0x4c   : > { %v1040_v29 = vrot.slane %v1039_v53, 4  ;;  %v1140_v62 = vrot.slane %v1138_v56, 5  ;;  %v1144_v63 = vrot.slane %v1142_v57, 4  ;;  %v886_v0 = vld [vmem:[#allocation2 + $0x9c] sm:$0xf]  ;;  %v436_v25 = vrot.slane %v434_v30, 7 }
  0x4d   : > { %v1055_v4 = vsel %vm5738_vm13, %v1050_v59, %v1054_v49  ;;  %v1135_v7 = vor.u32 %v1134_v61, %v1131_v60  ;;  %v1150_v8 = vrot.slane %v1148_v21, 5  ;;  %v1225_v10 = vshrl.u32 %v886_v0, 16  ;;  %v263_v38 = vld [vmem:[%s5657_s23 + $0xd0] sm:$0xff]  ;;  %v748_v34 = vld [vmem:[#allocation2 + $0xc] sm:$0xf] }
  0x4e   : > { %v1045_v11 = vsel %vm5738_vm13, %v1040_v29, %v1044_v1  ;;  %v1309_v13 = vunpack.c.l.b16 %v1055_v4  ;;  %v1145_v14 = vor.u32 %v1144_v63, %v1140_v62  ;;  %v887_v15 = vld [vmem:[#allocation2 + $0xa0] sm:$0xf]  ;;  %v1228_v16 = vshll.u32 %v886_v0, 16  ;;  %v752_v46 = vld [vmem:[#allocation2 + $0x14] sm:$0x1] }
  0x4f   : > { %v1308_v17 = vunpack.c.l.b16 %v1045_v11  ;;  %v1136_v18 = vrot.slane %v1135_v7, 4  ;;  %v1227_v22 = vrot.slane %v1225_v10, 4  ;;  %v1234_v23 = vshll.u32 %v887_v15, 16  ;;  %v355_v28 = vld [vmem:[#allocation2 + $0x50] sm:$0x1] }
  0x50   : > { %v1146_v19 = vrot.slane %v1145_v14, 4  ;;  %v1230_v20 = vrot.slane %v1228_v16, 5  ;;  %v1238_v24 = vshrl.u32 %v887_v15, 16  ;;  %v437_v5 = vshll.u32 %v5825_v9, 16  ;;  %v311_v52 = vld [vmem:[#allocation2 + $0x78] sm:$0x1] }
  0x51   : > { %v1335_v26 = vpack.c.b16 %v1309_v13, %v1308_v17  ;;  %v1141_v31 = vsel %vm5738_vm13, %v1136_v18, %v1140_v62  ;;  %v1236_v32 = vrot.slane %v1234_v23, 5  ;;  %v5867_v12 = vpack.c.bf16 %v263_v38, %v263_v38  ;;  %v367_v58 = vld [vmem:[#allocation2 + $0x80] sm:$0x1]  ;;  %v323_v21 = vld [vmem:[#allocation2 + $0xa8] sm:$0x1]  ;;  %v264_v15 = vld [vmem:[%s5657_s23 + $0xd8] sm:$0xff] }
  0x52   : > { %v1151_v35 = vsel %vm5738_vm13, %v1146_v19, %v1150_v8  ;;  %v1316_v36 = vunpack.c.l.b16 %v1141_v31  ;;  %v906_v37 = vld [vmem:[#allocation2 + $0xa4] sm:$0x1]  ;;  %v1231_v1 = vor.u32 %v1230_v20, %v1227_v22  ;;  %v1240_v41 = vrot.slane %v1238_v24, 4 }
  0x53   : > { %5076 = vmatmul.msk.bf16.gmra.mxu1 %vm1346_vm12, %v1335_v26  ;;  %v1317_v30 = vunpack.c.l.b16 %v1151_v35  ;;  %v1244_v44 = vshll.u32 %v906_v37, 16  ;;  %v439_v45 = vor.u32 %v437_v5, %v436_v25  ;;  %v441_v50 = vrot.slane %v436_v25, 4 }
  0x54   : > { %v1232_v49 = vrot.slane %v1231_v1, 4  ;;  %v1241_v9 = vor.u32 %v1240_v41, %v1236_v32  ;;  %v749_v51 = vsel %vm5683_vm9, %v5847_v43, %v748_v34  ;;  %v300_v57 = vsel %vm5637_vm3, 0, %v299_v42 }
  0x55   : > { %v1339_v53 = vpack.c.b16 %v1317_v30, %v1316_v36  ;;  %v1246_v54 = vrot.slane %v1244_v44, 5  ;;  %v440_v56 = vsel %vm5673_vm8, %v432_v2, %v439_v45  ;;  %750 = vst [vmem:[#allocation2 + $0xc] sm:$0xf] %v749_v51  ;;  %v753_v43 = vsel %vm5637_vm3, %v441_v50, %v752_v46  ;;  %v5887_v2 = vld [vmem:[#allocation2 + $0xb0] sm:$0x1] }
  0x56   : > { %v1237_v59 = vsel %vm5738_vm13, %v1232_v49, %v1236_v32  ;;  %v1242_v60 = vrot.slane %v1241_v9, 4  ;;  %751 = vst.msk [vmem:[#allocation2 + $0x10] sm:$0xf] %vm269_vm5, %v440_v56  ;;  %v356_v61 = vsel %vm5645_vm6, 0, %v355_v28  ;;  %v511_v62 = vshrl.u32 %v5839_v27, 16 }
  0x57   : > { %5080 = vmatmul.msk.bf16.gmra.mxu2 %vm1346_vm12, %v1339_v53  ;;  %v1324_v29 = vunpack.c.l.b16 %v1237_v59  ;;  %754 = vst [vmem:[#allocation2 + $0x14] sm:$0x1] %v753_v43  ;;  %v514_v63 = vshll.u32 %v5839_v27, 16  ;;  %v519_v0 = vshrl.u32 %v5843_v40, 16  ;;  %v522_v7 = vshll.u32 %v5843_v40, 16 }
  0x58   : > { %v1247_v4 = vsel %vm5738_vm13, %v1242_v60, %v1246_v54  ;;  %301 = vst [vmem:[#allocation2 + $0x48] sm:$0x1] %v300_v57  ;;  %v312_v8 = vsel %vm5637_vm3, 0, %v311_v52  ;;  %v368_v10 = vsel %vm5645_vm6, 0, %v367_v58  ;;  %v513_v13 = vrot.slane %v511_v62, 7  ;;  %v239_v52 = vld [vmem:[%s5657_s23 + $0x10] sm:$0xff] }
  0x59   : > { %v1325_v11 = vunpack.c.l.b16 %v1247_v4  ;;  %357 = vst [vmem:[#allocation2 + $0x50] sm:$0x1] %v356_v61  ;;  %v521_v27 = vrot.slane %v519_v0, 7  ;;  %v579_v14 = vshrl.u32 %v5849_v47, 16  ;;  %v582_v16 = vshll.u32 %v5849_v47, 16  ;;  %v240_v60 = vld [vmem:[%s5657_s23 + $0x18] sm:$0xff] }
  0x5a   : > { %313 = vst [vmem:[#allocation2 + $0x78] sm:$0x1] %v312_v8  ;;  %v587_v17 = vshrl.u32 %v5851_v48, 16  ;;  %v590_v40 = vshll.u32 %v5851_v48, 16  ;;  %v324_v18 = vsel %vm5637_vm3, 0, %v323_v21  ;;  %v516_v23 = vor.u32 %v514_v63, %v513_v13 }
  0x5b   : > { %v1343_v22 = vpack.c.b16 %v1325_v11, %v1324_v29  ;;  %v517_v19 = vrot.slane %v513_v13, 4  ;;  %v524_v20 = vor.u32 %v522_v7, %v521_v27  ;;  %369 = vst [vmem:[#allocation2 + $0x80] sm:$0x1] %v368_v10  ;;  %v526_v25 = vrot.slane %v521_v27, 4  ;;  %v287_v53 = vld [vmem:[#allocation2 + $0x18] sm:$0x1] }
  0x5c   : > { %v862_v24 = vld [vmem:[#allocation2 + $0xc] sm:$0xf]  ;;  %v581_v38 = vrot.slane %v579_v14, 7  ;;  %v589_v26 = vrot.slane %v587_v17, 7  ;;  %v380_v47 = vsel %vm5645_vm6, 0, %v5887_v2  ;;  %v418_v34 = vpack.c.bf16 %v264_v15, %v264_v15 }
  0x5d   : > { %5084 = vmatmul.msk.bf16.gmra.mxu3 %vm1346_vm12, %v1343_v22  ;;  %v5907_v31 = vld [vmem:[#allocation2 + $0x10] sm:$0xf]  ;;  %v937_v48 = vshrl.u32 %v862_v24, 16  ;;  %v940_v32 = vshll.u32 %v862_v24, 16  ;;  %v525_v5 = vsel %vm5673_vm8, %v517_v19, %v524_v20  ;;  %325 = vst [vmem:[#allocation2 + $0xa8] sm:$0x1] %v324_v18  ;;  %v5932_v11 = vpack.c.bf16 %v239_v52, %v239_v52 }
  0x5e   : > { %v5911_v35 = vld [vmem:[#allocation2 + $0x14] sm:$0x1]  ;;  %v946_v36 = vshll.u32 %v5907_v31, 16  ;;  %v950_v37 = vshrl.u32 %v5907_v31, 16  ;;  %786 = vst.msk [vmem:[#allocation2 + $0x4c] sm:$0xf] %vm269_vm5, %v525_v5  ;;  %v584_v1 = vor.u32 %v582_v16, %v581_v38  ;;  %v592_v41 = vor.u32 %v590_v40, %v589_v26 }
  0x5f   : > { %v939_v42 = vrot.slane %v937_v48, 4  ;;  %v942_v30 = vrot.slane %v940_v32, 5  ;;  %v956_v44 = vshll.u32 %v5911_v35, 16  ;;  %v783_v45 = vld [vmem:[#allocation2 + $0x48] sm:$0xf]  ;;  %v585_v46 = vrot.slane %v581_v38, 4 }
  0x60   : > { %v948_v28 = vrot.slane %v946_v36, 5  ;;  %v952_v49 = vrot.slane %v950_v37, 4  ;;  %v784_v9 = vsel %vm5683_vm9, %v516_v23, %v783_v45  ;;  %v787_v50 = vld [vmem:[#allocation2 + $0x50] sm:$0x1]  ;;  %v594_v51 = vrot.slane %v589_v26, 4 }
  0x61   : > { %v943_v54 = vor.u32 %v942_v30, %v939_v42  ;;  %v958_v56 = vrot.slane %v956_v44, 5  ;;  %785 = vst [vmem:[#allocation2 + $0x48] sm:$0xf] %v784_v9  ;;  %v788_v57 = vsel %vm5637_vm3, %v526_v25, %v787_v50  ;;  %v593_v58 = vsel %vm5673_vm8, %v585_v46, %v592_v41  ;;  %v811_v59 = vld [vmem:[#allocation2 + $0x78] sm:$0xf] }
  0x62   : > { %v953_v43 = vor.u32 %v952_v49, %v948_v28  ;;  %789 = vst [vmem:[#allocation2 + $0x50] sm:$0x1] %v788_v57  ;;  %v812_v61 = vsel %vm5683_vm9, %v584_v1, %v811_v59  ;;  %v815_v21 = vld [vmem:[#allocation2 + $0x80] sm:$0x1]  ;;  %v647_v29 = vshrl.u32 %v5867_v12, 16  ;;  %v650_v62 = vshll.u32 %v5867_v12, 16 }
  0x63   : > { %v944_v63 = vrot.slane %v943_v54, 4  ;;  %813 = vst [vmem:[#allocation2 + $0x78] sm:$0xf] %v812_v61  ;;  %v816_v0 = vsel %vm5637_vm3, %v594_v51, %v815_v21  ;;  %v655_v2 = vshrl.u32 %v418_v34, 16  ;;  %v658_v4 = vshll.u32 %v418_v34, 16  ;;  %v249_v1 = vld [vmem:[%s5657_s23 + $0x60] sm:$0xff] }
  0x64   : > { %v954_v7 = vrot.slane %v953_v43, 4  ;;  %814 = vst.msk [vmem:[#allocation2 + $0x7c] sm:$0xf] %vm269_vm5, %v593_v58  ;;  %v649_v8 = vrot.slane %v647_v29, 7  ;;  %v343_v10 = vld [vmem:[#allocation2 + $0x20] sm:$0x1]  ;;  %v5938_v15 = vpack.c.bf16 %v240_v60, %v240_v60 }
  0x65   : > { %v949_v13 = vsel %vm5738_vm13, %v944_v63, %v948_v28  ;;  %v873_v27 = vld [vmem:[#allocation2 + $0x4c] sm:$0xf]  ;;  %817 = vst [vmem:[#allocation2 + $0x80] sm:$0x1] %v816_v0  ;;  %v657_v12 = vrot.slane %v655_v2, 7  ;;  %v288_v14 = vsel %vm5637_vm3, 0, %v287_v53  ;;  %v5955_v63 = vpack.c.bf16 %v249_v1, %v249_v1 }
  0x66   : > { %v959_v16 = vsel %vm5738_vm13, %v954_v7, %v958_v56  ;;  %v1300_v17 = vunpack.c.l.b16 %v949_v13  ;;  %v1066_v40 = vshll.u32 %v873_v27, 16  ;;  %v1070_v18 = vshrl.u32 %v873_v27, 16  ;;  %381 = vst [vmem:[#allocation2 + $0xb0] sm:$0x1] %v380_v47  ;;  %v839_v24 = vld [vmem:[#allocation2 + $0xa8] sm:$0xf] }
  0x67   : > { %v1301_v22 = vunpack.c.l.b16 %v959_v16  ;;  %v652_v23 = vor.u32 %v650_v62, %v649_v8  ;;  %v653_v19 = vrot.slane %v649_v8, 4  ;;  %v660_v20 = vor.u32 %v658_v4, %v657_v12  ;;  %289 = vst [vmem:[#allocation2 + $0x18] sm:$0x1] %v288_v14  ;;  %v250_v62 = vld [vmem:[%s5657_s23 + $0x68] sm:$0xff] }
  0x68   : > { %v872_v25 = vld [vmem:[#allocation2 + $0x48] sm:$0xf]  ;;  %v1068_v38 = vrot.slane %v1066_v40, 5  ;;  %v1072_v26 = vrot.slane %v1070_v18, 4  ;;  %v662_v48 = vrot.slane %v657_v12, 4  ;;  %v344_v32 = vsel %vm5645_vm6, 0, %v343_v10 }
  0x69   : > { %v1331_v5 = vpack.c.b16 %v1301_v22, %v1300_v17  ;;  %v899_v34 = vld [vmem:[#allocation2 + $0x50] sm:$0x1]  ;;  %v1057_v36 = vshrl.u32 %v872_v25, 16  ;;  %v1060_v37 = vshll.u32 %v872_v25, 16  ;;  %v661_v47 = vsel %vm5673_vm8, %v653_v19, %v660_v20  ;;  %345 = vst [vmem:[#allocation2 + $0x20] sm:$0x1] %v344_v32 }
  0x6a   : > { %v1073_v41 = vor.u32 %v1072_v26, %v1068_v38  ;;  %v1076_v42 = vshll.u32 %v899_v34, 16  ;;  %v880_v30 = vld [vmem:[#allocation2 + $0x78] sm:$0xf]  ;;  %v840_v44 = vsel %vm5683_vm9, %v652_v23, %v839_v24  ;;  %842 = vst.msk [vmem:[#allocation2 + $0xac] sm:$0xf] %vm269_vm5, %v661_v47  ;;  %v443_v45 = vshrl.u32 %v5932_v11, 16 }
  0x6b   : > { %5072 = vmatmul.msk.bf16.gmra.mxu0 %vm1346_vm12, %v1331_v5  ;;  %v1059_v46 = vrot.slane %v1057_v36, 4  ;;  %v1062_v28 = vrot.slane %v1060_v37, 5  ;;  %v881_v49 = vld [vmem:[#allocation2 + $0x7c] sm:$0xf]  ;;  %v1153_v9 = vshrl.u32 %v880_v30, 16  ;;  %v1156_v50 = vshll.u32 %v880_v30, 16 }
  0x6c   : > { %v1074_v51 = vrot.slane %v1073_v41, 4  ;;  %v1078_v52 = vrot.slane %v1076_v42, 5  ;;  %v903_v53 = vld [vmem:[#allocation2 + $0x80] sm:$0x1]  ;;  %v1162_v54 = vshll.u32 %v881_v49, 16  ;;  %v1166_v56 = vshrl.u32 %v881_v49, 16 }
  0x6d   : > { %v1063_v57 = vor.u32 %v1062_v28, %v1059_v46  ;;  %v1155_v58 = vrot.slane %v1153_v9, 4  ;;  %v1158_v59 = vrot.slane %v1156_v50, 5  ;;  %v1172_v60 = vshll.u32 %v903_v53, 16  ;;  %841 = vst [vmem:[#allocation2 + $0xa8] sm:$0xf] %v840_v44  ;;  %v257_v49 = vld [vmem:[%s5657_s23 + $0xa0] sm:$0xff] }
  0x6e   : > { %v1079_v43 = vsel %vm5738_vm13, %v1074_v51, %v1078_v52  ;;  %v1164_v61 = vrot.slane %v1162_v54, 5  ;;  %v1168_v21 = vrot.slane %v1166_v56, 4  ;;  %v843_v29 = vld [vmem:[#allocation2 + $0xb0] sm:$0x1]  ;;  %v445_v13 = vrot.slane %v443_v45, 7 }
  0x6f   : > { %v1064_v0 = vrot.slane %v1063_v57, 4  ;;  %v1311_v2 = vunpack.c.l.b16 %v1079_v43  ;;  %v1159_v4 = vor.u32 %v1158_v59, %v1155_v58  ;;  %v1174_v7 = vrot.slane %v1172_v60, 5  ;;  %v755_v26 = vld [vmem:[#allocation2 + $0x18] sm:$0xf]  ;;  %v358_v37 = vld [vmem:[#allocation2 + $0x5c] sm:$0x1] }
  0x70   : > { %v1169_v8 = vor.u32 %v1168_v21, %v1164_v61  ;;  %v844_v10 = vsel %vm5637_vm3, %v662_v48, %v843_v29  ;;  %v446_v27 = vshll.u32 %v5932_v11, 16  ;;  %v451_v17 = vshrl.u32 %v5938_v15, 16  ;;  %v302_v48 = vld [vmem:[#allocation2 + $0x54] sm:$0x1]  ;;  %v759_v30 = vld [vmem:[#allocation2 + $0x20] sm:$0x1] }
  0x71   : > { %v1069_v12 = vsel %vm5738_vm13, %v1064_v0, %v1068_v38  ;;  %v1160_v14 = vrot.slane %v1159_v4, 4  ;;  %845 = vst [vmem:[#allocation2 + $0xb0] sm:$0x1] %v844_v10  ;;  %v889_v16 = vld [vmem:[#allocation2 + $0xac] sm:$0xf]  ;;  %v5963_v40 = vpack.c.bf16 %v250_v62, %v250_v62  ;;  %v449_v25 = vrot.slane %v445_v13, 4 }
  0x72   : > { %v1310_v18 = vunpack.c.l.b16 %v1069_v12  ;;  %v1170_v22 = vrot.slane %v1169_v8, 4  ;;  %v1258_v23 = vshll.u32 %v889_v16, 16  ;;  %v1262_v19 = vshrl.u32 %v889_v16, 16  ;;  %v314_v53 = vld [vmem:[#allocation2 + $0x84] sm:$0x1]  ;;  %v258_v4 = vld [vmem:[%s5657_s23 + $0xa8] sm:$0xff] }
  0x73   : > { %v1165_v20 = vsel %vm5738_vm13, %v1160_v14, %v1164_v61  ;;  %v448_v24 = vor.u32 %v446_v27, %v445_v13  ;;  %v453_v11 = vrot.slane %v451_v17, 7  ;;  %v454_v44 = vshll.u32 %v5938_v15, 16  ;;  %v370_v61 = vld [vmem:[#allocation2 + $0x8c] sm:$0x1] }
  0x74   : > { %v1336_v38 = vpack.c.b16 %v1311_v2, %v1310_v18  ;;  %v1175_v32 = vsel %vm5738_vm13, %v1170_v22, %v1174_v7  ;;  %v1318_v5 = vunpack.c.l.b16 %v1165_v20  ;;  %v888_v34 = vld [vmem:[#allocation2 + $0xa8] sm:$0xf]  ;;  %v1260_v36 = vrot.slane %v1258_v23, 5  ;;  %v265_v22 = vld [vmem:[%s5657_s23 + $0xe0] sm:$0xff] }
  0x75   : > { %v1319_v47 = vunpack.c.l.b16 %v1175_v32  ;;  %v1249_v1 = vshrl.u32 %v888_v34, 16  ;;  %v1252_v41 = vshll.u32 %v888_v34, 16  ;;  %v1264_v42 = vrot.slane %v1262_v19, 4  ;;  %v5480_v39 = vld [vmem:[#allocation2 + $0xa8] sm:$0xff] }
  0x76   : > { %5077 = vmatmul.msk.bf16.gmra.mxu1 %vm1346_vm12, %v1336_v38  ;;  %v458_v45 = vrot.slane %v453_v11, 4  ;;  %v756_v46 = vsel %vm5683_vm9, %v448_v24, %v755_v26  ;;  %v303_v28 = vsel %vm5637_vm3, 0, %v302_v48  ;;  %v456_v56 = vor.u32 %v454_v44, %v453_v11  ;;  %v266_v11 = vld [vmem:[%s5657_s23 + $0xe8] sm:$0xff]  ;;  %v241_v26 = vld [vmem:[%s5657_s23 + $0x20] sm:$0xff] }
  0x77   : > { %v1340_v9 = vpack.c.b16 %v1319_v47, %v1318_v5  ;;  %v1251_v50 = vrot.slane %v1249_v1, 4  ;;  %v1254_v51 = vrot.slane %v1252_v41, 5  ;;  %v1265_v52 = vor.u32 %v1264_v42, %v1260_v36  ;;  %757 = vst [vmem:[#allocation2 + $0x18] sm:$0xf] %v756_v46  ;;  %v326_v46 = vld [vmem:[#allocation2 + $0xb4] sm:$0x1] }
  0x78   : > { %v907_v54 = vld [vmem:[#allocation2 + $0xb0] sm:$0x1]  ;;  %v760_v57 = vsel %vm5637_vm3, %v458_v45, %v759_v30  ;;  %304 = vst [vmem:[#allocation2 + $0x54] sm:$0x1] %v303_v28  ;;  %v359_v15 = vsel %vm5645_vm6, 0, %v358_v37  ;;  %v528_v58 = vshrl.u32 %v5955_v63, 16  ;;  %v411_v21 = vpack.c.bf16 %v257_v49, %v257_v49 }
  0x79   : > { %5081 = vmatmul.msk.bf16.gmra.mxu2 %vm1346_vm12, %v1340_v9  ;;  %v1255_v59 = vor.u32 %v1254_v51, %v1251_v50  ;;  %v1266_v60 = vrot.slane %v1265_v52, 4  ;;  %v1268_v43 = vshll.u32 %v907_v54, 16  ;;  %761 = vst [vmem:[#allocation2 + $0x20] sm:$0x1] %v760_v57  ;;  %v457_v29 = vsel %vm5673_vm8, %v449_v25, %v456_v56  ;;  %v382_v28 = vld [vmem:[#allocation2 + $0xbc] sm:$0x1] }
  0x7a   : > { %360 = vst [vmem:[#allocation2 + $0x5c] sm:$0x1] %v359_v15  ;;  %v530_v62 = vrot.slane %v528_v58, 7  ;;  %v531_v0 = vshll.u32 %v5955_v63, 16  ;;  %v536_v2 = vshrl.u32 %v5963_v40, 16  ;;  %v539_v10 = vshll.u32 %v5963_v40, 16 }
  0x7b   : > { %v1256_v7 = vrot.slane %v1255_v59, 4  ;;  %v1270_v8 = vrot.slane %v1268_v43, 5  ;;  %758 = vst.msk [vmem:[#allocation2 + $0x1c] sm:$0xf] %vm269_vm5, %v457_v29  ;;  %v315_v13 = vsel %vm5637_vm3, 0, %v314_v53  ;;  %v371_v63 = vsel %vm5645_vm6, 0, %v370_v61 }
  0x7c   : > { %v533_v27 = vor.u32 %v531_v0, %v530_v62  ;;  %v534_v12 = vrot.slane %v530_v62, 4  ;;  %v538_v14 = vrot.slane %v536_v2, 7  ;;  %316 = vst [vmem:[#allocation2 + $0x84] sm:$0x1] %v315_v13  ;;  %v412_v40 = vpack.c.bf16 %v258_v4, %v258_v4 }
  0x7d   : > { %v1261_v16 = vsel %vm5738_vm13, %v1256_v7, %v1260_v36  ;;  %v1271_v17 = vsel %vm5738_vm13, %v1266_v60, %v1270_v8  ;;  %372 = vst [vmem:[#allocation2 + $0x8c] sm:$0x1] %v371_v63  ;;  %v596_v18 = vshrl.u32 %v411_v21, 16  ;;  %v599_v34 = vshll.u32 %v411_v21, 16 }
  0x7e   : > { %v1326_v23 = vunpack.c.l.b16 %v1261_v16  ;;  %v1327_v19 = vunpack.c.l.b16 %v1271_v17  ;;  %v864_v20 = vld [vmem:[#allocation2 + $0x18] sm:$0xf]  ;;  %v541_v24 = vor.u32 %v539_v10, %v538_v14  ;;  %v543_v25 = vrot.slane %v538_v14, 4 }
  0x7f   : > { %v961_v48 = vshrl.u32 %v864_v20, 16  ;;  %v964_v38 = vshll.u32 %v864_v20, 16  ;;  %v790_v32 = vld [vmem:[#allocation2 + $0x54] sm:$0xf]  ;;  %v598_v5 = vrot.slane %v596_v18, 7  ;;  %v604_v41 = vshrl.u32 %v412_v40, 16 }
  0x80   : > { %v1344_v36 = vpack.c.b16 %v1327_v19, %v1326_v23  ;;  %v6000_v37 = vld [vmem:[#allocation2 + $0x20] sm:$0x1]  ;;  %v542_v47 = vsel %vm5673_vm8, %v534_v12, %v541_v24  ;;  %v791_v1 = vsel %vm5683_vm9, %v533_v27, %v790_v32  ;;  %v419_v50 = vpack.c.bf16 %v265_v22, %v265_v22 }
  0x81   : > { %v963_v42 = vrot.slane %v961_v48, 4  ;;  %v966_v30 = vrot.slane %v964_v38, 5  ;;  %v980_v44 = vshll.u32 %v6000_v37, 16  ;;  %792 = vst [vmem:[#allocation2 + $0x54] sm:$0xf] %v791_v1  ;;  %v601_v45 = vor.u32 %v599_v34, %v598_v5 }
  0x82   : > { %5085 = vmatmul.msk.bf16.gmra.mxu3 %vm1346_vm12, %v1344_v36  ;;  %v6008_v49 = vld [vmem:[#allocation2 + $0x1c] sm:$0xf]  ;;  %793 = vst.msk [vmem:[#allocation2 + $0x58] sm:$0xf] %vm269_vm5, %v542_v47  ;;  %v420_v51 = vpack.c.bf16 %v266_v11, %v266_v11  ;;  %v6011_v52 = vpack.c.bf16 %v241_v26, %v241_v26  ;;  %v602_v59 = vrot.slane %v598_v5, 4  ;;  %v606_v60 = vrot.slane %v604_v41, 7 }
  0x83   : > { %v794_v9 = vld [vmem:[#allocation2 + $0x5c] sm:$0x1]  ;;  %v967_v53 = vor.u32 %v966_v30, %v963_v42  ;;  %v970_v54 = vshll.u32 %v6008_v49, 16  ;;  %v974_v56 = vshrl.u32 %v6008_v49, 16  ;;  %v982_v57 = vrot.slane %v980_v44, 5  ;;  %v242_v42 = vld [vmem:[%s5657_s23 + $0x28] sm:$0xff] }
  0x84   : > { %v818_v15 = vld [vmem:[#allocation2 + $0x84] sm:$0xf]  ;;  %v795_v58 = vsel %vm5637_vm3, %v543_v25, %v794_v9  ;;  %v607_v43 = vshll.u32 %v412_v40, 16  ;;  %v822_v61 = vld [vmem:[#allocation2 + $0x8c] sm:$0x1]  ;;  %v611_v4 = vrot.slane %v606_v60, 4 }
  0x85   : > { %v968_v21 = vrot.slane %v967_v53, 4  ;;  %v972_v29 = vrot.slane %v970_v54, 5  ;;  %v976_v62 = vrot.slane %v974_v56, 4  ;;  %796 = vst [vmem:[#allocation2 + $0x5c] sm:$0x1] %v795_v58  ;;  %v819_v0 = vsel %vm5683_vm9, %v601_v45, %v818_v15 }
  0x86   : > { %v609_v2 = vor.u32 %v607_v43, %v606_v60  ;;  %820 = vst [vmem:[#allocation2 + $0x84] sm:$0xf] %v819_v0  ;;  %v327_v7 = vsel %vm5637_vm3, 0, %v326_v46  ;;  %v383_v8 = vsel %vm5645_vm6, 0, %v382_v28  ;;  %v664_v27 = vshrl.u32 %v419_v50, 16 }
  0x87   : > { %v973_v10 = vsel %vm5738_vm13, %v968_v21, %v972_v29  ;;  %v977_v13 = vor.u32 %v976_v62, %v972_v29  ;;  %328 = vst [vmem:[#allocation2 + $0xb4] sm:$0x1] %v327_v7  ;;  %v667_v12 = vshll.u32 %v419_v50, 16  ;;  %v823_v17 = vsel %vm5637_vm3, %v611_v4, %v822_v61  ;;  %v290_v9 = vld [vmem:[#allocation2 + $0x24] sm:$0x1] }
  0x88   : > { %v1302_v14 = vunpack.c.l.b16 %v973_v10  ;;  %v874_v63 = vld [vmem:[#allocation2 + $0x54] sm:$0xf]  ;;  %v610_v16 = vsel %vm5673_vm8, %v602_v59, %v609_v2  ;;  %384 = vst [vmem:[#allocation2 + $0xbc] sm:$0x1] %v383_v8  ;;  %v672_v40 = vshrl.u32 %v420_v51, 16  ;;  %v666_v20 = vrot.slane %v664_v27, 7 }
  0x89   : > { %v978_v18 = vrot.slane %v977_v13, 4  ;;  %v6029_v22 = vld [vmem:[#allocation2 + $0x58] sm:$0xf]  ;;  %v1081_v23 = vshrl.u32 %v874_v63, 16  ;;  %v1084_v19 = vshll.u32 %v874_v63, 16  ;;  %v675_v26 = vshll.u32 %v420_v51, 16 }
  0x8a   : > { %v1090_v24 = vshll.u32 %v6029_v22, 16  ;;  %v1094_v25 = vshrl.u32 %v6029_v22, 16  ;;  %821 = vst.msk [vmem:[#allocation2 + $0x88] sm:$0xf] %vm269_vm5, %v610_v16  ;;  %v674_v11 = vrot.slane %v672_v40, 7  ;;  %v669_v5 = vor.u32 %v667_v12, %v666_v20 }
  0x8b   : > { %v983_v48 = vsel %vm5738_vm13, %v978_v18, %v982_v57  ;;  %v1083_v38 = vrot.slane %v1081_v23, 4  ;;  %v1086_v32 = vrot.slane %v1084_v19, 5  ;;  %824 = vst [vmem:[#allocation2 + $0x8c] sm:$0x1] %v823_v17  ;;  %v670_v41 = vrot.slane %v666_v20, 4 }
  0x8c   : > { %v1303_v34 = vunpack.c.l.b16 %v983_v48  ;;  %v6036_v36 = vld [vmem:[#allocation2 + $0x5c] sm:$0x1]  ;;  %v1092_v47 = vrot.slane %v1090_v24, 5  ;;  %v1096_v1 = vrot.slane %v1094_v25, 4  ;;  %v677_v46 = vor.u32 %v675_v26, %v674_v11  ;;  %v346_v57 = vld [vmem:[#allocation2 + $0x2c] sm:$0x1] }
  0x8d   : > { %v1087_v30 = vor.u32 %v1086_v32, %v1083_v38  ;;  %v1100_v44 = vshll.u32 %v6036_v36, 16  ;;  %v882_v45 = vld [vmem:[#allocation2 + $0x84] sm:$0xf]  ;;  %v679_v28 = vrot.slane %v674_v11, 4  ;;  %v291_v4 = vsel %vm5637_vm3, 0, %v290_v9 }
  0x8e   : > { %v1332_v50 = vpack.c.b16 %v1303_v34, %v1302_v14  ;;  %v1097_v51 = vor.u32 %v1096_v1, %v1092_v47  ;;  %v1177_v53 = vshrl.u32 %v882_v45, 16  ;;  %v1180_v54 = vshll.u32 %v882_v45, 16  ;;  %v846_v56 = vld [vmem:[#allocation2 + $0xb4] sm:$0xf]  ;;  %292 = vst [vmem:[#allocation2 + $0x24] sm:$0x1] %v291_v4 }
  0x8f   : > { %v1088_v15 = vrot.slane %v1087_v30, 4  ;;  %v1102_v58 = vrot.slane %v1100_v44, 5  ;;  %v678_v59 = vsel %vm5673_vm8, %v670_v41, %v677_v46  ;;  %v847_v60 = vsel %vm5683_vm9, %v669_v5, %v846_v56  ;;  %v850_v43 = vld [vmem:[#allocation2 + $0xbc] sm:$0x1]  ;;  %v1708_v44 = vld [vmem:[#allocation2] sm:$0xe] }
  0x90   : > { %5073 = vmatmul.msk.bf16.gmra.mxu0 %vm1346_vm12, %v1332_v50  ;;  %v1098_v61 = vrot.slane %v1097_v51, 4  ;;  %v1179_v21 = vrot.slane %v1177_v53, 4  ;;  %v1182_v29 = vrot.slane %v1180_v54, 5  ;;  %848 = vst [vmem:[#allocation2 + $0xb4] sm:$0xf] %v847_v60  ;;  %v851_v62 = vsel %vm5637_vm3, %v679_v28, %v850_v43 }
  0x91   : > { %v1093_v0 = vsel %vm5738_vm13, %v1088_v15, %v1092_v47  ;;  %v883_v2 = vld [vmem:[#allocation2 + $0x88] sm:$0xf]  ;;  %849 = vst.msk [vmem:[#allocation2 + $0xb8] sm:$0xf] %vm269_vm5, %v678_v59  ;;  %v347_v7 = vsel %vm5645_vm6, 0, %v346_v57  ;;  %v396_v8 = vpack.c.bf16 %v242_v42, %v242_v42  ;;  %v460_v23 = vshrl.u32 %v6011_v52, 16 }
  0x92   : > { %v1103_v10 = vsel %vm5738_vm13, %v1098_v61, %v1102_v58  ;;  %v1312_v13 = vunpack.c.l.b16 %v1093_v0  ;;  %v904_v27 = vld [vmem:[#allocation2 + $0x8c] sm:$0x1]  ;;  %v1183_v12 = vor.u32 %v1182_v29, %v1179_v21  ;;  %v1186_v14 = vshll.u32 %v883_v2, 16  ;;  %852 = vst [vmem:[#allocation2 + $0xbc] sm:$0x1] %v851_v62 }
  0x93   : > { %v1313_v63 = vunpack.c.l.b16 %v1103_v10  ;;  %v1190_v16 = vshrl.u32 %v883_v2, 16  ;;  %v1196_v17 = vshll.u32 %v904_v27, 16  ;;  %348 = vst [vmem:[#allocation2 + $0x2c] sm:$0x1] %v347_v7  ;;  %v463_v19 = vshll.u32 %v6011_v52, 16 }
  0x94   : > { %v1184_v40 = vrot.slane %v1183_v12, 4  ;;  %v1188_v18 = vrot.slane %v1186_v14, 5  ;;  %v468_v25 = vshrl.u32 %v396_v8, 16  ;;  %v462_v48 = vrot.slane %v460_v23, 7  ;;  %v5331_v43 = vld [vmem:[%s7151_s3 + $0xc] sm:$0x3] }
  0x95   : > { %v1337_v20 = vpack.c.b16 %v1313_v63, %v1312_v13  ;;  %v1192_v24 = vrot.slane %v1190_v16, 4  ;;  %v1198_v26 = vrot.slane %v1196_v17, 5  ;;  %v471_v38 = vshll.u32 %v396_v8, 16  ;;  %v762_v56 = vld [vmem:[#allocation2 + $0x24] sm:$0xf] }
  0x96   : > { %v1189_v11 = vsel %vm5738_vm13, %v1184_v40, %v1188_v18  ;;  %v470_v47 = vrot.slane %v468_v25, 7  ;;  %v465_v52 = vor.u32 %v463_v19, %v462_v48  ;;  %v466_v30 = vrot.slane %v462_v48, 4  ;;  %v5526_v7 = vld [vmem:[#allocation2 + $0x4] sm:$0xf]  ;;  %v5527_v16 = vld [vmem:[#allocation2 + $0x8] sm:$0x1] }
  0x97   : > { %5078 = vmatmul.msk.bf16.gmra.mxu1 %vm1346_vm12, %v1337_v20  ;;  %v1193_v32 = vor.u32 %v1192_v24, %v1188_v18  ;;  %v1320_v5 = vunpack.c.l.b16 %v1189_v11  ;;  %v890_v34 = vld [vmem:[#allocation2 + $0xb4] sm:$0xf]  ;;  %v5167_v4 = vrot.slane %v1708_v44, 9  ;;  %v1761_v8 = vrot.slane %v5526_v7, 5  ;;  %v2379_v23 = vld [vmem:[#allocation2 + $0xc] sm:$0xf] }
  0x98   : > { %v891_v1 = vld [vmem:[#allocation2 + $0xb8] sm:$0xf]  ;;  %v1273_v41 = vshrl.u32 %v890_v34, 16  ;;  %v1276_v42 = vshll.u32 %v890_v34, 16  ;;  %v473_v50 = vor.u32 %v471_v38, %v470_v47  ;;  %v475_v62 = vrot.slane %v470_v47, 4  ;;  %v5466_v48 = vld [vmem:[#allocation2] sm:$0xff] }
  0x99   : > { %v1194_v45 = vrot.slane %v1193_v32, 4  ;;  %v908_v46 = vld [vmem:[#allocation2 + $0xbc] sm:$0x1]  ;;  %v1282_v28 = vshll.u32 %v891_v1, 16  ;;  %v1286_v9 = vshrl.u32 %v891_v1, 16  ;;  %v763_v2 = vsel %vm5683_vm9, %v465_v52, %v762_v56 }
  0x9a   : > { %v1275_v51 = vrot.slane %v1273_v41, 4  ;;  %v1278_v53 = vrot.slane %v1276_v42, 5  ;;  %v1292_v54 = vshll.u32 %v908_v46, 16  ;;  %v474_v59 = vsel %vm5673_vm8, %v466_v30, %v473_v50  ;;  %v766_v60 = vld [vmem:[#allocation2 + $0x2c] sm:$0x1] }
  0x9b   : > { %v1199_v57 = vsel %vm5738_vm13, %v1194_v45, %v1198_v26  ;;  %v1284_v15 = vrot.slane %v1282_v28, 5  ;;  %v1288_v58 = vrot.slane %v1286_v9, 4  ;;  %765 = vst.msk [vmem:[#allocation2 + $0x28] sm:$0xf] %vm269_vm5, %v474_v59  ;;  %v767_v27 = vsel %vm5637_vm3, %v475_v62, %v766_v60  ;;  %v2380_v11 = vld [vmem:[#allocation2 + $0x10] sm:$0xf] }
  0x9c   : > { %v1321_v61 = vunpack.c.l.b16 %v1199_v57  ;;  %v1279_v21 = vor.u32 %v1278_v53, %v1275_v51  ;;  %v1294_v29 = vrot.slane %v1292_v54, 5  ;;  %764 = vst [vmem:[#allocation2 + $0x24] sm:$0xf] %v763_v2  ;;  %v3595_v12 = vsel %vm1395_vm0, %v5331_v43, 0  ;;  %v5412_v1 = vld [vmem:[%s7151_s3 + $0xe] sm:$0x3] }
  0x9d   : > { %v1289_v0 = vor.u32 %v1288_v58, %v1284_v15  ;;  %768 = vst [vmem:[#allocation2 + $0x2c] sm:$0x1] %v767_v27  ;;  %3604 = vmatpush.bf16.msra.mxu2 %v3595_v12  ;;  %v1764_v17 = vrot.slane %v5527_v16, 5  ;;  %v1763_v18 = vrot.slane %v1761_v8, 4  ;;  %v1762_v25 = vsel %vm6076_vm2, %v5167_v4, %v1761_v8  ;;  %v5314_v44 = vld [vmem:[%s7151_s3 + $0xa] sm:$0x3] }
  0x9e   : > { %v1341_v10 = vpack.c.b16 %v1321_v61, %v1320_v5  ;;  %v1280_v13 = vrot.slane %v1279_v21, 4  ;;  %v2428_v38 = vshrl.u32 %v2379_v23, 16  ;;  %v1873_v42 = vunpack.c.l.b16 %v1762_v25  ;;  %v5445_v57 = vld [vmem:[%s7151_s3 + $0x10] sm:$0x3]  ;;  %v2381_v27 = vld [vmem:[#allocation2 + $0x14] sm:$0x1] }
  0x9f   : > { %v1290_v14 = vrot.slane %v1289_v0, 4  ;;  %v1765_v47 = vsel %vm6076_vm2, %v1763_v18, %v1764_v17  ;;  %v2431_v52 = vshll.u32 %v2379_v23, 16  ;;  %v2437_v30 = vshll.u32 %v2380_v11, 16  ;;  %v1709_v17 = vld [vmem:[#allocation2 + $0xc] sm:$0xe] }
  0xa0   : > { %5082 = vmatmul.msk.bf16.gmra.mxu2 %vm1346_vm12, %v1341_v10  ;;  %v1285_v40 = vsel %vm5738_vm13, %v1280_v13, %v1284_v15  ;;  %v1874_v53 = vunpack.c.l.b16 %v1765_v47  ;;  %v2441_v54 = vshrl.u32 %v2380_v11, 16  ;;  %v4249_v56 = vsel %vm1395_vm0, %v5412_v1, 0  ;;  %v5482_v11 = vld [vmem:[#allocation2 + $0xc] sm:$0xff] }
  0xa1   : > { %v1295_v19 = vsel %vm5738_vm13, %v1290_v14, %v1294_v29  ;;  %v1328_v20 = vunpack.c.l.b16 %v1285_v40  ;;  %4258 = vmatpush.bf16.msra.mxu3 %v4249_v56  ;;  %v3308_v60 = vsel %vm1395_vm0, %v5314_v44, 0  ;;  %v4647_v61 = vsel %vm1395_vm0, %v5445_v57, 0 }
  0xa2   : > { %v1329_v24 = vunpack.c.l.b16 %v1295_v19  ;;  %v6087_v26 = vld [vmem:[#allocation2 + $0x28] sm:$0xf]  ;;  %3317 = vmatpush.bf16.msra.mxu1 %v3308_v60  ;;  %v2430_v62 = vrot.slane %v2428_v38, 4  ;;  %v2433_v0 = vrot.slane %v2431_v52, 5  ;;  %4656 = vmatpush.bf16.msra.mxu0 %v4647_v61  ;;  %v2439_v2 = vrot.slane %v2437_v30, 5  ;;  %v5467_v38 = vld [vmem:[#allocation2 + $0xc] sm:$0xff] }
  0xa3   : > { %v994_v5 = vshll.u32 %v6087_v26, 16  ;;  %v998_v34 = vshrl.u32 %v6087_v26, 16  ;;  %v866_v41 = vld [vmem:[#allocation2 + $0x24] sm:$0xf]  ;;  %v1905_v8 = vpack.c.b16 %v1874_v53, %v1873_v42  ;;  %v2443_v10 = vrot.slane %v2441_v54, 4 }
  0xa4   : > { %v1345_v32 = vpack.c.b16 %v1329_v24, %v1328_v20  ;;  %v6100_v45 = vld [vmem:[#allocation2 + $0x2c] sm:$0x1]  ;;  %v985_v46 = vshrl.u32 %v866_v41, 16  ;;  %v988_v28 = vshll.u32 %v866_v41, 16  ;;  %v1768_v12 = vrot.slane %v5907_v31, 5 }
  0xa5   : > { %v996_v9 = vrot.slane %v994_v5, 5  ;;  %v1000_v50 = vrot.slane %v998_v34, 4  ;;  %v1004_v51 = vshll.u32 %v6100_v45, 16  ;;  %v2434_v16 = vor.u32 %v2433_v0, %v2430_v62  ;;  %v2382_v31 = vld [vmem:[#allocation2 + $0x18] sm:$0xf] }
  0xa6   : > { %5086 = vmatmul.msk.bf16.gmra.mxu3 %vm1346_vm12, %v1345_v32  ;;  %v987_v15 = vrot.slane %v985_v46, 4  ;;  %v990_v58 = vrot.slane %v988_v28, 5  ;;  %v2444_v18 = vor.u32 %v2443_v10, %v2439_v2  ;;  %v2447_v23 = vshll.u32 %v2381_v27, 16  ;;  %v1710_v32 = vld [vmem:[#allocation2 + $0x18] sm:$0xe] }
  0xa7   : > { %5151 = vmatmul.msk.bf16.vlgmr.msrb.gmra.mxu1 %vm1346_vm12, %v5466_v48  ;;  %v1001_v59 = vor.u32 %v1000_v50, %v996_v9  ;;  %v1006_v43 = vrot.slane %v1004_v51, 5  ;;  %v5168_v20 = vrot.slane %v1709_v17, 9  ;;  %v1770_v24 = vrot.slane %v1768_v12, 4  ;;  %v2383_v41 = vld [vmem:[#allocation2 + $0x1c] sm:$0xf] }
  0xa8   : > { %v991_v21 = vor.u32 %v990_v58, %v987_v15  ;;  %v1771_v25 = vrot.slane %v5911_v35, 5  ;;  %v2435_v48 = vrot.slane %v2434_v16, 4  ;;  %v1775_v5 = vrot.slane %v6008_v49, 5  ;;  %v2384_v62 = vld [vmem:[#allocation2 + $0x20] sm:$0x1] }
  0xa9   : > { %v1002_v29 = vrot.slane %v1001_v59, 4  ;;  %v1778_v34 = vrot.slane %v6000_v37, 5  ;;  %v2445_v47 = vrot.slane %v2444_v18, 4  ;;  %v2449_v1 = vrot.slane %v2447_v23, 5  ;;  %v2386_v16 = vld [vmem:[#allocation2 + $0x28] sm:$0xf] }
  0xaa   : > { %v992_v4 = vrot.slane %v991_v21, 4  ;;  %v5169_v42 = vrot.slane %v1710_v32, 9  ;;  %v1769_v52 = vsel %vm6076_vm2, %v5168_v20, %v1768_v12  ;;  %v1772_v35 = vsel %vm6076_vm2, %v1770_v24, %v1771_v25  ;;  %v5468_v12 = vld [vmem:[#allocation2 + $0x18] sm:$0xff]  ;;  %v2387_v32 = vld [vmem:[#allocation2 + $0x2c] sm:$0x1] }
  0xab   : > { %v1007_v7 = vsel %vm5738_vm13, %v1002_v29, %v1006_v43  ;;  %v1777_v30 = vrot.slane %v1775_v5, 4  ;;  %v2440_v44 = vsel %vm5738_vm13, %v2435_v48, %v2439_v2  ;;  %v2452_v46 = vshrl.u32 %v2382_v31, 16 }
  0xac   : > { %v1305_v13 = vunpack.c.l.b16 %v1007_v7  ;;  %v997_v14 = vsel %vm5738_vm13, %v992_v4, %v996_v9  ;;  %v2455_v49 = vshll.u32 %v2382_v31, 16  ;;  %v1776_v37 = vsel %vm6076_vm2, %v5169_v42, %v1775_v5 }
  0xad   : > { %v1304_v40 = vunpack.c.l.b16 %v997_v14  ;;  %v2461_v28 = vshll.u32 %v2383_v41, 16  ;;  %v2465_v9 = vshrl.u32 %v2383_v41, 16  ;;  %v1779_v50 = vsel %vm6076_vm2, %v1777_v30, %v1778_v34  ;;  %v2385_v14 = vld [vmem:[#allocation2 + $0x24] sm:$0xf] }
  0xae   : > { %v1877_v51 = vunpack.c.l.b16 %v1776_v37  ;;  %v2450_v53 = vsel %vm5738_vm13, %v2445_v47, %v2449_v1  ;;  %v1875_v54 = vunpack.c.l.b16 %v1769_v52  ;;  %v1876_v56 = vunpack.c.l.b16 %v1772_v35  ;;  %v1711_v34 = vld [vmem:[#allocation2 + $0x24] sm:$0xe] }
  0xaf   : > { %v1333_v19 = vpack.c.b16 %v1305_v13, %v1304_v40  ;;  %v1878_v57 = vunpack.c.l.b16 %v1779_v50  ;;  %v2454_v15 = vrot.slane %v2452_v46, 4  ;;  %v2457_v58 = vrot.slane %v2455_v49, 5 }
  0xb0   : > { %5184 = vmatmul.msk.bf16.vlgmr.msrb.gmra.mxu2 %vm1346_vm12, %v1905_v8  ;;  %v2813_v60 = vunpack.c.l.b16 %v2440_v44  ;;  %v2814_v43 = vunpack.c.l.b16 %v2450_v53  ;;  %v2463_v61 = vrot.slane %v2461_v28, 5  ;;  %v2467_v21 = vrot.slane %v2465_v9, 4  ;;  %v5483_v8 = vld [vmem:[#allocation2 + $0x18] sm:$0xff]  ;;  %v5484_v44 = vld [vmem:[#allocation2 + $0x24] sm:$0xff]  ;;  %v2388_v9 = vld [vmem:[#allocation2 + $0x30] sm:$0xf] }
  0xb1   : > { %5074 = vmatmul.msk.bf16.gmra.mxu0 %vm1346_vm12, %v1333_v19  ;;  %v1907_v59 = vpack.c.b16 %v1878_v57, %v1877_v51  ;;  %v1906_v29 = vpack.c.b16 %v1876_v56, %v1875_v54  ;;  %v2458_v0 = vor.u32 %v2457_v58, %v2454_v15  ;;  %v2471_v7 = vshll.u32 %v2384_v62, 16  ;;  %v5469_v28 = vld [vmem:[#allocation2 + $0x24] sm:$0xff]  ;;  %v2389_v51 = vld [vmem:[#allocation2 + $0x34] sm:$0xf] }
  0xb2   : > { %v2845_v2 = vpack.c.b16 %v2814_v43, %v2813_v60  ;;  %v2468_v4 = vor.u32 %v2467_v21, %v2463_v61  ;;  %v2476_v40 = vshrl.u32 %v2385_v14, 16  ;;  %v2479_v23 = vshll.u32 %v2385_v14, 16  ;;  %v6156_v60 = vpop.f32.mrf.mxu1 }
  0xb3   : > { %v2459_v10 = vrot.slane %v2458_v0, 4  ;;  %v2473_v27 = vrot.slane %v2471_v7, 5  ;;  %v2485_v19 = vshll.u32 %v2386_v16, 16  ;;  %v2489_v20 = vshrl.u32 %v2386_v16, 16  ;;  %v5528_v7 = vld [vmem:[#allocation2 + $0x34] sm:$0xf] }
  0xb4   : > { %v2469_v13 = vrot.slane %v2468_v4, 4  ;;  %v2481_v48 = vrot.slane %v2479_v23, 5  ;;  %v1782_v5 = vrot.slane %v6087_v26, 5  ;;  %v2495_v42 = vshll.u32 %v2387_v32, 16  ;;  %v2390_v4 = vld [vmem:[#allocation2 + $0x38] sm:$0x1] }
  0xb5   : > { %v2464_v17 = vsel %vm5738_vm13, %v2459_v10, %v2463_v61  ;;  %v2491_v31 = vrot.slane %v2489_v20, 4  ;;  %v5170_v52 = vrot.slane %v1711_v34, 9  ;;  %v1785_v30 = vrot.slane %v6100_v45, 5  ;;  %v1712_v10 = vld [vmem:[#allocation2 + $0x30] sm:$0xe] }
  0xb6   : > { %5265 = vmatmul.msk.bf16.vlgmr.msrb.gmra.mxu3 %vm1346_vm12, %v5482_v11  ;;  %v2474_v18 = vsel %vm5738_vm13, %v2469_v13, %v2473_v27  ;;  %v2815_v24 = vunpack.c.l.b16 %v2464_v17  ;;  %v2478_v11 = vrot.slane %v2476_v40, 4  ;;  %v1784_v35 = vrot.slane %v1782_v5, 4  ;;  %v5529_v40 = vld [vmem:[#allocation2 + $0x38] sm:$0x1]  ;;  %v5485_v23 = vld [vmem:[#allocation2 + $0x30] sm:$0xff] }
  0xb7   : > { %5152 = vmatmul.msk.bf16.gmra.mxu1 %vm1346_vm12, %v5467_v38  ;;  %v2816_v25 = vunpack.c.l.b16 %v2474_v18  ;;  %v2487_v38 = vrot.slane %v2485_v19, 5  ;;  %v2497_v37 = vrot.slane %v2495_v42, 5  ;;  %v1783_v26 = vsel %vm6076_vm2, %v5170_v52, %v1782_v5  ;;  %v5470_v19 = vld [vmem:[#allocation2 + $0x30] sm:$0xff]  ;;  %v2391_v20 = vld [vmem:[#allocation2 + $0x3c] sm:$0xf] }
  0xb8   : > { %v2482_v1 = vor.u32 %v2481_v48, %v2478_v11  ;;  %v1786_v50 = vsel %vm6076_vm2, %v1784_v35, %v1785_v30  ;;  %v2500_v54 = vshrl.u32 %v2388_v9, 16  ;;  %v2503_v56 = vshll.u32 %v2388_v9, 16 }
  0xb9   : > { %v2846_v47 = vpack.c.b16 %v2816_v25, %v2815_v24  ;;  %v2492_v41 = vor.u32 %v2491_v31, %v2487_v38  ;;  %v1879_v57 = vunpack.c.l.b16 %v1783_v26  ;;  %v1880_v15 = vunpack.c.l.b16 %v1786_v50  ;;  %v2392_v24 = vld [vmem:[#allocation2 + $0x40] sm:$0xf]  ;;  %v2393_v26 = vld [vmem:[#allocation2 + $0x44] sm:$0x1] }
  0xba   : > { %v2483_v46 = vrot.slane %v2482_v1, 4  ;;  %v2509_v58 = vshll.u32 %v2389_v51, 16  ;;  %v2502_v21 = vrot.slane %v2500_v54, 4  ;;  %v2505_v62 = vrot.slane %v2503_v56, 5 }
  0xbb   : > { %v2493_v49 = vrot.slane %v2492_v41, 4  ;;  %v2519_v14 = vshll.u32 %v2390_v4, 16  ;;  %v5171_v16 = vrot.slane %v1712_v10, 9  ;;  %v1792_v18 = vrot.slane %v5529_v40, 5  ;;  %v6168_v41 = vpop.f32.mrf.mxu2  ;;  %v6182_v10 = vpop.f32.mrf.mxu0 }
  0xbc   : > { %v2488_v45 = vsel %vm5738_vm13, %v2483_v46, %v2487_v38  ;;  %v2511_v0 = vrot.slane %v2509_v58, 5  ;;  %v2506_v27 = vor.u32 %v2505_v62, %v2502_v21  ;;  %v6160_v38 = vpop.f32.mrf.mxu1  ;;  %v2524_v5 = vshrl.u32 %v2391_v20, 16  ;;  %v1713_v58 = vld [vmem:[#allocation2 + $0x3c] sm:$0xe] }
  0xbd   : > { %v2498_v53 = vsel %vm5738_vm13, %v2493_v49, %v2497_v37  ;;  %v2817_v43 = vunpack.c.l.b16 %v2488_v45  ;;  %v2521_v48 = vrot.slane %v2519_v14, 5  ;;  %v2527_v34 = vshll.u32 %v2391_v20, 16  ;;  %v6176_v45 = vpop.f32.mrf.mxu3 }
  0xbe   : > { %v2818_v61 = vunpack.c.l.b16 %v2498_v53  ;;  %v2507_v25 = vrot.slane %v2506_v27, 4  ;;  %v2537_v1 = vshrl.u32 %v2392_v24, 16  ;;  %v5530_v53 = vld [vmem:[#allocation2 + $0x40] sm:$0xf]  ;;  %v2395_v27 = vld [vmem:[#allocation2 + $0x4c] sm:$0xf] }
  0xbf   : > { %v2529_v46 = vrot.slane %v2527_v34, 5  ;;  %v1796_v54 = vrot.slane %v5530_v53, 5  ;;  %v2557_v20 = vshll.u32 %v2395_v27, 16 }
  0xc0   : > { %5185 = vmatmul.msk.bf16.gmra.mxu2 %vm1346_vm12, %v1906_v29  ;;  %v1908_v29 = vpack.c.b16 %v1880_v15, %v1879_v57  ;;  %v2847_v13 = vpack.c.b16 %v2818_v61, %v2817_v43  ;;  %v2512_v42 = vsel %vm5738_vm13, %v2507_v25, %v2511_v0  ;;  %v2539_v37 = vrot.slane %v2537_v1, 4 }
  0xc1   : > { %5282 = vmatmul.msk.bf16.vlgmr.msrb.gmra.mxu0 %vm1346_vm12, %v2845_v2  ;;  %v2543_v15 = vshll.u32 %v2393_v26, 16  ;;  %v5172_v61 = vrot.slane %v1713_v58, 9  ;;  %v1798_v21 = vrot.slane %v1796_v54, 4  ;;  %v2559_v34 = vrot.slane %v2557_v20, 5 }
  0xc3   : > { %v6179_v43 = vpop.f32.mrf.mxu2 }
  0xc6   : > { %5266 = vmatmul.msk.bf16.gmra.mxu3 %vm1346_vm12, %v5483_v8  ;;  %v1789_v8 = vrot.slane %v5528_v7, 5  ;;  %v2545_v7 = vrot.slane %v2543_v15, 5  ;;  %v5487_v15 = vld [vmem:[#allocation2 + $0x48] sm:$0xff] }
  0xc7   : > { %5153 = vmatmul.msk.bf16.gmra.mxu1 %vm1346_vm12, %v5468_v12 }
  0xc8   : > { %v1791_v17 = vrot.slane %v1789_v8, 4  ;;  %v1790_v31 = vsel %vm6076_vm2, %v5171_v16, %v1789_v8  ;;  %v5471_v8 = vld [vmem:[#allocation2 + $0x3c] sm:$0xff] }
  0xc9   : > { %v1881_v35 = vunpack.c.l.b16 %v1790_v31 }
  0xca   : > { %v1793_v32 = vsel %vm6076_vm2, %v1791_v17, %v1792_v18  ;;  %v6195_v18 = vpop.f32.mrf.mxu3 }
  0xcb   : > { %v1882_v30 = vunpack.c.l.b16 %v1793_v32 }
  0xcd   : > { %v1909_v50 = vpack.c.b16 %v1882_v30, %v1881_v35  ;;  %v5532_v35 = vld [vmem:[#allocation2 + $0x4c] sm:$0xf] }
  0xce   : > { %v1803_v30 = vrot.slane %v5532_v35, 5 }
  0xd0   : > { %5186 = vmatmul.msk.bf16.gmra.mxu2 %vm1346_vm12, %v1907_v59  ;;  %v2513_v59 = vshrl.u32 %v2389_v51, 16  ;;  %v6174_v51 = vpop.f32.mrf.mxu1 }
  0xd1   : > { %5283 = vmatmul.msk.bf16.gmra.mxu0 %vm1346_vm12, %v2846_v47  ;;  %v2533_v47 = vshll.u32 %v2392_v24, 16  ;;  %v2561_v24 = vshrl.u32 %v2395_v27, 16 }
  0xd2   : > { %v2515_v2 = vrot.slane %v2513_v59, 4 }
  0xd3   : > { %v2535_v49 = vrot.slane %v2533_v47, 5  ;;  %v2563_v47 = vrot.slane %v2561_v24, 4 }
  0xd4   : > { %v2516_v12 = vor.u32 %v2515_v2, %v2511_v0  ;;  %v5486_v0 = vld [vmem:[#allocation2 + $0x3c] sm:$0xff] }
  0xd5   : > { %v2540_v57 = vor.u32 %v2539_v37, %v2535_v49 }
  0xd6   : > { %5267 = vmatmul.msk.bf16.gmra.mxu3 %vm1346_vm12, %v5484_v44  ;;  %v2517_v11 = vrot.slane %v2516_v12, 4  ;;  %v2526_v44 = vrot.slane %v2524_v5, 4  ;;  %v1797_v12 = vsel %vm6076_vm2, %v5172_v61, %v1796_v54  ;;  %v1805_v54 = vrot.slane %v1803_v30, 4 }
  0xd7   : > { %5154 = vmatmul.msk.bf16.gmra.mxu1 %vm1346_vm12, %v5469_v28  ;;  %v2819_v28 = vunpack.c.l.b16 %v2512_v42  ;;  %v2541_v4 = vrot.slane %v2540_v57, 4  ;;  %v1883_v25 = vunpack.c.l.b16 %v1797_v12 }
  0xd8   : > { %v2522_v52 = vsel %vm5738_vm13, %v2517_v11, %v2521_v48  ;;  %v2530_v56 = vor.u32 %v2529_v46, %v2526_v44  ;;  %v6193_v40 = vpop.f32.mrf.mxu1  ;;  %v6200_v44 = vpop.f32.mrf.mxu0  ;;  %v1714_v46 = vld [vmem:[#allocation2 + $0x48] sm:$0xe] }
  0xd9   : > { %v2820_v9 = vunpack.c.l.b16 %v2522_v52  ;;  %v2546_v17 = vsel %vm5738_vm13, %v2541_v4, %v2545_v7  ;;  %v2396_v52 = vld [vmem:[#allocation2 + $0x50] sm:$0x1]  ;;  %v5173_v53 = vrot.slane %v1714_v46, 9  ;;  %v2398_v4 = vld [vmem:[#allocation2 + $0x58] sm:$0xf] }
  0xda   : > { %v2531_v2 = vrot.slane %v2530_v56, 4  ;;  %v2822_v31 = vunpack.c.l.b16 %v2546_v17  ;;  %v6198_v1 = vpop.f32.mrf.mxu2  ;;  %v5533_v56 = vld [vmem:[#allocation2 + $0x50] sm:$0x1]  ;;  %v2581_v17 = vshll.u32 %v2398_v4, 16 }
  0xdb   : > { %v2848_v59 = vpack.c.b16 %v2820_v9, %v2819_v28  ;;  %v2564_v28 = vor.u32 %v2563_v47, %v2559_v34  ;;  %v2567_v9 = vshll.u32 %v2396_v52, 16  ;;  %v1806_v57 = vrot.slane %v5533_v56, 5  ;;  %v5473_v56 = vld [vmem:[#allocation2 + $0x54] sm:$0xff] }
  0xdc   : > { %v2536_v16 = vsel %vm5738_vm13, %v2531_v2, %v2535_v49  ;;  %v1810_v47 = vrot.slane %v6029_v22, 5  ;;  %v2400_v22 = vld [vmem:[#allocation2 + $0x60] sm:$0xf] }
  0xdd   : > { %v2821_v48 = vunpack.c.l.b16 %v2536_v16  ;;  %v2569_v61 = vrot.slane %v2567_v9, 5  ;;  %v1807_v2 = vsel %vm6076_vm2, %v1805_v54, %v1806_v57  ;;  %v1813_v9 = vrot.slane %v6036_v36, 5  ;;  %v5488_v54 = vld [vmem:[#allocation2 + $0x54] sm:$0xff]  ;;  %v2401_v57 = vld [vmem:[#allocation2 + $0x64] sm:$0xf] }
  0xde   : > { %v1886_v16 = vunpack.c.l.b16 %v1807_v2  ;;  %v2599_v2 = vshll.u32 %v2400_v22, 16 }
  0xdf   : > { %v2849_v49 = vpack.c.b16 %v2822_v31, %v2821_v48 }
  0xe0   : > { %5187 = vmatmul.msk.bf16.gmra.mxu2 %vm1346_vm12, %v1908_v29  ;;  %v5531_v29 = vld [vmem:[#allocation2 + $0x44] sm:$0x1] }
  0xe1   : > { %5284 = vmatmul.msk.bf16.gmra.mxu0 %vm1346_vm12, %v2847_v13  ;;  %v1799_v62 = vrot.slane %v5531_v29, 5  ;;  %v2394_v13 = vld [vmem:[#allocation2 + $0x48] sm:$0xf]  ;;  %v2397_v29 = vld [vmem:[#allocation2 + $0x54] sm:$0xf] }
  0xe2   : > { %v2575_v27 = vshll.u32 %v2397_v29, 16 }
  0xe3   : > { %v1800_v14 = vsel %vm6076_vm2, %v1798_v21, %v1799_v62  ;;  %v5472_v21 = vld [vmem:[#allocation2 + $0x48] sm:$0xff]  ;;  %v6208_v62 = vpop.f32.mrf.mxu2 }
  0xe4   : > { %v1884_v11 = vunpack.c.l.b16 %v1800_v14  ;;  %v2577_v31 = vrot.slane %v2575_v27, 5 }
  0xe6   : > { %5268 = vmatmul.msk.bf16.gmra.mxu3 %vm1346_vm12, %v5485_v23  ;;  %v2548_v23 = vshrl.u32 %v2394_v13, 16  ;;  %v1910_v42 = vpack.c.b16 %v1884_v11, %v1883_v25 }
  0xe7   : > { %5155 = vmatmul.msk.bf16.gmra.mxu1 %vm1346_vm12, %v5470_v19  ;;  %v2551_v19 = vshll.u32 %v2394_v13, 16  ;;  %v2572_v13 = vshrl.u32 %v2397_v29, 16 }
  0xe8   : > { %v2550_v32 = vrot.slane %v2548_v23, 4  ;;  %v6220_v12 = vpop.f32.mrf.mxu0  ;;  %v2585_v23 = vshrl.u32 %v2398_v4, 16  ;;  %v2605_v4 = vshll.u32 %v2401_v57, 16 }
  0xe9   : > { %v2553_v5 = vrot.slane %v2551_v19, 5  ;;  %v2574_v11 = vrot.slane %v2572_v13, 4 }
  0xeb   : > { %v2554_v37 = vor.u32 %v2553_v5, %v2550_v32  ;;  %v2583_v32 = vrot.slane %v2581_v17, 5  ;;  %v2587_v5 = vrot.slane %v2585_v23, 4  ;;  %v2601_v23 = vrot.slane %v2599_v2, 5  ;;  %v2403_v2 = vld [vmem:[#allocation2 + $0x6c] sm:$0xf] }
  0xed   : > { %v2555_v58 = vrot.slane %v2554_v37, 4  ;;  %v2588_v46 = vor.u32 %v2587_v5, %v2583_v32 }
  0xef   : > { %v2560_v7 = vsel %vm5738_vm13, %v2555_v58, %v2559_v34  ;;  %v2399_v34 = vld [vmem:[#allocation2 + $0x5c] sm:$0x1]  ;;  %v2589_v58 = vrot.slane %v2588_v46, 4 }
  0xf0   : > { %5188 = vmatmul.msk.bf16.gmra.mxu2 %vm1346_vm12, %v1909_v50  ;;  %v6205_v50 = vpop.f32.mrf.mxu3  ;;  %v2823_v20 = vunpack.c.l.b16 %v2560_v7  ;;  %v2609_v7 = vshrl.u32 %v2401_v57, 16  ;;  %v5489_v57 = vld [vmem:[#allocation2 + $0x60] sm:$0xff] }
  0xf1   : > { %5285 = vmatmul.msk.bf16.gmra.mxu0 %vm1346_vm12, %v2848_v59  ;;  %v2565_v59 = vrot.slane %v2564_v28, 4  ;;  %v1812_v28 = vrot.slane %v1810_v47, 4 }
  0xf3   : > { %v6203_v26 = vpop.f32.mrf.mxu1  ;;  %v1814_v36 = vsel %vm6076_vm2, %v1812_v28, %v1813_v9  ;;  %v5535_v9 = vld [vmem:[#allocation2 + $0x68] sm:$0x1] }
  0xf6   : > { %5269 = vmatmul.msk.bf16.gmra.mxu3 %vm1346_vm12, %v5486_v0  ;;  %v1804_v0 = vsel %vm6076_vm2, %v5173_v53, %v1803_v30  ;;  %v2578_v30 = vor.u32 %v2577_v31, %v2574_v11  ;;  %v6231_v53 = vpop.f32.mrf.mxu0  ;;  %v2402_v31 = vld [vmem:[#allocation2 + $0x68] sm:$0x1] }
  0xf7   : > { %5156 = vmatmul.msk.bf16.gmra.mxu1 %vm1346_vm12, %v5471_v8  ;;  %v2570_v8 = vsel %vm5738_vm13, %v2565_v59, %v2569_v61  ;;  %v1885_v14 = vunpack.c.l.b16 %v1804_v0  ;;  %v2596_v0 = vshrl.u32 %v2400_v22, 16  ;;  %v2615_v46 = vshll.u32 %v2402_v31, 16 }
  0xf8   : > { %v2824_v24 = vunpack.c.l.b16 %v2570_v8  ;;  %v6224_v25 = vpop.f32.mrf.mxu3 }
  0xf9   : > { %v1911_v48 = vpack.c.b16 %v1886_v16, %v1885_v14  ;;  %v1888_v14 = vunpack.c.l.b16 %v1814_v36  ;;  %v2598_v17 = vrot.slane %v2596_v0, 4  ;;  %v5474_v36 = vld [vmem:[#allocation2 + $0x60] sm:$0xff] }
  0xfa   : > { %v2850_v52 = vpack.c.b16 %v2824_v24, %v2823_v20  ;;  %v2607_v20 = vrot.slane %v2605_v4, 5  ;;  %v2611_v24 = vrot.slane %v2609_v7, 4  ;;  %v2404_v4 = vld [vmem:[#allocation2 + $0x70] sm:$0xf] }
  0xfb   : > { %v6222_v19 = vpop.f32.mrf.mxu1 }
  0xfc   : > { %v6227_v35 = vpop.f32.mrf.mxu2 }
 0x100   : > { %5189 = vmatmul.msk.bf16.gmra.mxu2 %vm1346_vm12, %v1910_v42  ;;  %v1715_v42 = vld [vmem:[#allocation2 + $0x54] sm:$0xe] }
 0x101   : > { %5286 = vmatmul.msk.bf16.gmra.mxu0 %vm1346_vm12, %v2849_v49  ;;  %v2591_v49 = vshll.u32 %v2399_v34, 16  ;;  %v5174_v37 = vrot.slane %v1715_v42, 9 }
 0x103   : > { %v2593_v59 = vrot.slane %v2591_v49, 5  ;;  %v1811_v29 = vsel %vm6076_vm2, %v5174_v37, %v1810_v47  ;;  %v1716_v49 = vld [vmem:[#allocation2 + $0x60] sm:$0xe] }
 0x104   : > { %v1887_v27 = vunpack.c.l.b16 %v1811_v29  ;;  %v6248_v16 = vpop.f32.mrf.mxu2 }
 0x105   : > { %v2594_v13 = vsel %vm5738_vm13, %v2589_v58, %v2593_v59  ;;  %v2617_v59 = vrot.slane %v2615_v46, 5 }
 0x106   : > { %5270 = vmatmul.msk.bf16.gmra.mxu3 %vm1346_vm12, %v5487_v15  ;;  %v2579_v15 = vrot.slane %v2578_v30, 4  ;;  %v1912_v34 = vpack.c.b16 %v1888_v14, %v1887_v27  ;;  %v2612_v30 = vor.u32 %v2611_v24, %v2607_v20  ;;  %v2629_v24 = vshll.u32 %v2404_v4, 16 }
 0x107   : > { %5157 = vmatmul.msk.bf16.gmra.mxu1 %vm1346_vm12, %v5472_v21  ;;  %v6236_v21 = vpop.f32.mrf.mxu3 }
 0x108   : > { %7166 = vst [vmem:[#allocation3_spill] sm:$0xff] %v6236_v21  ;;  %v2584_v8 = vsel %vm5738_vm13, %v2579_v15, %v2583_v32  ;;  %v5534_v32 = vld [vmem:[#allocation2 + $0x64] sm:$0xf]  ;;  %v2613_v58 = vrot.slane %v2612_v30, 4 }
 0x109   : > { %v2825_v11 = vunpack.c.l.b16 %v2584_v8  ;;  %v1817_v42 = vrot.slane %v5534_v32, 5 }
 0x10a   : > { %v2618_v14 = vsel %vm5738_vm13, %v2613_v58, %v2617_v59 }
 0x10b   : > { %v1819_v22 = vrot.slane %v1817_v42, 4 }
 0x10d   : > { %v6250_v5 = vpop.f32.mrf.mxu0 }
 0x10f   : > { %v6254_v28 = vpop.f32.mrf.mxu3 }
 0x110   : > { %5190 = vmatmul.msk.bf16.gmra.mxu2 %vm1346_vm12, %v1911_v48  ;;  %v2826_v48 = vunpack.c.l.b16 %v2594_v13  ;;  %7167 = vst [vmem:[#allocation4_spill] sm:$0xff] %v6254_v28 }
 0x111   : > { %5287 = vmatmul.msk.bf16.gmra.mxu0 %vm1346_vm12, %v2850_v52  ;;  %v2602_v52 = vor.u32 %v2601_v23, %v2598_v17  ;;  %v2620_v17 = vshrl.u32 %v2403_v2, 16  ;;  %v2623_v23 = vshll.u32 %v2403_v2, 16 }
 0x112   : > { %v2851_v37 = vpack.c.b16 %v2826_v48, %v2825_v11  ;;  %v2633_v11 = vshrl.u32 %v2404_v4, 16  ;;  %v5537_v4 = vld [vmem:[#allocation2 + $0x74] sm:$0x1] }
 0x113   : > { %v2603_v15 = vrot.slane %v2602_v52, 4  ;;  %v2622_v30 = vrot.slane %v2620_v17, 4  ;;  %v2625_v46 = vrot.slane %v2623_v23, 5  ;;  %v5490_v23 = vld [vmem:[#allocation2 + $0x6c] sm:$0xff] }
 0x114   : > { %v6234_v61 = vpop.f32.mrf.mxu1 }
 0x115   : > { %v6264_v13 = vpop.f32.mrf.mxu0  ;;  %v2608_v27 = vsel %vm5738_vm13, %v2603_v15, %v2607_v20  ;;  %v2631_v20 = vrot.slane %v2629_v24, 5  ;;  %v2626_v58 = vor.u32 %v2625_v46, %v2622_v30  ;;  %v2406_v46 = vld [vmem:[#allocation2 + $0x78] sm:$0xf] }
 0x116   : > { %5271 = vmatmul.msk.bf16.gmra.mxu3 %vm1346_vm12, %v5488_v54  ;;  %v1820_v54 = vrot.slane %v5535_v9, 5  ;;  %v2827_v32 = vunpack.c.l.b16 %v2608_v27  ;;  %v2405_v9 = vld [vmem:[#allocation2 + $0x74] sm:$0x1] }
 0x117   : > { %5158 = vmatmul.msk.bf16.gmra.mxu1 %vm1346_vm12, %v5473_v56  ;;  %v5175_v56 = vrot.slane %v1716_v49, 9  ;;  %v2635_v49 = vrot.slane %v2633_v11, 4  ;;  %v2627_v24 = vrot.slane %v2626_v58, 4 }
 0x118   : > { %v1821_v8 = vsel %vm6076_vm2, %v1819_v22, %v1820_v54 }
 0x119   : > { %v1818_v7 = vsel %vm6076_vm2, %v5175_v56, %v1817_v42  ;;  %v1890_v31 = vunpack.c.l.b16 %v1821_v8  ;;  %v2828_v42 = vunpack.c.l.b16 %v2618_v14  ;;  %v5536_v56 = vld [vmem:[#allocation2 + $0x70] sm:$0xf]  ;;  %v2636_v59 = vor.u32 %v2635_v49, %v2631_v20 }
 0x11a   : > { %v1889_v48 = vunpack.c.l.b16 %v1818_v7  ;;  %v1824_v22 = vrot.slane %v5536_v56, 5  ;;  %v1827_v7 = vrot.slane %v5537_v4, 5  ;;  %v2644_v56 = vshrl.u32 %v2406_v46, 16 }
 0x11b   : > { %v2852_v15 = vpack.c.b16 %v2828_v42, %v2827_v32  ;;  %v2637_v11 = vrot.slane %v2636_v59, 4  ;;  %v5475_v32 = vld [vmem:[#allocation2 + $0x6c] sm:$0xff] }
 0x11c   : > { %v6252_v47 = vpop.f32.mrf.mxu1  ;;  %v1826_v14 = vrot.slane %v1824_v22, 4 }
 0x120   : > { %5191 = vmatmul.msk.bf16.gmra.mxu2 %vm1346_vm12, %v1912_v34 }
 0x121   : > { %5288 = vmatmul.msk.bf16.gmra.mxu0 %vm1346_vm12, %v2851_v37  ;;  %v1913_v37 = vpack.c.b16 %v1890_v31, %v1889_v48 }
 0x123   : > { %v6258_v29 = vpop.f32.mrf.mxu2 }
 0x124   : > { %v1628_v0 = vpop.f32.mrf.mxu1 }
 0x125   : > { %v1629_v17 = vadd.f32 %v1628_v0, %v6182_v10  ;;  %v2632_v10 = vsel %vm5738_vm13, %v2627_v24, %v2631_v20 }
 0x126   : > { %5272 = vmatmul.msk.bf16.gmra.mxu3 %vm1346_vm12, %v5489_v57  ;;  %v1717_v57 = vld [vmem:[#allocation2 + $0x6c] sm:$0xe] }
 0x127   : > { %5159 = vmatmul.msk.bf16.gmra.mxu1 %vm1346_vm12, %v5474_v36  ;;  %v2639_v36 = vshll.u32 %v2405_v9, 16  ;;  %v5176_v27 = vrot.slane %v1717_v57, 9  ;;  %v2407_v9 = vld [vmem:[#allocation2 + $0x7c] sm:$0xf]  ;;  %v2647_v57 = vshll.u32 %v2406_v46, 16 }
 0x128   : > { %v2653_v59 = vshll.u32 %v2407_v9, 16 }
 0x129   : > { %v6272_v34 = vpop.f32.mrf.mxu3  ;;  %v2641_v48 = vrot.slane %v2639_v36, 5  ;;  %v1825_v49 = vsel %vm6076_vm2, %v5176_v27, %v1824_v22  ;;  %v2657_v36 = vshrl.u32 %v2407_v9, 16  ;;  %v2649_v24 = vrot.slane %v2647_v57, 5 }
 0x12a   : > { %7168 = vst [vmem:[#allocation5_spill] sm:$0xff] %v6272_v34  ;;  %v1891_v58 = vunpack.c.l.b16 %v1825_v49  ;;  %v5538_v34 = vld [vmem:[#allocation2 + $0x7c] sm:$0xf] }
 0x12b   : > { %v6274_v52 = vpop.f32.mrf.mxu2  ;;  %v2642_v0 = vsel %vm5738_vm13, %v2637_v11, %v2641_v48  ;;  %v1831_v49 = vrot.slane %v5538_v34, 5  ;;  %v5491_v34 = vld [vmem:[#allocation2 + $0x78] sm:$0xff] }
 0x12c   : > { %v1630_v54 = vpop.f32.mrf.mxu1 }
 0x12d   : > { %v1631_v27 = vadd.f32 %v1630_v54, %v6200_v44  ;;  %v1833_v57 = vrot.slane %v1831_v49, 4 }
 0x12e   : > { %v6276_v2 = vpop.f32.mrf.mxu0 }
 0x130   : > { %5192 = vmatmul.msk.bf16.gmra.mxu2 %vm1346_vm12, %v1913_v37  ;;  %v1828_v37 = vsel %vm6076_vm2, %v1826_v14, %v1827_v7  ;;  %v2829_v14 = vunpack.c.l.b16 %v2632_v10 }
 0x131   : > { %v6279_v8 = vpop.f32.mrf.mxu3  ;;  %5289 = vmatmul.msk.bf16.gmra.mxu0 %vm1346_vm12, %v2852_v15  ;;  %v1892_v22 = vunpack.c.l.b16 %v1828_v37  ;;  %v1718_v37 = vld [vmem:[#allocation2 + $0x78] sm:$0xe] }
 0x132   : > { %7169 = vst [vmem:[#allocation6_spill] sm:$0xff] %v6279_v8  ;;  %v2408_v8 = vld [vmem:[#allocation2 + $0x80] sm:$0x1] }
 0x133   : > { %v1981_v31 = vpop.f32.mrf.mxu2  ;;  %v1914_v48 = vpack.c.b16 %v1892_v22, %v1891_v58  ;;  %v2663_v54 = vshll.u32 %v2408_v8, 16  ;;  %v2409_v58 = vld [vmem:[#allocation2 + $0x84] sm:$0xf] }
 0x134   : > { %v2061_v42 = vadd.f32 %v1981_v31, %v1629_v17  ;;  %v1633_v30 = vpop.f32.mrf.mxu1  ;;  %v2830_v17 = vunpack.c.l.b16 %v2642_v0  ;;  %v2655_v31 = vrot.slane %v2653_v59, 5 }
 0x135   : > { %v2665_v8 = vrot.slane %v2663_v54, 5 }
 0x136   : > { %5273 = vmatmul.msk.bf16.gmra.mxu3 %vm1346_vm12, %v5490_v23  ;;  %v6293_v15 = vpop.f32.mrf.mxu0  ;;  %v2646_v23 = vrot.slane %v2644_v56, 4  ;;  %v2853_v28 = vpack.c.b16 %v2830_v17, %v2829_v14  ;;  %v5177_v56 = vrot.slane %v1718_v37, 9  ;;  %v5476_v14 = vld [vmem:[#allocation2 + $0x78] sm:$0xff]  ;;  %v2410_v17 = vld [vmem:[#allocation2 + $0x88] sm:$0xf] }
 0x137   : > { %5160 = vmatmul.msk.bf16.gmra.mxu1 %vm1346_vm12, %v5475_v32  ;;  %v2659_v32 = vrot.slane %v2657_v36, 4  ;;  %v1634_v36 = vadd.f32 %v1633_v30, %v6220_v12  ;;  %v2671_v30 = vshll.u32 %v2409_v58, 16 }
 0x138   : > { %v2650_v9 = vor.u32 %v2649_v24, %v2646_v23 }
 0x139   : > { %v2267_v4 = vpop.f32.mrf.mxu3  ;;  %v2660_v44 = vor.u32 %v2659_v32, %v2655_v31 }
 0x13a   : > { %v2347_v7 = vadd.f32 %v2267_v4, %v2061_v42  ;;  %v5539_v42 = vld [vmem:[#allocation2 + $0x80] sm:$0x1]  ;;  %v2651_v4 = vrot.slane %v2650_v9, 4 }
 0x13b   : > { %v1983_v20 = vpop.f32.mrf.mxu2  ;;  %v1834_v10 = vrot.slane %v5539_v42, 5  ;;  %v2673_v42 = vrot.slane %v2671_v30, 5 }
 0x13c   : > { %v2062_v11 = vadd.f32 %v1983_v20, %v1631_v27  ;;  %v1635_v46 = vpop.f32.mrf.mxu1  ;;  %v2661_v20 = vrot.slane %v2660_v44, 4  ;;  %v2656_v37 = vsel %vm5738_vm13, %v2651_v4, %v2655_v31 }
 0x13d   : > { %v1835_v12 = vsel %vm6076_vm2, %v1833_v57, %v1834_v10 }
 0x13e   : > { %v2921_v21 = vpop.f32.mrf.mxu0  ;;  %v1894_v44 = vunpack.c.l.b16 %v1835_v12  ;;  %v1719_v12 = vld [vmem:[#allocation2 + $0x84] sm:$0xe] }
 0x13f   : > { %v6297_v22 = vadd.f32 %v2921_v21, %v2347_v7  ;;  %v1832_v21 = vsel %vm6076_vm2, %v5177_v56, %v1831_v49  ;;  %v2681_v7 = vshrl.u32 %v2410_v17, 16  ;;  %v1636_v56 = vadd.f32 %v1635_v46, %v6231_v53  ;;  %v5541_v53 = vld [vmem:[#allocation2 + $0x8c] sm:$0x1] }
 0x140   : > { %5193 = vmatmul.msk.bf16.gmra.mxu2 %vm1346_vm12, %v1914_v48  ;;  %v2668_v48 = vshrl.u32 %v2409_v58, 16  ;;  %v1893_v9 = vunpack.c.l.b16 %v1832_v21  ;;  %v1841_v46 = vrot.slane %v5541_v53, 5 }
 0x141   : > { %v2269_v0 = vpop.f32.mrf.mxu3  ;;  %5290 = vmatmul.msk.bf16.gmra.mxu0 %vm1346_vm12, %v2853_v28  ;;  %v2677_v28 = vshll.u32 %v2410_v17, 16  ;;  %v2683_v58 = vrot.slane %v2681_v7, 4  ;;  %v5178_v7 = vrot.slane %v1719_v12, 9 }
 0x142   : > { %v2348_v59 = vadd.f32 %v2269_v0, %v2062_v11  ;;  %v2670_v54 = vrot.slane %v2668_v48, 4  ;;  %v1915_v4 = vpack.c.b16 %v1894_v44, %v1893_v9  ;;  %v5492_v9 = vld [vmem:[#allocation2 + $0x84] sm:$0xff] }
 0x143   : > { %v1986_v27 = vpop.f32.mrf.mxu2  ;;  %v2679_v57 = vrot.slane %v2677_v28, 5 }
 0x144   : > { %v2063_v23 = vadd.f32 %v1986_v27, %v1634_v36  ;;  %v1638_v24 = vpop.f32.mrf.mxu1  ;;  %v2831_v36 = vunpack.c.l.b16 %v2656_v37  ;;  %v2674_v48 = vor.u32 %v2673_v42, %v2670_v54  ;;  %v5477_v42 = vld [vmem:[#allocation2 + $0x84] sm:$0xff] }
 0x145   : > { %v1639_v32 = vadd.f32 %v1638_v24, %v6250_v5  ;;  %v2666_v5 = vsel %vm5738_vm13, %v2661_v20, %v2665_v8  ;;  %v5540_v8 = vld [vmem:[#allocation2 + $0x88] sm:$0xf]  ;;  %v2684_v21 = vor.u32 %v2683_v58, %v2679_v57 }
 0x146   : > { %5274 = vmatmul.msk.bf16.gmra.mxu3 %vm1346_vm12, %v5491_v34  ;;  %v2923_v11 = vpop.f32.mrf.mxu0  ;;  %v2832_v34 = vunpack.c.l.b16 %v2666_v5  ;;  %v1838_v24 = vrot.slane %v5540_v8, 5 }
 0x147   : > { %5161 = vmatmul.msk.bf16.gmra.mxu1 %vm1346_vm12, %v5476_v14  ;;  %v6312_v10 = vadd.f32 %v2923_v11, %v2348_v59  ;;  %v2411_v14 = vld [vmem:[#allocation2 + $0x8c] sm:$0x1]  ;;  %v2685_v44 = vrot.slane %v2684_v21, 4 }
 0x148   : > { %v2687_v59 = vshll.u32 %v2411_v14, 16  ;;  %v1840_v11 = vrot.slane %v1838_v24, 4  ;;  %v1839_v14 = vsel %vm6076_vm2, %v5178_v7, %v1838_v24 }
 0x149   : > { %v2272_v49 = vpop.f32.mrf.mxu3  ;;  %v1895_v21 = vunpack.c.l.b16 %v1839_v14 }
 0x14a   : > { %v2349_v0 = vadd.f32 %v2272_v49, %v2063_v23  ;;  %v2854_v23 = vpack.c.b16 %v2832_v34, %v2831_v36  ;;  %v2689_v49 = vrot.slane %v2687_v59, 5  ;;  %v2412_v36 = vld [vmem:[#allocation2 + $0x90] sm:$0xf]  ;;  %v2413_v34 = vld [vmem:[#allocation2 + $0x94] sm:$0xf] }
 0x14b   : > { %v1988_v27 = vpop.f32.mrf.mxu2  ;;  %v2701_v8 = vshll.u32 %v2413_v34, 16 }
 0x14c   : > { %v2064_v31 = vadd.f32 %v1988_v27, %v1636_v56  ;;  %v1640_v17 = vpop.f32.mrf.mxu1 }
 0x14d   : > { %v1641_v20 = vadd.f32 %v1640_v17, %v6264_v13  ;;  %v2675_v13 = vrot.slane %v2674_v48, 4  ;;  %v2695_v17 = vshll.u32 %v2412_v36, 16  ;;  %v2703_v7 = vrot.slane %v2701_v8, 5  ;;  %v2415_v8 = vld [vmem:[#allocation2 + $0x9c] sm:$0xf] }
 0x14e   : > { %v2926_v30 = vpop.f32.mrf.mxu0 }
 0x14f   : > { %v6317_v37 = vadd.f32 %v2926_v30, %v2349_v0  ;;  %v1842_v0 = vsel %vm6076_vm2, %v1840_v11, %v1841_v46 }
 0x150   : > { %5194 = vmatmul.msk.bf16.gmra.mxu2 %vm1346_vm12, %v1915_v4  ;;  %v2690_v4 = vsel %vm5738_vm13, %v2685_v44, %v2689_v49  ;;  %v1896_v24 = vunpack.c.l.b16 %v1842_v0  ;;  %v2414_v44 = vld [vmem:[#allocation2 + $0x98] sm:$0x1] }
 0x151   : > { %v2274_v28 = vpop.f32.mrf.mxu3  ;;  %5291 = vmatmul.msk.bf16.gmra.mxu0 %vm1346_vm12, %v2854_v23  ;;  %v2834_v30 = vunpack.c.l.b16 %v2690_v4  ;;  %v2711_v0 = vshll.u32 %v2414_v44, 16 }
 0x152   : > { %v2350_v5 = vadd.f32 %v2274_v28, %v2064_v31  ;;  %v2680_v31 = vsel %vm5738_vm13, %v2675_v13, %v2679_v57  ;;  %v2697_v28 = vrot.slane %v2695_v17, 5  ;;  %v1916_v13 = vpack.c.b16 %v1896_v24, %v1895_v21 }
 0x153   : > { %v1991_v54 = vpop.f32.mrf.mxu2  ;;  %v2833_v23 = vunpack.c.l.b16 %v2680_v31 }
 0x154   : > { %v2065_v56 = vadd.f32 %v1991_v54, %v1639_v32  ;;  %v1643_v58 = vpop.f32.mrf.mxu1  ;;  %v2692_v32 = vshrl.u32 %v2412_v36, 16  ;;  %v1720_v36 = vld [vmem:[#allocation2 + $0x90] sm:$0xe] }
 0x155   : > { %v1644_v27 = vadd.f32 %v1643_v58, %v6276_v2  ;;  %v2705_v2 = vshrl.u32 %v2413_v34, 16  ;;  %v2855_v34 = vpack.c.b16 %v2834_v30, %v2833_v23  ;;  %v5179_v17 = vrot.slane %v1720_v36, 9  ;;  %v5478_v30 = vld [vmem:[#allocation2 + $0x90] sm:$0xff] }
 0x156   : > { %5275 = vmatmul.msk.bf16.gmra.mxu3 %vm1346_vm12, %v5492_v9  ;;  %v2928_v48 = vpop.f32.mrf.mxu0  ;;  %v2694_v57 = vrot.slane %v2692_v32, 4 }
 0x157   : > { %5162 = vmatmul.msk.bf16.gmra.mxu1 %vm1346_vm12, %v5477_v42  ;;  %v6331_v12 = vadd.f32 %v2928_v48, %v2350_v5  ;;  %v2707_v11 = vrot.slane %v2705_v2, 4  ;;  %v5542_v42 = vld [vmem:[#allocation2 + $0x94] sm:$0xf] }
 0x158   : > { %v1845_v58 = vrot.slane %v5542_v42, 5  ;;  %v2698_v5 = vor.u32 %v2697_v28, %v2694_v57 }
 0x159   : > { %v2277_v59 = vpop.f32.mrf.mxu3  ;;  %v2708_v14 = vor.u32 %v2707_v11, %v2703_v7  ;;  %v2716_v11 = vshrl.u32 %v2415_v8, 16 }
 0x15a   : > { %v2351_v53 = vadd.f32 %v2277_v59, %v2065_v56  ;;  %v5543_v56 = vld [vmem:[#allocation2 + $0x98] sm:$0x1]  ;;  %v2699_v21 = vrot.slane %v2698_v5, 4  ;;  %v2713_v59 = vrot.slane %v2711_v0, 5  ;;  %v1846_v44 = vsel %vm6076_vm2, %v5179_v17, %v1845_v58 }
 0x15b   : > { %v1993_v46 = vpop.f32.mrf.mxu2  ;;  %v1848_v4 = vrot.slane %v5543_v56, 5  ;;  %v2709_v24 = vrot.slane %v2708_v14, 4  ;;  %v2718_v14 = vrot.slane %v2716_v11, 4  ;;  %v1721_v11 = vld [vmem:[#allocation2 + $0x9c] sm:$0xe] }
 0x15c   : > { %v2066_v9 = vadd.f32 %v1993_v46, %v1641_v20  ;;  %v1645_v49 = vpop.f32.mrf.mxu1  ;;  %v1847_v20 = vrot.slane %v1845_v58, 4  ;;  %v2416_v46 = vld [vmem:[#allocation2 + $0xa0] sm:$0xf]  ;;  %v2704_v42 = vsel %vm5738_vm13, %v2699_v21, %v2703_v7  ;;  %v2417_v7 = vld [vmem:[#allocation2 + $0xa4] sm:$0x1] }
 0x15d   : > { %v1646_v54 = vadd.f32 %v1645_v49, %v6293_v15  ;;  %v5493_v15 = vld [vmem:[#allocation2 + $0x90] sm:$0xff]  ;;  %v2729_v49 = vshrl.u32 %v2416_v46, 16  ;;  %v2714_v36 = vsel %vm5738_vm13, %v2709_v24, %v2713_v59  ;;  %v2835_v17 = vunpack.c.l.b16 %v2704_v42 }
 0x15e   : > { %v2931_v31 = vpop.f32.mrf.mxu0 }
 0x15f   : > { %v6335_v2 = vadd.f32 %v2931_v31, %v2351_v53  ;;  %v1849_v53 = vsel %vm6076_vm2, %v1847_v20, %v1848_v4  ;;  %v2836_v20 = vunpack.c.l.b16 %v2714_v36  ;;  %v5180_v36 = vrot.slane %v1721_v11, 9  ;;  %v267_v11 = vld [vmem:[%s5657_s23 + $0xf0] sm:$0xff] }
 0x160   : > { %5195 = vmatmul.msk.bf16.gmra.mxu2 %vm1346_vm12, %v1916_v13  ;;  %v2719_v13 = vshll.u32 %v2415_v8, 16  ;;  %v1898_v5 = vunpack.c.l.b16 %v1849_v53 }
 0x161   : > { %v2279_v32 = vpop.f32.mrf.mxu3  ;;  %5292 = vmatmul.msk.bf16.gmra.mxu0 %vm1346_vm12, %v2855_v34  ;;  %v1897_v34 = vunpack.c.l.b16 %v1846_v44  ;;  %v2735_v44 = vshll.u32 %v2417_v7, 16 }
 0x162   : > { %v2352_v48 = vadd.f32 %v2279_v32, %v2066_v9  ;;  %v2725_v9 = vshll.u32 %v2416_v46, 16  ;;  %v2721_v58 = vrot.slane %v2719_v13, 5  ;;  %v2731_v32 = vrot.slane %v2729_v49, 4 }
 0x163   : > { %v1996_v23 = vpop.f32.mrf.mxu2  ;;  %v1917_v21 = vpack.c.b16 %v1898_v5, %v1897_v34  ;;  %v2856_v13 = vpack.c.b16 %v2836_v20, %v2835_v17  ;;  %v5479_v20 = vld [vmem:[#allocation2 + $0x9c] sm:$0xff] }
 0x164   : > { %v2067_v57 = vadd.f32 %v1996_v23, %v1644_v27  ;;  %v1648_v28 = vpop.f32.mrf.mxu1  ;;  %v2727_v4 = vrot.slane %v2725_v9, 5  ;;  %v2722_v24 = vor.u32 %v2721_v58, %v2718_v14  ;;  %v5544_v23 = vld [vmem:[#allocation2 + $0xa0] sm:$0xf]  ;;  %v5545_v9 = vld [vmem:[#allocation2 + $0xa4] sm:$0x1] }
 0x165   : > { %v1855_v49 = vrot.slane %v5545_v9, 5  ;;  %v1649_v14 = vadd.f32 %v1648_v28, %v6156_v60  ;;  %v5494_v58 = vld [vmem:[#allocation2 + $0x9c] sm:$0xff] }
 0x166   : > { %5276 = vmatmul.msk.bf16.gmra.mxu3 %vm1346_vm12, %v5493_v15  ;;  %v2933_v27 = vpop.f32.mrf.mxu0  ;;  %v2732_v46 = vor.u32 %v2731_v32, %v2727_v4  ;;  %v2737_v32 = vrot.slane %v2735_v44, 5 }
 0x167   : > { %5163 = vmatmul.msk.bf16.gmra.mxu1 %vm1346_vm12, %v5478_v30  ;;  %v6348_v31 = vadd.f32 %v2933_v27, %v2352_v48  ;;  %v1852_v30 = vrot.slane %v5544_v23, 5  ;;  %v2723_v48 = vrot.slane %v2722_v24, 4 }
 0x169   : > { %v2282_v0 = vpop.f32.mrf.mxu3  ;;  %7170 = vst [vmem:[#allocation7_spill] sm:$0xff] %v6348_v31  ;;  %v1854_v27 = vrot.slane %v1852_v30, 4  ;;  %v2728_v24 = vsel %vm5738_vm13, %v2723_v48, %v2727_v4  ;;  %v1853_v28 = vsel %vm6076_vm2, %v5180_v36, %v1852_v30 }
 0x16a   : > { %v2353_v56 = vadd.f32 %v2282_v0, %v2067_v57  ;;  %v2418_v57 = vld [vmem:[#allocation2 + $0xa8] sm:$0xf]  ;;  %v2733_v0 = vrot.slane %v2732_v46, 4  ;;  %v1899_v30 = vunpack.c.l.b16 %v1853_v28 }
 0x16b   : > { %v1998_v8 = vpop.f32.mrf.mxu2  ;;  %v2743_v7 = vshll.u32 %v2418_v57, 16  ;;  %v1856_v46 = vsel %vm6076_vm2, %v1854_v27, %v1855_v49 }
 0x16c   : > { %v2068_v15 = vadd.f32 %v1998_v8, %v1646_v54  ;;  %v1650_v59 = vpop.f32.mrf.mxu1  ;;  %v2419_v54 = vld [vmem:[#allocation2 + $0xac] sm:$0xf]  ;;  %v2740_v8 = vshrl.u32 %v2418_v57, 16  ;;  %v2738_v4 = vsel %vm5738_vm13, %v2733_v0, %v2737_v32  ;;  %v1900_v36 = vunpack.c.l.b16 %v1856_v46  ;;  %v385_v46 = vld [vmem:[#allocation2 + $0xc8] sm:$0x1] }
 0x16d   : > { %v2753_v44 = vshrl.u32 %v2419_v54, 16  ;;  %v2745_v9 = vrot.slane %v2743_v7, 5  ;;  %v1651_v0 = vadd.f32 %v1650_v59, %v6160_v38  ;;  %v1722_v59 = vld [vmem:[#allocation2 + $0xa8] sm:$0xe] }
 0x16e   : > { %v2936_v53 = vpop.f32.mrf.mxu0  ;;  %v2742_v57 = vrot.slane %v2740_v8, 4  ;;  %v2420_v8 = vld [vmem:[#allocation2 + $0xb0] sm:$0x1] }
 0x16f   : > { %v6351_v34 = vadd.f32 %v2936_v53, %v2353_v56  ;;  %v268_v53 = vld [vmem:[%s5657_s23 + $0xf8] sm:$0xff]  ;;  %v2759_v38 = vshll.u32 %v2420_v8, 16 }
 0x170   : > { %5196 = vmatmul.msk.bf16.gmra.mxu2 %vm1346_vm12, %v1917_v21  ;;  %v329_v21 = vld [vmem:[#allocation2 + $0xc0] sm:$0x1]  ;;  %v422_v48 = vpack.c.bf16 %v268_v53, %v268_v53  ;;  %v2746_v7 = vor.u32 %v2745_v9, %v2742_v57  ;;  %v386_v9 = vsel %vm5645_vm6, 0, %v385_v46 }
 0x171   : > { %v2284_v42 = vpop.f32.mrf.mxu3  ;;  %7171 = vst [vmem:[#allocation8_spill] sm:$0xff] %v6351_v34  ;;  %5293 = vmatmul.msk.bf16.gmra.mxu0 %vm1346_vm12, %v2856_v13  ;;  %v330_v60 = vsel %vm5637_vm3, 0, %v329_v21  ;;  %v421_v13 = vpack.c.bf16 %v267_v11, %v267_v11  ;;  %v2838_v21 = vunpack.c.l.b16 %v2738_v4  ;;  %v5546_v4 = vld [vmem:[#allocation2 + $0xb0] sm:$0x1] }
 0x172   : > { %v2354_v5 = vadd.f32 %v2284_v42, %v2068_v15  ;;  %v2749_v15 = vshll.u32 %v2419_v54, 16  ;;  %331 = vst [vmem:[#allocation2 + $0xc0] sm:$0x1] %v330_v60  ;;  %v2755_v54 = vrot.slane %v2753_v44, 4  ;;  %v689_v53 = vshrl.u32 %v422_v48, 16 }
 0x173   : > { %v2001_v17 = vpop.f32.mrf.mxu2  ;;  %v681_v42 = vshrl.u32 %v421_v13, 16  ;;  %v684_v60 = vshll.u32 %v421_v13, 16  ;;  %v5547_v44 = vld [vmem:[#allocation2 + $0xac] sm:$0xf]  ;;  %v692_v13 = vshll.u32 %v422_v48, 16 }
 0x174   : > { %v2069_v56 = vadd.f32 %v2001_v17, %v1649_v14  ;;  %v6357_v23 = vpop.f32.mrf.mxu1  ;;  %v2837_v17 = vunpack.c.l.b16 %v2728_v24  ;;  %v6371_v27 = vrot.slane %v2749_v15, 5  ;;  %v1918_v24 = vpack.c.b16 %v1900_v36, %v1899_v30  ;;  %v2421_v36 = vld [vmem:[#allocation2 + $0xb4] sm:$0xf]  ;;  %387 = vst [vmem:[#allocation2 + $0xc8] sm:$0x1] %v386_v9 }
 0x175   : > { %v683_v32 = vrot.slane %v681_v42, 7  ;;  %v1862_v15 = vrot.slane %v5546_v4, 5  ;;  %v2764_v4 = vshrl.u32 %v2421_v36, 16 }
 0x176   : > { %5277 = vmatmul.msk.bf16.gmra.mxu3 %vm1346_vm12, %v5494_v58  ;;  %v2938_v14 = vpop.f32.mrf.mxu0  ;;  %v2857_v31 = vpack.c.b16 %v2838_v21, %v2837_v17  ;;  %v2422_v17 = vld [vmem:[#allocation2 + $0xb8] sm:$0xf] }
 0x177   : > { %5164 = vmatmul.msk.bf16.gmra.mxu1 %vm1346_vm12, %v5479_v20  ;;  %v6373_v11 = vadd.f32 %v2938_v14, %v2354_v5  ;;  %v1859_v5 = vrot.slane %v5547_v44, 5  ;;  %v686_v42 = vor.u32 %v684_v60, %v683_v32  ;;  %v687_v57 = vrot.slane %v683_v32, 4 }
 0x178   : > { %v1654_v32 = vadd.f32 %v6357_v23, %v6174_v51  ;;  %v2767_v44 = vshll.u32 %v2421_v36, 16 }
 0x179   : > { %v2287_v49 = vpop.f32.mrf.mxu3  ;;  %7172 = vst [vmem:[#allocation9_spill] sm:$0xff] %v6373_v11  ;;  %v853_v14 = vld [vmem:[#allocation2 + $0xc0] sm:$0xf]  ;;  %v2747_v11 = vrot.slane %v2746_v7, 4  ;;  %v5495_v7 = vld [vmem:[#allocation2 + $0xa8] sm:$0xff] }
 0x17a   : > { %v2355_v58 = vadd.f32 %v2287_v49, %v2069_v56  ;;  %v2756_v56 = vor.u32 %v2755_v54, %v6371_v27  ;;  %v691_v49 = vrot.slane %v689_v53, 7  ;;  %v854_v21 = vsel %vm5683_vm9, %v686_v42, %v853_v14 }
 0x17b   : > { %v2003_v20 = vpop.f32.mrf.mxu2  ;;  %855 = vst [vmem:[#allocation2 + $0xc0] sm:$0xf] %v854_v21  ;;  %v2773_v14 = vshll.u32 %v2422_v17, 16  ;;  %v2752_v23 = vsel %vm5738_vm13, %v2747_v11, %v6371_v27  ;;  %v2423_v21 = vld [vmem:[#allocation2 + $0xbc] sm:$0x1] }
 0x17c   : > { %v2070_v34 = vadd.f32 %v2003_v20, %v1651_v0  ;;  %v6376_v28 = vpop.f32.mrf.mxu1  ;;  %v5181_v0 = vrot.slane %v1722_v59, 9  ;;  %v1861_v20 = vrot.slane %v1859_v5, 4  ;;  %v694_v8 = vor.u32 %v692_v13, %v691_v49 }
 0x17d   : > { %v2757_v60 = vrot.slane %v2756_v56, 4  ;;  %v2777_v13 = vshrl.u32 %v2422_v17, 16  ;;  %v2766_v56 = vrot.slane %v2764_v4, 4  ;;  %v5548_v4 = vld [vmem:[#allocation2 + $0xb8] sm:$0xf] }
 0x17e   : > { %v2941_v30 = vpop.f32.mrf.mxu0  ;;  %v695_v59 = vsel %vm5673_vm8, %v687_v57, %v694_v8  ;;  %v1860_v51 = vsel %vm6076_vm2, %v5181_v0, %v1859_v5  ;;  %v857_v57 = vld [vmem:[#allocation2 + $0xc8] sm:$0x1]  ;;  %v2839_v0 = vunpack.c.l.b16 %v2752_v23 }
 0x17f   : > { %v6384_v53 = vadd.f32 %v2941_v30, %v2355_v58  ;;  %856 = vst.msk [vmem:[#allocation2 + $0xc4] sm:$0xf] %vm269_vm5, %v695_v59  ;;  %v1901_v5 = vunpack.c.l.b16 %v1860_v51  ;;  %v2779_v36 = vrot.slane %v2777_v13, 4 }
 0x180   : > { %5197 = vmatmul.msk.bf16.gmra.mxu2 %vm1346_vm12, %v1918_v24  ;;  %v2761_v24 = vrot.slane %v2759_v38, 5  ;;  %v2769_v38 = vrot.slane %v2767_v44, 5  ;;  %v1866_v44 = vrot.slane %v5548_v4, 5  ;;  %v3718_v4 = vld [vmem:[#allocation2 + $0x18] sm:$0xf] }
 0x181   : > { %v2289_v54 = vpop.f32.mrf.mxu3  ;;  %5294 = vmatmul.msk.bf16.gmra.mxu0 %vm1346_vm12, %v2857_v31  ;;  %v1863_v31 = vsel %vm6076_vm2, %v1861_v20, %v1862_v15 }
 0x182   : > { %v2356_v48 = vadd.f32 %v2289_v54, %v2070_v34  ;;  %v696_v34 = vrot.slane %v691_v49, 4  ;;  %v2762_v33 = vsel %vm5738_vm13, %v2757_v60, %v2761_v24  ;;  %v2775_v49 = vrot.slane %v2773_v14, 5  ;;  %v1723_v14 = vld [vmem:[#allocation2 + $0xb4] sm:$0xe] }
 0x183   : > { %v2006_v46 = vpop.f32.mrf.mxu2  ;;  %v1902_v30 = vunpack.c.l.b16 %v1863_v31  ;;  %v1656_v54 = vadd.f32 %v6376_v28, %v6193_v40  ;;  %v2840_v20 = vunpack.c.l.b16 %v2762_v33  ;;  %v5549_v40 = vld [vmem:[#allocation2 + $0xbc] sm:$0x1]  ;;  %v5182_v31 = vrot.slane %v1723_v14, 9  ;;  %v2424_v33 = vld [vmem:[#allocation2 + $0xc0] sm:$0xf] }
 0x184   : > { %v2071_v42 = vadd.f32 %v2006_v46, %v1654_v32  ;;  %v1658_v58 = vpop.f32.mrf.mxu1  ;;  %v858_v15 = vsel %vm5637_vm3, %v696_v34, %v857_v57  ;;  %v2770_v32 = vor.u32 %v2769_v38, %v2766_v56  ;;  %v2780_v24 = vor.u32 %v2779_v36, %v2775_v49 }
 0x185   : > { %859 = vst [vmem:[#allocation2 + $0xc8] sm:$0x1] %v858_v15  ;;  %v1919_v60 = vpack.c.b16 %v1902_v30, %v1901_v5  ;;  %v2783_v46 = vshll.u32 %v2423_v21, 16  ;;  %v2858_v59 = vpack.c.b16 %v2840_v20, %v2839_v0  ;;  %v1869_v28 = vrot.slane %v5549_v40, 5  ;;  %v5550_v30 = vld [vmem:[#allocation2 + $0x10] sm:$0xf] }
 0x186   : > { %5278 = vmatmul.msk.bf16.gmra.mxu3 %vm1346_vm12, %v5495_v7  ;;  %v2943_v9 = vpop.f32.mrf.mxu0  ;;  %v1868_v23 = vrot.slane %v1866_v44, 4  ;;  %v1659_v57 = vadd.f32 %v1658_v58, %v6203_v26  ;;  %v2425_v5 = vld [vmem:[#allocation2 + $0xc4] sm:$0xf]  ;;  %v3099_v36 = vrot.slane %v5550_v30, 5  ;;  %v2788_v20 = vshrl.u32 %v2424_v33, 16 }
 0x187   : > { %5165 = vmatmul.msk.bf16.gmra.mxu1 %vm1346_vm12, %v5480_v39  ;;  %v6405_v27 = vadd.f32 %v2943_v9, %v2356_v48  ;;  %v2771_v48 = vrot.slane %v2770_v32, 4  ;;  %v2785_v34 = vrot.slane %v2783_v46, 5  ;;  %v5496_v9 = vld [vmem:[#allocation2 + $0xb4] sm:$0xff]  ;;  %v1867_v26 = vsel %vm6076_vm2, %v5182_v31, %v1866_v44  ;;  %v3033_v31 = vld [vmem:[#allocation2 + $0xc] sm:$0xe] }
 0x188   : > { %v1870_v58 = vsel %vm6076_vm2, %v1868_v23, %v1869_v28  ;;  %v2797_v32 = vshll.u32 %v2425_v5, 16  ;;  %v2790_v44 = vrot.slane %v2788_v20, 4 }
 0x189   : > { %v2292_v17 = vpop.f32.mrf.mxu3  ;;  %v2776_v21 = vsel %vm5738_vm13, %v2771_v48, %v2775_v49  ;;  %v1904_v48 = vunpack.c.l.b16 %v1870_v58 }
 0x18a   : > { %v2357_v11 = vadd.f32 %v2292_v17, %v2071_v42  ;;  %v2781_v42 = vrot.slane %v2780_v24, 4  ;;  %v5481_v17 = vld [vmem:[#allocation2 + $0xb4] sm:$0xff]  ;;  %v2841_v46 = vunpack.c.l.b16 %v2776_v21 }
 0x18b   : > { %v2008_v8 = vpop.f32.mrf.mxu2  ;;  %v5551_v24 = vld [vmem:[#allocation2 + $0x14] sm:$0x1] }
 0x18c   : > { %v2072_v7 = vadd.f32 %v2008_v8, %v1656_v54  ;;  %v1660_v39 = vpop.f32.mrf.mxu1  ;;  %v2786_v54 = vsel %vm5738_vm13, %v2781_v42, %v2785_v34  ;;  %v2791_v8 = vshll.u32 %v2424_v33, 16  ;;  %v3102_v49 = vrot.slane %v5551_v24, 5  ;;  %v6424_v42 = vld [vmem:[#allocation2 + $0x1c] sm:$0xf] }
 0x18d   : > { %v1661_v40 = vadd.f32 %v1660_v39, %v6222_v19  ;;  %v3776_v21 = vshll.u32 %v6424_v42, 16 }
 0x18e   : > { %v2946_v13 = vpop.f32.mrf.mxu0  ;;  %v2793_v28 = vrot.slane %v2791_v8, 5 }
 0x18f   : > { %v6410_v56 = vadd.f32 %v2946_v13, %v2357_v11  ;;  %v1903_v13 = vunpack.c.l.b16 %v1867_v26 }
 0x190   : > { %5198 = vmatmul.msk.bf16.gmra.mxu2 %vm1346_vm12, %v1919_v60  ;;  %v3101_v60 = vrot.slane %v3099_v36, 4 }
 0x191   : > { %v2294_v51 = vpop.f32.mrf.mxu3  ;;  %5295 = vmatmul.msk.bf16.gmra.mxu0 %vm1346_vm12, %v2858_v59  ;;  %v2842_v59 = vunpack.c.l.b16 %v2786_v54  ;;  %v3780_v54 = vshrl.u32 %v6424_v42, 16  ;;  %v1920_v26 = vpack.c.b16 %v1904_v48, %v1903_v13  ;;  %v6436_v13 = vld [vmem:[#allocation2 + $0x20] sm:$0x1] }
 0x192   : > { %v2358_v38 = vadd.f32 %v2294_v51, %v2072_v7  ;;  %v2801_v7 = vshrl.u32 %v2425_v5, 16  ;;  %v2799_v51 = vrot.slane %v2797_v32, 5  ;;  %v3767_v5 = vshrl.u32 %v3718_v4, 16 }
 0x193   : > { %v2011_v15 = vpop.f32.mrf.mxu2  ;;  %v3103_v39 = vsel %vm6076_vm2, %v3101_v60, %v3102_v49  ;;  %v2859_v32 = vpack.c.b16 %v2842_v59, %v2841_v46  ;;  %v5497_v46 = vld [vmem:[#allocation2 + $0xc0] sm:$0xff] }
 0x194   : > { %v2073_v0 = vadd.f32 %v2011_v15, %v1659_v57  ;;  %v1663_v11 = vpop.f32.mrf.mxu1  ;;  %v2803_v57 = vrot.slane %v2801_v7, 4  ;;  %v2426_v15 = vld [vmem:[#allocation2 + $0xc8] sm:$0x1]  ;;  %v3212_v8 = vunpack.c.l.b16 %v3103_v39 }
 0x195   : > { %v2807_v24 = vshll.u32 %v2426_v15, 16  ;;  %v1664_v49 = vadd.f32 %v1663_v11, %v6234_v61  ;;  %v3721_v11 = vld [vmem:[#allocation2 + $0x24] sm:$0xf] }
 0x196   : > { %5279 = vmatmul.msk.bf16.gmra.mxu3 %vm1346_vm12, %v5496_v9  ;;  %v2948_v14 = vpop.f32.mrf.mxu0  ;;  %v5298_v9 = vrot.slane %v3033_v31, 9  ;;  %v2804_v7 = vor.u32 %v2803_v57, %v2799_v51  ;;  %v3778_v31 = vrot.slane %v3776_v21, 5 }
 0x197   : > { %5166 = vmatmul.msk.bf16.gmra.mxu1 %vm1346_vm12, %v5481_v17  ;;  %v6427_v23 = vadd.f32 %v2948_v14, %v2358_v38  ;;  %v3770_v17 = vshll.u32 %v3718_v4, 16  ;;  %v2794_v38 = vor.u32 %v2793_v28, %v2790_v44  ;;  %v3769_v4 = vrot.slane %v3767_v5, 4 }
 0x198   : > { %v3100_v19 = vsel %vm6076_vm2, %v5298_v9, %v3099_v36  ;;  %v2805_v59 = vrot.slane %v2804_v7, 4  ;;  %v2809_v44 = vrot.slane %v2807_v24, 5  ;;  %v3034_v24 = vld [vmem:[#allocation2 + $0x18] sm:$0xe] }
 0x199   : > { %v2297_v34 = vpop.f32.mrf.mxu3  ;;  %7173 = vst [vmem:[#allocation10_spill] sm:$0xff] %v6427_v23  ;;  %v3782_v23 = vrot.slane %v3780_v54, 4  ;;  %v2795_v48 = vrot.slane %v2794_v38, 4  ;;  %v5553_v38 = vld [vmem:[#allocation2 + $0x1c] sm:$0xf] }
 0x19a   : > { %v2359_v33 = vadd.f32 %v2297_v34, %v2073_v0  ;;  %v3211_v0 = vunpack.c.l.b16 %v3100_v19  ;;  %v3772_v34 = vrot.slane %v3770_v17, 5  ;;  %v2810_v61 = vsel %vm5738_vm13, %v2805_v59, %v2809_v44 }
 0x19b   : > { %v2013_v30 = vpop.f32.mrf.mxu2  ;;  %v3783_v5 = vor.u32 %v3782_v23, %v3778_v31  ;;  %v2800_v21 = vsel %vm5738_vm13, %v2795_v48, %v2799_v51  ;;  %v2844_v51 = vunpack.c.l.b16 %v2810_v61  ;;  %v3794_v48 = vshll.u32 %v3721_v11, 16  ;;  %v4372_v61 = vld [vmem:[#allocation2 + $0x18] sm:$0xe] }
 0x19c   : > { %v2074_v20 = vadd.f32 %v2013_v30, %v1661_v40  ;;  %v1665_v58 = vpop.f32.mrf.mxu1  ;;  %v3243_v14 = vpack.c.b16 %v3212_v8, %v3211_v0  ;;  %v3773_v57 = vor.u32 %v3772_v34, %v3769_v4  ;;  %v3786_v30 = vshll.u32 %v6436_v13, 16  ;;  %v6449_v8 = vld [vmem:[#allocation2 + $0x28] sm:$0xf] }
 0x19d   : > { %v3784_v54 = vrot.slane %v3783_v5, 4  ;;  %v2843_v39 = vunpack.c.l.b16 %v2800_v21  ;;  %v3106_v0 = vrot.slane %v5553_v38, 5  ;;  %v1666_v7 = vadd.f32 %v1665_v58, %v6252_v47  ;;  %v5498_v58 = vld [vmem:[#allocation2 + $0x18] sm:$0xff] }
 0x19e   : > { %v2951_v40 = vpop.f32.mrf.mxu0  ;;  %v3791_v4 = vshrl.u32 %v3721_v11, 16  ;;  %v3800_v44 = vshll.u32 %v6449_v8, 16 }
 0x19f   : > { %v6438_v9 = vadd.f32 %v2951_v40, %v2359_v33  ;;  %v3774_v33 = vrot.slane %v3773_v57, 4  ;;  %v5299_v40 = vrot.slane %v3034_v24, 9 }
 0x1a0   : > { %5199 = vmatmul.msk.bf16.gmra.mxu2 %vm1346_vm12, %v1920_v26  ;;  %v5552_v26 = vld [vmem:[#allocation2 + $0x20] sm:$0x1]  ;;  %v3793_v11 = vrot.slane %v3791_v4, 4  ;;  %v4441_v4 = vrot.slane %v6436_v13, 5 }
 0x1a1   : > { %v2299_v36 = vpop.f32.mrf.mxu3  ;;  %5296 = vmatmul.msk.bf16.gmra.mxu0 %vm1346_vm12, %v2859_v32  ;;  %v3109_v23 = vrot.slane %v5552_v26, 5  ;;  %v3802_v26 = vrot.slane %v3800_v44, 5 }
 0x1a2   : > { %v2360_v60 = vadd.f32 %v2299_v36, %v2074_v20  ;;  %v3788_v20 = vrot.slane %v3786_v30, 5  ;;  %v3108_v36 = vrot.slane %v3106_v0, 4  ;;  %v2860_v30 = vpack.c.b16 %v2844_v51, %v2843_v39 }
 0x1a3   : > { %v2016_v28 = vpop.f32.mrf.mxu2 }
 0x1a4   : > { %v2075_v15 = vadd.f32 %v2016_v28, %v1664_v49  ;;  %v1668_v17 = vpop.f32.mrf.mxu1  ;;  %v3789_v59 = vsel %vm5738_vm13, %v3784_v54, %v3788_v20  ;;  %v3804_v28 = vshrl.u32 %v6449_v8, 16  ;;  %v3110_v5 = vsel %vm6076_vm2, %v3108_v36, %v3109_v23 }
 0x1a5   : > { %v4153_v21 = vunpack.c.l.b16 %v3789_v59  ;;  %v3214_v20 = vunpack.c.l.b16 %v3110_v5  ;;  %v1669_v51 = vadd.f32 %v1668_v17, %v6168_v41  ;;  %v3724_v17 = vld [vmem:[#allocation2 + $0x30] sm:$0xf] }
 0x1a6   : > { %5280 = vmatmul.msk.bf16.gmra.mxu3 %vm1346_vm12, %v5497_v46  ;;  %v2953_v19 = vpop.f32.mrf.mxu0  ;;  %v3779_v46 = vsel %vm5738_vm13, %v3774_v33, %v3778_v31  ;;  %v3796_v33 = vrot.slane %v3794_v48, 5 }
 0x1a7   : > { %5315 = vmatmul.msk.bf16.vlgmr.msra.gmra.mxu1 %vm1346_vm12, %v3243_v14  ;;  %v6452_v34 = vadd.f32 %v2953_v19, %v2360_v60  ;;  %v3107_v60 = vsel %vm6076_vm2, %v5299_v40, %v3106_v0  ;;  %v4152_v31 = vunpack.c.l.b16 %v3779_v46  ;;  %v3806_v19 = vrot.slane %v3804_v28, 4 }
 0x1a8   : > { %v3213_v54 = vunpack.c.l.b16 %v3107_v60  ;;  %v3797_v48 = vor.u32 %v3796_v33, %v3793_v11 }
 0x1a9   : > { %v2302_v32 = vpop.f32.mrf.mxu3  ;;  %v4184_v24 = vpack.c.b16 %v4153_v21, %v4152_v31  ;;  %v5555_v31 = vld [vmem:[#allocation2 + $0x28] sm:$0xf] }
 0x1aa   : > { %v2361_v14 = vadd.f32 %v2302_v32, %v2075_v15  ;;  %v4438_v15 = vrot.slane %v6424_v42, 5  ;;  %v6466_v32 = vld [vmem:[#allocation2 + $0x2c] sm:$0x1]  ;;  %v3244_v36 = vpack.c.b16 %v3214_v20, %v3213_v54  ;;  %v3798_v13 = vrot.slane %v3797_v48, 4  ;;  %v3035_v54 = vld [vmem:[#allocation2 + $0x24] sm:$0xe] }
 0x1ab   : > { %v2018_v49 = vpop.f32.mrf.mxu2  ;;  %v3810_v46 = vshll.u32 %v6466_v32, 16  ;;  %v3113_v21 = vrot.slane %v5555_v31, 5  ;;  %v3815_v20 = vshrl.u32 %v3724_v17, 16 }
 0x1ac   : > { %v2076_v47 = vadd.f32 %v2018_v49, %v1666_v7  ;;  %v1670_v57 = vpop.f32.mrf.mxu1  ;;  %v5429_v7 = vrot.slane %v4372_v61, 9  ;;  %v4440_v23 = vrot.slane %v4438_v15, 4  ;;  %v3807_v49 = vor.u32 %v3806_v19, %v3802_v26  ;;  %v6480_v61 = vld [vmem:[#allocation2 + $0x34] sm:$0xf] }
 0x1ad   : > { %v1671_v33 = vadd.f32 %v1670_v57, %v6179_v43  ;;  %v5499_v57 = vld [vmem:[#allocation2 + $0x24] sm:$0xff] }
 0x1ae   : > { %v2956_v38 = vpop.f32.mrf.mxu0  ;;  %v4442_v41 = vsel %vm6076_vm2, %v4440_v23, %v4441_v4  ;;  %v3808_v28 = vrot.slane %v3807_v49, 4  ;;  %v3818_v23 = vshll.u32 %v3724_v17, 16  ;;  %v3817_v17 = vrot.slane %v3815_v20, 4 }
 0x1af   : > { %v6468_v39 = vadd.f32 %v2956_v38, %v2361_v14  ;;  %v4439_v14 = vsel %vm6076_vm2, %v5429_v7, %v4438_v15  ;;  %v4551_v15 = vunpack.c.l.b16 %v4442_v41  ;;  %v3115_v7 = vrot.slane %v3113_v21, 4  ;;  %v4373_v41 = vld [vmem:[#allocation2 + $0x24] sm:$0xe] }
 0x1b0   : > { %5396 = vmatmul.msk.bf16.vlgmr.msra.gmra.mxu2 %vm1346_vm12, %v5498_v58  ;;  %v5554_v58 = vld [vmem:[#allocation2 + $0x2c] sm:$0x1]  ;;  %v4448_v20 = vrot.slane %v6466_v32, 5 }
 0x1b1   : > { %v2304_v0 = vpop.f32.mrf.mxu3  ;;  %5297 = vmatmul.msk.bf16.gmra.mxu0 %vm1346_vm12, %v2860_v30  ;;  %v3116_v60 = vrot.slane %v5554_v58, 5  ;;  %v4550_v30 = vunpack.c.l.b16 %v4439_v14 }
 0x1b2   : > { %v2362_v42 = vadd.f32 %v2304_v0, %v2076_v47  ;;  %v3812_v47 = vrot.slane %v3810_v46, 5  ;;  %v5300_v0 = vrot.slane %v3035_v54, 9 }
 0x1b3   : > { %v2021_v40 = vpop.f32.mrf.mxu2  ;;  %v3117_v49 = vsel %vm6076_vm2, %v3115_v7, %v3116_v60  ;;  %v4582_v46 = vpack.c.b16 %v4551_v15, %v4550_v30 }
 0x1b4   : > { %v2077_v59 = vadd.f32 %v2021_v40, %v1669_v51  ;;  %v1673_v44 = vpop.f32.mrf.mxu1  ;;  %v3813_v4 = vsel %vm5738_vm13, %v3808_v28, %v3812_v47  ;;  %v3824_v40 = vshll.u32 %v6480_v61, 16  ;;  %v3216_v47 = vunpack.c.l.b16 %v3117_v49 }
 0x1b5   : > { %v4155_v14 = vunpack.c.l.b16 %v3813_v4  ;;  %v1674_v15 = vadd.f32 %v1673_v44, %v6198_v1  ;;  %v3727_v44 = vld [vmem:[#allocation2 + $0x3c] sm:$0xf] }
 0x1b6   : > { %5413 = vmatmul.msk.bf16.vlgmr.msra.gmra.mxu3 %vm1346_vm12, %v4184_v24  ;;  %v2958_v5 = vpop.f32.mrf.mxu0  ;;  %v3803_v24 = vsel %vm5738_vm13, %v3798_v13, %v3802_v26  ;;  %v3820_v13 = vrot.slane %v3818_v23, 5  ;;  %v3826_v58 = vrot.slane %v3824_v40, 5 }
 0x1b7   : > { %5316 = vmatmul.msk.bf16.gmra.mxu1 %vm1346_vm12, %v3244_v36  ;;  %v6483_v19 = vadd.f32 %v2958_v5, %v2362_v42  ;;  %v3828_v36 = vshrl.u32 %v6480_v61, 16  ;;  %v3114_v42 = vsel %vm6076_vm2, %v5300_v0, %v3113_v21  ;;  %v4154_v26 = vunpack.c.l.b16 %v3803_v24 }
 0x1b8   : > { %v3215_v28 = vunpack.c.l.b16 %v3114_v42  ;;  %v3821_v23 = vor.u32 %v3820_v13, %v3817_v17 }
 0x1b9   : > { %v2307_v11 = vpop.f32.mrf.mxu3  ;;  %v3830_v5 = vrot.slane %v3828_v36, 4  ;;  %v4185_v54 = vpack.c.b16 %v4155_v14, %v4154_v26  ;;  %v5557_v26 = vld [vmem:[#allocation2 + $0x34] sm:$0xf] }
 0x1ba   : > { %v2363_v38 = vadd.f32 %v2307_v11, %v2077_v59  ;;  %v4445_v59 = vrot.slane %v6449_v8, 5  ;;  %v6497_v11 = vld [vmem:[#allocation2 + $0x38] sm:$0x1]  ;;  %v3245_v7 = vpack.c.b16 %v3216_v47, %v3215_v28  ;;  %v3822_v32 = vrot.slane %v3821_v23, 4  ;;  %v3036_v28 = vld [vmem:[#allocation2 + $0x30] sm:$0xe] }
 0x1bb   : > { %v2023_v51 = vpop.f32.mrf.mxu2  ;;  %v3834_v24 = vshll.u32 %v6497_v11, 16  ;;  %v3120_v14 = vrot.slane %v5557_v26, 5  ;;  %v3839_v47 = vshrl.u32 %v3727_v44, 16 }
 0x1bc   : > { %v2078_v43 = vadd.f32 %v2023_v51, %v1671_v33  ;;  %v1675_v48 = vpop.f32.mrf.mxu1  ;;  %v5430_v33 = vrot.slane %v4373_v41, 9  ;;  %v4447_v60 = vrot.slane %v4445_v59, 4  ;;  %v3831_v51 = vor.u32 %v3830_v5, %v3826_v58  ;;  %v6511_v41 = vld [vmem:[#allocation2 + $0x40] sm:$0xf] }
 0x1bd   : > { %v1676_v13 = vadd.f32 %v1675_v48, %v6208_v62  ;;  %v5500_v48 = vld [vmem:[#allocation2 + $0x30] sm:$0xff] }
 0x1be   : > { %v2961_v31 = vpop.f32.mrf.mxu0  ;;  %v4449_v1 = vsel %vm6076_vm2, %v4447_v60, %v4448_v20  ;;  %v3832_v36 = vrot.slane %v3831_v51, 4  ;;  %v3842_v60 = vshll.u32 %v3727_v44, 16  ;;  %v3841_v44 = vrot.slane %v3839_v47, 4 }
 0x1bf   : > { %v6499_v30 = vadd.f32 %v2961_v31, %v2363_v38  ;;  %v4446_v38 = vsel %vm6076_vm2, %v5430_v33, %v4445_v59  ;;  %v4553_v59 = vunpack.c.l.b16 %v4449_v1  ;;  %v3122_v33 = vrot.slane %v3120_v14, 4  ;;  %v4374_v1 = vld [vmem:[#allocation2 + $0x30] sm:$0xe] }
 0x1c0   : > { %5397 = vmatmul.msk.bf16.gmra.mxu2 %vm1346_vm12, %v5499_v57  ;;  %v5556_v57 = vld [vmem:[#allocation2 + $0x38] sm:$0x1]  ;;  %v4455_v47 = vrot.slane %v6497_v11, 5 }
 0x1c1   : > { %v2309_v21 = vpop.f32.mrf.mxu3  ;;  %5446 = vmatmul.msk.bf16.vlgmr.msra.gmra.mxu0 %vm1346_vm12, %v4582_v46  ;;  %v3123_v42 = vrot.slane %v5556_v57, 5  ;;  %v4552_v46 = vunpack.c.l.b16 %v4446_v38 }
 0x1c2   : > { %v2364_v8 = vadd.f32 %v2309_v21, %v2078_v43  ;;  %v3836_v43 = vrot.slane %v3834_v24, 5  ;;  %v5301_v21 = vrot.slane %v3036_v28, 9 }
 0x1c3   : > { %v2026_v0 = vpop.f32.mrf.mxu2  ;;  %v3124_v51 = vsel %vm6076_vm2, %v3122_v33, %v3123_v42  ;;  %v4583_v24 = vpack.c.b16 %v4553_v59, %v4552_v46 }
 0x1c4   : > { %v2079_v4 = vadd.f32 %v2026_v0, %v1674_v15  ;;  %v1678_v40 = vpop.f32.mrf.mxu1  ;;  %v3837_v20 = vsel %vm5738_vm13, %v3832_v36, %v3836_v43  ;;  %v3848_v0 = vshll.u32 %v6511_v41, 16  ;;  %v3218_v43 = vunpack.c.l.b16 %v3124_v51 }
 0x1c5   : > { %v4157_v38 = vunpack.c.l.b16 %v3837_v20  ;;  %v1679_v59 = vadd.f32 %v1678_v40, %v6227_v35  ;;  %v3730_v40 = vld [vmem:[#allocation2 + $0x48] sm:$0xf] }
 0x1c6   : > { %5414 = vmatmul.msk.bf16.gmra.mxu3 %vm1346_vm12, %v4185_v54  ;;  %v2963_v49 = vpop.f32.mrf.mxu0  ;;  %v3827_v54 = vsel %vm5738_vm13, %v3822_v32, %v3826_v58  ;;  %v3844_v32 = vrot.slane %v3842_v60, 5  ;;  %v3850_v57 = vrot.slane %v3848_v0, 5 }
 0x1c7   : > { %5317 = vmatmul.msk.bf16.gmra.mxu1 %vm1346_vm12, %v3245_v7  ;;  %v6514_v5 = vadd.f32 %v2963_v49, %v2364_v8  ;;  %v3852_v7 = vshrl.u32 %v6511_v41, 16  ;;  %v3121_v8 = vsel %vm6076_vm2, %v5301_v21, %v3120_v14  ;;  %v4156_v58 = vunpack.c.l.b16 %v3827_v54 }
 0x1c8   : > { %v3217_v36 = vunpack.c.l.b16 %v3121_v8  ;;  %v3845_v60 = vor.u32 %v3844_v32, %v3841_v44 }
 0x1c9   : > { %v2312_v17 = vpop.f32.mrf.mxu3  ;;  %v3854_v49 = vrot.slane %v3852_v7, 4  ;;  %v4186_v28 = vpack.c.b16 %v4157_v38, %v4156_v58  ;;  %v5559_v58 = vld [vmem:[#allocation2 + $0x40] sm:$0xf] }
 0x1ca   : > { %v2365_v31 = vadd.f32 %v2312_v17, %v2079_v4  ;;  %v4452_v4 = vrot.slane %v6480_v61, 5  ;;  %v6528_v17 = vld [vmem:[#allocation2 + $0x44] sm:$0x1]  ;;  %v3246_v33 = vpack.c.b16 %v3218_v43, %v3217_v36  ;;  %v3846_v11 = vrot.slane %v3845_v60, 4  ;;  %v3037_v36 = vld [vmem:[#allocation2 + $0x3c] sm:$0xe] }
 0x1cb   : > { %v2028_v15 = vpop.f32.mrf.mxu2  ;;  %v3858_v54 = vshll.u32 %v6528_v17, 16  ;;  %v3127_v38 = vrot.slane %v5559_v58, 5  ;;  %v3863_v43 = vshrl.u32 %v3730_v40, 16 }
 0x1cc   : > { %v2080_v62 = vadd.f32 %v2028_v15, %v1676_v13  ;;  %v1680_v23 = vpop.f32.mrf.mxu1  ;;  %v5431_v13 = vrot.slane %v4374_v1, 9  ;;  %v4454_v42 = vrot.slane %v4452_v4, 4  ;;  %v3855_v15 = vor.u32 %v3854_v49, %v3850_v57  ;;  %v6542_v1 = vld [vmem:[#allocation2 + $0x4c] sm:$0xf] }
 0x1cd   : > { %v1681_v32 = vadd.f32 %v1680_v23, %v6248_v16  ;;  %v5501_v23 = vld [vmem:[#allocation2 + $0x3c] sm:$0xff] }
 0x1ce   : > { %v2966_v26 = vpop.f32.mrf.mxu0  ;;  %v4456_v35 = vsel %vm6076_vm2, %v4454_v42, %v4455_v47  ;;  %v3856_v7 = vrot.slane %v3855_v15, 4  ;;  %v3866_v42 = vshll.u32 %v3730_v40, 16  ;;  %v3865_v40 = vrot.slane %v3863_v43, 4 }
 0x1cf   : > { %v6530_v46 = vadd.f32 %v2966_v26, %v2365_v31  ;;  %v4453_v31 = vsel %vm6076_vm2, %v5431_v13, %v4452_v4  ;;  %v4555_v4 = vunpack.c.l.b16 %v4456_v35  ;;  %v3129_v13 = vrot.slane %v3127_v38, 4  ;;  %v4375_v35 = vld [vmem:[#allocation2 + $0x3c] sm:$0xe] }
 0x1d0   : > { %5398 = vmatmul.msk.bf16.gmra.mxu2 %vm1346_vm12, %v5500_v48  ;;  %v5558_v48 = vld [vmem:[#allocation2 + $0x44] sm:$0x1]  ;;  %v4462_v43 = vrot.slane %v6528_v17, 5 }
 0x1d1   : > { %v2314_v14 = vpop.f32.mrf.mxu3  ;;  %5447 = vmatmul.msk.bf16.gmra.mxu0 %vm1346_vm12, %v4583_v24  ;;  %v3130_v8 = vrot.slane %v5558_v48, 5  ;;  %v4554_v24 = vunpack.c.l.b16 %v4453_v31 }
 0x1d2   : > { %v2366_v61 = vadd.f32 %v2314_v14, %v2080_v62  ;;  %v3860_v62 = vrot.slane %v3858_v54, 5  ;;  %v5302_v14 = vrot.slane %v3037_v36, 9 }
 0x1d3   : > { %v2031_v21 = vpop.f32.mrf.mxu2  ;;  %v3131_v15 = vsel %vm6076_vm2, %v3129_v13, %v3130_v8  ;;  %v4584_v54 = vpack.c.b16 %v4555_v4, %v4554_v24 }
 0x1d4   : > { %v2081_v20 = vadd.f32 %v2031_v21, %v1679_v59  ;;  %v1683_v0 = vpop.f32.mrf.mxu1  ;;  %v3861_v47 = vsel %vm5738_vm13, %v3856_v7, %v3860_v62  ;;  %v3872_v21 = vshll.u32 %v6542_v1, 16  ;;  %v3220_v62 = vunpack.c.l.b16 %v3131_v15 }
 0x1d5   : > { %v4159_v31 = vunpack.c.l.b16 %v3861_v47  ;;  %v1684_v4 = vadd.f32 %v1683_v0, %v6258_v29  ;;  %v3733_v0 = vld [vmem:[#allocation2 + $0x54] sm:$0xf] }
 0x1d6   : > { %5415 = vmatmul.msk.bf16.gmra.mxu3 %vm1346_vm12, %v4186_v28  ;;  %v2968_v51 = vpop.f32.mrf.mxu0  ;;  %v3851_v28 = vsel %vm5738_vm13, %v3846_v11, %v3850_v57  ;;  %v3868_v11 = vrot.slane %v3866_v42, 5  ;;  %v3874_v48 = vrot.slane %v3872_v21, 5 }
 0x1d7   : > { %5318 = vmatmul.msk.bf16.gmra.mxu1 %vm1346_vm12, %v3246_v33  ;;  %v6545_v49 = vadd.f32 %v2968_v51, %v2366_v61  ;;  %v3876_v33 = vshrl.u32 %v6542_v1, 16  ;;  %v3128_v61 = vsel %vm6076_vm2, %v5302_v14, %v3127_v38  ;;  %v4158_v57 = vunpack.c.l.b16 %v3851_v28 }
 0x1d8   : > { %v3219_v7 = vunpack.c.l.b16 %v3128_v61  ;;  %v3869_v42 = vor.u32 %v3868_v11, %v3865_v40 }
 0x1d9   : > { %v2317_v44 = vpop.f32.mrf.mxu3  ;;  %v3878_v51 = vrot.slane %v3876_v33, 4  ;;  %v4187_v36 = vpack.c.b16 %v4159_v31, %v4158_v57  ;;  %v5561_v57 = vld [vmem:[#allocation2 + $0x4c] sm:$0xf] }
 0x1da   : > { %v2367_v26 = vadd.f32 %v2317_v44, %v2081_v20  ;;  %v4459_v20 = vrot.slane %v6511_v41, 5  ;;  %v6559_v44 = vld [vmem:[#allocation2 + $0x50] sm:$0x1]  ;;  %v3247_v13 = vpack.c.b16 %v3220_v62, %v3219_v7  ;;  %v3870_v17 = vrot.slane %v3869_v42, 4  ;;  %v3038_v7 = vld [vmem:[#allocation2 + $0x48] sm:$0xe] }
 0x1db   : > { %v2033_v59 = vpop.f32.mrf.mxu2  ;;  %v3882_v28 = vshll.u32 %v6559_v44, 16  ;;  %v3134_v31 = vrot.slane %v5561_v57, 5  ;;  %v3887_v62 = vshrl.u32 %v3733_v0, 16 }
 0x1dc   : > { %v2082_v16 = vadd.f32 %v2033_v59, %v1681_v32  ;;  %v1685_v60 = vpop.f32.mrf.mxu1  ;;  %v5432_v32 = vrot.slane %v4375_v35, 9  ;;  %v4461_v8 = vrot.slane %v4459_v20, 4  ;;  %v3879_v59 = vor.u32 %v3878_v51, %v3874_v48  ;;  %v6573_v35 = vld [vmem:[#allocation2 + $0x58] sm:$0xf] }
 0x1dd   : > { %v1686_v11 = vadd.f32 %v1685_v60, %v6274_v52  ;;  %v5502_v60 = vld [vmem:[#allocation2 + $0x48] sm:$0xff] }
 0x1de   : > { %v2971_v58 = vpop.f32.mrf.mxu0  ;;  %v4463_v29 = vsel %vm6076_vm2, %v4461_v8, %v4462_v43  ;;  %v3880_v33 = vrot.slane %v3879_v59, 4  ;;  %v3890_v8 = vshll.u32 %v3733_v0, 16  ;;  %v3889_v0 = vrot.slane %v3887_v62, 4 }
 0x1df   : > { %v6561_v24 = vadd.f32 %v2971_v58, %v2367_v26  ;;  %v4460_v26 = vsel %vm6076_vm2, %v5432_v32, %v4459_v20  ;;  %v4557_v20 = vunpack.c.l.b16 %v4463_v29  ;;  %v3136_v32 = vrot.slane %v3134_v31, 4  ;;  %v4376_v29 = vld [vmem:[#allocation2 + $0x48] sm:$0xe] }
 0x1e0   : > { %5399 = vmatmul.msk.bf16.gmra.mxu2 %vm1346_vm12, %v5501_v23  ;;  %v5560_v23 = vld [vmem:[#allocation2 + $0x50] sm:$0x1]  ;;  %v4469_v62 = vrot.slane %v6559_v44, 5 }
 0x1e1   : > { %v2319_v38 = vpop.f32.mrf.mxu3  ;;  %5448 = vmatmul.msk.bf16.gmra.mxu0 %vm1346_vm12, %v4584_v54  ;;  %v3137_v61 = vrot.slane %v5560_v23, 5  ;;  %v4556_v54 = vunpack.c.l.b16 %v4460_v26 }
 0x1e2   : > { %v2368_v41 = vadd.f32 %v2319_v38, %v2082_v16  ;;  %v3884_v16 = vrot.slane %v3882_v28, 5  ;;  %v5303_v38 = vrot.slane %v3038_v7, 9 }
 0x1e3   : > { %v2036_v14 = vpop.f32.mrf.mxu2  ;;  %v3138_v59 = vsel %vm6076_vm2, %v3136_v32, %v3137_v61  ;;  %v4585_v28 = vpack.c.b16 %v4557_v20, %v4556_v54 }
 0x1e4   : > { %v2083_v47 = vadd.f32 %v2036_v14, %v1684_v4  ;;  %v1688_v21 = vpop.f32.mrf.mxu1  ;;  %v3885_v43 = vsel %vm5738_vm13, %v3880_v33, %v3884_v16  ;;  %v3896_v14 = vshll.u32 %v6573_v35, 16  ;;  %v3222_v16 = vunpack.c.l.b16 %v3138_v59 }
 0x1e5   : > { %v4161_v26 = vunpack.c.l.b16 %v3885_v43  ;;  %v1689_v20 = vadd.f32 %v1688_v21, %v6176_v45  ;;  %v3736_v21 = vld [vmem:[#allocation2 + $0x60] sm:$0xf] }
 0x1e6   : > { %5416 = vmatmul.msk.bf16.gmra.mxu3 %vm1346_vm12, %v4187_v36  ;;  %v2973_v15 = vpop.f32.mrf.mxu0  ;;  %v3875_v36 = vsel %vm5738_vm13, %v3870_v17, %v3874_v48  ;;  %v3892_v17 = vrot.slane %v3890_v8, 5  ;;  %v3898_v23 = vrot.slane %v3896_v14, 5 }
 0x1e7   : > { %5319 = vmatmul.msk.bf16.gmra.mxu1 %vm1346_vm12, %v3247_v13  ;;  %v6576_v51 = vadd.f32 %v2973_v15, %v2368_v41  ;;  %v3900_v13 = vshrl.u32 %v6573_v35, 16  ;;  %v3135_v41 = vsel %vm6076_vm2, %v5303_v38, %v3134_v31  ;;  %v4160_v48 = vunpack.c.l.b16 %v3875_v36 }
 0x1e8   : > { %v3221_v33 = vunpack.c.l.b16 %v3135_v41  ;;  %v3893_v8 = vor.u32 %v3892_v17, %v3889_v0 }
 0x1e9   : > { %v2322_v40 = vpop.f32.mrf.mxu3  ;;  %v3902_v15 = vrot.slane %v3900_v13, 4  ;;  %v4188_v7 = vpack.c.b16 %v4161_v26, %v4160_v48  ;;  %v5563_v48 = vld [vmem:[#allocation2 + $0x58] sm:$0xf] }
 0x1ea   : > { %v2369_v58 = vadd.f32 %v2322_v40, %v2083_v47  ;;  %v4466_v47 = vrot.slane %v6542_v1, 5  ;;  %v6590_v40 = vld [vmem:[#allocation2 + $0x5c] sm:$0x1]  ;;  %v3248_v32 = vpack.c.b16 %v3222_v16, %v3221_v33  ;;  %v3894_v44 = vrot.slane %v3893_v8, 4  ;;  %v3039_v33 = vld [vmem:[#allocation2 + $0x54] sm:$0xe] }
 0x1eb   : > { %v2038_v4 = vpop.f32.mrf.mxu2  ;;  %v3906_v36 = vshll.u32 %v6590_v40, 16  ;;  %v3141_v26 = vrot.slane %v5563_v48, 5  ;;  %v3911_v16 = vshrl.u32 %v3736_v21, 16 }
 0x1ec   : > { %v2084_v52 = vadd.f32 %v2038_v4, %v1686_v11  ;;  %v1690_v42 = vpop.f32.mrf.mxu1  ;;  %v5433_v11 = vrot.slane %v4376_v29, 9  ;;  %v4468_v61 = vrot.slane %v4466_v47, 4  ;;  %v3903_v4 = vor.u32 %v3902_v15, %v3898_v23  ;;  %v6604_v29 = vld [vmem:[#allocation2 + $0x64] sm:$0xf] }
 0x1ed   : > { %v1691_v17 = vadd.f32 %v1690_v42, %v6195_v18  ;;  %v5503_v42 = vld [vmem:[#allocation2 + $0x54] sm:$0xff] }
 0x1ee   : > { %v2976_v57 = vpop.f32.mrf.mxu0  ;;  %v4470_v45 = vsel %vm6076_vm2, %v4468_v61, %v4469_v62  ;;  %v3904_v13 = vrot.slane %v3903_v4, 4  ;;  %v3914_v61 = vshll.u32 %v3736_v21, 16  ;;  %v3913_v21 = vrot.slane %v3911_v16, 4 }
 0x1ef   : > { %v6592_v54 = vadd.f32 %v2976_v57, %v2369_v58  ;;  %v4467_v58 = vsel %vm6076_vm2, %v5433_v11, %v4466_v47  ;;  %v4559_v47 = vunpack.c.l.b16 %v4470_v45  ;;  %v3143_v11 = vrot.slane %v3141_v26, 4  ;;  %v4377_v45 = vld [vmem:[#allocation2 + $0x54] sm:$0xe] }
 0x1f0   : > { %5400 = vmatmul.msk.bf16.gmra.mxu2 %vm1346_vm12, %v5502_v60  ;;  %v5562_v60 = vld [vmem:[#allocation2 + $0x5c] sm:$0x1]  ;;  %v4476_v16 = vrot.slane %v6590_v40, 5 }
 0x1f1   : > { %v2324_v31 = vpop.f32.mrf.mxu3  ;;  %5449 = vmatmul.msk.bf16.gmra.mxu0 %vm1346_vm12, %v4585_v28  ;;  %v3144_v41 = vrot.slane %v5562_v60, 5  ;;  %v4558_v28 = vunpack.c.l.b16 %v4467_v58 }
 0x1f2   : > { %v2370_v1 = vadd.f32 %v2324_v31, %v2084_v52  ;;  %v3908_v52 = vrot.slane %v3906_v36, 5  ;;  %v5304_v31 = vrot.slane %v3039_v33, 9 }
 0x1f3   : > { %v2041_v38 = vpop.f32.mrf.mxu2  ;;  %v3145_v4 = vsel %vm6076_vm2, %v3143_v11, %v3144_v41  ;;  %v4586_v36 = vpack.c.b16 %v4559_v47, %v4558_v28 }
 0x1f4   : > { %v2085_v43 = vadd.f32 %v2041_v38, %v1689_v20  ;;  %v1693_v14 = vpop.f32.mrf.mxu1  ;;  %v3909_v62 = vsel %vm5738_vm13, %v3904_v13, %v3908_v52  ;;  %v3920_v38 = vshll.u32 %v6604_v29, 16  ;;  %v3224_v52 = vunpack.c.l.b16 %v3145_v4 }
 0x1f5   : > { %v4163_v58 = vunpack.c.l.b16 %v3909_v62  ;;  %v1694_v47 = vadd.f32 %v1693_v14, %v6205_v50  ;;  %v3739_v14 = vld [vmem:[#allocation2 + $0x6c] sm:$0xf] }
 0x1f6   : > { %5417 = vmatmul.msk.bf16.gmra.mxu3 %vm1346_vm12, %v4188_v7  ;;  %v2978_v59 = vpop.f32.mrf.mxu0  ;;  %v3899_v7 = vsel %vm5738_vm13, %v3894_v44, %v3898_v23  ;;  %v3916_v44 = vrot.slane %v3914_v61, 5  ;;  %v3922_v60 = vrot.slane %v3920_v38, 5 }
 0x1f7   : > { %5320 = vmatmul.msk.bf16.gmra.mxu1 %vm1346_vm12, %v3248_v32  ;;  %v6607_v15 = vadd.f32 %v2978_v59, %v2370_v1  ;;  %v3924_v32 = vshrl.u32 %v6604_v29, 16  ;;  %v3142_v1 = vsel %vm6076_vm2, %v5304_v31, %v3141_v26  ;;  %v4162_v23 = vunpack.c.l.b16 %v3899_v7 }
 0x1f8   : > { %v3223_v13 = vunpack.c.l.b16 %v3142_v1  ;;  %v3917_v61 = vor.u32 %v3916_v44, %v3913_v21 }
 0x1f9   : > { %v2327_v0 = vpop.f32.mrf.mxu3  ;;  %v3926_v59 = vrot.slane %v3924_v32, 4  ;;  %v4189_v33 = vpack.c.b16 %v4163_v58, %v4162_v23  ;;  %v5565_v23 = vld [vmem:[#allocation2 + $0x64] sm:$0xf] }
 0x1fa   : > { %v2371_v57 = vadd.f32 %v2327_v0, %v2085_v43  ;;  %v4473_v43 = vrot.slane %v6573_v35, 5  ;;  %v6621_v0 = vld [vmem:[#allocation2 + $0x68] sm:$0x1]  ;;  %v3249_v11 = vpack.c.b16 %v3224_v52, %v3223_v13  ;;  %v3918_v40 = vrot.slane %v3917_v61, 4  ;;  %v3040_v13 = vld [vmem:[#allocation2 + $0x60] sm:$0xe] }
 0x1fb   : > { %v2043_v20 = vpop.f32.mrf.mxu2  ;;  %v3930_v7 = vshll.u32 %v6621_v0, 16  ;;  %v3148_v58 = vrot.slane %v5565_v23, 5  ;;  %v3935_v52 = vshrl.u32 %v3739_v14, 16 }
 0x1fc   : > { %v2086_v18 = vadd.f32 %v2043_v20, %v1691_v17  ;;  %v1695_v8 = vpop.f32.mrf.mxu1  ;;  %v5434_v17 = vrot.slane %v4377_v45, 9  ;;  %v4475_v41 = vrot.slane %v4473_v43, 4  ;;  %v3927_v20 = vor.u32 %v3926_v59, %v3922_v60  ;;  %v6635_v45 = vld [vmem:[#allocation2 + $0x70] sm:$0xf] }
 0x1fd   : > { %v1696_v44 = vadd.f32 %v1695_v8, %v6224_v25  ;;  %v5504_v8 = vld [vmem:[#allocation2 + $0x60] sm:$0xff] }
 0x1fe   : > { %v2981_v48 = vpop.f32.mrf.mxu0  ;;  %v4477_v50 = vsel %vm6076_vm2, %v4475_v41, %v4476_v16  ;;  %v3928_v32 = vrot.slane %v3927_v20, 4  ;;  %v3938_v41 = vshll.u32 %v3739_v14, 16  ;;  %v3937_v14 = vrot.slane %v3935_v52, 4 }
 0x1ff   : > { %v6623_v28 = vadd.f32 %v2981_v48, %v2371_v57  ;;  %v4474_v57 = vsel %vm6076_vm2, %v5434_v17, %v4473_v43  ;;  %v4561_v43 = vunpack.c.l.b16 %v4477_v50  ;;  %v3150_v17 = vrot.slane %v3148_v58, 4  ;;  %v4378_v50 = vld [vmem:[#allocation2 + $0x60] sm:$0xe] }
 0x200   : > { %5401 = vmatmul.msk.bf16.gmra.mxu2 %vm1346_vm12, %v5503_v42  ;;  %v5564_v42 = vld [vmem:[#allocation2 + $0x68] sm:$0x1] }
 0x201   : > { %v2329_v26 = vpop.f32.mrf.mxu3  ;;  %5450 = vmatmul.msk.bf16.gmra.mxu0 %vm1346_vm12, %v4586_v36  ;;  %v3151_v1 = vrot.slane %v5564_v42, 5  ;;  %v4560_v36 = vunpack.c.l.b16 %v4474_v57 }
 0x202   : > { %v2372_v35 = vadd.f32 %v2329_v26, %v2086_v18  ;;  %v3932_v18 = vrot.slane %v3930_v7, 5  ;;  %v5305_v26 = vrot.slane %v3040_v13, 9  ;;  %v7174_v13 = vld [vmem:[#allocation3_spill] sm:$0xff] }
 0x203   : > { %v2046_v31 = vpop.f32.mrf.mxu2  ;;  %v3152_v20 = vsel %vm6076_vm2, %v3150_v17, %v3151_v1  ;;  %v4587_v7 = vpack.c.b16 %v4561_v43, %v4560_v36  ;;  %v4483_v36 = vrot.slane %v6621_v0, 5 }
 0x204   : > { %v2087_v62 = vadd.f32 %v2046_v31, %v1694_v47  ;;  %v1698_v38 = vpop.f32.mrf.mxu1  ;;  %v3933_v16 = vsel %vm5738_vm13, %v3928_v32, %v3932_v18  ;;  %v3944_v31 = vshll.u32 %v6635_v45, 16  ;;  %v3226_v18 = vunpack.c.l.b16 %v3152_v20 }
 0x205   : > { %v4165_v57 = vunpack.c.l.b16 %v3933_v16  ;;  %v1699_v52 = vadd.f32 %v1698_v38, %v7174_v13  ;;  %v3742_v38 = vld [vmem:[#allocation2 + $0x78] sm:$0xf]  ;;  %v5567_v13 = vld [vmem:[#allocation2 + $0x74] sm:$0x1] }
 0x206   : > { %5418 = vmatmul.msk.bf16.gmra.mxu3 %vm1346_vm12, %v4189_v33  ;;  %v2983_v4 = vpop.f32.mrf.mxu0  ;;  %v3923_v33 = vsel %vm5738_vm13, %v3918_v40, %v3922_v60  ;;  %v3940_v40 = vrot.slane %v3938_v41, 5  ;;  %v3946_v42 = vrot.slane %v3944_v31, 5 }
 0x207   : > { %5321 = vmatmul.msk.bf16.gmra.mxu1 %vm1346_vm12, %v3249_v11  ;;  %v6638_v59 = vadd.f32 %v2983_v4, %v2372_v35  ;;  %v3948_v11 = vshrl.u32 %v6635_v45, 16  ;;  %v3149_v35 = vsel %vm6076_vm2, %v5305_v26, %v3148_v58  ;;  %v4164_v60 = vunpack.c.l.b16 %v3923_v33 }
 0x208   : > { %v3225_v32 = vunpack.c.l.b16 %v3149_v35 }
 0x209   : > { %v2332_v21 = vpop.f32.mrf.mxu3  ;;  %v3950_v4 = vrot.slane %v3948_v11, 4  ;;  %v4190_v26 = vpack.c.b16 %v4165_v57, %v4164_v60  ;;  %v5566_v57 = vld [vmem:[#allocation2 + $0x70] sm:$0xf] }
 0x20a   : > { %v2373_v48 = vadd.f32 %v2332_v21, %v2087_v62  ;;  %v4480_v62 = vrot.slane %v6604_v29, 5  ;;  %v6652_v21 = vld [vmem:[#allocation2 + $0x74] sm:$0x1]  ;;  %v3250_v41 = vpack.c.b16 %v3226_v18, %v3225_v32  ;;  %v3041_v18 = vld [vmem:[#allocation2 + $0x6c] sm:$0xe] }
 0x20b   : > { %v2048_v47 = vpop.f32.mrf.mxu2  ;;  %v3951_v33 = vor.u32 %v3950_v4, %v3946_v42  ;;  %v3954_v16 = vshll.u32 %v6652_v21, 16  ;;  %v3959_v4 = vshrl.u32 %v3742_v38, 16 }
 0x20c   : > { %v2088_v25 = vadd.f32 %v2048_v47, %v1696_v44  ;;  %v1700_v61 = vpop.f32.mrf.mxu1  ;;  %v5435_v44 = vrot.slane %v4378_v50, 9  ;;  %v4482_v1 = vrot.slane %v4480_v62, 4  ;;  %v3941_v47 = vor.u32 %v3940_v40, %v3937_v14  ;;  %v6666_v14 = vld [vmem:[#allocation2 + $0x7c] sm:$0xf] }
 0x20d   : > { %v3956_v35 = vrot.slane %v3954_v16, 5  ;;  %v3155_v50 = vrot.slane %v5566_v57, 5  ;;  %v5505_v16 = vld [vmem:[#allocation2 + $0x6c] sm:$0xff] }
 0x20e   : > { %v2986_v23 = vpop.f32.mrf.mxu0  ;;  %v4484_v0 = vsel %vm6076_vm2, %v4482_v1, %v4483_v36  ;;  %v5306_v1 = vrot.slane %v3041_v18, 9 }
 0x20f   : > { %v6655_v29 = vadd.f32 %v2986_v23, %v2373_v48  ;;  %v3942_v48 = vrot.slane %v3941_v47, 4  ;;  %v4563_v60 = vunpack.c.l.b16 %v4484_v0  ;;  %v3962_v23 = vshll.u32 %v3742_v38, 16 }
 0x210   : > { %5402 = vmatmul.msk.bf16.gmra.mxu2 %vm1346_vm12, %v5504_v8  ;;  %v4481_v8 = vsel %vm6076_vm2, %v5435_v44, %v4480_v62  ;;  %v7175_v62 = vld [vmem:[#allocation4_spill] sm:$0xff]  ;;  %v3157_v36 = vrot.slane %v3155_v50, 4  ;;  %v3968_v47 = vshll.u32 %v6666_v14, 16  ;;  %v4487_v38 = vrot.slane %v6635_v45, 5 }
 0x211   : > { %v2334_v58 = vpop.f32.mrf.mxu3  ;;  %5451 = vmatmul.msk.bf16.gmra.mxu0 %vm1346_vm12, %v4587_v7  ;;  %v4562_v7 = vunpack.c.l.b16 %v4481_v8  ;;  %v1701_v32 = vadd.f32 %v1700_v61, %v7175_v62  ;;  %v3972_v61 = vshrl.u32 %v6666_v14, 16 }
 0x212   : > { %v2374_v43 = vadd.f32 %v2334_v58, %v2088_v25  ;;  %v3952_v25 = vrot.slane %v3951_v33, 4  ;;  %v3970_v62 = vrot.slane %v3968_v47, 5 }
 0x213   : > { %v2051_v17 = vpop.f32.mrf.mxu2  ;;  %v4588_v0 = vpack.c.b16 %v4563_v60, %v4562_v7  ;;  %v4490_v7 = vrot.slane %v6652_v21, 5 }
 0x214   : > { %v2089_v31 = vadd.f32 %v2051_v17, %v1699_v52  ;;  %v1703_v11 = vpop.f32.mrf.mxu1  ;;  %v3158_v52 = vrot.slane %v5567_v13, 5  ;;  %v3947_v17 = vsel %vm5738_vm13, %v3942_v48, %v3946_v42  ;;  %v6683_v13 = vld [vmem:[#allocation2 + $0x80] sm:$0x1] }
 0x215   : > { %v4166_v42 = vunpack.c.l.b16 %v3947_v17 }
 0x216   : > { %5419 = vmatmul.msk.bf16.gmra.mxu3 %vm1346_vm12, %v4190_v26  ;;  %v2988_v20 = vpop.f32.mrf.mxu0  ;;  %v3159_v8 = vsel %vm6076_vm2, %v3157_v36, %v3158_v52  ;;  %v4489_v36 = vrot.slane %v4487_v38, 4  ;;  %v7178_v52 = vld [vmem:[#allocation5_spill] sm:$0xff] }
 0x217   : > { %5322 = vmatmul.msk.bf16.gmra.mxu1 %vm1346_vm12, %v3250_v41  ;;  %v6669_v58 = vadd.f32 %v2988_v20, %v2374_v43  ;;  %v3957_v41 = vsel %vm5738_vm13, %v3952_v25, %v3956_v35  ;;  %v4379_v20 = vld [vmem:[#allocation2 + $0x6c] sm:$0xe]  ;;  %v3961_v25 = vrot.slane %v3959_v4, 4  ;;  %v3964_v35 = vrot.slane %v3962_v23, 5 }
 0x218   : > { %v4167_v48 = vunpack.c.l.b16 %v3957_v41  ;;  %v1704_v4 = vadd.f32 %v1703_v11, %v7178_v52  ;;  %v3745_v11 = vld [vmem:[#allocation2 + $0x84] sm:$0xf] }
 0x219   : > { %v2337_v40 = vpop.f32.mrf.mxu3  ;;  %7176 = vst [vmem:[#allocation3_spill] sm:$0xff] %v6669_v58  ;;  %v3965_v41 = vor.u32 %v3964_v35, %v3961_v25  ;;  %v5568_v25 = vld [vmem:[#allocation2 + $0x7c] sm:$0xf] }
 0x21a   : > { %v2375_v44 = vadd.f32 %v2337_v40, %v2089_v31  ;;  %v3156_v31 = vsel %vm6076_vm2, %v5306_v1, %v3155_v50  ;;  %v3228_v40 = vunpack.c.l.b16 %v3159_v8  ;;  %v5436_v1 = vrot.slane %v4379_v20, 9 }
 0x21b   : > { %v2053_v26 = vpop.f32.mrf.mxu2  ;;  %v3227_v57 = vunpack.c.l.b16 %v3156_v31  ;;  %v4191_v23 = vpack.c.b16 %v4167_v48, %v4166_v42  ;;  %v3162_v35 = vrot.slane %v5568_v25, 5 }
 0x21c   : > { %v2090_v33 = vadd.f32 %v2053_v26, %v1701_v32  ;;  %v1705_v43 = vpop.f32.mrf.mxu1  ;;  %v3974_v32 = vrot.slane %v3972_v61, 4  ;;  %v3978_v61 = vshll.u32 %v6683_v13, 16  ;;  %v4488_v21 = vsel %vm6076_vm2, %v5436_v1, %v4487_v38  ;;  %v7179_v38 = vld [vmem:[#allocation6_spill] sm:$0xff] }
 0x21d   : > { %v3251_v17 = vpack.c.b16 %v3228_v40, %v3227_v57  ;;  %v4564_v48 = vunpack.c.l.b16 %v4488_v21  ;;  %v6699_v57 = vld [vmem:[#allocation2 + $0x88] sm:$0xf]  ;;  %v3986_v1 = vshll.u32 %v3745_v11, 16 }
 0x21e   : > { %v2991_v18 = vpop.f32.mrf.mxu0  ;;  %v3975_v47 = vor.u32 %v3974_v32, %v3970_v62  ;;  %v1706_v32 = vadd.f32 %v1705_v43, %v7179_v38  ;;  %v3996_v43 = vshrl.u32 %v6699_v57, 16 }
 0x21f   : > { %v6686_v45 = vadd.f32 %v2991_v18, %v2375_v44  ;;  %v4491_v44 = vsel %vm6076_vm2, %v4489_v36, %v4490_v7  ;;  %v3042_v18 = vld [vmem:[#allocation2 + $0x78] sm:$0xe]  ;;  %v3988_v25 = vrot.slane %v3986_v1, 5 }
 0x220   : > { %5403 = vmatmul.msk.bf16.gmra.mxu2 %vm1346_vm12, %v5505_v16  ;;  %v3976_v8 = vrot.slane %v3975_v47, 4  ;;  %v4565_v20 = vunpack.c.l.b16 %v4491_v44  ;;  %v5307_v52 = vrot.slane %v3042_v18, 9  ;;  %v5506_v44 = vld [vmem:[#allocation2 + $0x78] sm:$0xff] }
 0x221   : > { %v2339_v50 = vpop.f32.mrf.mxu3  ;;  %7177 = vst [vmem:[#allocation4_spill] sm:$0xff] %v6686_v45  ;;  %5452 = vmatmul.msk.bf16.gmra.mxu0 %vm1346_vm12, %v4588_v0  ;;  %v3980_v0 = vrot.slane %v3978_v61, 5  ;;  %v3992_v61 = vshll.u32 %v6699_v57, 16 }
 0x222   : > { %v2376_v60 = vadd.f32 %v2339_v50, %v2090_v33  ;;  %v3966_v33 = vrot.slane %v3965_v41, 4  ;;  %v3983_v50 = vshrl.u32 %v3745_v11, 16 }
 0x223   : > { %v2056_v26 = vpop.f32.mrf.mxu2  ;;  %v3981_v47 = vsel %vm5738_vm13, %v3976_v8, %v3980_v0  ;;  %v4589_v8 = vpack.c.b16 %v4565_v20, %v4564_v48 }
 0x224   : > { %v2091_v16 = vadd.f32 %v2056_v26, %v1704_v4  ;;  %v6691_v31 = vpop.f32.mrf.mxu1  ;;  %v3164_v4 = vrot.slane %v3162_v35, 4  ;;  %v3971_v41 = vsel %vm5738_vm13, %v3966_v33, %v3970_v62  ;;  %v4494_v62 = vrot.slane %v6666_v14, 5 }
 0x225   : > { %v3985_v33 = vrot.slane %v3983_v50, 4  ;;  %v4168_v0 = vunpack.c.l.b16 %v3971_v41  ;;  %v4497_v14 = vrot.slane %v6683_v13, 5 }
 0x226   : > { %5420 = vmatmul.msk.bf16.gmra.mxu3 %vm1346_vm12, %v4191_v23  ;;  %v2993_v42 = vpop.f32.mrf.mxu0  ;;  %v5569_v23 = vld [vmem:[#allocation2 + $0x80] sm:$0x1] }
 0x227   : > { %5323 = vmatmul.msk.bf16.gmra.mxu1 %vm1346_vm12, %v3251_v17  ;;  %v6702_v36 = vadd.f32 %v2993_v42, %v2376_v60  ;;  %v3165_v26 = vrot.slane %v5569_v23, 5  ;;  %v4380_v42 = vld [vmem:[#allocation2 + $0x78] sm:$0xe]  ;;  %v3998_v23 = vrot.slane %v3996_v43, 4  ;;  %v3989_v50 = vor.u32 %v3988_v25, %v3985_v33 }
 0x228   : > { %v3399_v33 = vadd.f32 %v6691_v31, %v6297_v22 }
 0x229   : > { %v2342_v40 = vpop.f32.mrf.mxu3  ;;  %7180 = vst [vmem:[#allocation5_spill] sm:$0xff] %v6702_v36  ;;  %v3166_v11 = vsel %vm6076_vm2, %v3164_v4, %v3165_v26  ;;  %v4496_v26 = vrot.slane %v4494_v62, 4  ;;  %v5507_v36 = vld [vmem:[#allocation2 + $0x84] sm:$0xff] }
 0x22a   : > { %v2377_v7 = vadd.f32 %v2342_v40, %v2091_v16  ;;  %v3163_v16 = vsel %vm6076_vm2, %v5307_v52, %v3162_v35  ;;  %v4169_v40 = vunpack.c.l.b16 %v3981_v47  ;;  %v3230_v18 = vunpack.c.l.b16 %v3166_v11  ;;  %v6720_v52 = vld [vmem:[#allocation2 + $0x8c] sm:$0x1]  ;;  %v6730_v11 = vld [vmem:[#allocation2 + $0x94] sm:$0xf] }
 0x22b   : > { %v2058_v17 = vpop.f32.mrf.mxu2  ;;  %v3229_v38 = vunpack.c.l.b16 %v3163_v16  ;;  %v5437_v35 = vrot.slane %v4380_v42, 9  ;;  %v4002_v43 = vshll.u32 %v6720_v52, 16 }
 0x22c   : > { %v2092_v21 = vadd.f32 %v2058_v17, %v1706_v32  ;;  %v6710_v60 = vpop.f32.mrf.mxu1  ;;  %v6717_v32 = vrot.slane %v3992_v61, 5  ;;  %v4192_v20 = vpack.c.b16 %v4169_v40, %v4168_v0  ;;  %v4016_v40 = vshll.u32 %v6730_v11, 16 }
 0x22d   : > { %v3252_v47 = vpack.c.b16 %v3230_v18, %v3229_v38  ;;  %v4495_v13 = vsel %vm6076_vm2, %v5437_v35, %v4494_v62  ;;  %v4004_v0 = vrot.slane %v4002_v43, 5  ;;  %v4020_v38 = vshrl.u32 %v6730_v11, 16  ;;  %v5570_v35 = vld [vmem:[#allocation2 + $0x88] sm:$0xf] }
 0x22e   : > { %v2996_v17 = vpop.f32.mrf.mxu0  ;;  %v3999_v61 = vor.u32 %v3998_v23, %v6717_v32  ;;  %v4566_v18 = vunpack.c.l.b16 %v4495_v13 }
 0x22f   : > { %v6723_v1 = vadd.f32 %v2996_v17, %v2377_v7  ;;  %v4498_v7 = vsel %vm6076_vm2, %v4496_v26, %v4497_v14  ;;  %v4501_v17 = vrot.slane %v6699_v57, 5  ;;  %v3043_v14 = vld [vmem:[#allocation2 + $0x84] sm:$0xe] }
 0x230   : > { %5404 = vmatmul.msk.bf16.gmra.mxu2 %vm1346_vm12, %v5506_v44  ;;  %v3748_v44 = vld [vmem:[#allocation2 + $0x90] sm:$0xf]  ;;  %v4567_v23 = vunpack.c.l.b16 %v4498_v7 }
 0x231   : > { %v2344_v4 = vpop.f32.mrf.mxu3  ;;  %7181 = vst [vmem:[#allocation6_spill] sm:$0xff] %v6723_v1  ;;  %5453 = vmatmul.msk.bf16.gmra.mxu0 %vm1346_vm12, %v4589_v8  ;;  %v4007_v42 = vshrl.u32 %v3748_v44, 16  ;;  %v4010_v25 = vshll.u32 %v3748_v44, 16  ;;  %v4000_v8 = vrot.slane %v3999_v61, 4  ;;  %v5308_v61 = vrot.slane %v3043_v14, 9 }
 0x232   : > { %v2378_v48 = vadd.f32 %v2344_v4, %v2092_v21  ;;  %v3990_v21 = vrot.slane %v3989_v50, 4  ;;  %v3169_v4 = vrot.slane %v5570_v35, 5  ;;  %v5571_v44 = vld [vmem:[#allocation2 + $0x8c] sm:$0x1]  ;;  %v4590_v35 = vpack.c.b16 %v4567_v23, %v4566_v18 }
 0x233   : > { %v3606_v41 = vpop.f32.mrf.mxu2  ;;  %v4009_v50 = vrot.slane %v4007_v42, 4  ;;  %v3172_v13 = vrot.slane %v5571_v44, 5  ;;  %v4012_v7 = vrot.slane %v4010_v25, 5  ;;  %v4005_v57 = vsel %vm5738_vm13, %v4000_v8, %v4004_v0  ;;  %v6758_v42 = vld [vmem:[#allocation2 + $0x98] sm:$0x1] }
 0x234   : > { %v6728_v16 = vpop.f32.mrf.mxu1  ;;  %v3686_v26 = vadd.f32 %v3606_v41, %v3399_v33  ;;  %v3995_v31 = vsel %vm5738_vm13, %v3990_v21, %v6717_v32  ;;  %v3171_v43 = vrot.slane %v3169_v4, 4  ;;  %v6750_v41 = vrot.slane %v4016_v40, 5 }
 0x235   : > { %v4022_v33 = vrot.slane %v4020_v38, 4  ;;  %v3400_v8 = vadd.f32 %v6710_v60, %v6312_v10  ;;  %v4170_v0 = vunpack.c.l.b16 %v3995_v31  ;;  %v4171_v38 = vunpack.c.l.b16 %v4005_v57  ;;  %v4382_v57 = vld [vmem:[#allocation2 + $0x90] sm:$0xe] }
 0x236   : > { %5421 = vmatmul.msk.bf16.gmra.mxu3 %vm1346_vm12, %v4192_v20  ;;  %v2998_v62 = vpop.f32.mrf.mxu0  ;;  %v3173_v21 = vsel %vm6076_vm2, %v3171_v43, %v3172_v13  ;;  %v4504_v18 = vrot.slane %v6720_v52, 5  ;;  %v4013_v23 = vor.u32 %v4012_v7, %v4009_v50 }
 0x237   : > { %5324 = vmatmul.msk.bf16.gmra.mxu1 %vm1346_vm12, %v3252_v47  ;;  %v6746_v20 = vadd.f32 %v2998_v62, %v2378_v48  ;;  %v4381_v47 = vld [vmem:[#allocation2 + $0x84] sm:$0xe]  ;;  %v3170_v48 = vsel %vm6076_vm2, %v5308_v61, %v3169_v4  ;;  %v4503_v62 = vrot.slane %v4501_v17, 4  ;;  %v3232_v44 = vunpack.c.l.b16 %v3173_v21 }
 0x238   : > { %v5438_v40 = vrot.slane %v4381_v47, 9  ;;  %v3231_v14 = vunpack.c.l.b16 %v3170_v48  ;;  %v4023_v4 = vor.u32 %v4022_v33, %v6750_v41  ;;  %v4026_v61 = vshll.u32 %v6758_v42, 16  ;;  %v3751_v48 = vld [vmem:[#allocation2 + $0x9c] sm:$0xf] }
 0x239   : > { %v4260_v22 = vpop.f32.mrf.mxu3  ;;  %7182 = vst [vmem:[#allocation11_spill] sm:$0xff] %v6746_v20  ;;  %v4505_v31 = vsel %vm6076_vm2, %v4503_v62, %v4504_v18  ;;  %v4014_v13 = vrot.slane %v4013_v23, 4  ;;  %v4508_v33 = vrot.slane %v6730_v11, 5  ;;  %v3401_v21 = vadd.f32 %v6728_v16, %v6317_v37  ;;  %v5572_v23 = vld [vmem:[#allocation2 + $0x94] sm:$0xf] }
 0x23a   : > { %v4340_v25 = vadd.f32 %v4260_v22, %v3686_v26  ;;  %v4193_v26 = vpack.c.b16 %v4171_v38, %v4170_v0  ;;  %v6775_v22 = vsel %vm6076_vm2, %v5438_v40, %v4501_v17  ;;  %v3253_v47 = vpack.c.b16 %v3232_v44, %v3231_v14  ;;  %v6789_v0 = vld [vmem:[#allocation2 + $0xa0] sm:$0xf] }
 0x23b   : > { %v3608_v1 = vpop.f32.mrf.mxu2  ;;  %v4024_v7 = vrot.slane %v4023_v4, 4  ;;  %v4019_v11 = vsel %vm5738_vm13, %v4014_v13, %v6750_v41  ;;  %v4031_v62 = vshrl.u32 %v3751_v48, 16  ;;  %v4510_v16 = vrot.slane %v4508_v33, 4 }
 0x23c   : > { %v6752_v32 = vpop.f32.mrf.mxu1  ;;  %v3687_v60 = vadd.f32 %v3608_v1, %v3400_v8  ;;  %v5439_v8 = vrot.slane %v4382_v57, 9  ;;  %v4511_v18 = vrot.slane %v6758_v42, 5  ;;  %v3176_v14 = vrot.slane %v5572_v23, 5 }
 0x23d   : > { %v4034_v44 = vshll.u32 %v3751_v48, 16  ;;  %v4044_v41 = vshrl.u32 %v6789_v0, 16  ;;  %v4033_v57 = vrot.slane %v4031_v62, 4  ;;  %v4172_v45 = vunpack.c.l.b16 %v4019_v11 }
 0x23e   : > { %v4658_v43 = vpop.f32.mrf.mxu0 }
 0x23f   : > { %v4738_v10 = vadd.f32 %v4658_v43, %v4340_v25  ;;  %v4569_v25 = vunpack.c.l.b16 %v4505_v31  ;;  %v3178_v31 = vrot.slane %v3176_v14, 4  ;;  %v4036_v23 = vrot.slane %v4034_v44, 5 }
 0x240   : > { %5405 = vmatmul.msk.bf16.gmra.mxu2 %vm1346_vm12, %v5507_v36  ;;  %v4028_v36 = vrot.slane %v4026_v61, 5  ;;  %v4046_v20 = vrot.slane %v4044_v41, 4  ;;  %v4509_v44 = vsel %vm6076_vm2, %v5439_v8, %v4508_v33 }
 0x241   : > { %v4262_v52 = vpop.f32.mrf.mxu3  ;;  %5454 = vmatmul.msk.bf16.gmra.mxu0 %vm1346_vm12, %v4590_v35  ;;  %4770 = vst.msk [vmem:[%s6770_s17] sm:$0xff] %vm1346_vm12, %v4738_v10  ;;  %v4568_v35 = vunpack.c.l.b16 %v6775_v22  ;;  %v4872_v40 = vmul.f32 %v4738_v10, %v4738_v10  ;;  %v4037_v11 = vor.u32 %v4036_v23, %v4033_v57 }
 0x242   : > { %v4341_v17 = vadd.f32 %v4262_v52, %v3687_v60  ;;  %v4029_v38 = vsel %vm5738_vm13, %v4024_v7, %v4028_v36  ;;  %v3044_v60 = vld [vmem:[#allocation2 + $0x90] sm:$0xe]  ;;  %v4040_v52 = vshll.u32 %v6789_v0, 16 }
 0x243   : > { %v3611_v50 = vpop.f32.mrf.mxu2  ;;  %v5309_v22 = vrot.slane %v3044_v60, 9  ;;  %v4904_v42 = vsel %vm1346_vm12, %v4872_v40, 0.0  ;;  %v4173_v62 = vunpack.c.l.b16 %v4029_v38 }
 0x244   : > { %v6782_v1 = vpop.f32.mrf.mxu1  ;;  %v3688_v61 = vadd.f32 %v3611_v50, %v3401_v21 }
 0x246   : > { %5422 = vmatmul.msk.bf16.gmra.mxu3 %vm1346_vm12, %v4193_v26  ;;  %v4660_v37 = vpop.f32.mrf.mxu0  ;;  %v4802_v26 = vsel %vm1346_vm12, %v4738_v10, 0.0  ;;  %v3177_v10 = vsel %vm6076_vm2, %v5309_v22, %v3176_v14  ;;  %v3402_v14 = vadd.f32 %v6752_v32, %v6331_v12  ;;  %v4194_v12 = vpack.c.b16 %v4173_v62, %v4172_v45 }
 0x247   : > { %5325 = vmatmul.msk.bf16.gmra.mxu1 %vm1346_vm12, %v3253_v47  ;;  %v4739_v4 = vadd.f32 %v4660_v37, %v4341_v17  ;;  %v5573_v47 = vld [vmem:[#allocation2 + $0x98] sm:$0x1]  ;;  %v5508_v17 = vld [vmem:[#allocation2 + $0x90] sm:$0xff]  ;;  %v3233_v22 = vunpack.c.l.b16 %v3177_v10 }
 0x248   : > { %v3179_v13 = vrot.slane %v5573_v47, 5  ;;  %v6812_v47 = vrot.slane %v4040_v52, 5 }
 0x249   : > { %v4265_v43 = vpop.f32.mrf.mxu3  ;;  %4771 = vst.msk [vmem:[%s6770_s17 + $0x8] sm:$0xff] %vm1346_vm12, %v4739_v4  ;;  %v4803_v7 = vsel %vm1346_vm12, %v4739_v4, 0.0  ;;  %v4873_v36 = vmul.f32 %v4739_v4, %v4739_v4 }
 0x24a   : > { %v4804_v48 = vadd.f32 %v4803_v7, %v4802_v26  ;;  %v3180_v37 = vsel %vm6076_vm2, %v3178_v31, %v3179_v13  ;;  %v4342_v60 = vadd.f32 %v4265_v43, %v3688_v61  ;;  %v6814_v26 = vld [vmem:[#allocation2 + $0xa4] sm:$0x1]  ;;  %v4591_v7 = vpack.c.b16 %v4569_v25, %v4568_v35 }
 0x24b   : > { %v3613_v50 = vpop.f32.mrf.mxu2  ;;  %v4905_v40 = vsel %vm1346_vm12, %v4873_v36, 0.0  ;;  %v3234_v58 = vunpack.c.l.b16 %v3180_v37  ;;  %v4512_v61 = vsel %vm6076_vm2, %v4510_v16, %v4511_v18  ;;  %v4047_v35 = vor.u32 %v4046_v20, %v6812_v47 }
 0x24c   : > { %v6805_v21 = vpop.f32.mrf.mxu1  ;;  %v4906_v4 = vadd.f32 %v4905_v40, %v4904_v42  ;;  %v3689_v43 = vadd.f32 %v3613_v50, %v3402_v14  ;;  %v4050_v25 = vshll.u32 %v6814_v26, 16  ;;  %v4570_v16 = vunpack.c.l.b16 %v4509_v44  ;;  %v3754_v50 = vld [vmem:[#allocation2 + $0xa8] sm:$0xf] }
 0x24d   : > { %v3254_v8 = vpack.c.b16 %v3234_v58, %v3233_v22  ;;  %v4571_v18 = vunpack.c.l.b16 %v4512_v61  ;;  %v4038_v36 = vrot.slane %v4037_v11, 4  ;;  %v4048_v45 = vrot.slane %v4047_v35, 4  ;;  %v6836_v58 = vld [vmem:[#allocation2 + $0xac] sm:$0xf]  ;;  %v5575_v11 = vld [vmem:[#allocation2 + $0xa4] sm:$0x1] }
 0x24e   : > { %v4663_v31 = vpop.f32.mrf.mxu0  ;;  %v3403_v37 = vadd.f32 %v6782_v1, %v6335_v2  ;;  %v3045_v1 = vld [vmem:[#allocation2 + $0x9c] sm:$0xe] }
 0x24f   : > { %v4740_v38 = vadd.f32 %v4663_v31, %v4342_v60  ;;  %v4592_v40 = vpack.c.b16 %v4571_v18, %v4570_v16  ;;  %v5574_v60 = vld [vmem:[#allocation2 + $0xa0] sm:$0xf]  ;;  %v5310_v44 = vrot.slane %v3045_v1, 9 }
 0x250   : > { %5406 = vmatmul.msk.bf16.gmra.mxu2 %vm1346_vm12, %v5508_v17  ;;  %v4052_v17 = vrot.slane %v4050_v25, 5  ;;  %v3183_v62 = vrot.slane %v5574_v60, 5 }
 0x251   : > { %v4267_v52 = vpop.f32.mrf.mxu3  ;;  %5455 = vmatmul.msk.bf16.gmra.mxu0 %vm1346_vm12, %v4591_v7  ;;  %4772 = vst.msk [vmem:[%s6770_s17 + $0x10] sm:$0xff] %vm1346_vm12, %v4740_v38  ;;  %v4805_v32 = vsel %vm1346_vm12, %v4740_v38, 0.0  ;;  %v4874_v41 = vmul.f32 %v4740_v38, %v4740_v38  ;;  %v4058_v7 = vshll.u32 %v3754_v50, 16  ;;  %v3186_v38 = vrot.slane %v5575_v11, 5 }
 0x252   : > { %v4806_v13 = vadd.f32 %v4805_v32, %v4804_v48  ;;  %v4343_v57 = vadd.f32 %v4267_v52, %v3689_v43  ;;  %v4055_v48 = vshrl.u32 %v3754_v50, 16  ;;  %v4053_v2 = vsel %vm5738_vm13, %v4048_v45, %v4052_v17 }
 0x253   : > { %v3616_v33 = vpop.f32.mrf.mxu2  ;;  %v4907_v20 = vsel %vm1346_vm12, %v4874_v41, 0.0  ;;  %v3185_v61 = vrot.slane %v3183_v62, 4  ;;  %v4064_v43 = vshll.u32 %v6836_v58, 16  ;;  %v3184_v16 = vsel %vm6076_vm2, %v5310_v44, %v3183_v62  ;;  %v6858_v62 = vld [vmem:[#allocation2 + $0xb0] sm:$0x1] }
 0x254   : > { %v6829_v42 = vpop.f32.mrf.mxu1  ;;  %v4908_v10 = vadd.f32 %v4907_v20, %v4906_v4  ;;  %v3690_v22 = vadd.f32 %v3616_v33, %v3403_v37  ;;  %v4043_v4 = vsel %vm5738_vm13, %v4038_v36, %v6812_v47  ;;  %v4057_v32 = vrot.slane %v4055_v48, 4  ;;  %v5509_v33 = vld [vmem:[#allocation2 + $0x9c] sm:$0xff] }
 0x255   : > { %v4068_v47 = vshrl.u32 %v6836_v58, 16  ;;  %v3187_v18 = vsel %vm6076_vm2, %v3185_v61, %v3186_v38  ;;  %v4060_v36 = vrot.slane %v4058_v7, 5  ;;  %v4515_v17 = vrot.slane %v6789_v0, 5 }
 0x256   : > { %5423 = vmatmul.msk.bf16.gmra.mxu3 %vm1346_vm12, %v4194_v12  ;;  %v4665_v23 = vpop.f32.mrf.mxu0  ;;  %v4383_v12 = vld [vmem:[#allocation2 + $0x9c] sm:$0xe]  ;;  %v4175_v48 = vunpack.c.l.b16 %v4053_v2  ;;  %v3235_v60 = vunpack.c.l.b16 %v3184_v16  ;;  %v6860_v1 = vrot.slane %v4064_v43, 5  ;;  %v4074_v11 = vshll.u32 %v6858_v62, 16 }
 0x257   : > { %5326 = vmatmul.msk.bf16.gmra.mxu1 %vm1346_vm12, %v3254_v8  ;;  %v4741_v14 = vadd.f32 %v4665_v23, %v4343_v57  ;;  %v7183_v57 = vld [vmem:[#allocation7_spill] sm:$0xff]  ;;  %v5440_v23 = vrot.slane %v4383_v12, 9  ;;  %v4070_v7 = vrot.slane %v4068_v47, 4  ;;  %v4517_v0 = vrot.slane %v4515_v17, 4  ;;  %v3757_v47 = vld [vmem:[#allocation2 + $0xb4] sm:$0xf] }
 0x258   : > { %v3404_v45 = vadd.f32 %v6805_v21, %v7183_v57 }
 0x259   : > { %v4270_v31 = vpop.f32.mrf.mxu3  ;;  %4773 = vst.msk [vmem:[%s6770_s17 + $0x18] sm:$0xff] %vm1346_vm12, %v4741_v14  ;;  %v4807_v52 = vsel %vm1346_vm12, %v4741_v14, 0.0  ;;  %v4875_v35 = vmul.f32 %v4741_v14, %v4741_v14  ;;  %v3236_v14 = vunpack.c.l.b16 %v3187_v18  ;;  %v6866_v2 = vsel %vm6076_vm2, %v5440_v23, %v4515_v17  ;;  %v5576_v23 = vld [vmem:[#allocation2 + $0xac] sm:$0xf] }
 0x25a   : > { %v4808_v41 = vadd.f32 %v4807_v52, %v4806_v13  ;;  %v4344_v20 = vadd.f32 %v4270_v31, %v3690_v22  ;;  %v4174_v13 = vunpack.c.l.b16 %v4043_v4  ;;  %v4061_v22 = vor.u32 %v4060_v36, %v4057_v32 }
 0x25b   : > { %v3618_v25 = vpop.f32.mrf.mxu2  ;;  %v4909_v50 = vsel %vm1346_vm12, %v4875_v35, 0.0  ;;  %v3255_v35 = vpack.c.b16 %v3236_v14, %v3235_v60  ;;  %v4572_v36 = vunpack.c.l.b16 %v6866_v2  ;;  %v4079_v17 = vshrl.u32 %v3757_v47, 16 }
 0x25c   : > { %v6848_v8 = vpop.f32.mrf.mxu1  ;;  %v4910_v37 = vadd.f32 %v4909_v50, %v4908_v10  ;;  %v3691_v21 = vadd.f32 %v3618_v25, %v3404_v45  ;;  %v4518_v10 = vrot.slane %v6814_v26, 5  ;;  %v4195_v4 = vpack.c.b16 %v4175_v48, %v4174_v13  ;;  %v6881_v50 = vld [vmem:[#allocation2 + $0xb8] sm:$0xf] }
 0x25d   : > { %v4071_v25 = vor.u32 %v4070_v7, %v6860_v1  ;;  %v4062_v32 = vrot.slane %v4061_v22, 4  ;;  %v4076_v45 = vrot.slane %v4074_v11, 5  ;;  %v3190_v60 = vrot.slane %v5576_v23, 5 }
 0x25e   : > { %v4668_v44 = vpop.f32.mrf.mxu0  ;;  %v4082_v14 = vshll.u32 %v3757_v47, 16 }
 0x25f   : > { %v4742_v31 = vadd.f32 %v4668_v44, %v4344_v20  ;;  %v7184_v20 = vld [vmem:[#allocation8_spill] sm:$0xff]  ;;  %v4072_v57 = vrot.slane %v4071_v25, 4  ;;  %v5510_v25 = vld [vmem:[#allocation2 + $0xa8] sm:$0xff] }
 0x260   : > { %5407 = vmatmul.msk.bf16.gmra.mxu2 %vm1346_vm12, %v5509_v33 }
 0x261   : > { %v4272_v61 = vpop.f32.mrf.mxu3  ;;  %5456 = vmatmul.msk.bf16.gmra.mxu0 %vm1346_vm12, %v4592_v40  ;;  %4774 = vst.msk [vmem:[%s6770_s17 + $0x20] sm:$0xff] %vm1346_vm12, %v4742_v31  ;;  %v4809_v38 = vsel %vm1346_vm12, %v4742_v31, 0.0  ;;  %v4876_v43 = vmul.f32 %v4742_v31, %v4742_v31  ;;  %v4519_v40 = vsel %vm6076_vm2, %v4517_v0, %v4518_v10  ;;  %v3046_v31 = vld [vmem:[#allocation2 + $0xa8] sm:$0xe]  ;;  %v3192_v10 = vrot.slane %v3190_v60, 4 }
 0x262   : > { %v4810_v12 = vadd.f32 %v4809_v38, %v4808_v41  ;;  %v4345_v16 = vadd.f32 %v4272_v61, %v3691_v21  ;;  %v3405_v41 = vadd.f32 %v6829_v42, %v7184_v20  ;;  %v4573_v48 = vunpack.c.l.b16 %v4519_v40  ;;  %v4384_v20 = vld [vmem:[#allocation2 + $0xa8] sm:$0xe] }
 0x263   : > { %v3621_v52 = vpop.f32.mrf.mxu2  ;;  %v4911_v33 = vsel %vm1346_vm12, %v4876_v43, 0.0  ;;  %v4088_v42 = vshll.u32 %v6881_v50, 16  ;;  %v4092_v21 = vshrl.u32 %v6881_v50, 16  ;;  %v4522_v61 = vrot.slane %v6836_v58, 5 }
 0x264   : > { %v6874_v26 = vpop.f32.mrf.mxu1  ;;  %v4912_v18 = vadd.f32 %v4911_v33, %v4910_v37  ;;  %v4067_v37 = vsel %vm5738_vm13, %v4062_v32, %v6860_v1  ;;  %v3692_v44 = vadd.f32 %v3621_v52, %v3405_v41  ;;  %v5311_v0 = vrot.slane %v3046_v31, 9 }
 0x265   : > { %v4077_v43 = vsel %vm5738_vm13, %v4072_v57, %v4076_v45  ;;  %v4081_v52 = vrot.slane %v4079_v17, 4  ;;  %v4084_v33 = vrot.slane %v4082_v14, 5  ;;  %v6904_v41 = vrot.slane %v4088_v42, 5  ;;  %v6906_v17 = vld [vmem:[#allocation2 + $0xbc] sm:$0x1] }
 0x266   : > { %5424 = vmatmul.msk.bf16.gmra.mxu3 %vm1346_vm12, %v4195_v4  ;;  %v4670_v13 = vpop.f32.mrf.mxu0  ;;  %v5577_v4 = vld [vmem:[#allocation2 + $0xb0] sm:$0x1]  ;;  %v3191_v58 = vsel %vm6076_vm2, %v5311_v0, %v3190_v60  ;;  %v4176_v45 = vunpack.c.l.b16 %v4067_v37  ;;  %v4593_v23 = vpack.c.b16 %v4573_v48, %v4572_v36  ;;  %v4525_v42 = vrot.slane %v6858_v62, 5 }
 0x267   : > { %5327 = vmatmul.msk.bf16.gmra.mxu1 %vm1346_vm12, %v3255_v35  ;;  %v4743_v7 = vadd.f32 %v4670_v13, %v4345_v16  ;;  %v3193_v2 = vrot.slane %v5577_v4, 5  ;;  %v4094_v13 = vrot.slane %v4092_v21, 4  ;;  %v3237_v31 = vunpack.c.l.b16 %v3191_v58 }
 0x268   : > { %v4085_v21 = vor.u32 %v4084_v33, %v4081_v52  ;;  %v4098_v36 = vshll.u32 %v6906_v17, 16 }
 0x269   : > { %v4275_v22 = vpop.f32.mrf.mxu3  ;;  %4775 = vst.msk [vmem:[%s6770_s17 + $0x28] sm:$0xff] %vm1346_vm12, %v4743_v7  ;;  %v4811_v1 = vsel %vm1346_vm12, %v4743_v7, 0.0  ;;  %v4877_v11 = vmul.f32 %v4743_v7, %v4743_v7  ;;  %v3194_v47 = vsel %vm6076_vm2, %v3192_v10, %v3193_v2  ;;  %v7185_v7 = vld [vmem:[#allocation9_spill] sm:$0xff]  ;;  %v4095_v4 = vor.u32 %v4094_v13, %v6904_v41 }
 0x26a   : > { %v4812_v35 = vadd.f32 %v4811_v1, %v4810_v12  ;;  %v4346_v40 = vadd.f32 %v4275_v22, %v3692_v44  ;;  %v4177_v12 = vunpack.c.l.b16 %v4077_v43  ;;  %v3406_v60 = vadd.f32 %v6848_v8, %v7185_v7  ;;  %v3760_v43 = vld [vmem:[#allocation2 + $0xc0] sm:$0xf] }
 0x26b   : > { %v3623_v38 = vpop.f32.mrf.mxu2  ;;  %v4913_v16 = vsel %vm1346_vm12, %v4877_v11, 0.0  ;;  %v3238_v0 = vunpack.c.l.b16 %v3194_v47  ;;  %v5441_v44 = vrot.slane %v4384_v20, 9  ;;  %v4524_v22 = vrot.slane %v4522_v61, 4  ;;  %v6924_v47 = vld [vmem:[#allocation2 + $0xc4] sm:$0xf] }
 0x26c   : > { %v6897_v32 = vpop.f32.mrf.mxu1  ;;  %v4914_v57 = vadd.f32 %v4913_v16, %v4912_v18  ;;  %v3693_v37 = vadd.f32 %v3623_v38, %v3406_v60  ;;  %v4196_v48 = vpack.c.b16 %v4177_v12, %v4176_v45  ;;  %v4086_v58 = vrot.slane %v4085_v21, 4 }
 0x26d   : > { %v3256_v11 = vpack.c.b16 %v3238_v0, %v3237_v31  ;;  %v4523_v38 = vsel %vm6076_vm2, %v5441_v44, %v4522_v61  ;;  %v4526_v52 = vsel %vm6076_vm2, %v4524_v22, %v4525_v42  ;;  %v4100_v20 = vrot.slane %v4098_v36, 5  ;;  %v5578_v31 = vld [vmem:[#allocation2 + $0xb8] sm:$0xf]  ;;  %v3047_v42 = vld [vmem:[#allocation2 + $0xb4] sm:$0xe] }
 0x26e   : > { %v4673_v14 = vpop.f32.mrf.mxu0  ;;  %v3407_v61 = vadd.f32 %v6874_v26, %v6384_v53  ;;  %v4106_v45 = vshll.u32 %v3760_v43, 16  ;;  %v4112_v12 = vshll.u32 %v6924_v47, 16  ;;  %v4574_v7 = vunpack.c.l.b16 %v4523_v38 }
 0x26f   : > { %v4744_v18 = vadd.f32 %v4673_v14, %v4346_v40  ;;  %v4096_v40 = vrot.slane %v4095_v4, 4  ;;  %v4575_v60 = vunpack.c.l.b16 %v4526_v52  ;;  %v3197_v0 = vrot.slane %v5578_v31, 5 }
 0x270   : > { %5408 = vmatmul.msk.bf16.gmra.mxu2 %vm1346_vm12, %v5510_v25  ;;  %v4116_v14 = vshrl.u32 %v6924_v47, 16  ;;  %v4091_v53 = vsel %vm5738_vm13, %v4086_v58, %v6904_v41  ;;  %v5312_v21 = vrot.slane %v3047_v42, 9 }
 0x271   : > { %v4277_v10 = vpop.f32.mrf.mxu3  ;;  %5457 = vmatmul.msk.bf16.gmra.mxu0 %vm1346_vm12, %v4593_v23  ;;  %4776 = vst.msk [vmem:[%s6770_s17 + $0x30] sm:$0xff] %vm1346_vm12, %v4744_v18  ;;  %v4813_v8 = vsel %vm1346_vm12, %v4744_v18, 0.0  ;;  %v4878_v2 = vmul.f32 %v4744_v18, %v4744_v18  ;;  %v4101_v26 = vsel %vm5738_vm13, %v4096_v40, %v4100_v20  ;;  %v3199_v18 = vrot.slane %v3197_v0, 4 }
 0x272   : > { %v4814_v62 = vadd.f32 %v4813_v8, %v4812_v35  ;;  %v4347_v16 = vadd.f32 %v4277_v10, %v3693_v37  ;;  %v4103_v35 = vshrl.u32 %v3760_v43, 16  ;;  %v5579_v37 = vld [vmem:[#allocation2 + $0xbc] sm:$0x1]  ;;  %v5511_v43 = vld [vmem:[#allocation2 + $0xb4] sm:$0xff]  ;;  %v3198_v52 = vsel %vm6076_vm2, %v5312_v21, %v3197_v0 }
 0x273   : > { %v3626_v1 = vpop.f32.mrf.mxu2  ;;  %v4915_v33 = vsel %vm1346_vm12, %v4878_v2, 0.0  ;;  %v3200_v10 = vrot.slane %v5579_v37, 5  ;;  %v4385_v2 = vld [vmem:[#allocation2 + $0xb4] sm:$0xe]  ;;  %v4594_v20 = vpack.c.b16 %v4575_v60, %v4574_v7  ;;  %v4529_v0 = vrot.slane %v6881_v50, 5 }
 0x274   : > { %v6922_v25 = vpop.f32.mrf.mxu1  ;;  %v4916_v13 = vadd.f32 %v4915_v33, %v4914_v57  ;;  %v3694_v44 = vadd.f32 %v3626_v1, %v3407_v61  ;;  %v4105_v4 = vrot.slane %v4103_v35, 4  ;;  %v4108_v1 = vrot.slane %v4106_v45, 5  ;;  %v6949_v33 = vld [vmem:[#allocation2 + $0xc8] sm:$0x1] }
 0x275   : > { %v3201_v58 = vsel %vm6076_vm2, %v3199_v18, %v3200_v10  ;;  %v3408_v61 = vadd.f32 %v6897_v32, %v6405_v27  ;;  %v5442_v31 = vrot.slane %v4385_v2, 9  ;;  %v3239_v42 = vunpack.c.l.b16 %v3198_v52 }
 0x276   : > { %5425 = vmatmul.msk.bf16.gmra.mxu3 %vm1346_vm12, %v4196_v48  ;;  %v4675_v23 = vpop.f32.mrf.mxu0  ;;  %v3240_v21 = vunpack.c.l.b16 %v3201_v58  ;;  %v4122_v18 = vshll.u32 %v6949_v33, 16  ;;  %v4109_v7 = vor.u32 %v4108_v1, %v4105_v4  ;;  %v4531_v37 = vrot.slane %v4529_v0, 4 }
 0x277   : > { %5328 = vmatmul.msk.bf16.gmra.mxu1 %vm1346_vm12, %v3256_v11  ;;  %v4745_v57 = vadd.f32 %v4675_v23, %v4347_v16  ;;  %v6941_v11 = vrot.slane %v4112_v12, 5  ;;  %v4118_v16 = vrot.slane %v4116_v14, 4  ;;  %v4178_v12 = vunpack.c.l.b16 %v4091_v53 }
 0x278   : > { %v4179_v23 = vunpack.c.l.b16 %v4101_v26  ;;  %v6964_v53 = vsel %vm6076_vm2, %v5442_v31, %v4529_v0  ;;  %v4532_v26 = vrot.slane %v6906_v17, 5  ;;  %v3257_v4 = vpack.c.b16 %v3240_v21, %v3239_v42  ;;  %v3048_v31 = vld [vmem:[#allocation2 + $0xc0] sm:$0xe] }
 0x279   : > { %v4280_v22 = vpop.f32.mrf.mxu3  ;;  %4777 = vst.msk [vmem:[%s6770_s17 + $0x38] sm:$0xff] %vm1346_vm12, %v4745_v57  ;;  %v4815_v36 = vsel %vm1346_vm12, %v4745_v57, 0.0  ;;  %v4879_v48 = vmul.f32 %v4745_v57, %v4745_v57  ;;  %v388_v57 = vld [vmem:[#allocation2 + $0xd4] sm:$0x1]  ;;  %v4119_v60 = vor.u32 %v4118_v16, %v6941_v11  ;;  %v4124_v1 = vrot.slane %v4122_v18, 5 }
 0x27a   : > { %v4816_v41 = vadd.f32 %v4815_v36, %v4814_v62  ;;  %v4348_v35 = vadd.f32 %v4280_v22, %v3694_v44  ;;  %v332_v62 = vld [vmem:[#allocation2 + $0xcc] sm:$0x1]  ;;  %v389_v32 = vsel %vm5645_vm6, 0, %v388_v57  ;;  %v4197_v22 = vpack.c.b16 %v4179_v23, %v4178_v12  ;;  %v6977_v16 = vld [vmem:[#allocation2 + $0xd0] sm:$0xf] }
 0x27b   : > { %v3628_v8 = vpop.f32.mrf.mxu2  ;;  %v4917_v40 = vsel %vm1346_vm12, %v4879_v48, 0.0  ;;  %v333_v27 = vsel %vm5637_vm3, 0, %v332_v62  ;;  %390 = vst [vmem:[#allocation2 + $0xd4] sm:$0x1] %v389_v32  ;;  %v4120_v2 = vrot.slane %v4119_v60, 4  ;;  %v3409_v58 = vadd.f32 %v6922_v25, %v6410_v56 }
 0x27c   : > { %v6943_v38 = vpop.f32.mrf.mxu1  ;;  %v4918_v45 = vadd.f32 %v4917_v40, %v4916_v13  ;;  %v3695_v44 = vadd.f32 %v3628_v8, %v3408_v61  ;;  %334 = vst [vmem:[#allocation2 + $0xcc] sm:$0x1] %v333_v27  ;;  %v4110_v8 = vrot.slane %v4109_v7, 4  ;;  %v4533_v40 = vsel %vm6076_vm2, %v4531_v37, %v4532_v26  ;;  %v5580_v25 = vld [vmem:[#allocation2 + $0xc4] sm:$0xf] }
 0x27d   : > { %v4125_v56 = vsel %vm5738_vm13, %v4120_v2, %v4124_v1  ;;  %v3204_v62 = vrot.slane %v5580_v25, 5  ;;  %v4136_v0 = vshll.u32 %v6977_v16, 16  ;;  %v4140_v42 = vshrl.u32 %v6977_v16, 16  ;;  %v4386_v1 = vld [vmem:[#allocation2 + $0xc0] sm:$0xe] }
 0x27e   : > { %v4678_v14 = vpop.f32.mrf.mxu0  ;;  %v4115_v61 = vsel %vm5738_vm13, %v4110_v8, %v6941_v11  ;;  %v5313_v21 = vrot.slane %v3048_v31, 9  ;;  %v4577_v32 = vunpack.c.l.b16 %v4533_v40  ;;  %v4543_v55 = vrot.slane %v6977_v16, 5 }
 0x27f   : > { %v4746_v13 = vadd.f32 %v4678_v14, %v4348_v35  ;;  %v3206_v18 = vrot.slane %v3204_v62, 4  ;;  %v5581_v14 = vld [vmem:[#allocation2 + $0xc8] sm:$0x1]  ;;  %v4138_v8 = vrot.slane %v4136_v0, 5 }
 0x280   : > { %5409 = vmatmul.msk.bf16.gmra.mxu2 %vm1346_vm12, %v5511_v43  ;;  %v3207_v7 = vrot.slane %v5581_v14, 5 }
 0x281   : > { %v4282_v50 = vpop.f32.mrf.mxu3  ;;  %5458 = vmatmul.msk.bf16.gmra.mxu0 %vm1346_vm12, %v4594_v20  ;;  %4778 = vst.msk [vmem:[%s6770_s17 + $0x40] sm:$0xff] %vm1346_vm12, %v4746_v13  ;;  %v4817_v3 = vsel %vm1346_vm12, %v4746_v13, 0.0  ;;  %v4880_v6 = vmul.f32 %v4746_v13, %v4746_v13 }
 0x282   : > { %v4818_v36 = vadd.f32 %v4817_v3, %v4816_v41  ;;  %v4349_v17 = vadd.f32 %v4282_v50, %v3695_v44  ;;  %v4576_v41 = vunpack.c.l.b16 %v6964_v53  ;;  %v4180_v44 = vunpack.c.l.b16 %v4115_v61 }
 0x283   : > { %v3631_v10 = vpop.f32.mrf.mxu2  ;;  %v4919_v43 = vsel %vm1346_vm12, %v4880_v6, 0.0  ;;  %v4536_v53 = vrot.slane %v6924_v47, 5  ;;  %v3205_v3 = vsel %vm6076_vm2, %v5313_v21, %v3204_v62  ;;  %v3208_v6 = vsel %vm6076_vm2, %v3206_v18, %v3207_v7  ;;  %v7186_v47 = vld [vmem:[#allocation10_spill] sm:$0xff] }
 0x284   : > { %v6971_v48 = vpop.f32.mrf.mxu1  ;;  %v4920_v52 = vadd.f32 %v4919_v43, %v4918_v45  ;;  %v3696_v35 = vadd.f32 %v3631_v10, %v3409_v58  ;;  %v3763_v45 = vld [vmem:[#allocation2 + $0xcc] sm:$0xf]  ;;  %v4595_v58 = vpack.c.b16 %v4577_v32, %v4576_v41  ;;  %v3410_v40 = vadd.f32 %v6943_v38, %v7186_v47  ;;  %v7004_v62 = vld [vmem:[#allocation2 + $0xd4] sm:$0x1] }
 0x285   : > { %v4127_v57 = vshrl.u32 %v3763_v45, 16  ;;  %v4130_v11 = vshll.u32 %v3763_v45, 16  ;;  %v3242_v61 = vunpack.c.l.b16 %v3208_v6  ;;  %v4538_v31 = vrot.slane %v4536_v53, 4 }
 0x286   : > { %5426 = vmatmul.msk.bf16.gmra.mxu3 %vm1346_vm12, %v4197_v22  ;;  %v4680_v20 = vpop.f32.mrf.mxu0  ;;  %v5512_v22 = vld [vmem:[#allocation2 + $0xc0] sm:$0xff]  ;;  %v4146_v18 = vshll.u32 %v7004_v62, 16 }
 0x287   : > { %5329 = vmatmul.msk.bf16.gmra.mxu1 %vm1346_vm12, %v3257_v4  ;;  %v4747_v12 = vadd.f32 %v4680_v20, %v4349_v17  ;;  %v4181_v4 = vunpack.c.l.b16 %v4125_v56  ;;  %v4129_v43 = vrot.slane %v4127_v57, 4  ;;  %v4142_v17 = vrot.slane %v4140_v42, 4 }
 0x288   : > { %v3241_v20 = vunpack.c.l.b16 %v3205_v3 }
 0x289   : > { %v4285_v23 = vpop.f32.mrf.mxu3  ;;  %4779 = vst.msk [vmem:[%s6770_s17 + $0x48] sm:$0xff] %vm1346_vm12, %v4747_v12  ;;  %v4819_v60 = vsel %vm1346_vm12, %v4747_v12, 0.0  ;;  %v4881_v27 = vmul.f32 %v4747_v12, %v4747_v12  ;;  %v4539_v12 = vrot.slane %v6949_v33, 5  ;;  %v4143_v57 = vor.u32 %v4142_v17, %v4138_v8  ;;  %v5513_v17 = vld [vmem:[#allocation2 + $0xcc] sm:$0xff] }
 0x28a   : > { %v4820_v50 = vadd.f32 %v4819_v60, %v4818_v36  ;;  %v4350_v10 = vadd.f32 %v4285_v23, %v3696_v35  ;;  %v4132_v36 = vrot.slane %v4130_v11, 5  ;;  %v4198_v23 = vpack.c.b16 %v4181_v4, %v4180_v44 }
 0x28b   : > { %v3633_v13 = vpop.f32.mrf.mxu2  ;;  %v4921_v37 = vsel %vm1346_vm12, %v4881_v27, 0.0  ;;  %v3258_v21 = vpack.c.b16 %v3242_v61, %v3241_v20  ;;  %v4540_v32 = vsel %vm6076_vm2, %v4538_v31, %v4539_v12 }
 0x28c   : > { %v6994_v26 = vpop.f32.mrf.mxu1  ;;  %v4922_v2 = vadd.f32 %v4921_v37, %v4920_v52  ;;  %v3697_v56 = vadd.f32 %v3633_v13, %v3410_v40  ;;  %v5443_v52 = vrot.slane %v4386_v1, 9  ;;  %v4133_v41 = vor.u32 %v4132_v36, %v4129_v43 }
 0x28d   : > { %v3411_v13 = vadd.f32 %v6971_v48, %v6438_v9 }
 0x28e   : > { %v4683_v25 = vpop.f32.mrf.mxu0  ;;  %v4537_v27 = vsel %vm6076_vm2, %v5443_v52, %v4536_v53  ;;  %v4134_v44 = vrot.slane %v4133_v41, 4 }
 0x28f   : > { %v4748_v35 = vadd.f32 %v4683_v25, %v4350_v10  ;;  %v4578_v4 = vunpack.c.l.b16 %v4537_v27 }
 0x290   : > { %5410 = vmatmul.msk.bf16.gmra.mxu2 %vm1346_vm12, %v5512_v22  ;;  %v4148_v22 = vrot.slane %v4146_v18, 5  ;;  %v4139_v9 = vsel %vm5738_vm13, %v4134_v44, %v4138_v8 }
 0x291   : > { %v4287_v45 = vpop.f32.mrf.mxu3  ;;  %5459 = vmatmul.msk.bf16.gmra.mxu0 %vm1346_vm12, %v4595_v58  ;;  %4780 = vst.msk [vmem:[%s6770_s17 + $0x50] sm:$0xff] %vm1346_vm12, %v4748_v35  ;;  %v4821_v38 = vsel %vm1346_vm12, %v4748_v35, 0.0  ;;  %v4882_v0 = vmul.f32 %v4748_v35, %v4748_v35  ;;  %v4182_v61 = vunpack.c.l.b16 %v4139_v9 }
 0x292   : > { %v4822_v14 = vadd.f32 %v4821_v38, %v4820_v50  ;;  %v4351_v33 = vadd.f32 %v4287_v45, %v3697_v56  ;;  %v4144_v50 = vrot.slane %v4143_v57, 4  ;;  %v3412_v56 = vadd.f32 %v6994_v26, %v6452_v34 }
 0x293   : > { %v3636_v42 = vpop.f32.mrf.mxu2  ;;  %v4923_v11 = vsel %vm1346_vm12, %v4882_v0, 0.0  ;;  %v4545_v26 = vrot.slane %v4543_v55, 4 }
 0x294   : > { %v3354_v7 = vpop.f32.mrf.mxu1  ;;  %v4924_v60 = vadd.f32 %v4923_v11, %v4922_v2  ;;  %v3698_v37 = vadd.f32 %v3636_v42, %v3411_v13  ;;  %v4579_v2 = vunpack.c.l.b16 %v4540_v32  ;;  %v4149_v48 = vsel %vm5738_vm13, %v4144_v50, %v4148_v22 }
 0x295   : > { %v4183_v25 = vunpack.c.l.b16 %v4149_v48  ;;  %v4546_v42 = vrot.slane %v7004_v62, 5  ;;  %v3413_v11 = vadd.f32 %v3354_v7, %v6468_v39 }
 0x296   : > { %5427 = vmatmul.msk.bf16.gmra.mxu3 %vm1346_vm12, %v4198_v23  ;;  %v4685_v3 = vpop.f32.mrf.mxu0  ;;  %v4596_v35 = vpack.c.b16 %v4579_v2, %v4578_v4  ;;  %v4387_v23 = vld [vmem:[#allocation2 + $0xcc] sm:$0xe] }
 0x297   : > { %5330 = vmatmul.msk.bf16.gmra.mxu1 %vm1346_vm12, %v3258_v21  ;;  %v4749_v6 = vadd.f32 %v4685_v3, %v4351_v33  ;;  %v4199_v31 = vpack.c.b16 %v4183_v25, %v4182_v61  ;;  %v5444_v34 = vrot.slane %v4387_v23, 9  ;;  %v4547_v27 = vsel %vm6076_vm2, %v4545_v26, %v4546_v42 }
 0x298   : > { %v4581_v3 = vunpack.c.l.b16 %v4547_v27 }
 0x299   : > { %v4290_v10 = vpop.f32.mrf.mxu3  ;;  %4781 = vst.msk [vmem:[%s6770_s17 + $0x58] sm:$0xff] %vm1346_vm12, %v4749_v6  ;;  %v4823_v53 = vsel %vm1346_vm12, %v4749_v6, 0.0  ;;  %v4883_v1 = vmul.f32 %v4749_v6, %v4749_v6 }
 0x29a   : > { %v4824_v36 = vadd.f32 %v4823_v53, %v4822_v14  ;;  %v4352_v40 = vadd.f32 %v4290_v10, %v3698_v37 }
 0x29b   : > { %v3638_v43 = vpop.f32.mrf.mxu2  ;;  %v4925_v47 = vsel %vm1346_vm12, %v4883_v1, 0.0 }
 0x29c   : > { %v3356_v58 = vpop.f32.mrf.mxu1  ;;  %v4926_v20 = vadd.f32 %v4925_v47, %v4924_v60  ;;  %v3699_v52 = vadd.f32 %v3638_v43, %v3412_v56  ;;  %v4544_v60 = vsel %vm6076_vm2, %v5444_v34, %v4543_v55 }
 0x29d   : > { %v4580_v22 = vunpack.c.l.b16 %v4544_v60  ;;  %v3414_v2 = vadd.f32 %v3356_v58, %v6483_v19 }
 0x29e   : > { %v4688_v45 = vpop.f32.mrf.mxu0 }
 0x29f   : > { %v4750_v8 = vadd.f32 %v4688_v45, %v4352_v40  ;;  %v4597_v63 = vpack.c.b16 %v4581_v3, %v4580_v22 }
 0x2a0   : > { %5411 = vmatmul.msk.bf16.gmra.mxu2 %vm1346_vm12, %v5513_v17 }
 0x2a1   : > { %v4292_v12 = vpop.f32.mrf.mxu3  ;;  %5460 = vmatmul.msk.bf16.gmra.mxu0 %vm1346_vm12, %v4596_v35  ;;  %4782 = vst.msk [vmem:[%s6770_s17 + $0x60] sm:$0xff] %vm1346_vm12, %v4750_v8  ;;  %v4825_v41 = vsel %vm1346_vm12, %v4750_v8, 0.0  ;;  %v4884_v57 = vmul.f32 %v4750_v8, %v4750_v8 }
 0x2a2   : > { %v4826_v0 = vadd.f32 %v4825_v41, %v4824_v36  ;;  %v4353_v18 = vadd.f32 %v4292_v12, %v3699_v52 }
 0x2a3   : > { %v3641_v38 = vpop.f32.mrf.mxu2  ;;  %v4927_v21 = vsel %vm1346_vm12, %v4884_v57, 0.0 }
 0x2a4   : > { %v3359_v16 = vpop.f32.mrf.mxu1  ;;  %v4928_v14 = vadd.f32 %v4927_v21, %v4926_v20  ;;  %v3700_v13 = vadd.f32 %v3641_v38, %v3413_v11 }
 0x2a5   : > { %v3415_v19 = vadd.f32 %v3359_v16, %v6499_v30 }
 0x2a6   : > { %5428 = vmatmul.msk.bf16.gmra.mxu3 %vm1346_vm12, %v4199_v31  ;;  %v4690_v33 = vpop.f32.mrf.mxu0 }
 0x2a7   : > { %v4751_v32 = vadd.f32 %v4690_v33, %v4353_v18 }
 0x2a9   : > { %v4295_v44 = vpop.f32.mrf.mxu3  ;;  %4783 = vst.msk [vmem:[%s6770_s17 + $0x68] sm:$0xff] %vm1346_vm12, %v4751_v32  ;;  %v4827_v62 = vsel %vm1346_vm12, %v4751_v32, 0.0  ;;  %v4885_v50 = vmul.f32 %v4751_v32, %v4751_v32 }
 0x2aa   : > { %v4828_v39 = vadd.f32 %v4827_v62, %v4826_v0  ;;  %v4354_v10 = vadd.f32 %v4295_v44, %v3700_v13 }
 0x2ab   : > { %v3643_v6 = vpop.f32.mrf.mxu2  ;;  %v4929_v37 = vsel %vm1346_vm12, %v4885_v50, 0.0 }
 0x2ac   : > { %v3361_v7 = vpop.f32.mrf.mxu1  ;;  %v4930_v4 = vadd.f32 %v4929_v37, %v4928_v14  ;;  %v3701_v43 = vadd.f32 %v3643_v6, %v3414_v2 }
 0x2ad   : > { %v3416_v38 = vadd.f32 %v3361_v7, %v6514_v5 }
 0x2ae   : > { %v4693_v53 = vpop.f32.mrf.mxu0 }
 0x2af   : > { %v4752_v1 = vadd.f32 %v4693_v53, %v4354_v10 }
 0x2b1   : > { %v4297_v9 = vpop.f32.mrf.mxu3  ;;  %5461 = vmatmul.msk.bf16.gmra.mxu0 %vm1346_vm12, %v4597_v63  ;;  %4784 = vst.msk [vmem:[%s6770_s17 + $0x70] sm:$0xff] %vm1346_vm12, %v4752_v1  ;;  %v4829_v48 = vsel %vm1346_vm12, %v4752_v1, 0.0  ;;  %v4886_v36 = vmul.f32 %v4752_v1, %v4752_v1 }
 0x2b2   : > { %v4830_v47 = vadd.f32 %v4829_v48, %v4828_v39  ;;  %v4355_v61 = vadd.f32 %v4297_v9, %v3701_v43 }
 0x2b3   : > { %v3646_v17 = vpop.f32.mrf.mxu2  ;;  %v4931_v20 = vsel %vm1346_vm12, %v4886_v36, 0.0 }
 0x2b4   : > { %v3364_v40 = vpop.f32.mrf.mxu1  ;;  %v4932_v25 = vadd.f32 %v4931_v20, %v4930_v4  ;;  %v3702_v56 = vadd.f32 %v3646_v17, %v3415_v19 }
 0x2b5   : > { %v3417_v27 = vadd.f32 %v3364_v40, %v6530_v46 }
 0x2b6   : > { %v4695_v58 = vpop.f32.mrf.mxu0 }
 0x2b7   : > { %v4753_v35 = vadd.f32 %v4695_v58, %v4355_v61 }
 0x2b9   : > { %v4300_v45 = vpop.f32.mrf.mxu3  ;;  %4785 = vst.msk [vmem:[%s6770_s17 + $0x78] sm:$0xff] %vm1346_vm12, %v4753_v35  ;;  %v4831_v55 = vsel %vm1346_vm12, %v4753_v35, 0.0  ;;  %v4887_v8 = vmul.f32 %v4753_v35, %v4753_v35 }
 0x2ba   : > { %v4832_v12 = vadd.f32 %v4831_v55, %v4830_v47  ;;  %v4356_v41 = vadd.f32 %v4300_v45, %v3702_v56 }
 0x2bb   : > { %v3648_v52 = vpop.f32.mrf.mxu2  ;;  %v4933_v31 = vsel %vm1346_vm12, %v4887_v8, 0.0 }
 0x2bc   : > { %v3366_v23 = vpop.f32.mrf.mxu1  ;;  %v4934_v57 = vadd.f32 %v4933_v31, %v4932_v25  ;;  %v3703_v34 = vadd.f32 %v3648_v52, %v3416_v38 }
 0x2bd   : > { %v3418_v10 = vadd.f32 %v3366_v23, %v6545_v49 }
 0x2be   : > { %v4698_v30 = vpop.f32.mrf.mxu0 }
 0x2bf   : > { %v4754_v0 = vadd.f32 %v4698_v30, %v4356_v41 }
 0x2c1   : > { %v4302_v26 = vpop.f32.mrf.mxu3  ;;  %4786 = vst.msk [vmem:[%s6770_s17 + $0x80] sm:$0xff] %vm1346_vm12, %v4754_v0  ;;  %v4833_v42 = vsel %vm1346_vm12, %v4754_v0, 0.0  ;;  %v4888_v16 = vmul.f32 %v4754_v0, %v4754_v0 }
 0x2c2   : > { %v4834_v18 = vadd.f32 %v4833_v42, %v4832_v12  ;;  %v4357_v33 = vadd.f32 %v4302_v26, %v3703_v34 }
 0x2c3   : > { %v3651_v21 = vpop.f32.mrf.mxu2  ;;  %v4935_v11 = vsel %vm1346_vm12, %v4888_v16, 0.0 }
 0x2c4   : > { %v3369_v14 = vpop.f32.mrf.mxu1  ;;  %v4936_v60 = vadd.f32 %v4935_v11, %v4934_v57  ;;  %v3704_v13 = vadd.f32 %v3651_v21, %v3417_v27 }
 0x2c5   : > { %v3419_v40 = vadd.f32 %v3369_v14, %v6561_v24 }
 0x2c6   : > { %v4700_v5 = vpop.f32.mrf.mxu0 }
 0x2c7   : > { %v4755_v32 = vadd.f32 %v4700_v5, %v4357_v33 }
 0x2c9   : > { %v4305_v44 = vpop.f32.mrf.mxu3  ;;  %4787 = vst.msk [vmem:[%s6770_s17 + $0x88] sm:$0xff] %vm1346_vm12, %v4755_v32  ;;  %v4835_v62 = vsel %vm1346_vm12, %v4755_v32, 0.0  ;;  %v4889_v50 = vmul.f32 %v4755_v32, %v4755_v32 }
 0x2ca   : > { %v4836_v3 = vadd.f32 %v4835_v62, %v4834_v18  ;;  %v4358_v7 = vadd.f32 %v4305_v44, %v3704_v13 }
 0x2cb   : > { %v3653_v22 = vpop.f32.mrf.mxu2  ;;  %v4937_v39 = vsel %vm1346_vm12, %v4889_v50, 0.0 }
 0x2cc   : > { %v3371_v6 = vpop.f32.mrf.mxu1  ;;  %v4938_v37 = vadd.f32 %v4937_v39, %v4936_v60  ;;  %v3705_v63 = vadd.f32 %v3653_v22, %v3418_v10 }
 0x2cd   : > { %v3420_v12 = vadd.f32 %v3371_v6, %v6576_v51 }
 0x2ce   : > { %v4703_v46 = vpop.f32.mrf.mxu0 }
 0x2cf   : > { %v4756_v4 = vadd.f32 %v4703_v46, %v4358_v7 }
 0x2d1   : > { %v4307_v2 = vpop.f32.mrf.mxu3  ;;  %4788 = vst.msk [vmem:[%s6770_s17 + $0x90] sm:$0xff] %vm1346_vm12, %v4756_v4  ;;  %v4837_v53 = vsel %vm1346_vm12, %v4756_v4, 0.0  ;;  %v4890_v1 = vmul.f32 %v4756_v4, %v4756_v4 }
 0x2d2   : > { %v4838_v9 = vadd.f32 %v4837_v53, %v4836_v3  ;;  %v4359_v17 = vadd.f32 %v4307_v2, %v3705_v63 }
 0x2d3   : > { %v3656_v43 = vpop.f32.mrf.mxu2  ;;  %v4939_v36 = vsel %vm1346_vm12, %v4890_v1, 0.0 }
 0x2d4   : > { %v3374_v48 = vpop.f32.mrf.mxu1  ;;  %v4940_v47 = vadd.f32 %v4939_v36, %v4938_v37  ;;  %v3706_v61 = vadd.f32 %v3656_v43, %v3419_v40 }
 0x2d5   : > { %v3421_v21 = vadd.f32 %v3374_v48, %v6592_v54 }
 0x2d6   : > { %v4705_v49 = vpop.f32.mrf.mxu0 }
 0x2d7   : > { %v4757_v20 = vadd.f32 %v4705_v49, %v4359_v17 }
 0x2d9   : > { %v4310_v25 = vpop.f32.mrf.mxu3  ;;  %4789 = vst.msk [vmem:[%s6770_s17 + $0x98] sm:$0xff] %vm1346_vm12, %v4757_v20  ;;  %v4839_v19 = vsel %vm1346_vm12, %v4757_v20, 0.0  ;;  %v4891_v58 = vmul.f32 %v4757_v20, %v4757_v20 }
 0x2da   : > { %v4840_v56 = vadd.f32 %v4839_v19, %v4838_v9  ;;  %v4360_v8 = vadd.f32 %v4310_v25, %v3706_v61 }
 0x2db   : > { %v3658_v35 = vpop.f32.mrf.mxu2  ;;  %v4941_v55 = vsel %vm1346_vm12, %v4891_v58, 0.0 }
 0x2dc   : > { %v3376_v45 = vpop.f32.mrf.mxu1  ;;  %v4942_v52 = vadd.f32 %v4941_v55, %v4940_v47  ;;  %v3707_v31 = vadd.f32 %v3658_v35, %v3420_v12 }
 0x2dd   : > { %v3422_v62 = vadd.f32 %v3376_v45, %v6607_v15 }
 0x2de   : > { %v4708_v24 = vpop.f32.mrf.mxu0 }
 0x2df   : > { %v4758_v23 = vadd.f32 %v4708_v24, %v4360_v8 }
 0x2e1   : > { %v4312_v41 = vpop.f32.mrf.mxu3  ;;  %4790 = vst.msk [vmem:[%s6770_s17 + $0xa0] sm:$0xff] %vm1346_vm12, %v4758_v23  ;;  %v4841_v57 = vsel %vm1346_vm12, %v4758_v23, 0.0  ;;  %v4892_v38 = vmul.f32 %v4758_v23, %v4758_v23 }
 0x2e2   : > { %v4842_v0 = vadd.f32 %v4841_v57, %v4840_v56  ;;  %v4361_v26 = vadd.f32 %v4312_v41, %v3707_v31 }
 0x2e3   : > { %v3661_v30 = vpop.f32.mrf.mxu2  ;;  %v4943_v34 = vsel %vm1346_vm12, %v4892_v38, 0.0 }
 0x2e4   : > { %v4944_v42 = vadd.f32 %v4943_v34, %v4942_v52  ;;  %v3379_v16 = vpop.f32.mrf.mxu1  ;;  %v3708_v14 = vadd.f32 %v3661_v30, %v3421_v21 }
 0x2e5   : > { %v3423_v2 = vadd.f32 %v3379_v16, %v6623_v28 }
 0x2e6   : > { %v4710_v51 = vpop.f32.mrf.mxu0 }
 0x2e7   : > { %v4759_v18 = vadd.f32 %v4710_v51, %v4361_v26  ;;  %v7187_v51 = vld [vmem:[#allocation3_spill] sm:$0xff] }
 0x2e9   : > { %v4315_v11 = vpop.f32.mrf.mxu3  ;;  %4791 = vst.msk [vmem:[%s6770_s17 + $0xa8] sm:$0xff] %vm1346_vm12, %v4759_v18  ;;  %v4843_v33 = vsel %vm1346_vm12, %v4759_v18, 0.0  ;;  %v4893_v60 = vmul.f32 %v4759_v18, %v4759_v18 }
 0x2ea   : > { %v4844_v5 = vadd.f32 %v4843_v33, %v4842_v0  ;;  %v4362_v13 = vadd.f32 %v4315_v11, %v3708_v14 }
 0x2eb   : > { %v3663_v27 = vpop.f32.mrf.mxu2  ;;  %v4945_v32 = vsel %vm1346_vm12, %v4893_v60, 0.0 }
 0x2ec   : > { %v4946_v44 = vadd.f32 %v4945_v32, %v4944_v42  ;;  %v3381_v54 = vpop.f32.mrf.mxu1  ;;  %v3709_v3 = vadd.f32 %v3663_v27, %v3422_v62 }
 0x2ed   : > { %v3424_v61 = vadd.f32 %v3381_v54, %v6638_v59 }
 0x2ee   : > { %v4713_v50 = vpop.f32.mrf.mxu0 }
 0x2ef   : > { %v4760_v22 = vadd.f32 %v4713_v50, %v4362_v13  ;;  %v7188_v50 = vld [vmem:[#allocation4_spill] sm:$0xff] }
 0x2f1   : > { %v4317_v6 = vpop.f32.mrf.mxu3  ;;  %4792 = vst.msk [vmem:[%s6770_s17 + $0xb0] sm:$0xff] %vm1346_vm12, %v4760_v22  ;;  %v4845_v39 = vsel %vm1346_vm12, %v4760_v22, 0.0  ;;  %v4894_v7 = vmul.f32 %v4760_v22, %v4760_v22 }
 0x2f2   : > { %v4846_v10 = vadd.f32 %v4845_v39, %v4844_v5  ;;  %v4363_v4 = vadd.f32 %v4317_v6, %v3709_v3 }
 0x2f3   : > { %v3666_v37 = vpop.f32.mrf.mxu2  ;;  %v4947_v46 = vsel %vm1346_vm12, %v4894_v7, 0.0 }
 0x2f4   : > { %v4948_v63 = vadd.f32 %v4947_v46, %v4946_v44  ;;  %v3710_v1 = vadd.f32 %v3666_v37, %v3423_v2  ;;  %v3384_v9 = vpop.f32.mrf.mxu1 }
 0x2f5   : > { %v3425_v23 = vadd.f32 %v3384_v9, %v6655_v29 }
 0x2f6   : > { %v4715_v15 = vpop.f32.mrf.mxu0 }
 0x2f7   : > { %v4761_v53 = vadd.f32 %v4715_v15, %v4363_v4 }
 0x2f9   : > { %v4320_v43 = vpop.f32.mrf.mxu3  ;;  %4793 = vst.msk [vmem:[%s6770_s17 + $0xb8] sm:$0xff] %vm1346_vm12, %v4761_v53  ;;  %v4847_v48 = vsel %vm1346_vm12, %v4761_v53, 0.0  ;;  %v4895_v36 = vmul.f32 %v4761_v53, %v4761_v53  ;;  %v7189_v53 = vld [vmem:[#allocation5_spill] sm:$0xff] }
 0x2fa   : > { %v4848_v47 = vadd.f32 %v4847_v48, %v4846_v10  ;;  %v4364_v49 = vadd.f32 %v4320_v43, %v3710_v1 }
 0x2fb   : > { %v3668_v17 = vpop.f32.mrf.mxu2  ;;  %v4949_v40 = vsel %vm1346_vm12, %v4895_v36, 0.0 }
 0x2fc   : > { %v4950_v20 = vadd.f32 %v4949_v40, %v4948_v63  ;;  %v3711_v19 = vadd.f32 %v3668_v17, %v3424_v61  ;;  %v3386_v8 = vpop.f32.mrf.mxu1 }
 0x2fd   : > { %v3426_v18 = vadd.f32 %v3386_v8, %v7187_v51 }
 0x2fe   : > { %v4718_v28 = vpop.f32.mrf.mxu0 }
 0x2ff   : > { %v4762_v25 = vadd.f32 %v4718_v28, %v4364_v49 }
 0x301   : > { %v4322_v58 = vpop.f32.mrf.mxu3  ;;  %4794 = vst.msk [vmem:[%s6770_s17 + $0xc0] sm:$0xff] %vm1346_vm12, %v4762_v25  ;;  %v4849_v35 = vsel %vm1346_vm12, %v4762_v25, 0.0  ;;  %v4896_v56 = vmul.f32 %v4762_v25, %v4762_v25 }
 0x302   : > { %v4850_v55 = vadd.f32 %v4849_v35, %v4848_v47  ;;  %v4365_v12 = vadd.f32 %v4322_v58, %v3711_v19  ;;  %v7190_v19 = vld [vmem:[#allocation6_spill] sm:$0xff] }
 0x303   : > { %v3671_v45 = vpop.f32.mrf.mxu2  ;;  %v4951_v52 = vsel %vm1346_vm12, %v4896_v56, 0.0 }
 0x304   : > { %v4952_v24 = vadd.f32 %v4951_v52, %v4950_v20  ;;  %v3712_v41 = vadd.f32 %v3671_v45, %v3425_v23  ;;  %v3389_v21 = vpop.f32.mrf.mxu1 }
 0x305   : > { %v3427_v54 = vadd.f32 %v3389_v21, %v7188_v50 }
 0x306   : > { %v4720_v59 = vpop.f32.mrf.mxu0 }
 0x307   : > { %v4763_v31 = vadd.f32 %v4720_v59, %v4365_v12 }
 0x309   : > { %v4325_v57 = vpop.f32.mrf.mxu3  ;;  %4795 = vst.msk [vmem:[%s6770_s17 + $0xc8] sm:$0xff] %vm1346_vm12, %v4763_v31  ;;  %v4851_v38 = vsel %vm1346_vm12, %v4763_v31, 0.0  ;;  %v4897_v30 = vmul.f32 %v4763_v31, %v4763_v31 }
 0x30a   : > { %v4852_v34 = vadd.f32 %v4851_v38, %v4850_v55  ;;  %v4366_v42 = vadd.f32 %v4325_v57, %v3712_v41  ;;  %v7191_v57 = vld [vmem:[#allocation11_spill] sm:$0xff] }
 0x30b   : > { %v3673_v0 = vpop.f32.mrf.mxu2  ;;  %v4953_v26 = vsel %vm1346_vm12, %v4897_v30, 0.0 }
 0x30c   : > { %v4954_v16 = vadd.f32 %v4953_v26, %v4952_v24  ;;  %v3713_v11 = vadd.f32 %v3673_v0, %v3426_v18  ;;  %v3391_v3 = vpop.f32.mrf.mxu1 }
 0x30d   : > { %v3428_v1 = vadd.f32 %v3391_v3, %v7189_v53 }
 0x30e   : > { %v4723_v29 = vpop.f32.mrf.mxu0 }
 0x30f   : > { %v4764_v14 = vadd.f32 %v4723_v29, %v4366_v42 }
 0x311   : > { %v4327_v33 = vpop.f32.mrf.mxu3  ;;  %4796 = vst.msk [vmem:[%s6770_s17 + $0xd0] sm:$0xff] %vm1346_vm12, %v4764_v14  ;;  %v4853_v60 = vsel %vm1346_vm12, %v4764_v14, 0.0  ;;  %v4898_v27 = vmul.f32 %v4764_v14, %v4764_v14 }
 0x312   : > { %v4854_v32 = vadd.f32 %v4853_v60, %v4852_v34  ;;  %v4367_v44 = vadd.f32 %v4327_v33, %v3713_v11 }
 0x313   : > { %v3676_v5 = vpop.f32.mrf.mxu2  ;;  %v4955_v13 = vsel %vm1346_vm12, %v4898_v27, 0.0 }
 0x314   : > { %v4956_v62 = vadd.f32 %v4955_v13, %v4954_v16  ;;  %v3714_v39 = vadd.f32 %v3676_v5, %v3427_v54  ;;  %v3394_v17 = vpop.f32.mrf.mxu1 }
 0x315   : > { %v3429_v58 = vadd.f32 %v3394_v17, %v7190_v19 }
 0x316   : > { %v4725_v22 = vpop.f32.mrf.mxu0 }
 0x317   : > { %v4765_v6 = vadd.f32 %v4725_v22, %v4367_v44 }
 0x319   : > { %v4330_v7 = vpop.f32.mrf.mxu3  ;;  %4797 = vst.msk [vmem:[%s6770_s17 + $0xd8] sm:$0xff] %vm1346_vm12, %v4765_v6  ;;  %v4855_v37 = vsel %vm1346_vm12, %v4765_v6, 0.0  ;;  %v4899_v10 = vmul.f32 %v4765_v6, %v4765_v6 }
 0x31a   : > { %v4856_v4 = vadd.f32 %v4855_v37, %v4854_v32  ;;  %v4368_v2 = vadd.f32 %v4330_v7, %v3714_v39 }
 0x31b   : > { %v3678_v46 = vpop.f32.mrf.mxu2  ;;  %v4957_v63 = vsel %vm1346_vm12, %v4899_v10, 0.0 }
 0x31c   : > { %v4958_v15 = vadd.f32 %v4957_v63, %v4956_v62  ;;  %v3715_v48 = vadd.f32 %v3678_v46, %v3428_v1  ;;  %v3396_v24 = vpop.f32.mrf.mxu1 }
 0x31d   : > { %v3430_v38 = vadd.f32 %v3396_v24, %v7191_v57 }
 0x31e   : > { %v4728_v43 = vpop.f32.mrf.mxu0 }
 0x31f   : > { %v4766_v9 = vadd.f32 %v4728_v43, %v4368_v2 }
 0x321   : > { %v4332_v36 = vpop.f32.mrf.mxu3  ;;  %4798 = vst.msk [vmem:[%s6770_s17 + $0xe0] sm:$0xff] %vm1346_vm12, %v4766_v9  ;;  %v4857_v47 = vsel %vm1346_vm12, %v4766_v9, 0.0  ;;  %v4900_v40 = vmul.f32 %v4766_v9, %v4766_v9 }
 0x322   : > { %v4858_v49 = vadd.f32 %v4857_v47, %v4856_v4  ;;  %v4369_v28 = vadd.f32 %v4332_v36, %v3715_v48 }
 0x323   : > { %v3681_v20 = vpop.f32.mrf.mxu2  ;;  %v4959_v61 = vsel %vm1346_vm12, %v4900_v40, 0.0 }
 0x324   : > { %v4960_v25 = vadd.f32 %v4959_v61, %v4958_v15  ;;  %v3716_v45 = vadd.f32 %v3681_v20, %v3429_v58 }
 0x326   : > { %v4730_v35 = vpop.f32.mrf.mxu0 }
 0x327   : > { %v4767_v56 = vadd.f32 %v4730_v35, %v4369_v28 }
 0x329   : > { %v4335_v55 = vpop.f32.mrf.mxu3  ;;  %4799 = vst.msk [vmem:[%s6770_s17 + $0xe8] sm:$0xff] %vm1346_vm12, %v4767_v56  ;;  %v4859_v8 = vsel %vm1346_vm12, %v4767_v56, 0.0  ;;  %v4901_v52 = vmul.f32 %v4767_v56, %v4767_v56 }
 0x32a   : > { %v4860_v12 = vadd.f32 %v4859_v8, %v4858_v49  ;;  %v4370_v59 = vadd.f32 %v4335_v55, %v3716_v45 }
 0x32b   : > { %v4961_v23 = vsel %vm1346_vm12, %v4901_v52, 0.0  ;;  %v3683_v41 = vpop.f32.mrf.mxu2 }
 0x32c   : > { %v4962_v31 = vadd.f32 %v4961_v23, %v4960_v25  ;;  %v3717_v34 = vadd.f32 %v3683_v41, %v3430_v38 }
 0x32e   : > { %v4733_v30 = vpop.f32.mrf.mxu0 }
 0x32f   : > { %v4768_v0 = vadd.f32 %v4733_v30, %v4370_v59 }
 0x331   : > { %4800 = vst.msk [vmem:[%s6770_s17 + $0xf0] sm:$0xff] %vm1346_vm12, %v4768_v0  ;;  %v4861_v26 = vsel %vm1346_vm12, %v4768_v0, 0.0  ;;  %v4902_v42 = vmul.f32 %v4768_v0, %v4768_v0  ;;  %v4337_v21 = vpop.f32.mrf.mxu3 }
 0x332   : > { %v4862_v16 = vadd.f32 %v4861_v26, %v4860_v12  ;;  %v4371_v18 = vadd.f32 %v4337_v21, %v3717_v34 }
 0x333   : > { %v4963_v51 = vsel %vm1346_vm12, %v4902_v42, 0.0 }
 0x334   : > { %v4964_v29 = vadd.f32 %v4963_v51, %v4962_v31 }
 0x336   : > { %v4735_v14 = vpop.f32.mrf.mxu0 }
 0x337   : > { %v4769_v11 = vadd.f32 %v4735_v14, %v4371_v18 }
 0x339   : > { %4801 = vst.msk [vmem:[%s6770_s17 + $0xf8] sm:$0xff] %vm1346_vm12, %v4769_v11  ;;  %v4863_v33 = vsel %vm1346_vm12, %v4769_v11, 0.0  ;;  %v4903_v60 = vmul.f32 %v4769_v11, %v4769_v11 }
 0x33a   : > { %v4864_v27 = vadd.f32 %v4863_v33, %v4862_v16 }
 0x33b   : > { %v4965_v5 = vsel %vm1346_vm12, %v4903_v60, 0.0 }
 0x33c   : > { %v4865_v32 = vrot.slane %v4864_v27, 4  ;;  %v4966_v13 = vadd.f32 %v4965_v5, %v4964_v29 }
 0x33e   : > { %v4866_v44 = vadd.f32 %v4865_v32, %v4864_v27  ;;  %v4967_v62 = vrot.slane %v4966_v13, 4 }
 0x340   : > { %v4867_v50 = vrot.slane %v4866_v44, 2  ;;  %v4968_v54 = vadd.f32 %v4967_v62, %v4966_v13 }
 0x342   : > { %v4868_v22 = vadd.f32 %v4867_v50, %v4866_v44  ;;  %v4969_v3 = vrot.slane %v4968_v54, 2 }
 0x344   : > { %v4869_v6 = vrot.slane %v4868_v22, 1  ;;  %v4970_v39 = vadd.f32 %v4969_v3, %v4968_v54 }
 0x346   : > { %v4870_v7 = vadd.f32 %v4869_v6, %v4868_v22  ;;  %v4971_v37 = vrot.slane %v4970_v39, 1 }
 0x348   : > { %4871 = vst.msk [vmem:[%s235_s21] sm:$0x1] %vm272_vm1, %v4870_v7  ;;  %v4972_v10 = vadd.f32 %v4971_v37, %v4970_v39 }
 0x34a   : > { %4973 = vst.msk [vmem:[%s235_s21 + $0x1] sm:$0x1] %vm272_vm1, %v4972_v10 }
 0x34b PF: > { %s16_s18 = sadd.s32 1, %s5588_s18  }
 0x34c   : > { %p13_p4 = scmp.ge.s32.totalorder %s16_s18, 4  }
 0x34e   :  { %15 = sbr.rel (!%p13_p4) target bundleno = 1 (0x1), region = 89 }

</bundles_post_ra>
